<compile_context>
chip_gen: v7x
topology: tpu7x:2x2x1
jax: 0.10.0
libtpu: 0.0.40
codegen_flags: <defaults>
</compile_context>

<pallas_src>
import functools

import numpy as np
import jax
import jax.numpy as jnp
from jax.experimental import pallas as pl
from jax.experimental.pallas import tpu as pltpu


# MXU operand dtype: bf16 gives ~2x MXU rate on v6e/v7x and half the weight
# DMA bytes.  Accumulation is f32 (preferred_element_type); statistics and
# elementwise paths stay f32.
MXU_DTYPE = jnp.bfloat16

LANE = 128


def _rup(n, m=LANE):
    return ((n + m - 1) // m) * m


def _wdot(a, b):
    # Weight matmuls: operands cast to MXU_DTYPE, f32 accumulation.
    return jnp.dot(a.astype(MXU_DTYPE), b.astype(MXU_DTYPE),
                   preferred_element_type=jnp.float32)


def _shift_rows(x, off):
    """y[t] = x[t + off], zero outside [0, T) (== Conv1d zero padding)."""
    if off == 0:
        return x
    t = x.shape[0]
    z = jnp.zeros((abs(off),) + x.shape[1:], x.dtype)
    if off > 0:
        return jnp.concatenate([x[off:], z], axis=0)
    return jnp.concatenate([z, x[:t + off]], axis=0)


# -----------------------------------------------------------------------------
# Pallas kernels (one grid step == one sequence)
# -----------------------------------------------------------------------------
def _entry_kernel(x_ref, w_ref, p_ref, o_ref, *, k):
    """Entry Conv1d(k, pad=k//2) + ReLU + bn1 (eval affine)."""
    x = x_ref[...]                                   # (T, F) f32
    w = w_ref[...]                                   # (k, F, CP) bf16
    p = p_ref[...]                                   # (3, 1, CP) f32
    half = k // 2
    acc = _wdot(_shift_rows(x, -half), w[0])
    for j in range(1, k):
        acc = acc + _wdot(_shift_rows(x, j - half), w[j])
    o_ref[...] = jnp.maximum(acc + p[0], 0.0) * p[1] + p[2]


def _bottle2neck_kernel(*refs, n_in, c_logical, dilation):
    """Res2Net Bottle2neck (scale=8, k=3 dilated) + SE + residual.

    refs = (x_0..x_{n_in-1},                       block input = sum of these
            c1_w, c1_p, br_w, br_p, c3_w, c3_p,
            se_w1, se_b1, se_w2, se_b2, o_ref)
    Everything stays VMEM-resident for the tile; no intermediate touches HBM.
    """
    xs = refs[:n_in]
    (c1w_ref, c1p_ref, brw_ref, brp_ref, c3w_ref, c3p_ref,
     sew1_ref, seb1_ref, sew2_ref, seb2_ref, o_ref) = refs[n_in:]

    # residual add(s) folded in: block input is the sum of the passed refs
    x = xs[0][...]
    for r in xs[1:]:
        x = x + r[...]
    residual = x                                     # (T, CP)

    # conv1 (1x1) -> ReLU -> bn1 (eval-mode affine)
    p1 = c1p_ref[...]
    out = _wdot(x, c1w_ref[...]) + p1[0]
    out = jnp.maximum(out, 0.0) * p1[1] + p1[2]

    width = c_logical // 8
    d = dilation
    br_w = brw_ref[...]                              # (7, 3, W, W) bf16
    br_p = brp_ref[...]                              # (7, 3, 1, W) f32
    c3_w = c3w_ref[...]                              # (8, W, CP)  bf16

    # 7 sequential dilated-k3 branches.  Each tap is a shifted copy of the
    # branch input (static slices + zero rows, no (M,M) shift matmuls), so the
    # conv is three summed (T,W)@(W,W) matmuls.  conv3 (1x1) is folded in as
    # an accumulation over the 8 Res2Net splits (no 8-way lane concat).
    acc3 = None
    sp = None
    for i in range(7):
        spx_i = out[:, i * width:(i + 1) * width]
        sp = spx_i if i == 0 else sp + spx_i
        y = (_wdot(_shift_rows(sp, -d), br_w[i, 0])
             + _wdot(sp, br_w[i, 1])
             + _wdot(_shift_rows(sp, d), br_w[i, 2]) + br_p[i, 0])
        y = jnp.maximum(y, 0.0) * br_p[i, 1] + br_p[i, 2]
        sp = y
        term = _wdot(y, c3_w[i])
        acc3 = term if acc3 is None else acc3 + term
    acc3 = acc3 + _wdot(out[:, 7 * width:8 * width], c3_w[7])   # pass-through

    # conv3 bias -> ReLU -> bn3
    p3 = c3p_ref[...]
    out = jnp.maximum(acc3 + p3[0], 0.0) * p3[1] + p3[2]

    # SE block: per-sequence mean over time (this tile is one whole sequence)
    s = jnp.mean(out, axis=0, keepdims=True)                      # (1, CP)
    z = jnp.maximum(_wdot(s, sew1_ref[...]) + seb1_ref[...], 0.0)
    g = jax.nn.sigmoid(_wdot(z, sew2_ref[...]) + seb2_ref[...])   # (1, CP)
    o_ref[...] = out * g + residual


def _tail_kernel(x1_ref, x2_ref, x3_ref,
                 w4a_ref, w4b_ref, w4c_ref, b4_ref,
                 wx_ref, wmu_ref, wsd_ref, att1_p_ref,
                 wa2_ref, ba2_ref, bn5_p_ref,
                 fc6_w_ref, fc6_b_ref, fc_w_ref, fc_b_ref,
                 logits_ref, emb_ref, *, t):
    """layer4 + global-context attention + attentive stats pooling + bn5
    + fc6(+bn6 folded) + classifier, fused; one sequence per grid step."""
    # layer4 (1x1 conv over concat(x1,x2,x3)) + ReLU; weight pre-split per
    # input so the channel concat is never materialized.
    x = (_wdot(x1_ref[...], w4a_ref[...]) + _wdot(x2_ref[...], w4b_ref[...])
         + _wdot(x3_ref[...], w4c_ref[...]) + b4_ref[...])
    x = jnp.maximum(x, 0.0)                                       # (T, 3C/2)

    # global context: mean / unbiased std over time (clamped var), f32
    mean = jnp.mean(x, axis=0, keepdims=True)                     # (1, 3C/2)
    cent = x - mean
    var = jnp.sum(cent * cent, axis=0, keepdims=True) * (1.0 / (t - 1))
    sd = jnp.sqrt(jnp.maximum(var, 1e-4))

    # attention MLP; att_w1 split into [W_x; W_mu; W_sd]: mu/sd terms are
    # single-row matmuls broadcast over time, the (T, 9C/2) concat never exists
    p1 = att1_p_ref[...]
    h = (_wdot(x, wx_ref[...]) + _wdot(mean, wmu_ref[...])
         + _wdot(sd, wsd_ref[...]) + p1[0])
    h = jnp.tanh(jnp.maximum(h, 0.0) * p1[1] + p1[2])
    a = _wdot(h, wa2_ref[...]) + ba2_ref[...]                     # (T, 3C/2)

    # softmax over time (max-subtracted), reciprocal on the EUP slot
    a = a - jnp.max(a, axis=0, keepdims=True)
    ea = jnp.exp(a)
    w = ea * pl.reciprocal(jnp.sum(ea, axis=0, keepdims=True), approx=True)

    # attentive statistics pooling + bn5 (folded affine)
    mu = jnp.sum(x * w, axis=0, keepdims=True)                    # (1, 3C/2)
    ex2 = jnp.sum(x * x * w, axis=0, keepdims=True)
    sg = jnp.sqrt(jnp.maximum(ex2 - mu * mu, 1e-4))
    p5 = bn5_p_ref[...]                                           # (2, 1, 3C)
    emb = jnp.concatenate([mu, sg], axis=-1) * p5[0] + p5[1]      # (1, 3C)
    emb_ref[...] = emb

    # fc6 (+ folded bn6) and classifier
    h6 = _wdot(emb, fc6_w_ref[...]) + fc6_b_ref[...]
    logits_ref[...] = _wdot(h6, fc_w_ref[...]) + fc_b_ref[...]


# -----------------------------------------------------------------------------
# Weight packing (channel dims zero-padded to lane-dense multiples of 128)
# -----------------------------------------------------------------------------
def _pad_axis(a, n, axis):
    pad = n - a.shape[axis]
    if pad <= 0:
        return a
    widths = [(0, 0)] * a.ndim
    widths[axis] = (0, pad)
    return jnp.pad(a, widths)


def conv1x1_mat(w, rows=None, cols=None):
    # torch Conv1d 1x1 weight (Cout, Cin, 1) -> (Cin[->rows], Cout[->cols])
    m = jnp.transpose(w[:, :, 0], (1, 0))
    if rows is not None:
        m = _pad_axis(m, rows, 0)
    if cols is not None:
        m = _pad_axis(m, cols, 1)
    return m.astype(MXU_DTYPE)


def conv_taps(w, cols=None):
    # torch Conv1d weight (Cout, Cin, K) -> (K, Cin, Cout[->cols]);
    # tap j multiplies x[t + j - K//2].
    taps = jnp.transpose(w, (2, 1, 0))
    if cols is not None:
        taps = _pad_axis(taps, cols, 2)
    return taps.astype(MXU_DTYPE)


def pack_bsh(b, s, sh, n=None):
    # (bias, bn_scale, bn_shift) -> (3, 1, N[->n]) f32; pad lanes are zeros.
    p = jnp.stack([b, s, sh], axis=0)[:, None, :]
    if n is not None:
        p = _pad_axis(p, n, 2)
    return p.astype(jnp.float32)


def _const_spec(arr):
    # Full-array block with a constant index_map: stays VMEM-resident across
    # grid steps (no re-DMA), only activation tiles advance with the grid.
    nd = arr.ndim
    return pl.BlockSpec(arr.shape, lambda b, _nd=nd: (0,) * _nd)


_PARALLEL = pltpu.CompilerParams(dimension_semantics=("parallel",))


# -----------------------------------------------------------------------------
# pallas_call wrappers
# -----------------------------------------------------------------------------
def entry_conv(x_btf, w_taps, p, batch, t, f, cp):
    act_in = pl.BlockSpec((None, t, f), lambda b: (b, 0, 0))
    act_out = pl.BlockSpec((None, t, cp), lambda b: (b, 0, 0))
    return pl.pallas_call(
        functools.partial(_entry_kernel, k=int(w_taps.shape[0])),
        grid=(batch,),
        in_specs=[act_in, _const_spec(w_taps), _const_spec(p)],
        out_specs=act_out,
        out_shape=jax.ShapeDtypeStruct((batch, t, cp), jnp.float32),
        compiler_params=_PARALLEL,
    )(x_btf, w_taps, p)


def bottle2neck(xs, p, dilation, batch, t, c, cp):
    """xs: list of (B, T, CP) arrays; block input (= residual) is their sum."""
    width = c // 8
    c1_w = conv1x1_mat(p["c1_w"], rows=cp, cols=cp)
    c1_p = pack_bsh(p["c1_b"], p["bn1_s"], p["bn1_sh"], cp)
    br_w = jnp.stack([jnp.transpose(w, (2, 1, 0)) for w in p["br_w"]]
                     ).astype(MXU_DTYPE)                           # (7,3,W,W)
    br_p = jnp.stack(
        [jnp.stack([p["br_b"][i], p["br_bn_s"][i], p["br_bn_sh"][i]])
         for i in range(7)])[:, :, None, :].astype(jnp.float32)    # (7,3,1,W)
    c3_w = conv1x1_mat(p["c3_w"], cols=cp).reshape(8, width, cp)   # (8,W,CP)
    c3_p = pack_bsh(p["c3_b"], p["bn3_s"], p["bn3_sh"], cp)
    se_w1 = conv1x1_mat(p["se_w1"], rows=cp)                       # (CP,128)
    se_b1 = p["se_b1"].reshape(1, -1).astype(jnp.float32)
    se_w2 = conv1x1_mat(p["se_w2"], cols=cp)                       # (128,CP)
    se_b2 = _pad_axis(p["se_b2"].reshape(1, -1), cp, 1).astype(jnp.float32)

    consts = [c1_w, c1_p, br_w, br_p, c3_w, c3_p, se_w1, se_b1, se_w2, se_b2]
    act = pl.BlockSpec((None, t, cp), lambda b: (b, 0, 0))
    kernel = functools.partial(_bottle2neck_kernel, n_in=len(xs),
                               c_logical=c, dilation=dilation)
    return pl.pallas_call(
        kernel,
        grid=(batch,),
        in_specs=[act] * len(xs) + [_const_spec(a) for a in consts],
        out_specs=act,
        out_shape=jax.ShapeDtypeStruct((batch, t, cp), jnp.float32),
        compiler_params=_PARALLEL,
    )(*xs, *consts)


def tail_head(x1, x2, x3, p, batch, t, c, cp):
    c96 = c * 3 // 2
    w4 = jnp.transpose(p["l4_w"][:, :, 0], (1, 0))                 # (3C, 3C/2)
    w4a = _pad_axis(w4[:c], cp, 0).astype(MXU_DTYPE)
    w4b = _pad_axis(w4[c:2 * c], cp, 0).astype(MXU_DTYPE)
    w4c = _pad_axis(w4[2 * c:], cp, 0).astype(MXU_DTYPE)
    b4 = p["l4_b"].reshape(1, -1).astype(jnp.float32)

    wa1 = jnp.transpose(p["att_w1"][:, :, 0], (1, 0))              # (9C/2,128)
    wx = wa1[:c96].astype(MXU_DTYPE)
    wmu = wa1[c96:2 * c96].astype(MXU_DTYPE)
    wsd = wa1[2 * c96:].astype(MXU_DTYPE)
    att1_p = jnp.stack([p["att_b1"], p["att_bn_s"], p["att_bn_sh"]]
                       )[:, None, :].astype(jnp.float32)
    wa2 = jnp.transpose(p["att_w2"][:, :, 0], (1, 0)).astype(MXU_DTYPE)
    ba2 = p["att_b2"].reshape(1, -1).astype(jnp.float32)
    bn5_p = jnp.stack([p["bn5_s"], p["bn5_sh"]])[:, None, :].astype(jnp.float32)
    # fold bn6 into fc6 (no nonlinearity in between)
    fc6_w = (p["fc6_w"].T * p["bn6_s"][None, :]).astype(MXU_DTYPE)
    fc6_b = (p["fc6_b"] * p["bn6_s"] + p["bn6_sh"]).reshape(1, -1).astype(jnp.float32)
    fc_w = p["fc_w"].T.astype(MXU_DTYPE)
    fc_b = p["fc_b"].reshape(1, -1).astype(jnp.float32)
    n_class = p["fc_w"].shape[0]

    consts = [w4a, w4b, w4c, b4, wx, wmu, wsd, att1_p, wa2, ba2, bn5_p,
              fc6_w, fc6_b, fc_w, fc_b]
    act = pl.BlockSpec((None, t, cp), lambda b: (b, 0, 0))
    kernel = functools.partial(_tail_kernel, t=t)
    logits3, emb3 = pl.pallas_call(
        kernel,
        grid=(batch,),
        in_specs=[act, act, act] + [_const_spec(a) for a in consts],
        out_specs=(pl.BlockSpec((None, 1, n_class), lambda b: (b, 0, 0)),
                   pl.BlockSpec((None, 1, 3 * c), lambda b: (b, 0, 0))),
        out_shape=(jax.ShapeDtypeStruct((batch, 1, n_class), jnp.float32),
                   jax.ShapeDtypeStruct((batch, 1, 3 * c), jnp.float32)),
        compiler_params=_PARALLEL,
    )(x1, x2, x3, *consts)
    return logits3[:, 0, :], emb3[:, 0, :]


def forward(params, x_ncw):
    """x_ncw: (B, feature_dim, T) -> (logits (B, n_class), embedding (B, 3C))."""
    x = jnp.transpose(x_ncw, (0, 2, 1)).astype(jnp.float32)       # (B, T, F)
    batch, t, f = x.shape
    c = params["conv1_w"].shape[0]
    cp = _rup(c)                                                  # lane-dense C

    # entry conv1 (k=5, pad=2) -> ReLU -> bn1, im2col folded into the kernel
    w1_taps = conv_taps(params["conv1_w"], cols=cp)
    p1 = pack_bsh(params["conv1_b"], params["bn1_s"], params["bn1_sh"], cp)
    x0 = entry_conv(x, w1_taps, p1, batch, t, f, cp)

    # Res2Net blocks; residual sums (x, x+x1, x+x1+x2) are folded in-kernel.
    x1 = bottle2neck([x0], params["layer1"], 2, batch, t, c, cp)
    x2 = bottle2neck([x0, x1], params["layer2"], 3, batch, t, c, cp)
    x3 = bottle2neck([x0, x1, x2], params["layer3"], 4, batch, t, c, cp)

    # fused tail: layer4 + global-context attention + pooling + bn5/fc6/bn6/fc
    logits, embedding = tail_head(x1, x2, x3, params, batch, t, c, cp)
    return logits, embedding


# -----------------------------------------------------------------------------
# Deterministic parameter construction (synthetic weights, not a checkpoint)
# -----------------------------------------------------------------------------
def init_params(key, feature_dim=22, C=64, n_class=40):
    keys = iter(jax.random.split(key, 512))
    nk = lambda: next(keys)

    def conv(cin, cout, k):
        w = jax.random.normal(nk(), (cout, cin, k), jnp.float32) / np.sqrt(cin * k)
        b = 0.01 * jax.random.normal(nk(), (cout,), jnp.float32)
        return w, b

    def lin(cin, cout):
        w = jax.random.normal(nk(), (cout, cin), jnp.float32) / np.sqrt(cin)
        b = 0.01 * jax.random.normal(nk(), (cout,), jnp.float32)
        return w, b

    def bn(c):
        gamma = 1.0 + 0.1 * jax.random.normal(nk(), (c,), jnp.float32)
        beta = 0.1 * jax.random.normal(nk(), (c,), jnp.float32)
        mean = 0.05 * jax.random.normal(nk(), (c,), jnp.float32)
        var = jnp.abs(1.0 + 0.1 * jax.random.normal(nk(), (c,), jnp.float32))
        s = gamma / jnp.sqrt(var + 1e-5)
        return s, beta - mean * s

    def bottle(cin, planes):
        width = planes // 8
        d = {}
        d["c1_w"], d["c1_b"] = conv(cin, width * 8, 1)
        d["bn1_s"], d["bn1_sh"] = bn(width * 8)
        d["br_w"], d["br_b"], d["br_bn_s"], d["br_bn_sh"] = [], [], [], []
        for _ in range(7):
            w, b = conv(width, width, 3)
            s, sh = bn(width)
            d["br_w"].append(w); d["br_b"].append(b)
            d["br_bn_s"].append(s); d["br_bn_sh"].append(sh)
        d["c3_w"], d["c3_b"] = conv(width * 8, planes, 1)
        d["bn3_s"], d["bn3_sh"] = bn(planes)
        d["se_w1"], d["se_b1"] = conv(planes, 128, 1)
        d["se_w2"], d["se_b2"] = conv(128, planes, 1)
        return d

    p = {}
    p["conv1_w"], p["conv1_b"] = conv(feature_dim, C, 5)
    p["bn1_s"], p["bn1_sh"] = bn(C)
    p["layer1"] = bottle(C, C)
    p["layer2"] = bottle(C, C)
    p["layer3"] = bottle(C, C)
    p["l4_w"], p["l4_b"] = conv(3 * C, C * 3 // 2, 1)
    p["att_w1"], p["att_b1"] = conv(C * 9 // 2, 128, 1)
    p["att_bn_s"], p["att_bn_sh"] = bn(128)
    p["att_w2"], p["att_b2"] = conv(128, C * 3 // 2, 1)
    p["bn5_s"], p["bn5_sh"] = bn(3 * C)
    p["fc6_w"], p["fc6_b"] = lin(3 * C, 192)
    p["bn6_s"], p["bn6_sh"] = bn(192)
    p["fc_w"], p["fc_b"] = lin(192, 40)
    return p


if __name__ == "__main__":
    key = jax.random.PRNGKey(0)
    pkey, xkey = jax.random.split(key)

    feature_dim, C, n_class = 22, 64, 40   # small-C variant for the test
    B, T = 2, 16
    params = init_params(pkey, feature_dim=feature_dim, C=C, n_class=n_class)

    # input in PyTorch Conv1d NCW layout: (batch, feature_dim, time)
    x = jax.random.normal(xkey, (B, feature_dim, T), jnp.float32)

    fwd = jax.jit(forward)
    logits, embedding = fwd(params, x)
    jax.block_until_ready((logits, embedding))

    assert logits.shape == (B, n_class), logits.shape
    assert embedding.shape == (B, 3 * C), embedding.shape
    assert bool(jnp.all(jnp.isfinite(logits))) and bool(jnp.all(jnp.isfinite(embedding)))
    print("KERNEL_OK")
</pallas_src>

<mosaic_0001>
module attributes {stable_mosaic.version = 11 : i64} {
  func.func @_entry_kernel(%arg0: i32, %arg1: memref<1x16x22xf32, #tpu.memory_space<vmem>>, %arg2: memref<5x22x128xbf16, #tpu.memory_space<vmem>>, %arg3: memref<3x1x128xf32, #tpu.memory_space<vmem>>, %arg4: memref<1x16x128xf32, #tpu.memory_space<vmem>>) attributes {dimension_semantics = [#tpu.dimension_semantics<parallel>], iteration_bounds = array<i64: 2>, scalar_prefetch = 0 : i64, scratch_operands = 0 : i64, tpu.core_type = #tpu.core_type<tc>, window_params = [{transform_indices = @transform_0, window_bounds = array<i64: 1, 16, 22>}, {pipeline_mode = #tpu.pipeline_mode<synchronous>, transform_indices = @transform_1, window_bounds = array<i64: 5, 22, 128>}, {pipeline_mode = #tpu.pipeline_mode<synchronous>, transform_indices = @transform_2, window_bounds = array<i64: 3, 1, 128>}, {transform_indices = @transform_3, window_bounds = array<i64: 1, 16, 128>}]} {
    %c0 = arith.constant 0 : index
    %c0_0 = arith.constant 0 : index
    %c0_1 = arith.constant 0 : index
    %0 = vector.load %arg1[%c0, %c0_0, %c0_1] : memref<1x16x22xf32, #tpu.memory_space<vmem>>, vector<1x16x22xf32>
    %1 = vector.shape_cast %0 : vector<1x16x22xf32> to vector<16x22xf32>
    %c0_2 = arith.constant 0 : index
    %c0_3 = arith.constant 0 : index
    %c0_4 = arith.constant 0 : index
    %2 = vector.load %arg2[%c0_2, %c0_3, %c0_4] : memref<5x22x128xbf16, #tpu.memory_space<vmem>>, vector<5x22x128xbf16>
    %c0_5 = arith.constant 0 : index
    %c0_6 = arith.constant 0 : index
    %c0_7 = arith.constant 0 : index
    %3 = vector.load %arg3[%c0_5, %c0_6, %c0_7] : memref<3x1x128xf32, #tpu.memory_space<vmem>>, vector<3x1x128xf32>
    %cst = arith.constant 0.000000e+00 : f32
    %4 = vector.broadcast %cst : f32 to vector<2x22xf32>
    %5 = vector.extract_strided_slice %1 {offsets = [0, 0], sizes = [14, 22], strides = [1, 1]} : vector<16x22xf32> to vector<14x22xf32>
    %6 = tpu.concatenate %4, %5 in 0 : vector<2x22xf32>, vector<14x22xf32> -> vector<16x22xf32>
    %7 = vector.extract_strided_slice %2 {offsets = [0, 0, 0], sizes = [1, 22, 128], strides = [1, 1, 1]} : vector<5x22x128xbf16> to vector<1x22x128xbf16>
    %8 = vector.shape_cast %7 : vector<1x22x128xbf16> to vector<22x128xbf16>
    %9 = arith.truncf %6 : vector<16x22xf32> to vector<16x22xbf16>
    %cst_8 = arith.constant dense<0.000000e+00> : vector<16x128xf32>
    %10 = tpu.matmul %9, %8, %cst_8 {dimension_numbers = #tpu.dot_dimension_numbers<[1], [0], [0], [1], [0, 0, 1, 1], [], []>} : vector<16x22xbf16>, vector<22x128xbf16>, vector<16x128xf32> -> vector<16x128xf32>
    %cst_9 = arith.constant 0.000000e+00 : f32
    %11 = vector.broadcast %cst_9 : f32 to vector<1x22xf32>
    %12 = vector.extract_strided_slice %1 {offsets = [0, 0], sizes = [15, 22], strides = [1, 1]} : vector<16x22xf32> to vector<15x22xf32>
    %13 = tpu.concatenate %11, %12 in 0 : vector<1x22xf32>, vector<15x22xf32> -> vector<16x22xf32>
    %14 = vector.extract_strided_slice %2 {offsets = [1, 0, 0], sizes = [1, 22, 128], strides = [1, 1, 1]} : vector<5x22x128xbf16> to vector<1x22x128xbf16>
    %15 = vector.shape_cast %14 : vector<1x22x128xbf16> to vector<22x128xbf16>
    %16 = arith.truncf %13 : vector<16x22xf32> to vector<16x22xbf16>
    %cst_10 = arith.constant dense<0.000000e+00> : vector<16x128xf32>
    %17 = tpu.matmul %16, %15, %cst_10 {dimension_numbers = #tpu.dot_dimension_numbers<[1], [0], [0], [1], [0, 0, 1, 1], [], []>} : vector<16x22xbf16>, vector<22x128xbf16>, vector<16x128xf32> -> vector<16x128xf32>
    %18 = arith.addf %10, %17 : vector<16x128xf32>
    %19 = vector.extract_strided_slice %2 {offsets = [2, 0, 0], sizes = [1, 22, 128], strides = [1, 1, 1]} : vector<5x22x128xbf16> to vector<1x22x128xbf16>
    %20 = vector.shape_cast %19 : vector<1x22x128xbf16> to vector<22x128xbf16>
    %21 = arith.truncf %1 : vector<16x22xf32> to vector<16x22xbf16>
    %cst_11 = arith.constant dense<0.000000e+00> : vector<16x128xf32>
    %22 = tpu.matmul %21, %20, %cst_11 {dimension_numbers = #tpu.dot_dimension_numbers<[1], [0], [0], [1], [0, 0, 1, 1], [], []>} : vector<16x22xbf16>, vector<22x128xbf16>, vector<16x128xf32> -> vector<16x128xf32>
    %23 = arith.addf %18, %22 : vector<16x128xf32>
    %cst_12 = arith.constant 0.000000e+00 : f32
    %24 = vector.broadcast %cst_12 : f32 to vector<1x22xf32>
    %25 = vector.extract_strided_slice %1 {offsets = [1, 0], sizes = [15, 22], strides = [1, 1]} : vector<16x22xf32> to vector<15x22xf32>
    %26 = tpu.concatenate %25, %24 in 0 : vector<15x22xf32>, vector<1x22xf32> -> vector<16x22xf32>
    %27 = vector.extract_strided_slice %2 {offsets = [3, 0, 0], sizes = [1, 22, 128], strides = [1, 1, 1]} : vector<5x22x128xbf16> to vector<1x22x128xbf16>
    %28 = vector.shape_cast %27 : vector<1x22x128xbf16> to vector<22x128xbf16>
    %29 = arith.truncf %26 : vector<16x22xf32> to vector<16x22xbf16>
    %cst_13 = arith.constant dense<0.000000e+00> : vector<16x128xf32>
    %30 = tpu.matmul %29, %28, %cst_13 {dimension_numbers = #tpu.dot_dimension_numbers<[1], [0], [0], [1], [0, 0, 1, 1], [], []>} : vector<16x22xbf16>, vector<22x128xbf16>, vector<16x128xf32> -> vector<16x128xf32>
    %31 = arith.addf %23, %30 : vector<16x128xf32>
    %cst_14 = arith.constant 0.000000e+00 : f32
    %32 = vector.broadcast %cst_14 : f32 to vector<2x22xf32>
    %33 = vector.extract_strided_slice %1 {offsets = [2, 0], sizes = [14, 22], strides = [1, 1]} : vector<16x22xf32> to vector<14x22xf32>
    %34 = tpu.concatenate %33, %32 in 0 : vector<14x22xf32>, vector<2x22xf32> -> vector<16x22xf32>
    %35 = vector.extract_strided_slice %2 {offsets = [4, 0, 0], sizes = [1, 22, 128], strides = [1, 1, 1]} : vector<5x22x128xbf16> to vector<1x22x128xbf16>
    %36 = vector.shape_cast %35 : vector<1x22x128xbf16> to vector<22x128xbf16>
    %37 = arith.truncf %34 : vector<16x22xf32> to vector<16x22xbf16>
    %cst_15 = arith.constant dense<0.000000e+00> : vector<16x128xf32>
    %38 = tpu.matmul %37, %36, %cst_15 {dimension_numbers = #tpu.dot_dimension_numbers<[1], [0], [0], [1], [0, 0, 1, 1], [], []>} : vector<16x22xbf16>, vector<22x128xbf16>, vector<16x128xf32> -> vector<16x128xf32>
    %39 = arith.addf %31, %38 : vector<16x128xf32>
    %40 = vector.extract_strided_slice %3 {offsets = [0, 0, 0], sizes = [1, 1, 128], strides = [1, 1, 1]} : vector<3x1x128xf32> to vector<1x1x128xf32>
    %41 = vector.shape_cast %40 : vector<1x1x128xf32> to vector<1x128xf32>
    %42 = vector.broadcast %41 : vector<1x128xf32> to vector<16x128xf32>
    %43 = arith.addf %39, %42 : vector<16x128xf32>
    %cst_16 = arith.constant 0.000000e+00 : f32
    %44 = vector.broadcast %cst_16 : f32 to vector<16x128xf32>
    %45 = arith.maximumf %43, %44 : vector<16x128xf32>
    %46 = vector.extract_strided_slice %3 {offsets = [1, 0, 0], sizes = [1, 1, 128], strides = [1, 1, 1]} : vector<3x1x128xf32> to vector<1x1x128xf32>
    %47 = vector.shape_cast %46 : vector<1x1x128xf32> to vector<1x128xf32>
    %48 = vector.broadcast %47 : vector<1x128xf32> to vector<16x128xf32>
    %49 = arith.mulf %45, %48 : vector<16x128xf32>
    %50 = vector.extract_strided_slice %3 {offsets = [2, 0, 0], sizes = [1, 1, 128], strides = [1, 1, 1]} : vector<3x1x128xf32> to vector<1x1x128xf32>
    %51 = vector.shape_cast %50 : vector<1x1x128xf32> to vector<1x128xf32>
    %52 = vector.broadcast %51 : vector<1x128xf32> to vector<16x128xf32>
    %53 = arith.addf %49, %52 : vector<16x128xf32>
    %c0_17 = arith.constant 0 : index
    %c0_18 = arith.constant 0 : index
    %c0_19 = arith.constant 0 : index
    %54 = vector.load %arg4[%c0_17, %c0_18, %c0_19] : memref<1x16x128xf32, #tpu.memory_space<vmem>>, vector<1x16x128xf32>
    %55 = vector.shape_cast %54 : vector<1x16x128xf32> to vector<16x128xf32>
    %56 = vector.shape_cast %53 : vector<16x128xf32> to vector<1x16x128xf32>
    tpu.vector_store %arg4[%c0_17, %c0_18, %c0_19], %56 {strides = array<i32>} : memref<1x16x128xf32, #tpu.memory_space<vmem>>, vector<1x16x128xf32>,
    return
  }
  func.func @transform_0(%arg0: i32) -> (i32, i32, i32) {
    %c0_i32 = arith.constant 0 : i32
    %c0_i32_0 = arith.constant 0 : i32
    %c0_i32_1 = arith.constant 0 : i32
    return %arg0, %c0_i32, %c0_i32_0 : i32, i32, i32
  }
  func.func @transform_1(%arg0: i32) -> (i32, i32, i32) {
    %c0_i32 = arith.constant 0 : i32
    %c0_i32_0 = arith.constant 0 : i32
    %c0_i32_1 = arith.constant 0 : i32
    %c0_i32_2 = arith.constant 0 : i32
    return %c0_i32, %c0_i32_0, %c0_i32_1 : i32, i32, i32
  }
  func.func @transform_2(%arg0: i32) -> (i32, i32, i32) {
    %c0_i32 = arith.constant 0 : i32
    %c0_i32_0 = arith.constant 0 : i32
    %c0_i32_1 = arith.constant 0 : i32
    %c0_i32_2 = arith.constant 0 : i32
    return %c0_i32, %c0_i32_0, %c0_i32_1 : i32, i32, i32
  }
  func.func @transform_3(%arg0: i32) -> (i32, i32, i32) {
    %c0_i32 = arith.constant 0 : i32
    %c0_i32_0 = arith.constant 0 : i32
    %c0_i32_1 = arith.constant 0 : i32
    return %arg0, %c0_i32, %c0_i32_0 : i32, i32, i32
  }
}

module attributes {stable_mosaic.version = 11 : i64} {
  func.func @_bottle2neck_kernel(%arg0: i32, %arg1: memref<1x16x128xf32, #tpu.memory_space<vmem>>, %arg2: memref<1x16x128xf32, #tpu.memory_space<vmem>>, %arg3: memref<1x16x128xf32, #tpu.memory_space<vmem>>, %arg4: memref<128x128xbf16, #tpu.memory_space<vmem>>, %arg5: memref<3x1x128xf32, #tpu.memory_space<vmem>>, %arg6: memref<7x3x8x8xbf16, #tpu.memory_space<vmem>>, %arg7: memref<7x3x1x8xf32, #tpu.memory_space<vmem>>, %arg8: memref<8x8x128xbf16, #tpu.memory_space<vmem>>, %arg9: memref<3x1x128xf32, #tpu.memory_space<vmem>>, %arg10: memref<128x128xbf16, #tpu.memory_space<vmem>>, %arg11: memref<1x128xf32, #tpu.memory_space<vmem>>, %arg12: memref<128x128xbf16, #tpu.memory_space<vmem>>, %arg13: memref<1x128xf32, #tpu.memory_space<vmem>>, %arg14: memref<1x16x128xf32, #tpu.memory_space<vmem>>) attributes {dimension_semantics = [#tpu.dimension_semantics<parallel>], iteration_bounds = array<i64: 2>, scalar_prefetch = 0 : i64, scratch_operands = 0 : i64, tpu.core_type = #tpu.core_type<tc>, window_params = [{transform_indices = @transform_0, window_bounds = array<i64: 1, 16, 128>}, {transform_indices = @transform_1, window_bounds = array<i64: 1, 16, 128>}, {transform_indices = @transform_2, window_bounds = array<i64: 1, 16, 128>}, {pipeline_mode = #tpu.pipeline_mode<synchronous>, transform_indices = @transform_3, window_bounds = array<i64: 128, 128>}, {pipeline_mode = #tpu.pipeline_mode<synchronous>, transform_indices = @transform_4, window_bounds = array<i64: 3, 1, 128>}, {pipeline_mode = #tpu.pipeline_mode<synchronous>, transform_indices = @transform_5, window_bounds = array<i64: 7, 3, 8, 8>}, {pipeline_mode = #tpu.pipeline_mode<synchronous>, transform_indices = @transform_6, window_bounds = array<i64: 7, 3, 1, 8>}, {pipeline_mode = #tpu.pipeline_mode<synchronous>, transform_indices = @transform_7, window_bounds = array<i64: 8, 8, 128>}, {pipeline_mode = #tpu.pipeline_mode<synchronous>, transform_indices = @transform_8, window_bounds = array<i64: 3, 1, 128>}, {pipeline_mode = #tpu.pipeline_mode<synchronous>, transform_indices = @transform_9, window_bounds = array<i64: 128, 128>}, {pipeline_mode = #tpu.pipeline_mode<synchronous>, transform_indices = @transform_10, window_bounds = array<i64: 1, 128>}, {pipeline_mode = #tpu.pipeline_mode<synchronous>, transform_indices = @transform_11, window_bounds = array<i64: 128, 128>}, {pipeline_mode = #tpu.pipeline_mode<synchronous>, transform_indices = @transform_12, window_bounds = array<i64: 1, 128>}, {transform_indices = @transform_13, window_bounds = array<i64: 1, 16, 128>}]} {
    %c0 = arith.constant 0 : index
    %c0_0 = arith.constant 0 : index
    %c0_1 = arith.constant 0 : index
    %0 = vector.load %arg1[%c0, %c0_0, %c0_1] : memref<1x16x128xf32, #tpu.memory_space<vmem>>, vector<1x16x128xf32>
    %1 = vector.shape_cast %0 : vector<1x16x128xf32> to vector<16x128xf32>
    %c0_2 = arith.constant 0 : index
    %c0_3 = arith.constant 0 : index
    %c0_4 = arith.constant 0 : index
    %2 = vector.load %arg2[%c0_2, %c0_3, %c0_4] : memref<1x16x128xf32, #tpu.memory_space<vmem>>, vector<1x16x128xf32>
    %3 = vector.shape_cast %2 : vector<1x16x128xf32> to vector<16x128xf32>
    %4 = arith.addf %1, %3 : vector<16x128xf32>
    %c0_5 = arith.constant 0 : index
    %c0_6 = arith.constant 0 : index
    %c0_7 = arith.constant 0 : index
    %5 = vector.load %arg3[%c0_5, %c0_6, %c0_7] : memref<1x16x128xf32, #tpu.memory_space<vmem>>, vector<1x16x128xf32>
    %6 = vector.shape_cast %5 : vector<1x16x128xf32> to vector<16x128xf32>
    %7 = arith.addf %4, %6 : vector<16x128xf32>
    %c0_8 = arith.constant 0 : index
    %c0_9 = arith.constant 0 : index
    %c0_10 = arith.constant 0 : index
    %8 = vector.load %arg5[%c0_8, %c0_9, %c0_10] : memref<3x1x128xf32, #tpu.memory_space<vmem>>, vector<3x1x128xf32>
    %c0_11 = arith.constant 0 : index
    %c0_12 = arith.constant 0 : index
    %9 = vector.load %arg4[%c0_11, %c0_12] : memref<128x128xbf16, #tpu.memory_space<vmem>>, vector<128x128xbf16>
    %10 = arith.truncf %7 : vector<16x128xf32> to vector<16x128xbf16>
    %cst = arith.constant dense<0.000000e+00> : vector<16x128xf32>
    %11 = tpu.matmul %10, %9, %cst {dimension_numbers = #tpu.dot_dimension_numbers<[1], [0], [0], [1], [0, 0, 1, 1], [], []>} : vector<16x128xbf16>, vector<128x128xbf16>, vector<16x128xf32> -> vector<16x128xf32>
    %12 = vector.extract_strided_slice %8 {offsets = [0, 0, 0], sizes = [1, 1, 128], strides = [1, 1, 1]} : vector<3x1x128xf32> to vector<1x1x128xf32>
    %13 = vector.shape_cast %12 : vector<1x1x128xf32> to vector<1x128xf32>
    %14 = vector.broadcast %13 : vector<1x128xf32> to vector<16x128xf32>
    %15 = arith.addf %11, %14 : vector<16x128xf32>
    %cst_13 = arith.constant 0.000000e+00 : f32
    %16 = vector.broadcast %cst_13 : f32 to vector<16x128xf32>
    %17 = arith.maximumf %15, %16 : vector<16x128xf32>
    %18 = vector.extract_strided_slice %8 {offsets = [1, 0, 0], sizes = [1, 1, 128], strides = [1, 1, 1]} : vector<3x1x128xf32> to vector<1x1x128xf32>
    %19 = vector.shape_cast %18 : vector<1x1x128xf32> to vector<1x128xf32>
    %20 = vector.broadcast %19 : vector<1x128xf32> to vector<16x128xf32>
    %21 = arith.mulf %17, %20 : vector<16x128xf32>
    %22 = vector.extract_strided_slice %8 {offsets = [2, 0, 0], sizes = [1, 1, 128], strides = [1, 1, 1]} : vector<3x1x128xf32> to vector<1x1x128xf32>
    %23 = vector.shape_cast %22 : vector<1x1x128xf32> to vector<1x128xf32>
    %24 = vector.broadcast %23 : vector<1x128xf32> to vector<16x128xf32>
    %25 = arith.addf %21, %24 : vector<16x128xf32>
    %c0_14 = arith.constant 0 : index
    %c0_15 = arith.constant 0 : index
    %c0_16 = arith.constant 0 : index
    %c0_17 = arith.constant 0 : index
    %26 = vector.load %arg6[%c0_14, %c0_15, %c0_16, %c0_17] : memref<7x3x8x8xbf16, #tpu.memory_space<vmem>>, vector<7x3x8x8xbf16>
    %c0_18 = arith.constant 0 : index
    %c0_19 = arith.constant 0 : index
    %c0_20 = arith.constant 0 : index
    %c0_21 = arith.constant 0 : index
    %27 = vector.load %arg7[%c0_18, %c0_19, %c0_20, %c0_21] : memref<7x3x1x8xf32, #tpu.memory_space<vmem>>, vector<7x3x1x8xf32>
    %c0_22 = arith.constant 0 : index
    %c0_23 = arith.constant 0 : index
    %c0_24 = arith.constant 0 : index
    %28 = vector.load %arg8[%c0_22, %c0_23, %c0_24] : memref<8x8x128xbf16, #tpu.memory_space<vmem>>, vector<8x8x128xbf16>
    %29 = vector.extract_strided_slice %25 {offsets = [0, 0], sizes = [16, 8], strides = [1, 1]} : vector<16x128xf32> to vector<16x8xf32>
    %cst_25 = arith.constant 0.000000e+00 : f32
    %30 = vector.broadcast %cst_25 : f32 to vector<4x8xf32>
    %31 = vector.extract_strided_slice %29 {offsets = [0, 0], sizes = [12, 8], strides = [1, 1]} : vector<16x8xf32> to vector<12x8xf32>
    %32 = tpu.concatenate %30, %31 in 0 : vector<4x8xf32>, vector<12x8xf32> -> vector<16x8xf32>
    %33 = vector.extract_strided_slice %26 {offsets = [0, 0, 0, 0], sizes = [1, 1, 8, 8], strides = [1, 1, 1, 1]} : vector<7x3x8x8xbf16> to vector<1x1x8x8xbf16>
    %34 = vector.shape_cast %33 : vector<1x1x8x8xbf16> to vector<8x8xbf16>
    %35 = arith.truncf %32 : vector<16x8xf32> to vector<16x8xbf16>
    %cst_26 = arith.constant dense<0.000000e+00> : vector<16x8xf32>
    %36 = tpu.matmul %35, %34, %cst_26 {dimension_numbers = #tpu.dot_dimension_numbers<[1], [0], [0], [1], [0, 0, 1, 1], [], []>} : vector<16x8xbf16>, vector<8x8xbf16>, vector<16x8xf32> -> vector<16x8xf32>
    %37 = vector.extract_strided_slice %26 {offsets = [0, 1, 0, 0], sizes = [1, 1, 8, 8], strides = [1, 1, 1, 1]} : vector<7x3x8x8xbf16> to vector<1x1x8x8xbf16>
    %38 = vector.shape_cast %37 : vector<1x1x8x8xbf16> to vector<8x8xbf16>
    %39 = arith.truncf %29 : vector<16x8xf32> to vector<16x8xbf16>
    %cst_27 = arith.constant dense<0.000000e+00> : vector<16x8xf32>
    %40 = tpu.matmul %39, %38, %cst_27 {dimension_numbers = #tpu.dot_dimension_numbers<[1], [0], [0], [1], [0, 0, 1, 1], [], []>} : vector<16x8xbf16>, vector<8x8xbf16>, vector<16x8xf32> -> vector<16x8xf32>
    %41 = arith.addf %36, %40 : vector<16x8xf32>
    %cst_28 = arith.constant 0.000000e+00 : f32
    %42 = vector.broadcast %cst_28 : f32 to vector<4x8xf32>
    %43 = vector.extract_strided_slice %29 {offsets = [4, 0], sizes = [12, 8], strides = [1, 1]} : vector<16x8xf32> to vector<12x8xf32>
    %44 = tpu.concatenate %43, %42 in 0 : vector<12x8xf32>, vector<4x8xf32> -> vector<16x8xf32>
    %45 = vector.extract_strided_slice %26 {offsets = [0, 2, 0, 0], sizes = [1, 1, 8, 8], strides = [1, 1, 1, 1]} : vector<7x3x8x8xbf16> to vector<1x1x8x8xbf16>
    %46 = vector.shape_cast %45 : vector<1x1x8x8xbf16> to vector<8x8xbf16>
    %47 = arith.truncf %44 : vector<16x8xf32> to vector<16x8xbf16>
    %cst_29 = arith.constant dense<0.000000e+00> : vector<16x8xf32>
    %48 = tpu.matmul %47, %46, %cst_29 {dimension_numbers = #tpu.dot_dimension_numbers<[1], [0], [0], [1], [0, 0, 1, 1], [], []>} : vector<16x8xbf16>, vector<8x8xbf16>, vector<16x8xf32> -> vector<16x8xf32>
    %49 = arith.addf %41, %48 : vector<16x8xf32>
    %50 = vector.extract_strided_slice %27 {offsets = [0, 0, 0, 0], sizes = [1, 1, 1, 8], strides = [1, 1, 1, 1]} : vector<7x3x1x8xf32> to vector<1x1x1x8xf32>
    %51 = vector.shape_cast %50 : vector<1x1x1x8xf32> to vector<1x8xf32>
    %52 = vector.broadcast %51 : vector<1x8xf32> to vector<16x8xf32>
    %53 = arith.addf %49, %52 : vector<16x8xf32>
    %cst_30 = arith.constant 0.000000e+00 : f32
    %54 = vector.broadcast %cst_30 : f32 to vector<16x8xf32>
    %55 = arith.maximumf %53, %54 : vector<16x8xf32>
    %56 = vector.extract_strided_slice %27 {offsets = [0, 1, 0, 0], sizes = [1, 1, 1, 8], strides = [1, 1, 1, 1]} : vector<7x3x1x8xf32> to vector<1x1x1x8xf32>
    %57 = vector.shape_cast %56 : vector<1x1x1x8xf32> to vector<1x8xf32>
    %58 = vector.broadcast %57 : vector<1x8xf32> to vector<16x8xf32>
    %59 = arith.mulf %55, %58 : vector<16x8xf32>
    %60 = vector.extract_strided_slice %27 {offsets = [0, 2, 0, 0], sizes = [1, 1, 1, 8], strides = [1, 1, 1, 1]} : vector<7x3x1x8xf32> to vector<1x1x1x8xf32>
    %61 = vector.shape_cast %60 : vector<1x1x1x8xf32> to vector<1x8xf32>
    %62 = vector.broadcast %61 : vector<1x8xf32> to vector<16x8xf32>
    %63 = arith.addf %59, %62 : vector<16x8xf32>
    %64 = vector.extract_strided_slice %28 {offsets = [0, 0, 0], sizes = [1, 8, 128], strides = [1, 1, 1]} : vector<8x8x128xbf16> to vector<1x8x128xbf16>
    %65 = vector.shape_cast %64 : vector<1x8x128xbf16> to vector<8x128xbf16>
    %66 = arith.truncf %63 : vector<16x8xf32> to vector<16x8xbf16>
    %cst_31 = arith.constant dense<0.000000e+00> : vector<16x128xf32>
    %67 = tpu.matmul %66, %65, %cst_31 {dimension_numbers = #tpu.dot_dimension_numbers<[1], [0], [0], [1], [0, 0, 1, 1], [], []>} : vector<16x8xbf16>, vector<8x128xbf16>, vector<16x128xf32> -> vector<16x128xf32>
    %68 = vector.extract_strided_slice %25 {offsets = [0, 8], sizes = [16, 8], strides = [1, 1]} : vector<16x128xf32> to vector<16x8xf32>
    %69 = arith.addf %63, %68 : vector<16x8xf32>
    %cst_32 = arith.constant 0.000000e+00 : f32
    %70 = vector.broadcast %cst_32 : f32 to vector<4x8xf32>
    %71 = vector.extract_strided_slice %69 {offsets = [0, 0], sizes = [12, 8], strides = [1, 1]} : vector<16x8xf32> to vector<12x8xf32>
    %72 = tpu.concatenate %70, %71 in 0 : vector<4x8xf32>, vector<12x8xf32> -> vector<16x8xf32>
    %73 = vector.extract_strided_slice %26 {offsets = [1, 0, 0, 0], sizes = [1, 1, 8, 8], strides = [1, 1, 1, 1]} : vector<7x3x8x8xbf16> to vector<1x1x8x8xbf16>
    %74 = vector.shape_cast %73 : vector<1x1x8x8xbf16> to vector<8x8xbf16>
    %75 = arith.truncf %72 : vector<16x8xf32> to vector<16x8xbf16>
    %cst_33 = arith.constant dense<0.000000e+00> : vector<16x8xf32>
    %76 = tpu.matmul %75, %74, %cst_33 {dimension_numbers = #tpu.dot_dimension_numbers<[1], [0], [0], [1], [0, 0, 1, 1], [], []>} : vector<16x8xbf16>, vector<8x8xbf16>, vector<16x8xf32> -> vector<16x8xf32>
    %77 = vector.extract_strided_slice %26 {offsets = [1, 1, 0, 0], sizes = [1, 1, 8, 8], strides = [1, 1, 1, 1]} : vector<7x3x8x8xbf16> to vector<1x1x8x8xbf16>
    %78 = vector.shape_cast %77 : vector<1x1x8x8xbf16> to vector<8x8xbf16>
    %79 = arith.truncf %69 : vector<16x8xf32> to vector<16x8xbf16>
    %cst_34 = arith.constant dense<0.000000e+00> : vector<16x8xf32>
    %80 = tpu.matmul %79, %78, %cst_34 {dimension_numbers = #tpu.dot_dimension_numbers<[1], [0], [0], [1], [0, 0, 1, 1], [], []>} : vector<16x8xbf16>, vector<8x8xbf16>, vector<16x8xf32> -> vector<16x8xf32>
    %81 = arith.addf %76, %80 : vector<16x8xf32>
    %cst_35 = arith.constant 0.000000e+00 : f32
    %82 = vector.broadcast %cst_35 : f32 to vector<4x8xf32>
    %83 = vector.extract_strided_slice %69 {offsets = [4, 0], sizes = [12, 8], strides = [1, 1]} : vector<16x8xf32> to vector<12x8xf32>
    %84 = tpu.concatenate %83, %82 in 0 : vector<12x8xf32>, vector<4x8xf32> -> vector<16x8xf32>
    %85 = vector.extract_strided_slice %26 {offsets = [1, 2, 0, 0], sizes = [1, 1, 8, 8], strides = [1, 1, 1, 1]} : vector<7x3x8x8xbf16> to vector<1x1x8x8xbf16>
    %86 = vector.shape_cast %85 : vector<1x1x8x8xbf16> to vector<8x8xbf16>
    %87 = arith.truncf %84 : vector<16x8xf32> to vector<16x8xbf16>
    %cst_36 = arith.constant dense<0.000000e+00> : vector<16x8xf32>
    %88 = tpu.matmul %87, %86, %cst_36 {dimension_numbers = #tpu.dot_dimension_numbers<[1], [0], [0], [1], [0, 0, 1, 1], [], []>} : vector<16x8xbf16>, vector<8x8xbf16>, vector<16x8xf32> -> vector<16x8xf32>
    %89 = arith.addf %81, %88 : vector<16x8xf32>
    %90 = vector.extract_strided_slice %27 {offsets = [1, 0, 0, 0], sizes = [1, 1, 1, 8], strides = [1, 1, 1, 1]} : vector<7x3x1x8xf32> to vector<1x1x1x8xf32>
    %91 = vector.shape_cast %90 : vector<1x1x1x8xf32> to vector<1x8xf32>
    %92 = vector.broadcast %91 : vector<1x8xf32> to vector<16x8xf32>
    %93 = arith.addf %89, %92 : vector<16x8xf32>
    %cst_37 = arith.constant 0.000000e+00 : f32
    %94 = vector.broadcast %cst_37 : f32 to vector<16x8xf32>
    %95 = arith.maximumf %93, %94 : vector<16x8xf32>
    %96 = vector.extract_strided_slice %27 {offsets = [1, 1, 0, 0], sizes = [1, 1, 1, 8], strides = [1, 1, 1, 1]} : vector<7x3x1x8xf32> to vector<1x1x1x8xf32>
    %97 = vector.shape_cast %96 : vector<1x1x1x8xf32> to vector<1x8xf32>
    %98 = vector.broadcast %97 : vector<1x8xf32> to vector<16x8xf32>
    %99 = arith.mulf %95, %98 : vector<16x8xf32>
    %100 = vector.extract_strided_slice %27 {offsets = [1, 2, 0, 0], sizes = [1, 1, 1, 8], strides = [1, 1, 1, 1]} : vector<7x3x1x8xf32> to vector<1x1x1x8xf32>
    %101 = vector.shape_cast %100 : vector<1x1x1x8xf32> to vector<1x8xf32>
    %102 = vector.broadcast %101 : vector<1x8xf32> to vector<16x8xf32>
    %103 = arith.addf %99, %102 : vector<16x8xf32>
    %104 = vector.extract_strided_slice %28 {offsets = [1, 0, 0], sizes = [1, 8, 128], strides = [1, 1, 1]} : vector<8x8x128xbf16> to vector<1x8x128xbf16>
    %105 = vector.shape_cast %104 : vector<1x8x128xbf16> to vector<8x128xbf16>
    %106 = arith.truncf %103 : vector<16x8xf32> to vector<16x8xbf16>
    %cst_38 = arith.constant dense<0.000000e+00> : vector<16x128xf32>
    %107 = tpu.matmul %106, %105, %cst_38 {dimension_numbers = #tpu.dot_dimension_numbers<[1], [0], [0], [1], [0, 0, 1, 1], [], []>} : vector<16x8xbf16>, vector<8x128xbf16>, vector<16x128xf32> -> vector<16x128xf32>
    %108 = arith.addf %67, %107 : vector<16x128xf32>
    %109 = vector.extract_strided_slice %25 {offsets = [0, 16], sizes = [16, 8], strides = [1, 1]} : vector<16x128xf32> to vector<16x8xf32>
    %110 = arith.addf %103, %109 : vector<16x8xf32>
    %cst_39 = arith.constant 0.000000e+00 : f32
    %111 = vector.broadcast %cst_39 : f32 to vector<4x8xf32>
    %112 = vector.extract_strided_slice %110 {offsets = [0, 0], sizes = [12, 8], strides = [1, 1]} : vector<16x8xf32> to vector<12x8xf32>
    %113 = tpu.concatenate %111, %112 in 0 : vector<4x8xf32>, vector<12x8xf32> -> vector<16x8xf32>
    %114 = vector.extract_strided_slice %26 {offsets = [2, 0, 0, 0], sizes = [1, 1, 8, 8], strides = [1, 1, 1, 1]} : vector<7x3x8x8xbf16> to vector<1x1x8x8xbf16>
    %115 = vector.shape_cast %114 : vector<1x1x8x8xbf16> to vector<8x8xbf16>
    %116 = arith.truncf %113 : vector<16x8xf32> to vector<16x8xbf16>
    %cst_40 = arith.constant dense<0.000000e+00> : vector<16x8xf32>
    %117 = tpu.matmul %116, %115, %cst_40 {dimension_numbers = #tpu.dot_dimension_numbers<[1], [0], [0], [1], [0, 0, 1, 1], [], []>} : vector<16x8xbf16>, vector<8x8xbf16>, vector<16x8xf32> -> vector<16x8xf32>
    %118 = vector.extract_strided_slice %26 {offsets = [2, 1, 0, 0], sizes = [1, 1, 8, 8], strides = [1, 1, 1, 1]} : vector<7x3x8x8xbf16> to vector<1x1x8x8xbf16>
    %119 = vector.shape_cast %118 : vector<1x1x8x8xbf16> to vector<8x8xbf16>
    %120 = arith.truncf %110 : vector<16x8xf32> to vector<16x8xbf16>
    %cst_41 = arith.constant dense<0.000000e+00> : vector<16x8xf32>
    %121 = tpu.matmul %120, %119, %cst_41 {dimension_numbers = #tpu.dot_dimension_numbers<[1], [0], [0], [1], [0, 0, 1, 1], [], []>} : vector<16x8xbf16>, vector<8x8xbf16>, vector<16x8xf32> -> vector<16x8xf32>
    %122 = arith.addf %117, %121 : vector<16x8xf32>
    %cst_42 = arith.constant 0.000000e+00 : f32
    %123 = vector.broadcast %cst_42 : f32 to vector<4x8xf32>
    %124 = vector.extract_strided_slice %110 {offsets = [4, 0], sizes = [12, 8], strides = [1, 1]} : vector<16x8xf32> to vector<12x8xf32>
    %125 = tpu.concatenate %124, %123 in 0 : vector<12x8xf32>, vector<4x8xf32> -> vector<16x8xf32>
    %126 = vector.extract_strided_slice %26 {offsets = [2, 2, 0, 0], sizes = [1, 1, 8, 8], strides = [1, 1, 1, 1]} : vector<7x3x8x8xbf16> to vector<1x1x8x8xbf16>
    %127 = vector.shape_cast %126 : vector<1x1x8x8xbf16> to vector<8x8xbf16>
    %128 = arith.truncf %125 : vector<16x8xf32> to vector<16x8xbf16>
    %cst_43 = arith.constant dense<0.000000e+00> : vector<16x8xf32>
    %129 = tpu.matmul %128, %127, %cst_43 {dimension_numbers = #tpu.dot_dimension_numbers<[1], [0], [0], [1], [0, 0, 1, 1], [], []>} : vector<16x8xbf16>, vector<8x8xbf16>, vector<16x8xf32> -> vector<16x8xf32>
    %130 = arith.addf %122, %129 : vector<16x8xf32>
    %131 = vector.extract_strided_slice %27 {offsets = [2, 0, 0, 0], sizes = [1, 1, 1, 8], strides = [1, 1, 1, 1]} : vector<7x3x1x8xf32> to vector<1x1x1x8xf32>
    %132 = vector.shape_cast %131 : vector<1x1x1x8xf32> to vector<1x8xf32>
    %133 = vector.broadcast %132 : vector<1x8xf32> to vector<16x8xf32>
    %134 = arith.addf %130, %133 : vector<16x8xf32>
    %cst_44 = arith.constant 0.000000e+00 : f32
    %135 = vector.broadcast %cst_44 : f32 to vector<16x8xf32>
    %136 = arith.maximumf %134, %135 : vector<16x8xf32>
    %137 = vector.extract_strided_slice %27 {offsets = [2, 1, 0, 0], sizes = [1, 1, 1, 8], strides = [1, 1, 1, 1]} : vector<7x3x1x8xf32> to vector<1x1x1x8xf32>
    %138 = vector.shape_cast %137 : vector<1x1x1x8xf32> to vector<1x8xf32>
    %139 = vector.broadcast %138 : vector<1x8xf32> to vector<16x8xf32>
    %140 = arith.mulf %136, %139 : vector<16x8xf32>
    %141 = vector.extract_strided_slice %27 {offsets = [2, 2, 0, 0], sizes = [1, 1, 1, 8], strides = [1, 1, 1, 1]} : vector<7x3x1x8xf32> to vector<1x1x1x8xf32>
    %142 = vector.shape_cast %141 : vector<1x1x1x8xf32> to vector<1x8xf32>
    %143 = vector.broadcast %142 : vector<1x8xf32> to vector<16x8xf32>
    %144 = arith.addf %140, %143 : vector<16x8xf32>
    %145 = vector.extract_strided_slice %28 {offsets = [2, 0, 0], sizes = [1, 8, 128], strides = [1, 1, 1]} : vector<8x8x128xbf16> to vector<1x8x128xbf16>
    %146 = vector.shape_cast %145 : vector<1x8x128xbf16> to vector<8x128xbf16>
    %147 = arith.truncf %144 : vector<16x8xf32> to vector<16x8xbf16>
    %cst_45 = arith.constant dense<0.000000e+00> : vector<16x128xf32>
    %148 = tpu.matmul %147, %146, %cst_45 {dimension_numbers = #tpu.dot_dimension_numbers<[1], [0], [0], [1], [0, 0, 1, 1], [], []>} : vector<16x8xbf16>, vector<8x128xbf16>, vector<16x128xf32> -> vector<16x128xf32>
    %149 = arith.addf %108, %148 : vector<16x128xf32>
    %150 = vector.extract_strided_slice %25 {offsets = [0, 24], sizes = [16, 8], strides = [1, 1]} : vector<16x128xf32> to vector<16x8xf32>
    %151 = arith.addf %144, %150 : vector<16x8xf32>
    %cst_46 = arith.constant 0.000000e+00 : f32
    %152 = vector.broadcast %cst_46 : f32 to vector<4x8xf32>
    %153 = vector.extract_strided_slice %151 {offsets = [0, 0], sizes = [12, 8], strides = [1, 1]} : vector<16x8xf32> to vector<12x8xf32>
    %154 = tpu.concatenate %152, %153 in 0 : vector<4x8xf32>, vector<12x8xf32> -> vector<16x8xf32>
    %155 = vector.extract_strided_slice %26 {offsets = [3, 0, 0, 0], sizes = [1, 1, 8, 8], strides = [1, 1, 1, 1]} : vector<7x3x8x8xbf16> to vector<1x1x8x8xbf16>
    %156 = vector.shape_cast %155 : vector<1x1x8x8xbf16> to vector<8x8xbf16>
    %157 = arith.truncf %154 : vector<16x8xf32> to vector<16x8xbf16>
    %cst_47 = arith.constant dense<0.000000e+00> : vector<16x8xf32>
    %158 = tpu.matmul %157, %156, %cst_47 {dimension_numbers = #tpu.dot_dimension_numbers<[1], [0], [0], [1], [0, 0, 1, 1], [], []>} : vector<16x8xbf16>, vector<8x8xbf16>, vector<16x8xf32> -> vector<16x8xf32>
    %159 = vector.extract_strided_slice %26 {offsets = [3, 1, 0, 0], sizes = [1, 1, 8, 8], strides = [1, 1, 1, 1]} : vector<7x3x8x8xbf16> to vector<1x1x8x8xbf16>
    %160 = vector.shape_cast %159 : vector<1x1x8x8xbf16> to vector<8x8xbf16>
    %161 = arith.truncf %151 : vector<16x8xf32> to vector<16x8xbf16>
    %cst_48 = arith.constant dense<0.000000e+00> : vector<16x8xf32>
    %162 = tpu.matmul %161, %160, %cst_48 {dimension_numbers = #tpu.dot_dimension_numbers<[1], [0], [0], [1], [0, 0, 1, 1], [], []>} : vector<16x8xbf16>, vector<8x8xbf16>, vector<16x8xf32> -> vector<16x8xf32>
    %163 = arith.addf %158, %162 : vector<16x8xf32>
    %cst_49 = arith.constant 0.000000e+00 : f32
    %164 = vector.broadcast %cst_49 : f32 to vector<4x8xf32>
    %165 = vector.extract_strided_slice %151 {offsets = [4, 0], sizes = [12, 8], strides = [1, 1]} : vector<16x8xf32> to vector<12x8xf32>
    %166 = tpu.concatenate %165, %164 in 0 : vector<12x8xf32>, vector<4x8xf32> -> vector<16x8xf32>
    %167 = vector.extract_strided_slice %26 {offsets = [3, 2, 0, 0], sizes = [1, 1, 8, 8], strides = [1, 1, 1, 1]} : vector<7x3x8x8xbf16> to vector<1x1x8x8xbf16>
    %168 = vector.shape_cast %167 : vector<1x1x8x8xbf16> to vector<8x8xbf16>
    %169 = arith.truncf %166 : vector<16x8xf32> to vector<16x8xbf16>
    %cst_50 = arith.constant dense<0.000000e+00> : vector<16x8xf32>
    %170 = tpu.matmul %169, %168, %cst_50 {dimension_numbers = #tpu.dot_dimension_numbers<[1], [0], [0], [1], [0, 0, 1, 1], [], []>} : vector<16x8xbf16>, vector<8x8xbf16>, vector<16x8xf32> -> vector<16x8xf32>
    %171 = arith.addf %163, %170 : vector<16x8xf32>
    %172 = vector.extract_strided_slice %27 {offsets = [3, 0, 0, 0], sizes = [1, 1, 1, 8], strides = [1, 1, 1, 1]} : vector<7x3x1x8xf32> to vector<1x1x1x8xf32>
    %173 = vector.shape_cast %172 : vector<1x1x1x8xf32> to vector<1x8xf32>
    %174 = vector.broadcast %173 : vector<1x8xf32> to vector<16x8xf32>
    %175 = arith.addf %171, %174 : vector<16x8xf32>
    %cst_51 = arith.constant 0.000000e+00 : f32
    %176 = vector.broadcast %cst_51 : f32 to vector<16x8xf32>
    %177 = arith.maximumf %175, %176 : vector<16x8xf32>
    %178 = vector.extract_strided_slice %27 {offsets = [3, 1, 0, 0], sizes = [1, 1, 1, 8], strides = [1, 1, 1, 1]} : vector<7x3x1x8xf32> to vector<1x1x1x8xf32>
    %179 = vector.shape_cast %178 : vector<1x1x1x8xf32> to vector<1x8xf32>
    %180 = vector.broadcast %179 : vector<1x8xf32> to vector<16x8xf32>
    %181 = arith.mulf %177, %180 : vector<16x8xf32>
    %182 = vector.extract_strided_slice %27 {offsets = [3, 2, 0, 0], sizes = [1, 1, 1, 8], strides = [1, 1, 1, 1]} : vector<7x3x1x8xf32> to vector<1x1x1x8xf32>
    %183 = vector.shape_cast %182 : vector<1x1x1x8xf32> to vector<1x8xf32>
    %184 = vector.broadcast %183 : vector<1x8xf32> to vector<16x8xf32>
    %185 = arith.addf %181, %184 : vector<16x8xf32>
    %186 = vector.extract_strided_slice %28 {offsets = [3, 0, 0], sizes = [1, 8, 128], strides = [1, 1, 1]} : vector<8x8x128xbf16> to vector<1x8x128xbf16>
    %187 = vector.shape_cast %186 : vector<1x8x128xbf16> to vector<8x128xbf16>
    %188 = arith.truncf %185 : vector<16x8xf32> to vector<16x8xbf16>
    %cst_52 = arith.constant dense<0.000000e+00> : vector<16x128xf32>
    %189 = tpu.matmul %188, %187, %cst_52 {dimension_numbers = #tpu.dot_dimension_numbers<[1], [0], [0], [1], [0, 0, 1, 1], [], []>} : vector<16x8xbf16>, vector<8x128xbf16>, vector<16x128xf32> -> vector<16x128xf32>
    %190 = arith.addf %149, %189 : vector<16x128xf32>
    %191 = vector.extract_strided_slice %25 {offsets = [0, 32], sizes = [16, 8], strides = [1, 1]} : vector<16x128xf32> to vector<16x8xf32>
    %192 = arith.addf %185, %191 : vector<16x8xf32>
    %cst_53 = arith.constant 0.000000e+00 : f32
    %193 = vector.broadcast %cst_53 : f32 to vector<4x8xf32>
    %194 = vector.extract_strided_slice %192 {offsets = [0, 0], sizes = [12, 8], strides = [1, 1]} : vector<16x8xf32> to vector<12x8xf32>
    %195 = tpu.concatenate %193, %194 in 0 : vector<4x8xf32>, vector<12x8xf32> -> vector<16x8xf32>
    %196 = vector.extract_strided_slice %26 {offsets = [4, 0, 0, 0], sizes = [1, 1, 8, 8], strides = [1, 1, 1, 1]} : vector<7x3x8x8xbf16> to vector<1x1x8x8xbf16>
    %197 = vector.shape_cast %196 : vector<1x1x8x8xbf16> to vector<8x8xbf16>
    %198 = arith.truncf %195 : vector<16x8xf32> to vector<16x8xbf16>
    %cst_54 = arith.constant dense<0.000000e+00> : vector<16x8xf32>
    %199 = tpu.matmul %198, %197, %cst_54 {dimension_numbers = #tpu.dot_dimension_numbers<[1], [0], [0], [1], [0, 0, 1, 1], [], []>} : vector<16x8xbf16>, vector<8x8xbf16>, vector<16x8xf32> -> vector<16x8xf32>
    %200 = vector.extract_strided_slice %26 {offsets = [4, 1, 0, 0], sizes = [1, 1, 8, 8], strides = [1, 1, 1, 1]} : vector<7x3x8x8xbf16> to vector<1x1x8x8xbf16>
    %201 = vector.shape_cast %200 : vector<1x1x8x8xbf16> to vector<8x8xbf16>
    %202 = arith.truncf %192 : vector<16x8xf32> to vector<16x8xbf16>
    %cst_55 = arith.constant dense<0.000000e+00> : vector<16x8xf32>
    %203 = tpu.matmul %202, %201, %cst_55 {dimension_numbers = #tpu.dot_dimension_numbers<[1], [0], [0], [1], [0, 0, 1, 1], [], []>} : vector<16x8xbf16>, vector<8x8xbf16>, vector<16x8xf32> -> vector<16x8xf32>
    %204 = arith.addf %199, %203 : vector<16x8xf32>
    %cst_56 = arith.constant 0.000000e+00 : f32
    %205 = vector.broadcast %cst_56 : f32 to vector<4x8xf32>
    %206 = vector.extract_strided_slice %192 {offsets = [4, 0], sizes = [12, 8], strides = [1, 1]} : vector<16x8xf32> to vector<12x8xf32>
    %207 = tpu.concatenate %206, %205 in 0 : vector<12x8xf32>, vector<4x8xf32> -> vector<16x8xf32>
    %208 = vector.extract_strided_slice %26 {offsets = [4, 2, 0, 0], sizes = [1, 1, 8, 8], strides = [1, 1, 1, 1]} : vector<7x3x8x8xbf16> to vector<1x1x8x8xbf16>
    %209 = vector.shape_cast %208 : vector<1x1x8x8xbf16> to vector<8x8xbf16>
    %210 = arith.truncf %207 : vector<16x8xf32> to vector<16x8xbf16>
    %cst_57 = arith.constant dense<0.000000e+00> : vector<16x8xf32>
    %211 = tpu.matmul %210, %209, %cst_57 {dimension_numbers = #tpu.dot_dimension_numbers<[1], [0], [0], [1], [0, 0, 1, 1], [], []>} : vector<16x8xbf16>, vector<8x8xbf16>, vector<16x8xf32> -> vector<16x8xf32>
    %212 = arith.addf %204, %211 : vector<16x8xf32>
    %213 = vector.extract_strided_slice %27 {offsets = [4, 0, 0, 0], sizes = [1, 1, 1, 8], strides = [1, 1, 1, 1]} : vector<7x3x1x8xf32> to vector<1x1x1x8xf32>
    %214 = vector.shape_cast %213 : vector<1x1x1x8xf32> to vector<1x8xf32>
    %215 = vector.broadcast %214 : vector<1x8xf32> to vector<16x8xf32>
    %216 = arith.addf %212, %215 : vector<16x8xf32>
    %cst_58 = arith.constant 0.000000e+00 : f32
    %217 = vector.broadcast %cst_58 : f32 to vector<16x8xf32>
    %218 = arith.maximumf %216, %217 : vector<16x8xf32>
    %219 = vector.extract_strided_slice %27 {offsets = [4, 1, 0, 0], sizes = [1, 1, 1, 8], strides = [1, 1, 1, 1]} : vector<7x3x1x8xf32> to vector<1x1x1x8xf32>
    %220 = vector.shape_cast %219 : vector<1x1x1x8xf32> to vector<1x8xf32>
    %221 = vector.broadcast %220 : vector<1x8xf32> to vector<16x8xf32>
    %222 = arith.mulf %218, %221 : vector<16x8xf32>
    %223 = vector.extract_strided_slice %27 {offsets = [4, 2, 0, 0], sizes = [1, 1, 1, 8], strides = [1, 1, 1, 1]} : vector<7x3x1x8xf32> to vector<1x1x1x8xf32>
    %224 = vector.shape_cast %223 : vector<1x1x1x8xf32> to vector<1x8xf32>
    %225 = vector.broadcast %224 : vector<1x8xf32> to vector<16x8xf32>
    %226 = arith.addf %222, %225 : vector<16x8xf32>
    %227 = vector.extract_strided_slice %28 {offsets = [4, 0, 0], sizes = [1, 8, 128], strides = [1, 1, 1]} : vector<8x8x128xbf16> to vector<1x8x128xbf16>
    %228 = vector.shape_cast %227 : vector<1x8x128xbf16> to vector<8x128xbf16>
    %229 = arith.truncf %226 : vector<16x8xf32> to vector<16x8xbf16>
    %cst_59 = arith.constant dense<0.000000e+00> : vector<16x128xf32>
    %230 = tpu.matmul %229, %228, %cst_59 {dimension_numbers = #tpu.dot_dimension_numbers<[1], [0], [0], [1], [0, 0, 1, 1], [], []>} : vector<16x8xbf16>, vector<8x128xbf16>, vector<16x128xf32> -> vector<16x128xf32>
    %231 = arith.addf %190, %230 : vector<16x128xf32>
    %232 = vector.extract_strided_slice %25 {offsets = [0, 40], sizes = [16, 8], strides = [1, 1]} : vector<16x128xf32> to vector<16x8xf32>
    %233 = arith.addf %226, %232 : vector<16x8xf32>
    %cst_60 = arith.constant 0.000000e+00 : f32
    %234 = vector.broadcast %cst_60 : f32 to vector<4x8xf32>
    %235 = vector.extract_strided_slice %233 {offsets = [0, 0], sizes = [12, 8], strides = [1, 1]} : vector<16x8xf32> to vector<12x8xf32>
    %236 = tpu.concatenate %234, %235 in 0 : vector<4x8xf32>, vector<12x8xf32> -> vector<16x8xf32>
    %237 = vector.extract_strided_slice %26 {offsets = [5, 0, 0, 0], sizes = [1, 1, 8, 8], strides = [1, 1, 1, 1]} : vector<7x3x8x8xbf16> to vector<1x1x8x8xbf16>
    %238 = vector.shape_cast %237 : vector<1x1x8x8xbf16> to vector<8x8xbf16>
    %239 = arith.truncf %236 : vector<16x8xf32> to vector<16x8xbf16>
    %cst_61 = arith.constant dense<0.000000e+00> : vector<16x8xf32>
    %240 = tpu.matmul %239, %238, %cst_61 {dimension_numbers = #tpu.dot_dimension_numbers<[1], [0], [0], [1], [0, 0, 1, 1], [], []>} : vector<16x8xbf16>, vector<8x8xbf16>, vector<16x8xf32> -> vector<16x8xf32>
    %241 = vector.extract_strided_slice %26 {offsets = [5, 1, 0, 0], sizes = [1, 1, 8, 8], strides = [1, 1, 1, 1]} : vector<7x3x8x8xbf16> to vector<1x1x8x8xbf16>
    %242 = vector.shape_cast %241 : vector<1x1x8x8xbf16> to vector<8x8xbf16>
    %243 = arith.truncf %233 : vector<16x8xf32> to vector<16x8xbf16>
    %cst_62 = arith.constant dense<0.000000e+00> : vector<16x8xf32>
    %244 = tpu.matmul %243, %242, %cst_62 {dimension_numbers = #tpu.dot_dimension_numbers<[1], [0], [0], [1], [0, 0, 1, 1], [], []>} : vector<16x8xbf16>, vector<8x8xbf16>, vector<16x8xf32> -> vector<16x8xf32>
    %245 = arith.addf %240, %244 : vector<16x8xf32>
    %cst_63 = arith.constant 0.000000e+00 : f32
    %246 = vector.broadcast %cst_63 : f32 to vector<4x8xf32>
    %247 = vector.extract_strided_slice %233 {offsets = [4, 0], sizes = [12, 8], strides = [1, 1]} : vector<16x8xf32> to vector<12x8xf32>
    %248 = tpu.concatenate %247, %246 in 0 : vector<12x8xf32>, vector<4x8xf32> -> vector<16x8xf32>
    %249 = vector.extract_strided_slice %26 {offsets = [5, 2, 0, 0], sizes = [1, 1, 8, 8], strides = [1, 1, 1, 1]} : vector<7x3x8x8xbf16> to vector<1x1x8x8xbf16>
    %250 = vector.shape_cast %249 : vector<1x1x8x8xbf16> to vector<8x8xbf16>
    %251 = arith.truncf %248 : vector<16x8xf32> to vector<16x8xbf16>
    %cst_64 = arith.constant dense<0.000000e+00> : vector<16x8xf32>
    %252 = tpu.matmul %251, %250, %cst_64 {dimension_numbers = #tpu.dot_dimension_numbers<[1], [0], [0], [1], [0, 0, 1, 1], [], []>} : vector<16x8xbf16>, vector<8x8xbf16>, vector<16x8xf32> -> vector<16x8xf32>
    %253 = arith.addf %245, %252 : vector<16x8xf32>
    %254 = vector.extract_strided_slice %27 {offsets = [5, 0, 0, 0], sizes = [1, 1, 1, 8], strides = [1, 1, 1, 1]} : vector<7x3x1x8xf32> to vector<1x1x1x8xf32>
    %255 = vector.shape_cast %254 : vector<1x1x1x8xf32> to vector<1x8xf32>
    %256 = vector.broadcast %255 : vector<1x8xf32> to vector<16x8xf32>
    %257 = arith.addf %253, %256 : vector<16x8xf32>
    %cst_65 = arith.constant 0.000000e+00 : f32
    %258 = vector.broadcast %cst_65 : f32 to vector<16x8xf32>
    %259 = arith.maximumf %257, %258 : vector<16x8xf32>
    %260 = vector.extract_strided_slice %27 {offsets = [5, 1, 0, 0], sizes = [1, 1, 1, 8], strides = [1, 1, 1, 1]} : vector<7x3x1x8xf32> to vector<1x1x1x8xf32>
    %261 = vector.shape_cast %260 : vector<1x1x1x8xf32> to vector<1x8xf32>
    %262 = vector.broadcast %261 : vector<1x8xf32> to vector<16x8xf32>
    %263 = arith.mulf %259, %262 : vector<16x8xf32>
    %264 = vector.extract_strided_slice %27 {offsets = [5, 2, 0, 0], sizes = [1, 1, 1, 8], strides = [1, 1, 1, 1]} : vector<7x3x1x8xf32> to vector<1x1x1x8xf32>
    %265 = vector.shape_cast %264 : vector<1x1x1x8xf32> to vector<1x8xf32>
    %266 = vector.broadcast %265 : vector<1x8xf32> to vector<16x8xf32>
    %267 = arith.addf %263, %266 : vector<16x8xf32>
    %268 = vector.extract_strided_slice %28 {offsets = [5, 0, 0], sizes = [1, 8, 128], strides = [1, 1, 1]} : vector<8x8x128xbf16> to vector<1x8x128xbf16>
    %269 = vector.shape_cast %268 : vector<1x8x128xbf16> to vector<8x128xbf16>
    %270 = arith.truncf %267 : vector<16x8xf32> to vector<16x8xbf16>
    %cst_66 = arith.constant dense<0.000000e+00> : vector<16x128xf32>
    %271 = tpu.matmul %270, %269, %cst_66 {dimension_numbers = #tpu.dot_dimension_numbers<[1], [0], [0], [1], [0, 0, 1, 1], [], []>} : vector<16x8xbf16>, vector<8x128xbf16>, vector<16x128xf32> -> vector<16x128xf32>
    %272 = arith.addf %231, %271 : vector<16x128xf32>
    %273 = vector.extract_strided_slice %25 {offsets = [0, 48], sizes = [16, 8], strides = [1, 1]} : vector<16x128xf32> to vector<16x8xf32>
    %274 = arith.addf %267, %273 : vector<16x8xf32>
    %cst_67 = arith.constant 0.000000e+00 : f32
    %275 = vector.broadcast %cst_67 : f32 to vector<4x8xf32>
    %276 = vector.extract_strided_slice %274 {offsets = [0, 0], sizes = [12, 8], strides = [1, 1]} : vector<16x8xf32> to vector<12x8xf32>
    %277 = tpu.concatenate %275, %276 in 0 : vector<4x8xf32>, vector<12x8xf32> -> vector<16x8xf32>
    %278 = vector.extract_strided_slice %26 {offsets = [6, 0, 0, 0], sizes = [1, 1, 8, 8], strides = [1, 1, 1, 1]} : vector<7x3x8x8xbf16> to vector<1x1x8x8xbf16>
    %279 = vector.shape_cast %278 : vector<1x1x8x8xbf16> to vector<8x8xbf16>
    %280 = arith.truncf %277 : vector<16x8xf32> to vector<16x8xbf16>
    %cst_68 = arith.constant dense<0.000000e+00> : vector<16x8xf32>
    %281 = tpu.matmul %280, %279, %cst_68 {dimension_numbers = #tpu.dot_dimension_numbers<[1], [0], [0], [1], [0, 0, 1, 1], [], []>} : vector<16x8xbf16>, vector<8x8xbf16>, vector<16x8xf32> -> vector<16x8xf32>
    %282 = vector.extract_strided_slice %26 {offsets = [6, 1, 0, 0], sizes = [1, 1, 8, 8], strides = [1, 1, 1, 1]} : vector<7x3x8x8xbf16> to vector<1x1x8x8xbf16>
    %283 = vector.shape_cast %282 : vector<1x1x8x8xbf16> to vector<8x8xbf16>
    %284 = arith.truncf %274 : vector<16x8xf32> to vector<16x8xbf16>
    %cst_69 = arith.constant dense<0.000000e+00> : vector<16x8xf32>
    %285 = tpu.matmul %284, %283, %cst_69 {dimension_numbers = #tpu.dot_dimension_numbers<[1], [0], [0], [1], [0, 0, 1, 1], [], []>} : vector<16x8xbf16>, vector<8x8xbf16>, vector<16x8xf32> -> vector<16x8xf32>
    %286 = arith.addf %281, %285 : vector<16x8xf32>
    %cst_70 = arith.constant 0.000000e+00 : f32
    %287 = vector.broadcast %cst_70 : f32 to vector<4x8xf32>
    %288 = vector.extract_strided_slice %274 {offsets = [4, 0], sizes = [12, 8], strides = [1, 1]} : vector<16x8xf32> to vector<12x8xf32>
    %289 = tpu.concatenate %288, %287 in 0 : vector<12x8xf32>, vector<4x8xf32> -> vector<16x8xf32>
    %290 = vector.extract_strided_slice %26 {offsets = [6, 2, 0, 0], sizes = [1, 1, 8, 8], strides = [1, 1, 1, 1]} : vector<7x3x8x8xbf16> to vector<1x1x8x8xbf16>
    %291 = vector.shape_cast %290 : vector<1x1x8x8xbf16> to vector<8x8xbf16>
    %292 = arith.truncf %289 : vector<16x8xf32> to vector<16x8xbf16>
    %cst_71 = arith.constant dense<0.000000e+00> : vector<16x8xf32>
    %293 = tpu.matmul %292, %291, %cst_71 {dimension_numbers = #tpu.dot_dimension_numbers<[1], [0], [0], [1], [0, 0, 1, 1], [], []>} : vector<16x8xbf16>, vector<8x8xbf16>, vector<16x8xf32> -> vector<16x8xf32>
    %294 = arith.addf %286, %293 : vector<16x8xf32>
    %295 = vector.extract_strided_slice %27 {offsets = [6, 0, 0, 0], sizes = [1, 1, 1, 8], strides = [1, 1, 1, 1]} : vector<7x3x1x8xf32> to vector<1x1x1x8xf32>
    %296 = vector.shape_cast %295 : vector<1x1x1x8xf32> to vector<1x8xf32>
    %297 = vector.broadcast %296 : vector<1x8xf32> to vector<16x8xf32>
    %298 = arith.addf %294, %297 : vector<16x8xf32>
    %cst_72 = arith.constant 0.000000e+00 : f32
    %299 = vector.broadcast %cst_72 : f32 to vector<16x8xf32>
    %300 = arith.maximumf %298, %299 : vector<16x8xf32>
    %301 = vector.extract_strided_slice %27 {offsets = [6, 1, 0, 0], sizes = [1, 1, 1, 8], strides = [1, 1, 1, 1]} : vector<7x3x1x8xf32> to vector<1x1x1x8xf32>
    %302 = vector.shape_cast %301 : vector<1x1x1x8xf32> to vector<1x8xf32>
    %303 = vector.broadcast %302 : vector<1x8xf32> to vector<16x8xf32>
    %304 = arith.mulf %300, %303 : vector<16x8xf32>
    %305 = vector.extract_strided_slice %27 {offsets = [6, 2, 0, 0], sizes = [1, 1, 1, 8], strides = [1, 1, 1, 1]} : vector<7x3x1x8xf32> to vector<1x1x1x8xf32>
    %306 = vector.shape_cast %305 : vector<1x1x1x8xf32> to vector<1x8xf32>
    %307 = vector.broadcast %306 : vector<1x8xf32> to vector<16x8xf32>
    %308 = arith.addf %304, %307 : vector<16x8xf32>
    %309 = vector.extract_strided_slice %28 {offsets = [6, 0, 0], sizes = [1, 8, 128], strides = [1, 1, 1]} : vector<8x8x128xbf16> to vector<1x8x128xbf16>
    %310 = vector.shape_cast %309 : vector<1x8x128xbf16> to vector<8x128xbf16>
    %311 = arith.truncf %308 : vector<16x8xf32> to vector<16x8xbf16>
    %cst_73 = arith.constant dense<0.000000e+00> : vector<16x128xf32>
    %312 = tpu.matmul %311, %310, %cst_73 {dimension_numbers = #tpu.dot_dimension_numbers<[1], [0], [0], [1], [0, 0, 1, 1], [], []>} : vector<16x8xbf16>, vector<8x128xbf16>, vector<16x128xf32> -> vector<16x128xf32>
    %313 = arith.addf %272, %312 : vector<16x128xf32>
    %314 = vector.extract_strided_slice %25 {offsets = [0, 56], sizes = [16, 8], strides = [1, 1]} : vector<16x128xf32> to vector<16x8xf32>
    %315 = vector.extract_strided_slice %28 {offsets = [7, 0, 0], sizes = [1, 8, 128], strides = [1, 1, 1]} : vector<8x8x128xbf16> to vector<1x8x128xbf16>
    %316 = vector.shape_cast %315 : vector<1x8x128xbf16> to vector<8x128xbf16>
    %317 = arith.truncf %314 : vector<16x8xf32> to vector<16x8xbf16>
    %cst_74 = arith.constant dense<0.000000e+00> : vector<16x128xf32>
    %318 = tpu.matmul %317, %316, %cst_74 {dimension_numbers = #tpu.dot_dimension_numbers<[1], [0], [0], [1], [0, 0, 1, 1], [], []>} : vector<16x8xbf16>, vector<8x128xbf16>, vector<16x128xf32> -> vector<16x128xf32>
    %319 = arith.addf %313, %318 : vector<16x128xf32>
    %c0_75 = arith.constant 0 : index
    %c0_76 = arith.constant 0 : index
    %c0_77 = arith.constant 0 : index
    %320 = vector.load %arg9[%c0_75, %c0_76, %c0_77] : memref<3x1x128xf32, #tpu.memory_space<vmem>>, vector<3x1x128xf32>
    %321 = vector.extract_strided_slice %320 {offsets = [0, 0, 0], sizes = [1, 1, 128], strides = [1, 1, 1]} : vector<3x1x128xf32> to vector<1x1x128xf32>
    %322 = vector.shape_cast %321 : vector<1x1x128xf32> to vector<1x128xf32>
    %323 = vector.broadcast %322 : vector<1x128xf32> to vector<16x128xf32>
    %324 = arith.addf %319, %323 : vector<16x128xf32>
    %cst_78 = arith.constant 0.000000e+00 : f32
    %325 = vector.broadcast %cst_78 : f32 to vector<16x128xf32>
    %326 = arith.maximumf %324, %325 : vector<16x128xf32>
    %327 = vector.extract_strided_slice %320 {offsets = [1, 0, 0], sizes = [1, 1, 128], strides = [1, 1, 1]} : vector<3x1x128xf32> to vector<1x1x128xf32>
    %328 = vector.shape_cast %327 : vector<1x1x128xf32> to vector<1x128xf32>
    %329 = vector.broadcast %328 : vector<1x128xf32> to vector<16x128xf32>
    %330 = arith.mulf %326, %329 : vector<16x128xf32>
    %331 = vector.extract_strided_slice %320 {offsets = [2, 0, 0], sizes = [1, 1, 128], strides = [1, 1, 1]} : vector<3x1x128xf32> to vector<1x1x128xf32>
    %332 = vector.shape_cast %331 : vector<1x1x128xf32> to vector<1x128xf32>
    %333 = vector.broadcast %332 : vector<1x128xf32> to vector<16x128xf32>
    %334 = arith.addf %330, %333 : vector<16x128xf32>
    %cst_79 = arith.constant dense<0.000000e+00> : vector<128xf32>
    %335 = vector.multi_reduction <add>, %334, %cst_79 [0] : vector<16x128xf32> to vector<128xf32>
    %336 = vector.shape_cast %335 : vector<128xf32> to vector<1x128xf32>
    %cst_80 = arith.constant 1.600000e+01 : f32
    %337 = vector.broadcast %cst_80 : f32 to vector<1x128xf32>
    %338 = arith.divf %336, %337 : vector<1x128xf32>
    %c0_81 = arith.constant 0 : index
    %c0_82 = arith.constant 0 : index
    %339 = vector.load %arg10[%c0_81, %c0_82] : memref<128x128xbf16, #tpu.memory_space<vmem>>, vector<128x128xbf16>
    %340 = arith.truncf %338 : vector<1x128xf32> to vector<1x128xbf16>
    %cst_83 = arith.constant dense<0.000000e+00> : vector<1x128xf32>
    %341 = tpu.matmul %340, %339, %cst_83 {dimension_numbers = #tpu.dot_dimension_numbers<[1], [0], [0], [1], [0, 0, 1, 1], [], []>} : vector<1x128xbf16>, vector<128x128xbf16>, vector<1x128xf32> -> vector<1x128xf32>
    %c0_84 = arith.constant 0 : index
    %c0_85 = arith.constant 0 : index
    %342 = vector.load %arg11[%c0_84, %c0_85] : memref<1x128xf32, #tpu.memory_space<vmem>>, vector<1x128xf32>
    %343 = arith.addf %341, %342 : vector<1x128xf32>
    %cst_86 = arith.constant 0.000000e+00 : f32
    %344 = vector.broadcast %cst_86 : f32 to vector<1x128xf32>
    %345 = arith.maximumf %343, %344 : vector<1x128xf32>
    %c0_87 = arith.constant 0 : index
    %c0_88 = arith.constant 0 : index
    %346 = vector.load %arg12[%c0_87, %c0_88] : memref<128x128xbf16, #tpu.memory_space<vmem>>, vector<128x128xbf16>
    %347 = arith.truncf %345 : vector<1x128xf32> to vector<1x128xbf16>
    %cst_89 = arith.constant dense<0.000000e+00> : vector<1x128xf32>
    %348 = tpu.matmul %347, %346, %cst_89 {dimension_numbers = #tpu.dot_dimension_numbers<[1], [0], [0], [1], [0, 0, 1, 1], [], []>} : vector<1x128xbf16>, vector<128x128xbf16>, vector<1x128xf32> -> vector<1x128xf32>
    %c0_90 = arith.constant 0 : index
    %c0_91 = arith.constant 0 : index
    %349 = vector.load %arg13[%c0_90, %c0_91] : memref<1x128xf32, #tpu.memory_space<vmem>>, vector<1x128xf32>
    %350 = arith.addf %348, %349 : vector<1x128xf32>
    %351 = arith.negf %350 : vector<1x128xf32>
    %352 = math.exp %351 : vector<1x128xf32>
    %cst_92 = arith.constant 1.000000e+00 : f32
    %353 = vector.broadcast %cst_92 : f32 to vector<1x128xf32>
    %354 = arith.addf %353, %352 : vector<1x128xf32>
    %355 = arith.divf %353, %354 : vector<1x128xf32>
    %356 = vector.broadcast %355 : vector<1x128xf32> to vector<16x128xf32>
    %357 = arith.mulf %334, %356 : vector<16x128xf32>
    %358 = arith.addf %357, %7 : vector<16x128xf32>
    %c0_93 = arith.constant 0 : index
    %c0_94 = arith.constant 0 : index
    %c0_95 = arith.constant 0 : index
    %359 = vector.load %arg14[%c0_93, %c0_94, %c0_95] : memref<1x16x128xf32, #tpu.memory_space<vmem>>, vector<1x16x128xf32>
    %360 = vector.shape_cast %359 : vector<1x16x128xf32> to vector<16x128xf32>
    %361 = vector.shape_cast %358 : vector<16x128xf32> to vector<1x16x128xf32>
    tpu.vector_store %arg14[%c0_93, %c0_94, %c0_95], %361 {strides = array<i32>} : memref<1x16x128xf32, #tpu.memory_space<vmem>>, vector<1x16x128xf32>,
    return
  }
  func.func @transform_0(%arg0: i32) -> (i32, i32, i32) {
    %c0_i32 = arith.constant 0 : i32
    %c0_i32_0 = arith.constant 0 : i32
    %c0_i32_1 = arith.constant 0 : i32
    return %arg0, %c0_i32, %c0_i32_0 : i32, i32, i32
  }
  func.func @transform_1(%arg0: i32) -> (i32, i32, i32) {
    %c0_i32 = arith.constant 0 : i32
    %c0_i32_0 = arith.constant 0 : i32
    %c0_i32_1 = arith.constant 0 : i32
    return %arg0, %c0_i32, %c0_i32_0 : i32, i32, i32
  }
  func.func @transform_2(%arg0: i32) -> (i32, i32, i32) {
    %c0_i32 = arith.constant 0 : i32
    %c0_i32_0 = arith.constant 0 : i32
    %c0_i32_1 = arith.constant 0 : i32
    return %arg0, %c0_i32, %c0_i32_0 : i32, i32, i32
  }
  func.func @transform_3(%arg0: i32) -> (i32, i32) {
    %c0_i32 = arith.constant 0 : i32
    %c0_i32_0 = arith.constant 0 : i32
    %c0_i32_1 = arith.constant 0 : i32
    return %c0_i32, %c0_i32_0 : i32, i32
  }
  func.func @transform_4(%arg0: i32) -> (i32, i32, i32) {
    %c0_i32 = arith.constant 0 : i32
    %c0_i32_0 = arith.constant 0 : i32
    %c0_i32_1 = arith.constant 0 : i32
    %c0_i32_2 = arith.constant 0 : i32
    return %c0_i32, %c0_i32_0, %c0_i32_1 : i32, i32, i32
  }
  func.func @transform_5(%arg0: i32) -> (i32, i32, i32, i32) {
    %c0_i32 = arith.constant 0 : i32
    %c0_i32_0 = arith.constant 0 : i32
    %c0_i32_1 = arith.constant 0 : i32
    %c0_i32_2 = arith.constant 0 : i32
    %c0_i32_3 = arith.constant 0 : i32
    return %c0_i32, %c0_i32_0, %c0_i32_1, %c0_i32_2 : i32, i32, i32, i32
  }
  func.func @transform_6(%arg0: i32) -> (i32, i32, i32, i32) {
    %c0_i32 = arith.constant 0 : i32
    %c0_i32_0 = arith.constant 0 : i32
    %c0_i32_1 = arith.constant 0 : i32
    %c0_i32_2 = arith.constant 0 : i32
    %c0_i32_3 = arith.constant 0 : i32
    return %c0_i32, %c0_i32_0, %c0_i32_1, %c0_i32_2 : i32, i32, i32, i32
  }
  func.func @transform_7(%arg0: i32) -> (i32, i32, i32) {
    %c0_i32 = arith.constant 0 : i32
    %c0_i32_0 = arith.constant 0 : i32
    %c0_i32_1 = arith.constant 0 : i32
    %c0_i32_2 = arith.constant 0 : i32
    return %c0_i32, %c0_i32_0, %c0_i32_1 : i32, i32, i32
  }
  func.func @transform_8(%arg0: i32) -> (i32, i32, i32) {
    %c0_i32 = arith.constant 0 : i32
    %c0_i32_0 = arith.constant 0 : i32
    %c0_i32_1 = arith.constant 0 : i32
    %c0_i32_2 = arith.constant 0 : i32
    return %c0_i32, %c0_i32_0, %c0_i32_1 : i32, i32, i32
  }
  func.func @transform_9(%arg0: i32) -> (i32, i32) {
    %c0_i32 = arith.constant 0 : i32
    %c0_i32_0 = arith.constant 0 : i32
    %c0_i32_1 = arith.constant 0 : i32
    return %c0_i32, %c0_i32_0 : i32, i32
  }
  func.func @transform_10(%arg0: i32) -> (i32, i32) {
    %c0_i32 = arith.constant 0 : i32
    %c0_i32_0 = arith.constant 0 : i32
    %c0_i32_1 = arith.constant 0 : i32
    return %c0_i32, %c0_i32_0 : i32, i32
  }
  func.func @transform_11(%arg0: i32) -> (i32, i32) {
    %c0_i32 = arith.constant 0 : i32
    %c0_i32_0 = arith.constant 0 : i32
    %c0_i32_1 = arith.constant 0 : i32
    return %c0_i32, %c0_i32_0 : i32, i32
  }
  func.func @transform_12(%arg0: i32) -> (i32, i32) {
    %c0_i32 = arith.constant 0 : i32
    %c0_i32_0 = arith.constant 0 : i32
    %c0_i32_1 = arith.constant 0 : i32
    return %c0_i32, %c0_i32_0 : i32, i32
  }
  func.func @transform_13(%arg0: i32) -> (i32, i32, i32) {
    %c0_i32 = arith.constant 0 : i32
    %c0_i32_0 = arith.constant 0 : i32
    %c0_i32_1 = arith.constant 0 : i32
    return %arg0, %c0_i32, %c0_i32_0 : i32, i32, i32
  }
}

module attributes {stable_mosaic.version = 11 : i64} {
  func.func @_bottle2neck_kernel(%arg0: i32, %arg1: memref<1x16x128xf32, #tpu.memory_space<vmem>>, %arg2: memref<128x128xbf16, #tpu.memory_space<vmem>>, %arg3: memref<3x1x128xf32, #tpu.memory_space<vmem>>, %arg4: memref<7x3x8x8xbf16, #tpu.memory_space<vmem>>, %arg5: memref<7x3x1x8xf32, #tpu.memory_space<vmem>>, %arg6: memref<8x8x128xbf16, #tpu.memory_space<vmem>>, %arg7: memref<3x1x128xf32, #tpu.memory_space<vmem>>, %arg8: memref<128x128xbf16, #tpu.memory_space<vmem>>, %arg9: memref<1x128xf32, #tpu.memory_space<vmem>>, %arg10: memref<128x128xbf16, #tpu.memory_space<vmem>>, %arg11: memref<1x128xf32, #tpu.memory_space<vmem>>, %arg12: memref<1x16x128xf32, #tpu.memory_space<vmem>>) attributes {dimension_semantics = [#tpu.dimension_semantics<parallel>], iteration_bounds = array<i64: 2>, scalar_prefetch = 0 : i64, scratch_operands = 0 : i64, tpu.core_type = #tpu.core_type<tc>, window_params = [{transform_indices = @transform_0, window_bounds = array<i64: 1, 16, 128>}, {pipeline_mode = #tpu.pipeline_mode<synchronous>, transform_indices = @transform_1, window_bounds = array<i64: 128, 128>}, {pipeline_mode = #tpu.pipeline_mode<synchronous>, transform_indices = @transform_2, window_bounds = array<i64: 3, 1, 128>}, {pipeline_mode = #tpu.pipeline_mode<synchronous>, transform_indices = @transform_3, window_bounds = array<i64: 7, 3, 8, 8>}, {pipeline_mode = #tpu.pipeline_mode<synchronous>, transform_indices = @transform_4, window_bounds = array<i64: 7, 3, 1, 8>}, {pipeline_mode = #tpu.pipeline_mode<synchronous>, transform_indices = @transform_5, window_bounds = array<i64: 8, 8, 128>}, {pipeline_mode = #tpu.pipeline_mode<synchronous>, transform_indices = @transform_6, window_bounds = array<i64: 3, 1, 128>}, {pipeline_mode = #tpu.pipeline_mode<synchronous>, transform_indices = @transform_7, window_bounds = array<i64: 128, 128>}, {pipeline_mode = #tpu.pipeline_mode<synchronous>, transform_indices = @transform_8, window_bounds = array<i64: 1, 128>}, {pipeline_mode = #tpu.pipeline_mode<synchronous>, transform_indices = @transform_9, window_bounds = array<i64: 128, 128>}, {pipeline_mode = #tpu.pipeline_mode<synchronous>, transform_indices = @transform_10, window_bounds = array<i64: 1, 128>}, {transform_indices = @transform_11, window_bounds = array<i64: 1, 16, 128>}]} {
    %c0 = arith.constant 0 : index
    %c0_0 = arith.constant 0 : index
    %c0_1 = arith.constant 0 : index
    %0 = vector.load %arg1[%c0, %c0_0, %c0_1] : memref<1x16x128xf32, #tpu.memory_space<vmem>>, vector<1x16x128xf32>
    %1 = vector.shape_cast %0 : vector<1x16x128xf32> to vector<16x128xf32>
    %c0_2 = arith.constant 0 : index
    %c0_3 = arith.constant 0 : index
    %c0_4 = arith.constant 0 : index
    %2 = vector.load %arg3[%c0_2, %c0_3, %c0_4] : memref<3x1x128xf32, #tpu.memory_space<vmem>>, vector<3x1x128xf32>
    %c0_5 = arith.constant 0 : index
    %c0_6 = arith.constant 0 : index
    %3 = vector.load %arg2[%c0_5, %c0_6] : memref<128x128xbf16, #tpu.memory_space<vmem>>, vector<128x128xbf16>
    %4 = arith.truncf %1 : vector<16x128xf32> to vector<16x128xbf16>
    %cst = arith.constant dense<0.000000e+00> : vector<16x128xf32>
    %5 = tpu.matmul %4, %3, %cst {dimension_numbers = #tpu.dot_dimension_numbers<[1], [0], [0], [1], [0, 0, 1, 1], [], []>} : vector<16x128xbf16>, vector<128x128xbf16>, vector<16x128xf32> -> vector<16x128xf32>
    %6 = vector.extract_strided_slice %2 {offsets = [0, 0, 0], sizes = [1, 1, 128], strides = [1, 1, 1]} : vector<3x1x128xf32> to vector<1x1x128xf32>
    %7 = vector.shape_cast %6 : vector<1x1x128xf32> to vector<1x128xf32>
    %8 = vector.broadcast %7 : vector<1x128xf32> to vector<16x128xf32>
    %9 = arith.addf %5, %8 : vector<16x128xf32>
    %cst_7 = arith.constant 0.000000e+00 : f32
    %10 = vector.broadcast %cst_7 : f32 to vector<16x128xf32>
    %11 = arith.maximumf %9, %10 : vector<16x128xf32>
    %12 = vector.extract_strided_slice %2 {offsets = [1, 0, 0], sizes = [1, 1, 128], strides = [1, 1, 1]} : vector<3x1x128xf32> to vector<1x1x128xf32>
    %13 = vector.shape_cast %12 : vector<1x1x128xf32> to vector<1x128xf32>
    %14 = vector.broadcast %13 : vector<1x128xf32> to vector<16x128xf32>
    %15 = arith.mulf %11, %14 : vector<16x128xf32>
    %16 = vector.extract_strided_slice %2 {offsets = [2, 0, 0], sizes = [1, 1, 128], strides = [1, 1, 1]} : vector<3x1x128xf32> to vector<1x1x128xf32>
    %17 = vector.shape_cast %16 : vector<1x1x128xf32> to vector<1x128xf32>
    %18 = vector.broadcast %17 : vector<1x128xf32> to vector<16x128xf32>
    %19 = arith.addf %15, %18 : vector<16x128xf32>
    %c0_8 = arith.constant 0 : index
    %c0_9 = arith.constant 0 : index
    %c0_10 = arith.constant 0 : index
    %c0_11 = arith.constant 0 : index
    %20 = vector.load %arg4[%c0_8, %c0_9, %c0_10, %c0_11] : memref<7x3x8x8xbf16, #tpu.memory_space<vmem>>, vector<7x3x8x8xbf16>
    %c0_12 = arith.constant 0 : index
    %c0_13 = arith.constant 0 : index
    %c0_14 = arith.constant 0 : index
    %c0_15 = arith.constant 0 : index
    %21 = vector.load %arg5[%c0_12, %c0_13, %c0_14, %c0_15] : memref<7x3x1x8xf32, #tpu.memory_space<vmem>>, vector<7x3x1x8xf32>
    %c0_16 = arith.constant 0 : index
    %c0_17 = arith.constant 0 : index
    %c0_18 = arith.constant 0 : index
    %22 = vector.load %arg6[%c0_16, %c0_17, %c0_18] : memref<8x8x128xbf16, #tpu.memory_space<vmem>>, vector<8x8x128xbf16>
    %23 = vector.extract_strided_slice %19 {offsets = [0, 0], sizes = [16, 8], strides = [1, 1]} : vector<16x128xf32> to vector<16x8xf32>
    %cst_19 = arith.constant 0.000000e+00 : f32
    %24 = vector.broadcast %cst_19 : f32 to vector<2x8xf32>
    %25 = vector.extract_strided_slice %23 {offsets = [0, 0], sizes = [14, 8], strides = [1, 1]} : vector<16x8xf32> to vector<14x8xf32>
    %26 = tpu.concatenate %24, %25 in 0 : vector<2x8xf32>, vector<14x8xf32> -> vector<16x8xf32>
    %27 = vector.extract_strided_slice %20 {offsets = [0, 0, 0, 0], sizes = [1, 1, 8, 8], strides = [1, 1, 1, 1]} : vector<7x3x8x8xbf16> to vector<1x1x8x8xbf16>
    %28 = vector.shape_cast %27 : vector<1x1x8x8xbf16> to vector<8x8xbf16>
    %29 = arith.truncf %26 : vector<16x8xf32> to vector<16x8xbf16>
    %cst_20 = arith.constant dense<0.000000e+00> : vector<16x8xf32>
    %30 = tpu.matmul %29, %28, %cst_20 {dimension_numbers = #tpu.dot_dimension_numbers<[1], [0], [0], [1], [0, 0, 1, 1], [], []>} : vector<16x8xbf16>, vector<8x8xbf16>, vector<16x8xf32> -> vector<16x8xf32>
    %31 = vector.extract_strided_slice %20 {offsets = [0, 1, 0, 0], sizes = [1, 1, 8, 8], strides = [1, 1, 1, 1]} : vector<7x3x8x8xbf16> to vector<1x1x8x8xbf16>
    %32 = vector.shape_cast %31 : vector<1x1x8x8xbf16> to vector<8x8xbf16>
    %33 = arith.truncf %23 : vector<16x8xf32> to vector<16x8xbf16>
    %cst_21 = arith.constant dense<0.000000e+00> : vector<16x8xf32>
    %34 = tpu.matmul %33, %32, %cst_21 {dimension_numbers = #tpu.dot_dimension_numbers<[1], [0], [0], [1], [0, 0, 1, 1], [], []>} : vector<16x8xbf16>, vector<8x8xbf16>, vector<16x8xf32> -> vector<16x8xf32>
    %35 = arith.addf %30, %34 : vector<16x8xf32>
    %cst_22 = arith.constant 0.000000e+00 : f32
    %36 = vector.broadcast %cst_22 : f32 to vector<2x8xf32>
    %37 = vector.extract_strided_slice %23 {offsets = [2, 0], sizes = [14, 8], strides = [1, 1]} : vector<16x8xf32> to vector<14x8xf32>
    %38 = tpu.concatenate %37, %36 in 0 : vector<14x8xf32>, vector<2x8xf32> -> vector<16x8xf32>
    %39 = vector.extract_strided_slice %20 {offsets = [0, 2, 0, 0], sizes = [1, 1, 8, 8], strides = [1, 1, 1, 1]} : vector<7x3x8x8xbf16> to vector<1x1x8x8xbf16>
    %40 = vector.shape_cast %39 : vector<1x1x8x8xbf16> to vector<8x8xbf16>
    %41 = arith.truncf %38 : vector<16x8xf32> to vector<16x8xbf16>
    %cst_23 = arith.constant dense<0.000000e+00> : vector<16x8xf32>
    %42 = tpu.matmul %41, %40, %cst_23 {dimension_numbers = #tpu.dot_dimension_numbers<[1], [0], [0], [1], [0, 0, 1, 1], [], []>} : vector<16x8xbf16>, vector<8x8xbf16>, vector<16x8xf32> -> vector<16x8xf32>
    %43 = arith.addf %35, %42 : vector<16x8xf32>
    %44 = vector.extract_strided_slice %21 {offsets = [0, 0, 0, 0], sizes = [1, 1, 1, 8], strides = [1, 1, 1, 1]} : vector<7x3x1x8xf32> to vector<1x1x1x8xf32>
    %45 = vector.shape_cast %44 : vector<1x1x1x8xf32> to vector<1x8xf32>
    %46 = vector.broadcast %45 : vector<1x8xf32> to vector<16x8xf32>
    %47 = arith.addf %43, %46 : vector<16x8xf32>
    %cst_24 = arith.constant 0.000000e+00 : f32
    %48 = vector.broadcast %cst_24 : f32 to vector<16x8xf32>
    %49 = arith.maximumf %47, %48 : vector<16x8xf32>
    %50 = vector.extract_strided_slice %21 {offsets = [0, 1, 0, 0], sizes = [1, 1, 1, 8], strides = [1, 1, 1, 1]} : vector<7x3x1x8xf32> to vector<1x1x1x8xf32>
    %51 = vector.shape_cast %50 : vector<1x1x1x8xf32> to vector<1x8xf32>
    %52 = vector.broadcast %51 : vector<1x8xf32> to vector<16x8xf32>
    %53 = arith.mulf %49, %52 : vector<16x8xf32>
    %54 = vector.extract_strided_slice %21 {offsets = [0, 2, 0, 0], sizes = [1, 1, 1, 8], strides = [1, 1, 1, 1]} : vector<7x3x1x8xf32> to vector<1x1x1x8xf32>
    %55 = vector.shape_cast %54 : vector<1x1x1x8xf32> to vector<1x8xf32>
    %56 = vector.broadcast %55 : vector<1x8xf32> to vector<16x8xf32>
    %57 = arith.addf %53, %56 : vector<16x8xf32>
    %58 = vector.extract_strided_slice %22 {offsets = [0, 0, 0], sizes = [1, 8, 128], strides = [1, 1, 1]} : vector<8x8x128xbf16> to vector<1x8x128xbf16>
    %59 = vector.shape_cast %58 : vector<1x8x128xbf16> to vector<8x128xbf16>
    %60 = arith.truncf %57 : vector<16x8xf32> to vector<16x8xbf16>
    %cst_25 = arith.constant dense<0.000000e+00> : vector<16x128xf32>
    %61 = tpu.matmul %60, %59, %cst_25 {dimension_numbers = #tpu.dot_dimension_numbers<[1], [0], [0], [1], [0, 0, 1, 1], [], []>} : vector<16x8xbf16>, vector<8x128xbf16>, vector<16x128xf32> -> vector<16x128xf32>
    %62 = vector.extract_strided_slice %19 {offsets = [0, 8], sizes = [16, 8], strides = [1, 1]} : vector<16x128xf32> to vector<16x8xf32>
    %63 = arith.addf %57, %62 : vector<16x8xf32>
    %cst_26 = arith.constant 0.000000e+00 : f32
    %64 = vector.broadcast %cst_26 : f32 to vector<2x8xf32>
    %65 = vector.extract_strided_slice %63 {offsets = [0, 0], sizes = [14, 8], strides = [1, 1]} : vector<16x8xf32> to vector<14x8xf32>
    %66 = tpu.concatenate %64, %65 in 0 : vector<2x8xf32>, vector<14x8xf32> -> vector<16x8xf32>
    %67 = vector.extract_strided_slice %20 {offsets = [1, 0, 0, 0], sizes = [1, 1, 8, 8], strides = [1, 1, 1, 1]} : vector<7x3x8x8xbf16> to vector<1x1x8x8xbf16>
    %68 = vector.shape_cast %67 : vector<1x1x8x8xbf16> to vector<8x8xbf16>
    %69 = arith.truncf %66 : vector<16x8xf32> to vector<16x8xbf16>
    %cst_27 = arith.constant dense<0.000000e+00> : vector<16x8xf32>
    %70 = tpu.matmul %69, %68, %cst_27 {dimension_numbers = #tpu.dot_dimension_numbers<[1], [0], [0], [1], [0, 0, 1, 1], [], []>} : vector<16x8xbf16>, vector<8x8xbf16>, vector<16x8xf32> -> vector<16x8xf32>
    %71 = vector.extract_strided_slice %20 {offsets = [1, 1, 0, 0], sizes = [1, 1, 8, 8], strides = [1, 1, 1, 1]} : vector<7x3x8x8xbf16> to vector<1x1x8x8xbf16>
    %72 = vector.shape_cast %71 : vector<1x1x8x8xbf16> to vector<8x8xbf16>
    %73 = arith.truncf %63 : vector<16x8xf32> to vector<16x8xbf16>
    %cst_28 = arith.constant dense<0.000000e+00> : vector<16x8xf32>
    %74 = tpu.matmul %73, %72, %cst_28 {dimension_numbers = #tpu.dot_dimension_numbers<[1], [0], [0], [1], [0, 0, 1, 1], [], []>} : vector<16x8xbf16>, vector<8x8xbf16>, vector<16x8xf32> -> vector<16x8xf32>
    %75 = arith.addf %70, %74 : vector<16x8xf32>
    %cst_29 = arith.constant 0.000000e+00 : f32
    %76 = vector.broadcast %cst_29 : f32 to vector<2x8xf32>
    %77 = vector.extract_strided_slice %63 {offsets = [2, 0], sizes = [14, 8], strides = [1, 1]} : vector<16x8xf32> to vector<14x8xf32>
    %78 = tpu.concatenate %77, %76 in 0 : vector<14x8xf32>, vector<2x8xf32> -> vector<16x8xf32>
    %79 = vector.extract_strided_slice %20 {offsets = [1, 2, 0, 0], sizes = [1, 1, 8, 8], strides = [1, 1, 1, 1]} : vector<7x3x8x8xbf16> to vector<1x1x8x8xbf16>
    %80 = vector.shape_cast %79 : vector<1x1x8x8xbf16> to vector<8x8xbf16>
    %81 = arith.truncf %78 : vector<16x8xf32> to vector<16x8xbf16>
    %cst_30 = arith.constant dense<0.000000e+00> : vector<16x8xf32>
    %82 = tpu.matmul %81, %80, %cst_30 {dimension_numbers = #tpu.dot_dimension_numbers<[1], [0], [0], [1], [0, 0, 1, 1], [], []>} : vector<16x8xbf16>, vector<8x8xbf16>, vector<16x8xf32> -> vector<16x8xf32>
    %83 = arith.addf %75, %82 : vector<16x8xf32>
    %84 = vector.extract_strided_slice %21 {offsets = [1, 0, 0, 0], sizes = [1, 1, 1, 8], strides = [1, 1, 1, 1]} : vector<7x3x1x8xf32> to vector<1x1x1x8xf32>
    %85 = vector.shape_cast %84 : vector<1x1x1x8xf32> to vector<1x8xf32>
    %86 = vector.broadcast %85 : vector<1x8xf32> to vector<16x8xf32>
    %87 = arith.addf %83, %86 : vector<16x8xf32>
    %cst_31 = arith.constant 0.000000e+00 : f32
    %88 = vector.broadcast %cst_31 : f32 to vector<16x8xf32>
    %89 = arith.maximumf %87, %88 : vector<16x8xf32>
    %90 = vector.extract_strided_slice %21 {offsets = [1, 1, 0, 0], sizes = [1, 1, 1, 8], strides = [1, 1, 1, 1]} : vector<7x3x1x8xf32> to vector<1x1x1x8xf32>
    %91 = vector.shape_cast %90 : vector<1x1x1x8xf32> to vector<1x8xf32>
    %92 = vector.broadcast %91 : vector<1x8xf32> to vector<16x8xf32>
    %93 = arith.mulf %89, %92 : vector<16x8xf32>
    %94 = vector.extract_strided_slice %21 {offsets = [1, 2, 0, 0], sizes = [1, 1, 1, 8], strides = [1, 1, 1, 1]} : vector<7x3x1x8xf32> to vector<1x1x1x8xf32>
    %95 = vector.shape_cast %94 : vector<1x1x1x8xf32> to vector<1x8xf32>
    %96 = vector.broadcast %95 : vector<1x8xf32> to vector<16x8xf32>
    %97 = arith.addf %93, %96 : vector<16x8xf32>
    %98 = vector.extract_strided_slice %22 {offsets = [1, 0, 0], sizes = [1, 8, 128], strides = [1, 1, 1]} : vector<8x8x128xbf16> to vector<1x8x128xbf16>
    %99 = vector.shape_cast %98 : vector<1x8x128xbf16> to vector<8x128xbf16>
    %100 = arith.truncf %97 : vector<16x8xf32> to vector<16x8xbf16>
    %cst_32 = arith.constant dense<0.000000e+00> : vector<16x128xf32>
    %101 = tpu.matmul %100, %99, %cst_32 {dimension_numbers = #tpu.dot_dimension_numbers<[1], [0], [0], [1], [0, 0, 1, 1], [], []>} : vector<16x8xbf16>, vector<8x128xbf16>, vector<16x128xf32> -> vector<16x128xf32>
    %102 = arith.addf %61, %101 : vector<16x128xf32>
    %103 = vector.extract_strided_slice %19 {offsets = [0, 16], sizes = [16, 8], strides = [1, 1]} : vector<16x128xf32> to vector<16x8xf32>
    %104 = arith.addf %97, %103 : vector<16x8xf32>
    %cst_33 = arith.constant 0.000000e+00 : f32
    %105 = vector.broadcast %cst_33 : f32 to vector<2x8xf32>
    %106 = vector.extract_strided_slice %104 {offsets = [0, 0], sizes = [14, 8], strides = [1, 1]} : vector<16x8xf32> to vector<14x8xf32>
    %107 = tpu.concatenate %105, %106 in 0 : vector<2x8xf32>, vector<14x8xf32> -> vector<16x8xf32>
    %108 = vector.extract_strided_slice %20 {offsets = [2, 0, 0, 0], sizes = [1, 1, 8, 8], strides = [1, 1, 1, 1]} : vector<7x3x8x8xbf16> to vector<1x1x8x8xbf16>
    %109 = vector.shape_cast %108 : vector<1x1x8x8xbf16> to vector<8x8xbf16>
    %110 = arith.truncf %107 : vector<16x8xf32> to vector<16x8xbf16>
    %cst_34 = arith.constant dense<0.000000e+00> : vector<16x8xf32>
    %111 = tpu.matmul %110, %109, %cst_34 {dimension_numbers = #tpu.dot_dimension_numbers<[1], [0], [0], [1], [0, 0, 1, 1], [], []>} : vector<16x8xbf16>, vector<8x8xbf16>, vector<16x8xf32> -> vector<16x8xf32>
    %112 = vector.extract_strided_slice %20 {offsets = [2, 1, 0, 0], sizes = [1, 1, 8, 8], strides = [1, 1, 1, 1]} : vector<7x3x8x8xbf16> to vector<1x1x8x8xbf16>
    %113 = vector.shape_cast %112 : vector<1x1x8x8xbf16> to vector<8x8xbf16>
    %114 = arith.truncf %104 : vector<16x8xf32> to vector<16x8xbf16>
    %cst_35 = arith.constant dense<0.000000e+00> : vector<16x8xf32>
    %115 = tpu.matmul %114, %113, %cst_35 {dimension_numbers = #tpu.dot_dimension_numbers<[1], [0], [0], [1], [0, 0, 1, 1], [], []>} : vector<16x8xbf16>, vector<8x8xbf16>, vector<16x8xf32> -> vector<16x8xf32>
    %116 = arith.addf %111, %115 : vector<16x8xf32>
    %cst_36 = arith.constant 0.000000e+00 : f32
    %117 = vector.broadcast %cst_36 : f32 to vector<2x8xf32>
    %118 = vector.extract_strided_slice %104 {offsets = [2, 0], sizes = [14, 8], strides = [1, 1]} : vector<16x8xf32> to vector<14x8xf32>
    %119 = tpu.concatenate %118, %117 in 0 : vector<14x8xf32>, vector<2x8xf32> -> vector<16x8xf32>
    %120 = vector.extract_strided_slice %20 {offsets = [2, 2, 0, 0], sizes = [1, 1, 8, 8], strides = [1, 1, 1, 1]} : vector<7x3x8x8xbf16> to vector<1x1x8x8xbf16>
    %121 = vector.shape_cast %120 : vector<1x1x8x8xbf16> to vector<8x8xbf16>
    %122 = arith.truncf %119 : vector<16x8xf32> to vector<16x8xbf16>
    %cst_37 = arith.constant dense<0.000000e+00> : vector<16x8xf32>
    %123 = tpu.matmul %122, %121, %cst_37 {dimension_numbers = #tpu.dot_dimension_numbers<[1], [0], [0], [1], [0, 0, 1, 1], [], []>} : vector<16x8xbf16>, vector<8x8xbf16>, vector<16x8xf32> -> vector<16x8xf32>
    %124 = arith.addf %116, %123 : vector<16x8xf32>
    %125 = vector.extract_strided_slice %21 {offsets = [2, 0, 0, 0], sizes = [1, 1, 1, 8], strides = [1, 1, 1, 1]} : vector<7x3x1x8xf32> to vector<1x1x1x8xf32>
    %126 = vector.shape_cast %125 : vector<1x1x1x8xf32> to vector<1x8xf32>
    %127 = vector.broadcast %126 : vector<1x8xf32> to vector<16x8xf32>
    %128 = arith.addf %124, %127 : vector<16x8xf32>
    %cst_38 = arith.constant 0.000000e+00 : f32
    %129 = vector.broadcast %cst_38 : f32 to vector<16x8xf32>
    %130 = arith.maximumf %128, %129 : vector<16x8xf32>
    %131 = vector.extract_strided_slice %21 {offsets = [2, 1, 0, 0], sizes = [1, 1, 1, 8], strides = [1, 1, 1, 1]} : vector<7x3x1x8xf32> to vector<1x1x1x8xf32>
    %132 = vector.shape_cast %131 : vector<1x1x1x8xf32> to vector<1x8xf32>
    %133 = vector.broadcast %132 : vector<1x8xf32> to vector<16x8xf32>
    %134 = arith.mulf %130, %133 : vector<16x8xf32>
    %135 = vector.extract_strided_slice %21 {offsets = [2, 2, 0, 0], sizes = [1, 1, 1, 8], strides = [1, 1, 1, 1]} : vector<7x3x1x8xf32> to vector<1x1x1x8xf32>
    %136 = vector.shape_cast %135 : vector<1x1x1x8xf32> to vector<1x8xf32>
    %137 = vector.broadcast %136 : vector<1x8xf32> to vector<16x8xf32>
    %138 = arith.addf %134, %137 : vector<16x8xf32>
    %139 = vector.extract_strided_slice %22 {offsets = [2, 0, 0], sizes = [1, 8, 128], strides = [1, 1, 1]} : vector<8x8x128xbf16> to vector<1x8x128xbf16>
    %140 = vector.shape_cast %139 : vector<1x8x128xbf16> to vector<8x128xbf16>
    %141 = arith.truncf %138 : vector<16x8xf32> to vector<16x8xbf16>
    %cst_39 = arith.constant dense<0.000000e+00> : vector<16x128xf32>
    %142 = tpu.matmul %141, %140, %cst_39 {dimension_numbers = #tpu.dot_dimension_numbers<[1], [0], [0], [1], [0, 0, 1, 1], [], []>} : vector<16x8xbf16>, vector<8x128xbf16>, vector<16x128xf32> -> vector<16x128xf32>
    %143 = arith.addf %102, %142 : vector<16x128xf32>
    %144 = vector.extract_strided_slice %19 {offsets = [0, 24], sizes = [16, 8], strides = [1, 1]} : vector<16x128xf32> to vector<16x8xf32>
    %145 = arith.addf %138, %144 : vector<16x8xf32>
    %cst_40 = arith.constant 0.000000e+00 : f32
    %146 = vector.broadcast %cst_40 : f32 to vector<2x8xf32>
    %147 = vector.extract_strided_slice %145 {offsets = [0, 0], sizes = [14, 8], strides = [1, 1]} : vector<16x8xf32> to vector<14x8xf32>
    %148 = tpu.concatenate %146, %147 in 0 : vector<2x8xf32>, vector<14x8xf32> -> vector<16x8xf32>
    %149 = vector.extract_strided_slice %20 {offsets = [3, 0, 0, 0], sizes = [1, 1, 8, 8], strides = [1, 1, 1, 1]} : vector<7x3x8x8xbf16> to vector<1x1x8x8xbf16>
    %150 = vector.shape_cast %149 : vector<1x1x8x8xbf16> to vector<8x8xbf16>
    %151 = arith.truncf %148 : vector<16x8xf32> to vector<16x8xbf16>
    %cst_41 = arith.constant dense<0.000000e+00> : vector<16x8xf32>
    %152 = tpu.matmul %151, %150, %cst_41 {dimension_numbers = #tpu.dot_dimension_numbers<[1], [0], [0], [1], [0, 0, 1, 1], [], []>} : vector<16x8xbf16>, vector<8x8xbf16>, vector<16x8xf32> -> vector<16x8xf32>
    %153 = vector.extract_strided_slice %20 {offsets = [3, 1, 0, 0], sizes = [1, 1, 8, 8], strides = [1, 1, 1, 1]} : vector<7x3x8x8xbf16> to vector<1x1x8x8xbf16>
    %154 = vector.shape_cast %153 : vector<1x1x8x8xbf16> to vector<8x8xbf16>
    %155 = arith.truncf %145 : vector<16x8xf32> to vector<16x8xbf16>
    %cst_42 = arith.constant dense<0.000000e+00> : vector<16x8xf32>
    %156 = tpu.matmul %155, %154, %cst_42 {dimension_numbers = #tpu.dot_dimension_numbers<[1], [0], [0], [1], [0, 0, 1, 1], [], []>} : vector<16x8xbf16>, vector<8x8xbf16>, vector<16x8xf32> -> vector<16x8xf32>
    %157 = arith.addf %152, %156 : vector<16x8xf32>
    %cst_43 = arith.constant 0.000000e+00 : f32
    %158 = vector.broadcast %cst_43 : f32 to vector<2x8xf32>
    %159 = vector.extract_strided_slice %145 {offsets = [2, 0], sizes = [14, 8], strides = [1, 1]} : vector<16x8xf32> to vector<14x8xf32>
    %160 = tpu.concatenate %159, %158 in 0 : vector<14x8xf32>, vector<2x8xf32> -> vector<16x8xf32>
    %161 = vector.extract_strided_slice %20 {offsets = [3, 2, 0, 0], sizes = [1, 1, 8, 8], strides = [1, 1, 1, 1]} : vector<7x3x8x8xbf16> to vector<1x1x8x8xbf16>
    %162 = vector.shape_cast %161 : vector<1x1x8x8xbf16> to vector<8x8xbf16>
    %163 = arith.truncf %160 : vector<16x8xf32> to vector<16x8xbf16>
    %cst_44 = arith.constant dense<0.000000e+00> : vector<16x8xf32>
    %164 = tpu.matmul %163, %162, %cst_44 {dimension_numbers = #tpu.dot_dimension_numbers<[1], [0], [0], [1], [0, 0, 1, 1], [], []>} : vector<16x8xbf16>, vector<8x8xbf16>, vector<16x8xf32> -> vector<16x8xf32>
    %165 = arith.addf %157, %164 : vector<16x8xf32>
    %166 = vector.extract_strided_slice %21 {offsets = [3, 0, 0, 0], sizes = [1, 1, 1, 8], strides = [1, 1, 1, 1]} : vector<7x3x1x8xf32> to vector<1x1x1x8xf32>
    %167 = vector.shape_cast %166 : vector<1x1x1x8xf32> to vector<1x8xf32>
    %168 = vector.broadcast %167 : vector<1x8xf32> to vector<16x8xf32>
    %169 = arith.addf %165, %168 : vector<16x8xf32>
    %cst_45 = arith.constant 0.000000e+00 : f32
    %170 = vector.broadcast %cst_45 : f32 to vector<16x8xf32>
    %171 = arith.maximumf %169, %170 : vector<16x8xf32>
    %172 = vector.extract_strided_slice %21 {offsets = [3, 1, 0, 0], sizes = [1, 1, 1, 8], strides = [1, 1, 1, 1]} : vector<7x3x1x8xf32> to vector<1x1x1x8xf32>
    %173 = vector.shape_cast %172 : vector<1x1x1x8xf32> to vector<1x8xf32>
    %174 = vector.broadcast %173 : vector<1x8xf32> to vector<16x8xf32>
    %175 = arith.mulf %171, %174 : vector<16x8xf32>
    %176 = vector.extract_strided_slice %21 {offsets = [3, 2, 0, 0], sizes = [1, 1, 1, 8], strides = [1, 1, 1, 1]} : vector<7x3x1x8xf32> to vector<1x1x1x8xf32>
    %177 = vector.shape_cast %176 : vector<1x1x1x8xf32> to vector<1x8xf32>
    %178 = vector.broadcast %177 : vector<1x8xf32> to vector<16x8xf32>
    %179 = arith.addf %175, %178 : vector<16x8xf32>
    %180 = vector.extract_strided_slice %22 {offsets = [3, 0, 0], sizes = [1, 8, 128], strides = [1, 1, 1]} : vector<8x8x128xbf16> to vector<1x8x128xbf16>
    %181 = vector.shape_cast %180 : vector<1x8x128xbf16> to vector<8x128xbf16>
    %182 = arith.truncf %179 : vector<16x8xf32> to vector<16x8xbf16>
    %cst_46 = arith.constant dense<0.000000e+00> : vector<16x128xf32>
    %183 = tpu.matmul %182, %181, %cst_46 {dimension_numbers = #tpu.dot_dimension_numbers<[1], [0], [0], [1], [0, 0, 1, 1], [], []>} : vector<16x8xbf16>, vector<8x128xbf16>, vector<16x128xf32> -> vector<16x128xf32>
    %184 = arith.addf %143, %183 : vector<16x128xf32>
    %185 = vector.extract_strided_slice %19 {offsets = [0, 32], sizes = [16, 8], strides = [1, 1]} : vector<16x128xf32> to vector<16x8xf32>
    %186 = arith.addf %179, %185 : vector<16x8xf32>
    %cst_47 = arith.constant 0.000000e+00 : f32
    %187 = vector.broadcast %cst_47 : f32 to vector<2x8xf32>
    %188 = vector.extract_strided_slice %186 {offsets = [0, 0], sizes = [14, 8], strides = [1, 1]} : vector<16x8xf32> to vector<14x8xf32>
    %189 = tpu.concatenate %187, %188 in 0 : vector<2x8xf32>, vector<14x8xf32> -> vector<16x8xf32>
    %190 = vector.extract_strided_slice %20 {offsets = [4, 0, 0, 0], sizes = [1, 1, 8, 8], strides = [1, 1, 1, 1]} : vector<7x3x8x8xbf16> to vector<1x1x8x8xbf16>
    %191 = vector.shape_cast %190 : vector<1x1x8x8xbf16> to vector<8x8xbf16>
    %192 = arith.truncf %189 : vector<16x8xf32> to vector<16x8xbf16>
    %cst_48 = arith.constant dense<0.000000e+00> : vector<16x8xf32>
    %193 = tpu.matmul %192, %191, %cst_48 {dimension_numbers = #tpu.dot_dimension_numbers<[1], [0], [0], [1], [0, 0, 1, 1], [], []>} : vector<16x8xbf16>, vector<8x8xbf16>, vector<16x8xf32> -> vector<16x8xf32>
    %194 = vector.extract_strided_slice %20 {offsets = [4, 1, 0, 0], sizes = [1, 1, 8, 8], strides = [1, 1, 1, 1]} : vector<7x3x8x8xbf16> to vector<1x1x8x8xbf16>
    %195 = vector.shape_cast %194 : vector<1x1x8x8xbf16> to vector<8x8xbf16>
    %196 = arith.truncf %186 : vector<16x8xf32> to vector<16x8xbf16>
    %cst_49 = arith.constant dense<0.000000e+00> : vector<16x8xf32>
    %197 = tpu.matmul %196, %195, %cst_49 {dimension_numbers = #tpu.dot_dimension_numbers<[1], [0], [0], [1], [0, 0, 1, 1], [], []>} : vector<16x8xbf16>, vector<8x8xbf16>, vector<16x8xf32> -> vector<16x8xf32>
    %198 = arith.addf %193, %197 : vector<16x8xf32>
    %cst_50 = arith.constant 0.000000e+00 : f32
    %199 = vector.broadcast %cst_50 : f32 to vector<2x8xf32>
    %200 = vector.extract_strided_slice %186 {offsets = [2, 0], sizes = [14, 8], strides = [1, 1]} : vector<16x8xf32> to vector<14x8xf32>
    %201 = tpu.concatenate %200, %199 in 0 : vector<14x8xf32>, vector<2x8xf32> -> vector<16x8xf32>
    %202 = vector.extract_strided_slice %20 {offsets = [4, 2, 0, 0], sizes = [1, 1, 8, 8], strides = [1, 1, 1, 1]} : vector<7x3x8x8xbf16> to vector<1x1x8x8xbf16>
    %203 = vector.shape_cast %202 : vector<1x1x8x8xbf16> to vector<8x8xbf16>
    %204 = arith.truncf %201 : vector<16x8xf32> to vector<16x8xbf16>
    %cst_51 = arith.constant dense<0.000000e+00> : vector<16x8xf32>
    %205 = tpu.matmul %204, %203, %cst_51 {dimension_numbers = #tpu.dot_dimension_numbers<[1], [0], [0], [1], [0, 0, 1, 1], [], []>} : vector<16x8xbf16>, vector<8x8xbf16>, vector<16x8xf32> -> vector<16x8xf32>
    %206 = arith.addf %198, %205 : vector<16x8xf32>
    %207 = vector.extract_strided_slice %21 {offsets = [4, 0, 0, 0], sizes = [1, 1, 1, 8], strides = [1, 1, 1, 1]} : vector<7x3x1x8xf32> to vector<1x1x1x8xf32>
    %208 = vector.shape_cast %207 : vector<1x1x1x8xf32> to vector<1x8xf32>
    %209 = vector.broadcast %208 : vector<1x8xf32> to vector<16x8xf32>
    %210 = arith.addf %206, %209 : vector<16x8xf32>
    %cst_52 = arith.constant 0.000000e+00 : f32
    %211 = vector.broadcast %cst_52 : f32 to vector<16x8xf32>
    %212 = arith.maximumf %210, %211 : vector<16x8xf32>
    %213 = vector.extract_strided_slice %21 {offsets = [4, 1, 0, 0], sizes = [1, 1, 1, 8], strides = [1, 1, 1, 1]} : vector<7x3x1x8xf32> to vector<1x1x1x8xf32>
    %214 = vector.shape_cast %213 : vector<1x1x1x8xf32> to vector<1x8xf32>
    %215 = vector.broadcast %214 : vector<1x8xf32> to vector<16x8xf32>
    %216 = arith.mulf %212, %215 : vector<16x8xf32>
    %217 = vector.extract_strided_slice %21 {offsets = [4, 2, 0, 0], sizes = [1, 1, 1, 8], strides = [1, 1, 1, 1]} : vector<7x3x1x8xf32> to vector<1x1x1x8xf32>
    %218 = vector.shape_cast %217 : vector<1x1x1x8xf32> to vector<1x8xf32>
    %219 = vector.broadcast %218 : vector<1x8xf32> to vector<16x8xf32>
    %220 = arith.addf %216, %219 : vector<16x8xf32>
    %221 = vector.extract_strided_slice %22 {offsets = [4, 0, 0], sizes = [1, 8, 128], strides = [1, 1, 1]} : vector<8x8x128xbf16> to vector<1x8x128xbf16>
    %222 = vector.shape_cast %221 : vector<1x8x128xbf16> to vector<8x128xbf16>
    %223 = arith.truncf %220 : vector<16x8xf32> to vector<16x8xbf16>
    %cst_53 = arith.constant dense<0.000000e+00> : vector<16x128xf32>
    %224 = tpu.matmul %223, %222, %cst_53 {dimension_numbers = #tpu.dot_dimension_numbers<[1], [0], [0], [1], [0, 0, 1, 1], [], []>} : vector<16x8xbf16>, vector<8x128xbf16>, vector<16x128xf32> -> vector<16x128xf32>
    %225 = arith.addf %184, %224 : vector<16x128xf32>
    %226 = vector.extract_strided_slice %19 {offsets = [0, 40], sizes = [16, 8], strides = [1, 1]} : vector<16x128xf32> to vector<16x8xf32>
    %227 = arith.addf %220, %226 : vector<16x8xf32>
    %cst_54 = arith.constant 0.000000e+00 : f32
    %228 = vector.broadcast %cst_54 : f32 to vector<2x8xf32>
    %229 = vector.extract_strided_slice %227 {offsets = [0, 0], sizes = [14, 8], strides = [1, 1]} : vector<16x8xf32> to vector<14x8xf32>
    %230 = tpu.concatenate %228, %229 in 0 : vector<2x8xf32>, vector<14x8xf32> -> vector<16x8xf32>
    %231 = vector.extract_strided_slice %20 {offsets = [5, 0, 0, 0], sizes = [1, 1, 8, 8], strides = [1, 1, 1, 1]} : vector<7x3x8x8xbf16> to vector<1x1x8x8xbf16>
    %232 = vector.shape_cast %231 : vector<1x1x8x8xbf16> to vector<8x8xbf16>
    %233 = arith.truncf %230 : vector<16x8xf32> to vector<16x8xbf16>
    %cst_55 = arith.constant dense<0.000000e+00> : vector<16x8xf32>
    %234 = tpu.matmul %233, %232, %cst_55 {dimension_numbers = #tpu.dot_dimension_numbers<[1], [0], [0], [1], [0, 0, 1, 1], [], []>} : vector<16x8xbf16>, vector<8x8xbf16>, vector<16x8xf32> -> vector<16x8xf32>
    %235 = vector.extract_strided_slice %20 {offsets = [5, 1, 0, 0], sizes = [1, 1, 8, 8], strides = [1, 1, 1, 1]} : vector<7x3x8x8xbf16> to vector<1x1x8x8xbf16>
    %236 = vector.shape_cast %235 : vector<1x1x8x8xbf16> to vector<8x8xbf16>
    %237 = arith.truncf %227 : vector<16x8xf32> to vector<16x8xbf16>
    %cst_56 = arith.constant dense<0.000000e+00> : vector<16x8xf32>
    %238 = tpu.matmul %237, %236, %cst_56 {dimension_numbers = #tpu.dot_dimension_numbers<[1], [0], [0], [1], [0, 0, 1, 1], [], []>} : vector<16x8xbf16>, vector<8x8xbf16>, vector<16x8xf32> -> vector<16x8xf32>
    %239 = arith.addf %234, %238 : vector<16x8xf32>
    %cst_57 = arith.constant 0.000000e+00 : f32
    %240 = vector.broadcast %cst_57 : f32 to vector<2x8xf32>
    %241 = vector.extract_strided_slice %227 {offsets = [2, 0], sizes = [14, 8], strides = [1, 1]} : vector<16x8xf32> to vector<14x8xf32>
    %242 = tpu.concatenate %241, %240 in 0 : vector<14x8xf32>, vector<2x8xf32> -> vector<16x8xf32>
    %243 = vector.extract_strided_slice %20 {offsets = [5, 2, 0, 0], sizes = [1, 1, 8, 8], strides = [1, 1, 1, 1]} : vector<7x3x8x8xbf16> to vector<1x1x8x8xbf16>
    %244 = vector.shape_cast %243 : vector<1x1x8x8xbf16> to vector<8x8xbf16>
    %245 = arith.truncf %242 : vector<16x8xf32> to vector<16x8xbf16>
    %cst_58 = arith.constant dense<0.000000e+00> : vector<16x8xf32>
    %246 = tpu.matmul %245, %244, %cst_58 {dimension_numbers = #tpu.dot_dimension_numbers<[1], [0], [0], [1], [0, 0, 1, 1], [], []>} : vector<16x8xbf16>, vector<8x8xbf16>, vector<16x8xf32> -> vector<16x8xf32>
    %247 = arith.addf %239, %246 : vector<16x8xf32>
    %248 = vector.extract_strided_slice %21 {offsets = [5, 0, 0, 0], sizes = [1, 1, 1, 8], strides = [1, 1, 1, 1]} : vector<7x3x1x8xf32> to vector<1x1x1x8xf32>
    %249 = vector.shape_cast %248 : vector<1x1x1x8xf32> to vector<1x8xf32>
    %250 = vector.broadcast %249 : vector<1x8xf32> to vector<16x8xf32>
    %251 = arith.addf %247, %250 : vector<16x8xf32>
    %cst_59 = arith.constant 0.000000e+00 : f32
    %252 = vector.broadcast %cst_59 : f32 to vector<16x8xf32>
    %253 = arith.maximumf %251, %252 : vector<16x8xf32>
    %254 = vector.extract_strided_slice %21 {offsets = [5, 1, 0, 0], sizes = [1, 1, 1, 8], strides = [1, 1, 1, 1]} : vector<7x3x1x8xf32> to vector<1x1x1x8xf32>
    %255 = vector.shape_cast %254 : vector<1x1x1x8xf32> to vector<1x8xf32>
    %256 = vector.broadcast %255 : vector<1x8xf32> to vector<16x8xf32>
    %257 = arith.mulf %253, %256 : vector<16x8xf32>
    %258 = vector.extract_strided_slice %21 {offsets = [5, 2, 0, 0], sizes = [1, 1, 1, 8], strides = [1, 1, 1, 1]} : vector<7x3x1x8xf32> to vector<1x1x1x8xf32>
    %259 = vector.shape_cast %258 : vector<1x1x1x8xf32> to vector<1x8xf32>
    %260 = vector.broadcast %259 : vector<1x8xf32> to vector<16x8xf32>
    %261 = arith.addf %257, %260 : vector<16x8xf32>
    %262 = vector.extract_strided_slice %22 {offsets = [5, 0, 0], sizes = [1, 8, 128], strides = [1, 1, 1]} : vector<8x8x128xbf16> to vector<1x8x128xbf16>
    %263 = vector.shape_cast %262 : vector<1x8x128xbf16> to vector<8x128xbf16>
    %264 = arith.truncf %261 : vector<16x8xf32> to vector<16x8xbf16>
    %cst_60 = arith.constant dense<0.000000e+00> : vector<16x128xf32>
    %265 = tpu.matmul %264, %263, %cst_60 {dimension_numbers = #tpu.dot_dimension_numbers<[1], [0], [0], [1], [0, 0, 1, 1], [], []>} : vector<16x8xbf16>, vector<8x128xbf16>, vector<16x128xf32> -> vector<16x128xf32>
    %266 = arith.addf %225, %265 : vector<16x128xf32>
    %267 = vector.extract_strided_slice %19 {offsets = [0, 48], sizes = [16, 8], strides = [1, 1]} : vector<16x128xf32> to vector<16x8xf32>
    %268 = arith.addf %261, %267 : vector<16x8xf32>
    %cst_61 = arith.constant 0.000000e+00 : f32
    %269 = vector.broadcast %cst_61 : f32 to vector<2x8xf32>
    %270 = vector.extract_strided_slice %268 {offsets = [0, 0], sizes = [14, 8], strides = [1, 1]} : vector<16x8xf32> to vector<14x8xf32>
    %271 = tpu.concatenate %269, %270 in 0 : vector<2x8xf32>, vector<14x8xf32> -> vector<16x8xf32>
    %272 = vector.extract_strided_slice %20 {offsets = [6, 0, 0, 0], sizes = [1, 1, 8, 8], strides = [1, 1, 1, 1]} : vector<7x3x8x8xbf16> to vector<1x1x8x8xbf16>
    %273 = vector.shape_cast %272 : vector<1x1x8x8xbf16> to vector<8x8xbf16>
    %274 = arith.truncf %271 : vector<16x8xf32> to vector<16x8xbf16>
    %cst_62 = arith.constant dense<0.000000e+00> : vector<16x8xf32>
    %275 = tpu.matmul %274, %273, %cst_62 {dimension_numbers = #tpu.dot_dimension_numbers<[1], [0], [0], [1], [0, 0, 1, 1], [], []>} : vector<16x8xbf16>, vector<8x8xbf16>, vector<16x8xf32> -> vector<16x8xf32>
    %276 = vector.extract_strided_slice %20 {offsets = [6, 1, 0, 0], sizes = [1, 1, 8, 8], strides = [1, 1, 1, 1]} : vector<7x3x8x8xbf16> to vector<1x1x8x8xbf16>
    %277 = vector.shape_cast %276 : vector<1x1x8x8xbf16> to vector<8x8xbf16>
    %278 = arith.truncf %268 : vector<16x8xf32> to vector<16x8xbf16>
    %cst_63 = arith.constant dense<0.000000e+00> : vector<16x8xf32>
    %279 = tpu.matmul %278, %277, %cst_63 {dimension_numbers = #tpu.dot_dimension_numbers<[1], [0], [0], [1], [0, 0, 1, 1], [], []>} : vector<16x8xbf16>, vector<8x8xbf16>, vector<16x8xf32> -> vector<16x8xf32>
    %280 = arith.addf %275, %279 : vector<16x8xf32>
    %cst_64 = arith.constant 0.000000e+00 : f32
    %281 = vector.broadcast %cst_64 : f32 to vector<2x8xf32>
    %282 = vector.extract_strided_slice %268 {offsets = [2, 0], sizes = [14, 8], strides = [1, 1]} : vector<16x8xf32> to vector<14x8xf32>
    %283 = tpu.concatenate %282, %281 in 0 : vector<14x8xf32>, vector<2x8xf32> -> vector<16x8xf32>
    %284 = vector.extract_strided_slice %20 {offsets = [6, 2, 0, 0], sizes = [1, 1, 8, 8], strides = [1, 1, 1, 1]} : vector<7x3x8x8xbf16> to vector<1x1x8x8xbf16>
    %285 = vector.shape_cast %284 : vector<1x1x8x8xbf16> to vector<8x8xbf16>
    %286 = arith.truncf %283 : vector<16x8xf32> to vector<16x8xbf16>
    %cst_65 = arith.constant dense<0.000000e+00> : vector<16x8xf32>
    %287 = tpu.matmul %286, %285, %cst_65 {dimension_numbers = #tpu.dot_dimension_numbers<[1], [0], [0], [1], [0, 0, 1, 1], [], []>} : vector<16x8xbf16>, vector<8x8xbf16>, vector<16x8xf32> -> vector<16x8xf32>
    %288 = arith.addf %280, %287 : vector<16x8xf32>
    %289 = vector.extract_strided_slice %21 {offsets = [6, 0, 0, 0], sizes = [1, 1, 1, 8], strides = [1, 1, 1, 1]} : vector<7x3x1x8xf32> to vector<1x1x1x8xf32>
    %290 = vector.shape_cast %289 : vector<1x1x1x8xf32> to vector<1x8xf32>
    %291 = vector.broadcast %290 : vector<1x8xf32> to vector<16x8xf32>
    %292 = arith.addf %288, %291 : vector<16x8xf32>
    %cst_66 = arith.constant 0.000000e+00 : f32
    %293 = vector.broadcast %cst_66 : f32 to vector<16x8xf32>
    %294 = arith.maximumf %292, %293 : vector<16x8xf32>
    %295 = vector.extract_strided_slice %21 {offsets = [6, 1, 0, 0], sizes = [1, 1, 1, 8], strides = [1, 1, 1, 1]} : vector<7x3x1x8xf32> to vector<1x1x1x8xf32>
    %296 = vector.shape_cast %295 : vector<1x1x1x8xf32> to vector<1x8xf32>
    %297 = vector.broadcast %296 : vector<1x8xf32> to vector<16x8xf32>
    %298 = arith.mulf %294, %297 : vector<16x8xf32>
    %299 = vector.extract_strided_slice %21 {offsets = [6, 2, 0, 0], sizes = [1, 1, 1, 8], strides = [1, 1, 1, 1]} : vector<7x3x1x8xf32> to vector<1x1x1x8xf32>
    %300 = vector.shape_cast %299 : vector<1x1x1x8xf32> to vector<1x8xf32>
    %301 = vector.broadcast %300 : vector<1x8xf32> to vector<16x8xf32>
    %302 = arith.addf %298, %301 : vector<16x8xf32>
    %303 = vector.extract_strided_slice %22 {offsets = [6, 0, 0], sizes = [1, 8, 128], strides = [1, 1, 1]} : vector<8x8x128xbf16> to vector<1x8x128xbf16>
    %304 = vector.shape_cast %303 : vector<1x8x128xbf16> to vector<8x128xbf16>
    %305 = arith.truncf %302 : vector<16x8xf32> to vector<16x8xbf16>
    %cst_67 = arith.constant dense<0.000000e+00> : vector<16x128xf32>
    %306 = tpu.matmul %305, %304, %cst_67 {dimension_numbers = #tpu.dot_dimension_numbers<[1], [0], [0], [1], [0, 0, 1, 1], [], []>} : vector<16x8xbf16>, vector<8x128xbf16>, vector<16x128xf32> -> vector<16x128xf32>
    %307 = arith.addf %266, %306 : vector<16x128xf32>
    %308 = vector.extract_strided_slice %19 {offsets = [0, 56], sizes = [16, 8], strides = [1, 1]} : vector<16x128xf32> to vector<16x8xf32>
    %309 = vector.extract_strided_slice %22 {offsets = [7, 0, 0], sizes = [1, 8, 128], strides = [1, 1, 1]} : vector<8x8x128xbf16> to vector<1x8x128xbf16>
    %310 = vector.shape_cast %309 : vector<1x8x128xbf16> to vector<8x128xbf16>
    %311 = arith.truncf %308 : vector<16x8xf32> to vector<16x8xbf16>
    %cst_68 = arith.constant dense<0.000000e+00> : vector<16x128xf32>
    %312 = tpu.matmul %311, %310, %cst_68 {dimension_numbers = #tpu.dot_dimension_numbers<[1], [0], [0], [1], [0, 0, 1, 1], [], []>} : vector<16x8xbf16>, vector<8x128xbf16>, vector<16x128xf32> -> vector<16x128xf32>
    %313 = arith.addf %307, %312 : vector<16x128xf32>
    %c0_69 = arith.constant 0 : index
    %c0_70 = arith.constant 0 : index
    %c0_71 = arith.constant 0 : index
    %314 = vector.load %arg7[%c0_69, %c0_70, %c0_71] : memref<3x1x128xf32, #tpu.memory_space<vmem>>, vector<3x1x128xf32>
    %315 = vector.extract_strided_slice %314 {offsets = [0, 0, 0], sizes = [1, 1, 128], strides = [1, 1, 1]} : vector<3x1x128xf32> to vector<1x1x128xf32>
    %316 = vector.shape_cast %315 : vector<1x1x128xf32> to vector<1x128xf32>
    %317 = vector.broadcast %316 : vector<1x128xf32> to vector<16x128xf32>
    %318 = arith.addf %313, %317 : vector<16x128xf32>
    %cst_72 = arith.constant 0.000000e+00 : f32
    %319 = vector.broadcast %cst_72 : f32 to vector<16x128xf32>
    %320 = arith.maximumf %318, %319 : vector<16x128xf32>
    %321 = vector.extract_strided_slice %314 {offsets = [1, 0, 0], sizes = [1, 1, 128], strides = [1, 1, 1]} : vector<3x1x128xf32> to vector<1x1x128xf32>
    %322 = vector.shape_cast %321 : vector<1x1x128xf32> to vector<1x128xf32>
    %323 = vector.broadcast %322 : vector<1x128xf32> to vector<16x128xf32>
    %324 = arith.mulf %320, %323 : vector<16x128xf32>
    %325 = vector.extract_strided_slice %314 {offsets = [2, 0, 0], sizes = [1, 1, 128], strides = [1, 1, 1]} : vector<3x1x128xf32> to vector<1x1x128xf32>
    %326 = vector.shape_cast %325 : vector<1x1x128xf32> to vector<1x128xf32>
    %327 = vector.broadcast %326 : vector<1x128xf32> to vector<16x128xf32>
    %328 = arith.addf %324, %327 : vector<16x128xf32>
    %cst_73 = arith.constant dense<0.000000e+00> : vector<128xf32>
    %329 = vector.multi_reduction <add>, %328, %cst_73 [0] : vector<16x128xf32> to vector<128xf32>
    %330 = vector.shape_cast %329 : vector<128xf32> to vector<1x128xf32>
    %cst_74 = arith.constant 1.600000e+01 : f32
    %331 = vector.broadcast %cst_74 : f32 to vector<1x128xf32>
    %332 = arith.divf %330, %331 : vector<1x128xf32>
    %c0_75 = arith.constant 0 : index
    %c0_76 = arith.constant 0 : index
    %333 = vector.load %arg8[%c0_75, %c0_76] : memref<128x128xbf16, #tpu.memory_space<vmem>>, vector<128x128xbf16>
    %334 = arith.truncf %332 : vector<1x128xf32> to vector<1x128xbf16>
    %cst_77 = arith.constant dense<0.000000e+00> : vector<1x128xf32>
    %335 = tpu.matmul %334, %333, %cst_77 {dimension_numbers = #tpu.dot_dimension_numbers<[1], [0], [0], [1], [0, 0, 1, 1], [], []>} : vector<1x128xbf16>, vector<128x128xbf16>, vector<1x128xf32> -> vector<1x128xf32>
    %c0_78 = arith.constant 0 : index
    %c0_79 = arith.constant 0 : index
    %336 = vector.load %arg9[%c0_78, %c0_79] : memref<1x128xf32, #tpu.memory_space<vmem>>, vector<1x128xf32>
    %337 = arith.addf %335, %336 : vector<1x128xf32>
    %cst_80 = arith.constant 0.000000e+00 : f32
    %338 = vector.broadcast %cst_80 : f32 to vector<1x128xf32>
    %339 = arith.maximumf %337, %338 : vector<1x128xf32>
    %c0_81 = arith.constant 0 : index
    %c0_82 = arith.constant 0 : index
    %340 = vector.load %arg10[%c0_81, %c0_82] : memref<128x128xbf16, #tpu.memory_space<vmem>>, vector<128x128xbf16>
    %341 = arith.truncf %339 : vector<1x128xf32> to vector<1x128xbf16>
    %cst_83 = arith.constant dense<0.000000e+00> : vector<1x128xf32>
    %342 = tpu.matmul %341, %340, %cst_83 {dimension_numbers = #tpu.dot_dimension_numbers<[1], [0], [0], [1], [0, 0, 1, 1], [], []>} : vector<1x128xbf16>, vector<128x128xbf16>, vector<1x128xf32> -> vector<1x128xf32>
    %c0_84 = arith.constant 0 : index
    %c0_85 = arith.constant 0 : index
    %343 = vector.load %arg11[%c0_84, %c0_85] : memref<1x128xf32, #tpu.memory_space<vmem>>, vector<1x128xf32>
    %344 = arith.addf %342, %343 : vector<1x128xf32>
    %345 = arith.negf %344 : vector<1x128xf32>
    %346 = math.exp %345 : vector<1x128xf32>
    %cst_86 = arith.constant 1.000000e+00 : f32
    %347 = vector.broadcast %cst_86 : f32 to vector<1x128xf32>
    %348 = arith.addf %347, %346 : vector<1x128xf32>
    %349 = arith.divf %347, %348 : vector<1x128xf32>
    %350 = vector.broadcast %349 : vector<1x128xf32> to vector<16x128xf32>
    %351 = arith.mulf %328, %350 : vector<16x128xf32>
    %352 = arith.addf %351, %1 : vector<16x128xf32>
    %c0_87 = arith.constant 0 : index
    %c0_88 = arith.constant 0 : index
    %c0_89 = arith.constant 0 : index
    %353 = vector.load %arg12[%c0_87, %c0_88, %c0_89] : memref<1x16x128xf32, #tpu.memory_space<vmem>>, vector<1x16x128xf32>
    %354 = vector.shape_cast %353 : vector<1x16x128xf32> to vector<16x128xf32>
    %355 = vector.shape_cast %352 : vector<16x128xf32> to vector<1x16x128xf32>
    tpu.vector_store %arg12[%c0_87, %c0_88, %c0_89], %355 {strides = array<i32>} : memref<1x16x128xf32, #tpu.memory_space<vmem>>, vector<1x16x128xf32>,
    return
  }
  func.func @transform_0(%arg0: i32) -> (i32, i32, i32) {
    %c0_i32 = arith.constant 0 : i32
    %c0_i32_0 = arith.constant 0 : i32
    %c0_i32_1 = arith.constant 0 : i32
    return %arg0, %c0_i32, %c0_i32_0 : i32, i32, i32
  }
  func.func @transform_1(%arg0: i32) -> (i32, i32) {
    %c0_i32 = arith.constant 0 : i32
    %c0_i32_0 = arith.constant 0 : i32
    %c0_i32_1 = arith.constant 0 : i32
    return %c0_i32, %c0_i32_0 : i32, i32
  }
  func.func @transform_2(%arg0: i32) -> (i32, i32, i32) {
    %c0_i32 = arith.constant 0 : i32
    %c0_i32_0 = arith.constant 0 : i32
    %c0_i32_1 = arith.constant 0 : i32
    %c0_i32_2 = arith.constant 0 : i32
    return %c0_i32, %c0_i32_0, %c0_i32_1 : i32, i32, i32
  }
  func.func @transform_3(%arg0: i32) -> (i32, i32, i32, i32) {
    %c0_i32 = arith.constant 0 : i32
    %c0_i32_0 = arith.constant 0 : i32
    %c0_i32_1 = arith.constant 0 : i32
    %c0_i32_2 = arith.constant 0 : i32
    %c0_i32_3 = arith.constant 0 : i32
    return %c0_i32, %c0_i32_0, %c0_i32_1, %c0_i32_2 : i32, i32, i32, i32
  }
  func.func @transform_4(%arg0: i32) -> (i32, i32, i32, i32) {
    %c0_i32 = arith.constant 0 : i32
    %c0_i32_0 = arith.constant 0 : i32
    %c0_i32_1 = arith.constant 0 : i32
    %c0_i32_2 = arith.constant 0 : i32
    %c0_i32_3 = arith.constant 0 : i32
    return %c0_i32, %c0_i32_0, %c0_i32_1, %c0_i32_2 : i32, i32, i32, i32
  }
  func.func @transform_5(%arg0: i32) -> (i32, i32, i32) {
    %c0_i32 = arith.constant 0 : i32
    %c0_i32_0 = arith.constant 0 : i32
    %c0_i32_1 = arith.constant 0 : i32
    %c0_i32_2 = arith.constant 0 : i32
    return %c0_i32, %c0_i32_0, %c0_i32_1 : i32, i32, i32
  }
  func.func @transform_6(%arg0: i32) -> (i32, i32, i32) {
    %c0_i32 = arith.constant 0 : i32
    %c0_i32_0 = arith.constant 0 : i32
    %c0_i32_1 = arith.constant 0 : i32
    %c0_i32_2 = arith.constant 0 : i32
    return %c0_i32, %c0_i32_0, %c0_i32_1 : i32, i32, i32
  }
  func.func @transform_7(%arg0: i32) -> (i32, i32) {
    %c0_i32 = arith.constant 0 : i32
    %c0_i32_0 = arith.constant 0 : i32
    %c0_i32_1 = arith.constant 0 : i32
    return %c0_i32, %c0_i32_0 : i32, i32
  }
  func.func @transform_8(%arg0: i32) -> (i32, i32) {
    %c0_i32 = arith.constant 0 : i32
    %c0_i32_0 = arith.constant 0 : i32
    %c0_i32_1 = arith.constant 0 : i32
    return %c0_i32, %c0_i32_0 : i32, i32
  }
  func.func @transform_9(%arg0: i32) -> (i32, i32) {
    %c0_i32 = arith.constant 0 : i32
    %c0_i32_0 = arith.constant 0 : i32
    %c0_i32_1 = arith.constant 0 : i32
    return %c0_i32, %c0_i32_0 : i32, i32
  }
  func.func @transform_10(%arg0: i32) -> (i32, i32) {
    %c0_i32 = arith.constant 0 : i32
    %c0_i32_0 = arith.constant 0 : i32
    %c0_i32_1 = arith.constant 0 : i32
    return %c0_i32, %c0_i32_0 : i32, i32
  }
  func.func @transform_11(%arg0: i32) -> (i32, i32, i32) {
    %c0_i32 = arith.constant 0 : i32
    %c0_i32_0 = arith.constant 0 : i32
    %c0_i32_1 = arith.constant 0 : i32
    return %arg0, %c0_i32, %c0_i32_0 : i32, i32, i32
  }
}

module attributes {stable_mosaic.version = 11 : i64} {
  func.func @_bottle2neck_kernel(%arg0: i32, %arg1: memref<1x16x128xf32, #tpu.memory_space<vmem>>, %arg2: memref<1x16x128xf32, #tpu.memory_space<vmem>>, %arg3: memref<128x128xbf16, #tpu.memory_space<vmem>>, %arg4: memref<3x1x128xf32, #tpu.memory_space<vmem>>, %arg5: memref<7x3x8x8xbf16, #tpu.memory_space<vmem>>, %arg6: memref<7x3x1x8xf32, #tpu.memory_space<vmem>>, %arg7: memref<8x8x128xbf16, #tpu.memory_space<vmem>>, %arg8: memref<3x1x128xf32, #tpu.memory_space<vmem>>, %arg9: memref<128x128xbf16, #tpu.memory_space<vmem>>, %arg10: memref<1x128xf32, #tpu.memory_space<vmem>>, %arg11: memref<128x128xbf16, #tpu.memory_space<vmem>>, %arg12: memref<1x128xf32, #tpu.memory_space<vmem>>, %arg13: memref<1x16x128xf32, #tpu.memory_space<vmem>>) attributes {dimension_semantics = [#tpu.dimension_semantics<parallel>], iteration_bounds = array<i64: 2>, scalar_prefetch = 0 : i64, scratch_operands = 0 : i64, tpu.core_type = #tpu.core_type<tc>, window_params = [{transform_indices = @transform_0, window_bounds = array<i64: 1, 16, 128>}, {transform_indices = @transform_1, window_bounds = array<i64: 1, 16, 128>}, {pipeline_mode = #tpu.pipeline_mode<synchronous>, transform_indices = @transform_2, window_bounds = array<i64: 128, 128>}, {pipeline_mode = #tpu.pipeline_mode<synchronous>, transform_indices = @transform_3, window_bounds = array<i64: 3, 1, 128>}, {pipeline_mode = #tpu.pipeline_mode<synchronous>, transform_indices = @transform_4, window_bounds = array<i64: 7, 3, 8, 8>}, {pipeline_mode = #tpu.pipeline_mode<synchronous>, transform_indices = @transform_5, window_bounds = array<i64: 7, 3, 1, 8>}, {pipeline_mode = #tpu.pipeline_mode<synchronous>, transform_indices = @transform_6, window_bounds = array<i64: 8, 8, 128>}, {pipeline_mode = #tpu.pipeline_mode<synchronous>, transform_indices = @transform_7, window_bounds = array<i64: 3, 1, 128>}, {pipeline_mode = #tpu.pipeline_mode<synchronous>, transform_indices = @transform_8, window_bounds = array<i64: 128, 128>}, {pipeline_mode = #tpu.pipeline_mode<synchronous>, transform_indices = @transform_9, window_bounds = array<i64: 1, 128>}, {pipeline_mode = #tpu.pipeline_mode<synchronous>, transform_indices = @transform_10, window_bounds = array<i64: 128, 128>}, {pipeline_mode = #tpu.pipeline_mode<synchronous>, transform_indices = @transform_11, window_bounds = array<i64: 1, 128>}, {transform_indices = @transform_12, window_bounds = array<i64: 1, 16, 128>}]} {
    %c0 = arith.constant 0 : index
    %c0_0 = arith.constant 0 : index
    %c0_1 = arith.constant 0 : index
    %0 = vector.load %arg1[%c0, %c0_0, %c0_1] : memref<1x16x128xf32, #tpu.memory_space<vmem>>, vector<1x16x128xf32>
    %1 = vector.shape_cast %0 : vector<1x16x128xf32> to vector<16x128xf32>
    %c0_2 = arith.constant 0 : index
    %c0_3 = arith.constant 0 : index
    %c0_4 = arith.constant 0 : index
    %2 = vector.load %arg2[%c0_2, %c0_3, %c0_4] : memref<1x16x128xf32, #tpu.memory_space<vmem>>, vector<1x16x128xf32>
    %3 = vector.shape_cast %2 : vector<1x16x128xf32> to vector<16x128xf32>
    %4 = arith.addf %1, %3 : vector<16x128xf32>
    %c0_5 = arith.constant 0 : index
    %c0_6 = arith.constant 0 : index
    %c0_7 = arith.constant 0 : index
    %5 = vector.load %arg4[%c0_5, %c0_6, %c0_7] : memref<3x1x128xf32, #tpu.memory_space<vmem>>, vector<3x1x128xf32>
    %c0_8 = arith.constant 0 : index
    %c0_9 = arith.constant 0 : index
    %6 = vector.load %arg3[%c0_8, %c0_9] : memref<128x128xbf16, #tpu.memory_space<vmem>>, vector<128x128xbf16>
    %7 = arith.truncf %4 : vector<16x128xf32> to vector<16x128xbf16>
    %cst = arith.constant dense<0.000000e+00> : vector<16x128xf32>
    %8 = tpu.matmul %7, %6, %cst {dimension_numbers = #tpu.dot_dimension_numbers<[1], [0], [0], [1], [0, 0, 1, 1], [], []>} : vector<16x128xbf16>, vector<128x128xbf16>, vector<16x128xf32> -> vector<16x128xf32>
    %9 = vector.extract_strided_slice %5 {offsets = [0, 0, 0], sizes = [1, 1, 128], strides = [1, 1, 1]} : vector<3x1x128xf32> to vector<1x1x128xf32>
    %10 = vector.shape_cast %9 : vector<1x1x128xf32> to vector<1x128xf32>
    %11 = vector.broadcast %10 : vector<1x128xf32> to vector<16x128xf32>
    %12 = arith.addf %8, %11 : vector<16x128xf32>
    %cst_10 = arith.constant 0.000000e+00 : f32
    %13 = vector.broadcast %cst_10 : f32 to vector<16x128xf32>
    %14 = arith.maximumf %12, %13 : vector<16x128xf32>
    %15 = vector.extract_strided_slice %5 {offsets = [1, 0, 0], sizes = [1, 1, 128], strides = [1, 1, 1]} : vector<3x1x128xf32> to vector<1x1x128xf32>
    %16 = vector.shape_cast %15 : vector<1x1x128xf32> to vector<1x128xf32>
    %17 = vector.broadcast %16 : vector<1x128xf32> to vector<16x128xf32>
    %18 = arith.mulf %14, %17 : vector<16x128xf32>
    %19 = vector.extract_strided_slice %5 {offsets = [2, 0, 0], sizes = [1, 1, 128], strides = [1, 1, 1]} : vector<3x1x128xf32> to vector<1x1x128xf32>
    %20 = vector.shape_cast %19 : vector<1x1x128xf32> to vector<1x128xf32>
    %21 = vector.broadcast %20 : vector<1x128xf32> to vector<16x128xf32>
    %22 = arith.addf %18, %21 : vector<16x128xf32>
    %c0_11 = arith.constant 0 : index
    %c0_12 = arith.constant 0 : index
    %c0_13 = arith.constant 0 : index
    %c0_14 = arith.constant 0 : index
    %23 = vector.load %arg5[%c0_11, %c0_12, %c0_13, %c0_14] : memref<7x3x8x8xbf16, #tpu.memory_space<vmem>>, vector<7x3x8x8xbf16>
    %c0_15 = arith.constant 0 : index
    %c0_16 = arith.constant 0 : index
    %c0_17 = arith.constant 0 : index
    %c0_18 = arith.constant 0 : index
    %24 = vector.load %arg6[%c0_15, %c0_16, %c0_17, %c0_18] : memref<7x3x1x8xf32, #tpu.memory_space<vmem>>, vector<7x3x1x8xf32>
    %c0_19 = arith.constant 0 : index
    %c0_20 = arith.constant 0 : index
    %c0_21 = arith.constant 0 : index
    %25 = vector.load %arg7[%c0_19, %c0_20, %c0_21] : memref<8x8x128xbf16, #tpu.memory_space<vmem>>, vector<8x8x128xbf16>
    %26 = vector.extract_strided_slice %22 {offsets = [0, 0], sizes = [16, 8], strides = [1, 1]} : vector<16x128xf32> to vector<16x8xf32>
    %cst_22 = arith.constant 0.000000e+00 : f32
    %27 = vector.broadcast %cst_22 : f32 to vector<3x8xf32>
    %28 = vector.extract_strided_slice %26 {offsets = [0, 0], sizes = [13, 8], strides = [1, 1]} : vector<16x8xf32> to vector<13x8xf32>
    %29 = tpu.concatenate %27, %28 in 0 : vector<3x8xf32>, vector<13x8xf32> -> vector<16x8xf32>
    %30 = vector.extract_strided_slice %23 {offsets = [0, 0, 0, 0], sizes = [1, 1, 8, 8], strides = [1, 1, 1, 1]} : vector<7x3x8x8xbf16> to vector<1x1x8x8xbf16>
    %31 = vector.shape_cast %30 : vector<1x1x8x8xbf16> to vector<8x8xbf16>
    %32 = arith.truncf %29 : vector<16x8xf32> to vector<16x8xbf16>
    %cst_23 = arith.constant dense<0.000000e+00> : vector<16x8xf32>
    %33 = tpu.matmul %32, %31, %cst_23 {dimension_numbers = #tpu.dot_dimension_numbers<[1], [0], [0], [1], [0, 0, 1, 1], [], []>} : vector<16x8xbf16>, vector<8x8xbf16>, vector<16x8xf32> -> vector<16x8xf32>
    %34 = vector.extract_strided_slice %23 {offsets = [0, 1, 0, 0], sizes = [1, 1, 8, 8], strides = [1, 1, 1, 1]} : vector<7x3x8x8xbf16> to vector<1x1x8x8xbf16>
    %35 = vector.shape_cast %34 : vector<1x1x8x8xbf16> to vector<8x8xbf16>
    %36 = arith.truncf %26 : vector<16x8xf32> to vector<16x8xbf16>
    %cst_24 = arith.constant dense<0.000000e+00> : vector<16x8xf32>
    %37 = tpu.matmul %36, %35, %cst_24 {dimension_numbers = #tpu.dot_dimension_numbers<[1], [0], [0], [1], [0, 0, 1, 1], [], []>} : vector<16x8xbf16>, vector<8x8xbf16>, vector<16x8xf32> -> vector<16x8xf32>
    %38 = arith.addf %33, %37 : vector<16x8xf32>
    %cst_25 = arith.constant 0.000000e+00 : f32
    %39 = vector.broadcast %cst_25 : f32 to vector<3x8xf32>
    %40 = vector.extract_strided_slice %26 {offsets = [3, 0], sizes = [13, 8], strides = [1, 1]} : vector<16x8xf32> to vector<13x8xf32>
    %41 = tpu.concatenate %40, %39 in 0 : vector<13x8xf32>, vector<3x8xf32> -> vector<16x8xf32>
    %42 = vector.extract_strided_slice %23 {offsets = [0, 2, 0, 0], sizes = [1, 1, 8, 8], strides = [1, 1, 1, 1]} : vector<7x3x8x8xbf16> to vector<1x1x8x8xbf16>
    %43 = vector.shape_cast %42 : vector<1x1x8x8xbf16> to vector<8x8xbf16>
    %44 = arith.truncf %41 : vector<16x8xf32> to vector<16x8xbf16>
    %cst_26 = arith.constant dense<0.000000e+00> : vector<16x8xf32>
    %45 = tpu.matmul %44, %43, %cst_26 {dimension_numbers = #tpu.dot_dimension_numbers<[1], [0], [0], [1], [0, 0, 1, 1], [], []>} : vector<16x8xbf16>, vector<8x8xbf16>, vector<16x8xf32> -> vector<16x8xf32>
    %46 = arith.addf %38, %45 : vector<16x8xf32>
    %47 = vector.extract_strided_slice %24 {offsets = [0, 0, 0, 0], sizes = [1, 1, 1, 8], strides = [1, 1, 1, 1]} : vector<7x3x1x8xf32> to vector<1x1x1x8xf32>
    %48 = vector.shape_cast %47 : vector<1x1x1x8xf32> to vector<1x8xf32>
    %49 = vector.broadcast %48 : vector<1x8xf32> to vector<16x8xf32>
    %50 = arith.addf %46, %49 : vector<16x8xf32>
    %cst_27 = arith.constant 0.000000e+00 : f32
    %51 = vector.broadcast %cst_27 : f32 to vector<16x8xf32>
    %52 = arith.maximumf %50, %51 : vector<16x8xf32>
    %53 = vector.extract_strided_slice %24 {offsets = [0, 1, 0, 0], sizes = [1, 1, 1, 8], strides = [1, 1, 1, 1]} : vector<7x3x1x8xf32> to vector<1x1x1x8xf32>
    %54 = vector.shape_cast %53 : vector<1x1x1x8xf32> to vector<1x8xf32>
    %55 = vector.broadcast %54 : vector<1x8xf32> to vector<16x8xf32>
    %56 = arith.mulf %52, %55 : vector<16x8xf32>
    %57 = vector.extract_strided_slice %24 {offsets = [0, 2, 0, 0], sizes = [1, 1, 1, 8], strides = [1, 1, 1, 1]} : vector<7x3x1x8xf32> to vector<1x1x1x8xf32>
    %58 = vector.shape_cast %57 : vector<1x1x1x8xf32> to vector<1x8xf32>
    %59 = vector.broadcast %58 : vector<1x8xf32> to vector<16x8xf32>
    %60 = arith.addf %56, %59 : vector<16x8xf32>
    %61 = vector.extract_strided_slice %25 {offsets = [0, 0, 0], sizes = [1, 8, 128], strides = [1, 1, 1]} : vector<8x8x128xbf16> to vector<1x8x128xbf16>
    %62 = vector.shape_cast %61 : vector<1x8x128xbf16> to vector<8x128xbf16>
    %63 = arith.truncf %60 : vector<16x8xf32> to vector<16x8xbf16>
    %cst_28 = arith.constant dense<0.000000e+00> : vector<16x128xf32>
    %64 = tpu.matmul %63, %62, %cst_28 {dimension_numbers = #tpu.dot_dimension_numbers<[1], [0], [0], [1], [0, 0, 1, 1], [], []>} : vector<16x8xbf16>, vector<8x128xbf16>, vector<16x128xf32> -> vector<16x128xf32>
    %65 = vector.extract_strided_slice %22 {offsets = [0, 8], sizes = [16, 8], strides = [1, 1]} : vector<16x128xf32> to vector<16x8xf32>
    %66 = arith.addf %60, %65 : vector<16x8xf32>
    %cst_29 = arith.constant 0.000000e+00 : f32
    %67 = vector.broadcast %cst_29 : f32 to vector<3x8xf32>
    %68 = vector.extract_strided_slice %66 {offsets = [0, 0], sizes = [13, 8], strides = [1, 1]} : vector<16x8xf32> to vector<13x8xf32>
    %69 = tpu.concatenate %67, %68 in 0 : vector<3x8xf32>, vector<13x8xf32> -> vector<16x8xf32>
    %70 = vector.extract_strided_slice %23 {offsets = [1, 0, 0, 0], sizes = [1, 1, 8, 8], strides = [1, 1, 1, 1]} : vector<7x3x8x8xbf16> to vector<1x1x8x8xbf16>
    %71 = vector.shape_cast %70 : vector<1x1x8x8xbf16> to vector<8x8xbf16>
    %72 = arith.truncf %69 : vector<16x8xf32> to vector<16x8xbf16>
    %cst_30 = arith.constant dense<0.000000e+00> : vector<16x8xf32>
    %73 = tpu.matmul %72, %71, %cst_30 {dimension_numbers = #tpu.dot_dimension_numbers<[1], [0], [0], [1], [0, 0, 1, 1], [], []>} : vector<16x8xbf16>, vector<8x8xbf16>, vector<16x8xf32> -> vector<16x8xf32>
    %74 = vector.extract_strided_slice %23 {offsets = [1, 1, 0, 0], sizes = [1, 1, 8, 8], strides = [1, 1, 1, 1]} : vector<7x3x8x8xbf16> to vector<1x1x8x8xbf16>
    %75 = vector.shape_cast %74 : vector<1x1x8x8xbf16> to vector<8x8xbf16>
    %76 = arith.truncf %66 : vector<16x8xf32> to vector<16x8xbf16>
    %cst_31 = arith.constant dense<0.000000e+00> : vector<16x8xf32>
    %77 = tpu.matmul %76, %75, %cst_31 {dimension_numbers = #tpu.dot_dimension_numbers<[1], [0], [0], [1], [0, 0, 1, 1], [], []>} : vector<16x8xbf16>, vector<8x8xbf16>, vector<16x8xf32> -> vector<16x8xf32>
    %78 = arith.addf %73, %77 : vector<16x8xf32>
    %cst_32 = arith.constant 0.000000e+00 : f32
    %79 = vector.broadcast %cst_32 : f32 to vector<3x8xf32>
    %80 = vector.extract_strided_slice %66 {offsets = [3, 0], sizes = [13, 8], strides = [1, 1]} : vector<16x8xf32> to vector<13x8xf32>
    %81 = tpu.concatenate %80, %79 in 0 : vector<13x8xf32>, vector<3x8xf32> -> vector<16x8xf32>
    %82 = vector.extract_strided_slice %23 {offsets = [1, 2, 0, 0], sizes = [1, 1, 8, 8], strides = [1, 1, 1, 1]} : vector<7x3x8x8xbf16> to vector<1x1x8x8xbf16>
    %83 = vector.shape_cast %82 : vector<1x1x8x8xbf16> to vector<8x8xbf16>
    %84 = arith.truncf %81 : vector<16x8xf32> to vector<16x8xbf16>
    %cst_33 = arith.constant dense<0.000000e+00> : vector<16x8xf32>
    %85 = tpu.matmul %84, %83, %cst_33 {dimension_numbers = #tpu.dot_dimension_numbers<[1], [0], [0], [1], [0, 0, 1, 1], [], []>} : vector<16x8xbf16>, vector<8x8xbf16>, vector<16x8xf32> -> vector<16x8xf32>
    %86 = arith.addf %78, %85 : vector<16x8xf32>
    %87 = vector.extract_strided_slice %24 {offsets = [1, 0, 0, 0], sizes = [1, 1, 1, 8], strides = [1, 1, 1, 1]} : vector<7x3x1x8xf32> to vector<1x1x1x8xf32>
    %88 = vector.shape_cast %87 : vector<1x1x1x8xf32> to vector<1x8xf32>
    %89 = vector.broadcast %88 : vector<1x8xf32> to vector<16x8xf32>
    %90 = arith.addf %86, %89 : vector<16x8xf32>
    %cst_34 = arith.constant 0.000000e+00 : f32
    %91 = vector.broadcast %cst_34 : f32 to vector<16x8xf32>
    %92 = arith.maximumf %90, %91 : vector<16x8xf32>
    %93 = vector.extract_strided_slice %24 {offsets = [1, 1, 0, 0], sizes = [1, 1, 1, 8], strides = [1, 1, 1, 1]} : vector<7x3x1x8xf32> to vector<1x1x1x8xf32>
    %94 = vector.shape_cast %93 : vector<1x1x1x8xf32> to vector<1x8xf32>
    %95 = vector.broadcast %94 : vector<1x8xf32> to vector<16x8xf32>
    %96 = arith.mulf %92, %95 : vector<16x8xf32>
    %97 = vector.extract_strided_slice %24 {offsets = [1, 2, 0, 0], sizes = [1, 1, 1, 8], strides = [1, 1, 1, 1]} : vector<7x3x1x8xf32> to vector<1x1x1x8xf32>
    %98 = vector.shape_cast %97 : vector<1x1x1x8xf32> to vector<1x8xf32>
    %99 = vector.broadcast %98 : vector<1x8xf32> to vector<16x8xf32>
    %100 = arith.addf %96, %99 : vector<16x8xf32>
    %101 = vector.extract_strided_slice %25 {offsets = [1, 0, 0], sizes = [1, 8, 128], strides = [1, 1, 1]} : vector<8x8x128xbf16> to vector<1x8x128xbf16>
    %102 = vector.shape_cast %101 : vector<1x8x128xbf16> to vector<8x128xbf16>
    %103 = arith.truncf %100 : vector<16x8xf32> to vector<16x8xbf16>
    %cst_35 = arith.constant dense<0.000000e+00> : vector<16x128xf32>
    %104 = tpu.matmul %103, %102, %cst_35 {dimension_numbers = #tpu.dot_dimension_numbers<[1], [0], [0], [1], [0, 0, 1, 1], [], []>} : vector<16x8xbf16>, vector<8x128xbf16>, vector<16x128xf32> -> vector<16x128xf32>
    %105 = arith.addf %64, %104 : vector<16x128xf32>
    %106 = vector.extract_strided_slice %22 {offsets = [0, 16], sizes = [16, 8], strides = [1, 1]} : vector<16x128xf32> to vector<16x8xf32>
    %107 = arith.addf %100, %106 : vector<16x8xf32>
    %cst_36 = arith.constant 0.000000e+00 : f32
    %108 = vector.broadcast %cst_36 : f32 to vector<3x8xf32>
    %109 = vector.extract_strided_slice %107 {offsets = [0, 0], sizes = [13, 8], strides = [1, 1]} : vector<16x8xf32> to vector<13x8xf32>
    %110 = tpu.concatenate %108, %109 in 0 : vector<3x8xf32>, vector<13x8xf32> -> vector<16x8xf32>
    %111 = vector.extract_strided_slice %23 {offsets = [2, 0, 0, 0], sizes = [1, 1, 8, 8], strides = [1, 1, 1, 1]} : vector<7x3x8x8xbf16> to vector<1x1x8x8xbf16>
    %112 = vector.shape_cast %111 : vector<1x1x8x8xbf16> to vector<8x8xbf16>
    %113 = arith.truncf %110 : vector<16x8xf32> to vector<16x8xbf16>
    %cst_37 = arith.constant dense<0.000000e+00> : vector<16x8xf32>
    %114 = tpu.matmul %113, %112, %cst_37 {dimension_numbers = #tpu.dot_dimension_numbers<[1], [0], [0], [1], [0, 0, 1, 1], [], []>} : vector<16x8xbf16>, vector<8x8xbf16>, vector<16x8xf32> -> vector<16x8xf32>
    %115 = vector.extract_strided_slice %23 {offsets = [2, 1, 0, 0], sizes = [1, 1, 8, 8], strides = [1, 1, 1, 1]} : vector<7x3x8x8xbf16> to vector<1x1x8x8xbf16>
    %116 = vector.shape_cast %115 : vector<1x1x8x8xbf16> to vector<8x8xbf16>
    %117 = arith.truncf %107 : vector<16x8xf32> to vector<16x8xbf16>
    %cst_38 = arith.constant dense<0.000000e+00> : vector<16x8xf32>
    %118 = tpu.matmul %117, %116, %cst_38 {dimension_numbers = #tpu.dot_dimension_numbers<[1], [0], [0], [1], [0, 0, 1, 1], [], []>} : vector<16x8xbf16>, vector<8x8xbf16>, vector<16x8xf32> -> vector<16x8xf32>
    %119 = arith.addf %114, %118 : vector<16x8xf32>
    %cst_39 = arith.constant 0.000000e+00 : f32
    %120 = vector.broadcast %cst_39 : f32 to vector<3x8xf32>
    %121 = vector.extract_strided_slice %107 {offsets = [3, 0], sizes = [13, 8], strides = [1, 1]} : vector<16x8xf32> to vector<13x8xf32>
    %122 = tpu.concatenate %121, %120 in 0 : vector<13x8xf32>, vector<3x8xf32> -> vector<16x8xf32>
    %123 = vector.extract_strided_slice %23 {offsets = [2, 2, 0, 0], sizes = [1, 1, 8, 8], strides = [1, 1, 1, 1]} : vector<7x3x8x8xbf16> to vector<1x1x8x8xbf16>
    %124 = vector.shape_cast %123 : vector<1x1x8x8xbf16> to vector<8x8xbf16>
    %125 = arith.truncf %122 : vector<16x8xf32> to vector<16x8xbf16>
    %cst_40 = arith.constant dense<0.000000e+00> : vector<16x8xf32>
    %126 = tpu.matmul %125, %124, %cst_40 {dimension_numbers = #tpu.dot_dimension_numbers<[1], [0], [0], [1], [0, 0, 1, 1], [], []>} : vector<16x8xbf16>, vector<8x8xbf16>, vector<16x8xf32> -> vector<16x8xf32>
    %127 = arith.addf %119, %126 : vector<16x8xf32>
    %128 = vector.extract_strided_slice %24 {offsets = [2, 0, 0, 0], sizes = [1, 1, 1, 8], strides = [1, 1, 1, 1]} : vector<7x3x1x8xf32> to vector<1x1x1x8xf32>
    %129 = vector.shape_cast %128 : vector<1x1x1x8xf32> to vector<1x8xf32>
    %130 = vector.broadcast %129 : vector<1x8xf32> to vector<16x8xf32>
    %131 = arith.addf %127, %130 : vector<16x8xf32>
    %cst_41 = arith.constant 0.000000e+00 : f32
    %132 = vector.broadcast %cst_41 : f32 to vector<16x8xf32>
    %133 = arith.maximumf %131, %132 : vector<16x8xf32>
    %134 = vector.extract_strided_slice %24 {offsets = [2, 1, 0, 0], sizes = [1, 1, 1, 8], strides = [1, 1, 1, 1]} : vector<7x3x1x8xf32> to vector<1x1x1x8xf32>
    %135 = vector.shape_cast %134 : vector<1x1x1x8xf32> to vector<1x8xf32>
    %136 = vector.broadcast %135 : vector<1x8xf32> to vector<16x8xf32>
    %137 = arith.mulf %133, %136 : vector<16x8xf32>
    %138 = vector.extract_strided_slice %24 {offsets = [2, 2, 0, 0], sizes = [1, 1, 1, 8], strides = [1, 1, 1, 1]} : vector<7x3x1x8xf32> to vector<1x1x1x8xf32>
    %139 = vector.shape_cast %138 : vector<1x1x1x8xf32> to vector<1x8xf32>
    %140 = vector.broadcast %139 : vector<1x8xf32> to vector<16x8xf32>
    %141 = arith.addf %137, %140 : vector<16x8xf32>
    %142 = vector.extract_strided_slice %25 {offsets = [2, 0, 0], sizes = [1, 8, 128], strides = [1, 1, 1]} : vector<8x8x128xbf16> to vector<1x8x128xbf16>
    %143 = vector.shape_cast %142 : vector<1x8x128xbf16> to vector<8x128xbf16>
    %144 = arith.truncf %141 : vector<16x8xf32> to vector<16x8xbf16>
    %cst_42 = arith.constant dense<0.000000e+00> : vector<16x128xf32>
    %145 = tpu.matmul %144, %143, %cst_42 {dimension_numbers = #tpu.dot_dimension_numbers<[1], [0], [0], [1], [0, 0, 1, 1], [], []>} : vector<16x8xbf16>, vector<8x128xbf16>, vector<16x128xf32> -> vector<16x128xf32>
    %146 = arith.addf %105, %145 : vector<16x128xf32>
    %147 = vector.extract_strided_slice %22 {offsets = [0, 24], sizes = [16, 8], strides = [1, 1]} : vector<16x128xf32> to vector<16x8xf32>
    %148 = arith.addf %141, %147 : vector<16x8xf32>
    %cst_43 = arith.constant 0.000000e+00 : f32
    %149 = vector.broadcast %cst_43 : f32 to vector<3x8xf32>
    %150 = vector.extract_strided_slice %148 {offsets = [0, 0], sizes = [13, 8], strides = [1, 1]} : vector<16x8xf32> to vector<13x8xf32>
    %151 = tpu.concatenate %149, %150 in 0 : vector<3x8xf32>, vector<13x8xf32> -> vector<16x8xf32>
    %152 = vector.extract_strided_slice %23 {offsets = [3, 0, 0, 0], sizes = [1, 1, 8, 8], strides = [1, 1, 1, 1]} : vector<7x3x8x8xbf16> to vector<1x1x8x8xbf16>
    %153 = vector.shape_cast %152 : vector<1x1x8x8xbf16> to vector<8x8xbf16>
    %154 = arith.truncf %151 : vector<16x8xf32> to vector<16x8xbf16>
    %cst_44 = arith.constant dense<0.000000e+00> : vector<16x8xf32>
    %155 = tpu.matmul %154, %153, %cst_44 {dimension_numbers = #tpu.dot_dimension_numbers<[1], [0], [0], [1], [0, 0, 1, 1], [], []>} : vector<16x8xbf16>, vector<8x8xbf16>, vector<16x8xf32> -> vector<16x8xf32>
    %156 = vector.extract_strided_slice %23 {offsets = [3, 1, 0, 0], sizes = [1, 1, 8, 8], strides = [1, 1, 1, 1]} : vector<7x3x8x8xbf16> to vector<1x1x8x8xbf16>
    %157 = vector.shape_cast %156 : vector<1x1x8x8xbf16> to vector<8x8xbf16>
    %158 = arith.truncf %148 : vector<16x8xf32> to vector<16x8xbf16>
    %cst_45 = arith.constant dense<0.000000e+00> : vector<16x8xf32>
    %159 = tpu.matmul %158, %157, %cst_45 {dimension_numbers = #tpu.dot_dimension_numbers<[1], [0], [0], [1], [0, 0, 1, 1], [], []>} : vector<16x8xbf16>, vector<8x8xbf16>, vector<16x8xf32> -> vector<16x8xf32>
    %160 = arith.addf %155, %159 : vector<16x8xf32>
    %cst_46 = arith.constant 0.000000e+00 : f32
    %161 = vector.broadcast %cst_46 : f32 to vector<3x8xf32>
    %162 = vector.extract_strided_slice %148 {offsets = [3, 0], sizes = [13, 8], strides = [1, 1]} : vector<16x8xf32> to vector<13x8xf32>
    %163 = tpu.concatenate %162, %161 in 0 : vector<13x8xf32>, vector<3x8xf32> -> vector<16x8xf32>
    %164 = vector.extract_strided_slice %23 {offsets = [3, 2, 0, 0], sizes = [1, 1, 8, 8], strides = [1, 1, 1, 1]} : vector<7x3x8x8xbf16> to vector<1x1x8x8xbf16>
    %165 = vector.shape_cast %164 : vector<1x1x8x8xbf16> to vector<8x8xbf16>
    %166 = arith.truncf %163 : vector<16x8xf32> to vector<16x8xbf16>
    %cst_47 = arith.constant dense<0.000000e+00> : vector<16x8xf32>
    %167 = tpu.matmul %166, %165, %cst_47 {dimension_numbers = #tpu.dot_dimension_numbers<[1], [0], [0], [1], [0, 0, 1, 1], [], []>} : vector<16x8xbf16>, vector<8x8xbf16>, vector<16x8xf32> -> vector<16x8xf32>
    %168 = arith.addf %160, %167 : vector<16x8xf32>
    %169 = vector.extract_strided_slice %24 {offsets = [3, 0, 0, 0], sizes = [1, 1, 1, 8], strides = [1, 1, 1, 1]} : vector<7x3x1x8xf32> to vector<1x1x1x8xf32>
    %170 = vector.shape_cast %169 : vector<1x1x1x8xf32> to vector<1x8xf32>
    %171 = vector.broadcast %170 : vector<1x8xf32> to vector<16x8xf32>
    %172 = arith.addf %168, %171 : vector<16x8xf32>
    %cst_48 = arith.constant 0.000000e+00 : f32
    %173 = vector.broadcast %cst_48 : f32 to vector<16x8xf32>
    %174 = arith.maximumf %172, %173 : vector<16x8xf32>
    %175 = vector.extract_strided_slice %24 {offsets = [3, 1, 0, 0], sizes = [1, 1, 1, 8], strides = [1, 1, 1, 1]} : vector<7x3x1x8xf32> to vector<1x1x1x8xf32>
    %176 = vector.shape_cast %175 : vector<1x1x1x8xf32> to vector<1x8xf32>
    %177 = vector.broadcast %176 : vector<1x8xf32> to vector<16x8xf32>
    %178 = arith.mulf %174, %177 : vector<16x8xf32>
    %179 = vector.extract_strided_slice %24 {offsets = [3, 2, 0, 0], sizes = [1, 1, 1, 8], strides = [1, 1, 1, 1]} : vector<7x3x1x8xf32> to vector<1x1x1x8xf32>
    %180 = vector.shape_cast %179 : vector<1x1x1x8xf32> to vector<1x8xf32>
    %181 = vector.broadcast %180 : vector<1x8xf32> to vector<16x8xf32>
    %182 = arith.addf %178, %181 : vector<16x8xf32>
    %183 = vector.extract_strided_slice %25 {offsets = [3, 0, 0], sizes = [1, 8, 128], strides = [1, 1, 1]} : vector<8x8x128xbf16> to vector<1x8x128xbf16>
    %184 = vector.shape_cast %183 : vector<1x8x128xbf16> to vector<8x128xbf16>
    %185 = arith.truncf %182 : vector<16x8xf32> to vector<16x8xbf16>
    %cst_49 = arith.constant dense<0.000000e+00> : vector<16x128xf32>
    %186 = tpu.matmul %185, %184, %cst_49 {dimension_numbers = #tpu.dot_dimension_numbers<[1], [0], [0], [1], [0, 0, 1, 1], [], []>} : vector<16x8xbf16>, vector<8x128xbf16>, vector<16x128xf32> -> vector<16x128xf32>
    %187 = arith.addf %146, %186 : vector<16x128xf32>
    %188 = vector.extract_strided_slice %22 {offsets = [0, 32], sizes = [16, 8], strides = [1, 1]} : vector<16x128xf32> to vector<16x8xf32>
    %189 = arith.addf %182, %188 : vector<16x8xf32>
    %cst_50 = arith.constant 0.000000e+00 : f32
    %190 = vector.broadcast %cst_50 : f32 to vector<3x8xf32>
    %191 = vector.extract_strided_slice %189 {offsets = [0, 0], sizes = [13, 8], strides = [1, 1]} : vector<16x8xf32> to vector<13x8xf32>
    %192 = tpu.concatenate %190, %191 in 0 : vector<3x8xf32>, vector<13x8xf32> -> vector<16x8xf32>
    %193 = vector.extract_strided_slice %23 {offsets = [4, 0, 0, 0], sizes = [1, 1, 8, 8], strides = [1, 1, 1, 1]} : vector<7x3x8x8xbf16> to vector<1x1x8x8xbf16>
    %194 = vector.shape_cast %193 : vector<1x1x8x8xbf16> to vector<8x8xbf16>
    %195 = arith.truncf %192 : vector<16x8xf32> to vector<16x8xbf16>
    %cst_51 = arith.constant dense<0.000000e+00> : vector<16x8xf32>
    %196 = tpu.matmul %195, %194, %cst_51 {dimension_numbers = #tpu.dot_dimension_numbers<[1], [0], [0], [1], [0, 0, 1, 1], [], []>} : vector<16x8xbf16>, vector<8x8xbf16>, vector<16x8xf32> -> vector<16x8xf32>
    %197 = vector.extract_strided_slice %23 {offsets = [4, 1, 0, 0], sizes = [1, 1, 8, 8], strides = [1, 1, 1, 1]} : vector<7x3x8x8xbf16> to vector<1x1x8x8xbf16>
    %198 = vector.shape_cast %197 : vector<1x1x8x8xbf16> to vector<8x8xbf16>
    %199 = arith.truncf %189 : vector<16x8xf32> to vector<16x8xbf16>
    %cst_52 = arith.constant dense<0.000000e+00> : vector<16x8xf32>
    %200 = tpu.matmul %199, %198, %cst_52 {dimension_numbers = #tpu.dot_dimension_numbers<[1], [0], [0], [1], [0, 0, 1, 1], [], []>} : vector<16x8xbf16>, vector<8x8xbf16>, vector<16x8xf32> -> vector<16x8xf32>
    %201 = arith.addf %196, %200 : vector<16x8xf32>
    %cst_53 = arith.constant 0.000000e+00 : f32
    %202 = vector.broadcast %cst_53 : f32 to vector<3x8xf32>
    %203 = vector.extract_strided_slice %189 {offsets = [3, 0], sizes = [13, 8], strides = [1, 1]} : vector<16x8xf32> to vector<13x8xf32>
    %204 = tpu.concatenate %203, %202 in 0 : vector<13x8xf32>, vector<3x8xf32> -> vector<16x8xf32>
    %205 = vector.extract_strided_slice %23 {offsets = [4, 2, 0, 0], sizes = [1, 1, 8, 8], strides = [1, 1, 1, 1]} : vector<7x3x8x8xbf16> to vector<1x1x8x8xbf16>
    %206 = vector.shape_cast %205 : vector<1x1x8x8xbf16> to vector<8x8xbf16>
    %207 = arith.truncf %204 : vector<16x8xf32> to vector<16x8xbf16>
    %cst_54 = arith.constant dense<0.000000e+00> : vector<16x8xf32>
    %208 = tpu.matmul %207, %206, %cst_54 {dimension_numbers = #tpu.dot_dimension_numbers<[1], [0], [0], [1], [0, 0, 1, 1], [], []>} : vector<16x8xbf16>, vector<8x8xbf16>, vector<16x8xf32> -> vector<16x8xf32>
    %209 = arith.addf %201, %208 : vector<16x8xf32>
    %210 = vector.extract_strided_slice %24 {offsets = [4, 0, 0, 0], sizes = [1, 1, 1, 8], strides = [1, 1, 1, 1]} : vector<7x3x1x8xf32> to vector<1x1x1x8xf32>
    %211 = vector.shape_cast %210 : vector<1x1x1x8xf32> to vector<1x8xf32>
    %212 = vector.broadcast %211 : vector<1x8xf32> to vector<16x8xf32>
    %213 = arith.addf %209, %212 : vector<16x8xf32>
    %cst_55 = arith.constant 0.000000e+00 : f32
    %214 = vector.broadcast %cst_55 : f32 to vector<16x8xf32>
    %215 = arith.maximumf %213, %214 : vector<16x8xf32>
    %216 = vector.extract_strided_slice %24 {offsets = [4, 1, 0, 0], sizes = [1, 1, 1, 8], strides = [1, 1, 1, 1]} : vector<7x3x1x8xf32> to vector<1x1x1x8xf32>
    %217 = vector.shape_cast %216 : vector<1x1x1x8xf32> to vector<1x8xf32>
    %218 = vector.broadcast %217 : vector<1x8xf32> to vector<16x8xf32>
    %219 = arith.mulf %215, %218 : vector<16x8xf32>
    %220 = vector.extract_strided_slice %24 {offsets = [4, 2, 0, 0], sizes = [1, 1, 1, 8], strides = [1, 1, 1, 1]} : vector<7x3x1x8xf32> to vector<1x1x1x8xf32>
    %221 = vector.shape_cast %220 : vector<1x1x1x8xf32> to vector<1x8xf32>
    %222 = vector.broadcast %221 : vector<1x8xf32> to vector<16x8xf32>
    %223 = arith.addf %219, %222 : vector<16x8xf32>
    %224 = vector.extract_strided_slice %25 {offsets = [4, 0, 0], sizes = [1, 8, 128], strides = [1, 1, 1]} : vector<8x8x128xbf16> to vector<1x8x128xbf16>
    %225 = vector.shape_cast %224 : vector<1x8x128xbf16> to vector<8x128xbf16>
    %226 = arith.truncf %223 : vector<16x8xf32> to vector<16x8xbf16>
    %cst_56 = arith.constant dense<0.000000e+00> : vector<16x128xf32>
    %227 = tpu.matmul %226, %225, %cst_56 {dimension_numbers = #tpu.dot_dimension_numbers<[1], [0], [0], [1], [0, 0, 1, 1], [], []>} : vector<16x8xbf16>, vector<8x128xbf16>, vector<16x128xf32> -> vector<16x128xf32>
    %228 = arith.addf %187, %227 : vector<16x128xf32>
    %229 = vector.extract_strided_slice %22 {offsets = [0, 40], sizes = [16, 8], strides = [1, 1]} : vector<16x128xf32> to vector<16x8xf32>
    %230 = arith.addf %223, %229 : vector<16x8xf32>
    %cst_57 = arith.constant 0.000000e+00 : f32
    %231 = vector.broadcast %cst_57 : f32 to vector<3x8xf32>
    %232 = vector.extract_strided_slice %230 {offsets = [0, 0], sizes = [13, 8], strides = [1, 1]} : vector<16x8xf32> to vector<13x8xf32>
    %233 = tpu.concatenate %231, %232 in 0 : vector<3x8xf32>, vector<13x8xf32> -> vector<16x8xf32>
    %234 = vector.extract_strided_slice %23 {offsets = [5, 0, 0, 0], sizes = [1, 1, 8, 8], strides = [1, 1, 1, 1]} : vector<7x3x8x8xbf16> to vector<1x1x8x8xbf16>
    %235 = vector.shape_cast %234 : vector<1x1x8x8xbf16> to vector<8x8xbf16>
    %236 = arith.truncf %233 : vector<16x8xf32> to vector<16x8xbf16>
    %cst_58 = arith.constant dense<0.000000e+00> : vector<16x8xf32>
    %237 = tpu.matmul %236, %235, %cst_58 {dimension_numbers = #tpu.dot_dimension_numbers<[1], [0], [0], [1], [0, 0, 1, 1], [], []>} : vector<16x8xbf16>, vector<8x8xbf16>, vector<16x8xf32> -> vector<16x8xf32>
    %238 = vector.extract_strided_slice %23 {offsets = [5, 1, 0, 0], sizes = [1, 1, 8, 8], strides = [1, 1, 1, 1]} : vector<7x3x8x8xbf16> to vector<1x1x8x8xbf16>
    %239 = vector.shape_cast %238 : vector<1x1x8x8xbf16> to vector<8x8xbf16>
    %240 = arith.truncf %230 : vector<16x8xf32> to vector<16x8xbf16>
    %cst_59 = arith.constant dense<0.000000e+00> : vector<16x8xf32>
    %241 = tpu.matmul %240, %239, %cst_59 {dimension_numbers = #tpu.dot_dimension_numbers<[1], [0], [0], [1], [0, 0, 1, 1], [], []>} : vector<16x8xbf16>, vector<8x8xbf16>, vector<16x8xf32> -> vector<16x8xf32>
    %242 = arith.addf %237, %241 : vector<16x8xf32>
    %cst_60 = arith.constant 0.000000e+00 : f32
    %243 = vector.broadcast %cst_60 : f32 to vector<3x8xf32>
    %244 = vector.extract_strided_slice %230 {offsets = [3, 0], sizes = [13, 8], strides = [1, 1]} : vector<16x8xf32> to vector<13x8xf32>
    %245 = tpu.concatenate %244, %243 in 0 : vector<13x8xf32>, vector<3x8xf32> -> vector<16x8xf32>
    %246 = vector.extract_strided_slice %23 {offsets = [5, 2, 0, 0], sizes = [1, 1, 8, 8], strides = [1, 1, 1, 1]} : vector<7x3x8x8xbf16> to vector<1x1x8x8xbf16>
    %247 = vector.shape_cast %246 : vector<1x1x8x8xbf16> to vector<8x8xbf16>
    %248 = arith.truncf %245 : vector<16x8xf32> to vector<16x8xbf16>
    %cst_61 = arith.constant dense<0.000000e+00> : vector<16x8xf32>
    %249 = tpu.matmul %248, %247, %cst_61 {dimension_numbers = #tpu.dot_dimension_numbers<[1], [0], [0], [1], [0, 0, 1, 1], [], []>} : vector<16x8xbf16>, vector<8x8xbf16>, vector<16x8xf32> -> vector<16x8xf32>
    %250 = arith.addf %242, %249 : vector<16x8xf32>
    %251 = vector.extract_strided_slice %24 {offsets = [5, 0, 0, 0], sizes = [1, 1, 1, 8], strides = [1, 1, 1, 1]} : vector<7x3x1x8xf32> to vector<1x1x1x8xf32>
    %252 = vector.shape_cast %251 : vector<1x1x1x8xf32> to vector<1x8xf32>
    %253 = vector.broadcast %252 : vector<1x8xf32> to vector<16x8xf32>
    %254 = arith.addf %250, %253 : vector<16x8xf32>
    %cst_62 = arith.constant 0.000000e+00 : f32
    %255 = vector.broadcast %cst_62 : f32 to vector<16x8xf32>
    %256 = arith.maximumf %254, %255 : vector<16x8xf32>
    %257 = vector.extract_strided_slice %24 {offsets = [5, 1, 0, 0], sizes = [1, 1, 1, 8], strides = [1, 1, 1, 1]} : vector<7x3x1x8xf32> to vector<1x1x1x8xf32>
    %258 = vector.shape_cast %257 : vector<1x1x1x8xf32> to vector<1x8xf32>
    %259 = vector.broadcast %258 : vector<1x8xf32> to vector<16x8xf32>
    %260 = arith.mulf %256, %259 : vector<16x8xf32>
    %261 = vector.extract_strided_slice %24 {offsets = [5, 2, 0, 0], sizes = [1, 1, 1, 8], strides = [1, 1, 1, 1]} : vector<7x3x1x8xf32> to vector<1x1x1x8xf32>
    %262 = vector.shape_cast %261 : vector<1x1x1x8xf32> to vector<1x8xf32>
    %263 = vector.broadcast %262 : vector<1x8xf32> to vector<16x8xf32>
    %264 = arith.addf %260, %263 : vector<16x8xf32>
    %265 = vector.extract_strided_slice %25 {offsets = [5, 0, 0], sizes = [1, 8, 128], strides = [1, 1, 1]} : vector<8x8x128xbf16> to vector<1x8x128xbf16>
    %266 = vector.shape_cast %265 : vector<1x8x128xbf16> to vector<8x128xbf16>
    %267 = arith.truncf %264 : vector<16x8xf32> to vector<16x8xbf16>
    %cst_63 = arith.constant dense<0.000000e+00> : vector<16x128xf32>
    %268 = tpu.matmul %267, %266, %cst_63 {dimension_numbers = #tpu.dot_dimension_numbers<[1], [0], [0], [1], [0, 0, 1, 1], [], []>} : vector<16x8xbf16>, vector<8x128xbf16>, vector<16x128xf32> -> vector<16x128xf32>
    %269 = arith.addf %228, %268 : vector<16x128xf32>
    %270 = vector.extract_strided_slice %22 {offsets = [0, 48], sizes = [16, 8], strides = [1, 1]} : vector<16x128xf32> to vector<16x8xf32>
    %271 = arith.addf %264, %270 : vector<16x8xf32>
    %cst_64 = arith.constant 0.000000e+00 : f32
    %272 = vector.broadcast %cst_64 : f32 to vector<3x8xf32>
    %273 = vector.extract_strided_slice %271 {offsets = [0, 0], sizes = [13, 8], strides = [1, 1]} : vector<16x8xf32> to vector<13x8xf32>
    %274 = tpu.concatenate %272, %273 in 0 : vector<3x8xf32>, vector<13x8xf32> -> vector<16x8xf32>
    %275 = vector.extract_strided_slice %23 {offsets = [6, 0, 0, 0], sizes = [1, 1, 8, 8], strides = [1, 1, 1, 1]} : vector<7x3x8x8xbf16> to vector<1x1x8x8xbf16>
    %276 = vector.shape_cast %275 : vector<1x1x8x8xbf16> to vector<8x8xbf16>
    %277 = arith.truncf %274 : vector<16x8xf32> to vector<16x8xbf16>
    %cst_65 = arith.constant dense<0.000000e+00> : vector<16x8xf32>
    %278 = tpu.matmul %277, %276, %cst_65 {dimension_numbers = #tpu.dot_dimension_numbers<[1], [0], [0], [1], [0, 0, 1, 1], [], []>} : vector<16x8xbf16>, vector<8x8xbf16>, vector<16x8xf32> -> vector<16x8xf32>
    %279 = vector.extract_strided_slice %23 {offsets = [6, 1, 0, 0], sizes = [1, 1, 8, 8], strides = [1, 1, 1, 1]} : vector<7x3x8x8xbf16> to vector<1x1x8x8xbf16>
    %280 = vector.shape_cast %279 : vector<1x1x8x8xbf16> to vector<8x8xbf16>
    %281 = arith.truncf %271 : vector<16x8xf32> to vector<16x8xbf16>
    %cst_66 = arith.constant dense<0.000000e+00> : vector<16x8xf32>
    %282 = tpu.matmul %281, %280, %cst_66 {dimension_numbers = #tpu.dot_dimension_numbers<[1], [0], [0], [1], [0, 0, 1, 1], [], []>} : vector<16x8xbf16>, vector<8x8xbf16>, vector<16x8xf32> -> vector<16x8xf32>
    %283 = arith.addf %278, %282 : vector<16x8xf32>
    %cst_67 = arith.constant 0.000000e+00 : f32
    %284 = vector.broadcast %cst_67 : f32 to vector<3x8xf32>
    %285 = vector.extract_strided_slice %271 {offsets = [3, 0], sizes = [13, 8], strides = [1, 1]} : vector<16x8xf32> to vector<13x8xf32>
    %286 = tpu.concatenate %285, %284 in 0 : vector<13x8xf32>, vector<3x8xf32> -> vector<16x8xf32>
    %287 = vector.extract_strided_slice %23 {offsets = [6, 2, 0, 0], sizes = [1, 1, 8, 8], strides = [1, 1, 1, 1]} : vector<7x3x8x8xbf16> to vector<1x1x8x8xbf16>
    %288 = vector.shape_cast %287 : vector<1x1x8x8xbf16> to vector<8x8xbf16>
    %289 = arith.truncf %286 : vector<16x8xf32> to vector<16x8xbf16>
    %cst_68 = arith.constant dense<0.000000e+00> : vector<16x8xf32>
    %290 = tpu.matmul %289, %288, %cst_68 {dimension_numbers = #tpu.dot_dimension_numbers<[1], [0], [0], [1], [0, 0, 1, 1], [], []>} : vector<16x8xbf16>, vector<8x8xbf16>, vector<16x8xf32> -> vector<16x8xf32>
    %291 = arith.addf %283, %290 : vector<16x8xf32>
    %292 = vector.extract_strided_slice %24 {offsets = [6, 0, 0, 0], sizes = [1, 1, 1, 8], strides = [1, 1, 1, 1]} : vector<7x3x1x8xf32> to vector<1x1x1x8xf32>
    %293 = vector.shape_cast %292 : vector<1x1x1x8xf32> to vector<1x8xf32>
    %294 = vector.broadcast %293 : vector<1x8xf32> to vector<16x8xf32>
    %295 = arith.addf %291, %294 : vector<16x8xf32>
    %cst_69 = arith.constant 0.000000e+00 : f32
    %296 = vector.broadcast %cst_69 : f32 to vector<16x8xf32>
    %297 = arith.maximumf %295, %296 : vector<16x8xf32>
    %298 = vector.extract_strided_slice %24 {offsets = [6, 1, 0, 0], sizes = [1, 1, 1, 8], strides = [1, 1, 1, 1]} : vector<7x3x1x8xf32> to vector<1x1x1x8xf32>
    %299 = vector.shape_cast %298 : vector<1x1x1x8xf32> to vector<1x8xf32>
    %300 = vector.broadcast %299 : vector<1x8xf32> to vector<16x8xf32>
    %301 = arith.mulf %297, %300 : vector<16x8xf32>
    %302 = vector.extract_strided_slice %24 {offsets = [6, 2, 0, 0], sizes = [1, 1, 1, 8], strides = [1, 1, 1, 1]} : vector<7x3x1x8xf32> to vector<1x1x1x8xf32>
    %303 = vector.shape_cast %302 : vector<1x1x1x8xf32> to vector<1x8xf32>
    %304 = vector.broadcast %303 : vector<1x8xf32> to vector<16x8xf32>
    %305 = arith.addf %301, %304 : vector<16x8xf32>
    %306 = vector.extract_strided_slice %25 {offsets = [6, 0, 0], sizes = [1, 8, 128], strides = [1, 1, 1]} : vector<8x8x128xbf16> to vector<1x8x128xbf16>
    %307 = vector.shape_cast %306 : vector<1x8x128xbf16> to vector<8x128xbf16>
    %308 = arith.truncf %305 : vector<16x8xf32> to vector<16x8xbf16>
    %cst_70 = arith.constant dense<0.000000e+00> : vector<16x128xf32>
    %309 = tpu.matmul %308, %307, %cst_70 {dimension_numbers = #tpu.dot_dimension_numbers<[1], [0], [0], [1], [0, 0, 1, 1], [], []>} : vector<16x8xbf16>, vector<8x128xbf16>, vector<16x128xf32> -> vector<16x128xf32>
    %310 = arith.addf %269, %309 : vector<16x128xf32>
    %311 = vector.extract_strided_slice %22 {offsets = [0, 56], sizes = [16, 8], strides = [1, 1]} : vector<16x128xf32> to vector<16x8xf32>
    %312 = vector.extract_strided_slice %25 {offsets = [7, 0, 0], sizes = [1, 8, 128], strides = [1, 1, 1]} : vector<8x8x128xbf16> to vector<1x8x128xbf16>
    %313 = vector.shape_cast %312 : vector<1x8x128xbf16> to vector<8x128xbf16>
    %314 = arith.truncf %311 : vector<16x8xf32> to vector<16x8xbf16>
    %cst_71 = arith.constant dense<0.000000e+00> : vector<16x128xf32>
    %315 = tpu.matmul %314, %313, %cst_71 {dimension_numbers = #tpu.dot_dimension_numbers<[1], [0], [0], [1], [0, 0, 1, 1], [], []>} : vector<16x8xbf16>, vector<8x128xbf16>, vector<16x128xf32> -> vector<16x128xf32>
    %316 = arith.addf %310, %315 : vector<16x128xf32>
    %c0_72 = arith.constant 0 : index
    %c0_73 = arith.constant 0 : index
    %c0_74 = arith.constant 0 : index
    %317 = vector.load %arg8[%c0_72, %c0_73, %c0_74] : memref<3x1x128xf32, #tpu.memory_space<vmem>>, vector<3x1x128xf32>
    %318 = vector.extract_strided_slice %317 {offsets = [0, 0, 0], sizes = [1, 1, 128], strides = [1, 1, 1]} : vector<3x1x128xf32> to vector<1x1x128xf32>
    %319 = vector.shape_cast %318 : vector<1x1x128xf32> to vector<1x128xf32>
    %320 = vector.broadcast %319 : vector<1x128xf32> to vector<16x128xf32>
    %321 = arith.addf %316, %320 : vector<16x128xf32>
    %cst_75 = arith.constant 0.000000e+00 : f32
    %322 = vector.broadcast %cst_75 : f32 to vector<16x128xf32>
    %323 = arith.maximumf %321, %322 : vector<16x128xf32>
    %324 = vector.extract_strided_slice %317 {offsets = [1, 0, 0], sizes = [1, 1, 128], strides = [1, 1, 1]} : vector<3x1x128xf32> to vector<1x1x128xf32>
    %325 = vector.shape_cast %324 : vector<1x1x128xf32> to vector<1x128xf32>
    %326 = vector.broadcast %325 : vector<1x128xf32> to vector<16x128xf32>
    %327 = arith.mulf %323, %326 : vector<16x128xf32>
    %328 = vector.extract_strided_slice %317 {offsets = [2, 0, 0], sizes = [1, 1, 128], strides = [1, 1, 1]} : vector<3x1x128xf32> to vector<1x1x128xf32>
    %329 = vector.shape_cast %328 : vector<1x1x128xf32> to vector<1x128xf32>
    %330 = vector.broadcast %329 : vector<1x128xf32> to vector<16x128xf32>
    %331 = arith.addf %327, %330 : vector<16x128xf32>
    %cst_76 = arith.constant dense<0.000000e+00> : vector<128xf32>
    %332 = vector.multi_reduction <add>, %331, %cst_76 [0] : vector<16x128xf32> to vector<128xf32>
    %333 = vector.shape_cast %332 : vector<128xf32> to vector<1x128xf32>
    %cst_77 = arith.constant 1.600000e+01 : f32
    %334 = vector.broadcast %cst_77 : f32 to vector<1x128xf32>
    %335 = arith.divf %333, %334 : vector<1x128xf32>
    %c0_78 = arith.constant 0 : index
    %c0_79 = arith.constant 0 : index
    %336 = vector.load %arg9[%c0_78, %c0_79] : memref<128x128xbf16, #tpu.memory_space<vmem>>, vector<128x128xbf16>
    %337 = arith.truncf %335 : vector<1x128xf32> to vector<1x128xbf16>
    %cst_80 = arith.constant dense<0.000000e+00> : vector<1x128xf32>
    %338 = tpu.matmul %337, %336, %cst_80 {dimension_numbers = #tpu.dot_dimension_numbers<[1], [0], [0], [1], [0, 0, 1, 1], [], []>} : vector<1x128xbf16>, vector<128x128xbf16>, vector<1x128xf32> -> vector<1x128xf32>
    %c0_81 = arith.constant 0 : index
    %c0_82 = arith.constant 0 : index
    %339 = vector.load %arg10[%c0_81, %c0_82] : memref<1x128xf32, #tpu.memory_space<vmem>>, vector<1x128xf32>
    %340 = arith.addf %338, %339 : vector<1x128xf32>
    %cst_83 = arith.constant 0.000000e+00 : f32
    %341 = vector.broadcast %cst_83 : f32 to vector<1x128xf32>
    %342 = arith.maximumf %340, %341 : vector<1x128xf32>
    %c0_84 = arith.constant 0 : index
    %c0_85 = arith.constant 0 : index
    %343 = vector.load %arg11[%c0_84, %c0_85] : memref<128x128xbf16, #tpu.memory_space<vmem>>, vector<128x128xbf16>
    %344 = arith.truncf %342 : vector<1x128xf32> to vector<1x128xbf16>
    %cst_86 = arith.constant dense<0.000000e+00> : vector<1x128xf32>
    %345 = tpu.matmul %344, %343, %cst_86 {dimension_numbers = #tpu.dot_dimension_numbers<[1], [0], [0], [1], [0, 0, 1, 1], [], []>} : vector<1x128xbf16>, vector<128x128xbf16>, vector<1x128xf32> -> vector<1x128xf32>
    %c0_87 = arith.constant 0 : index
    %c0_88 = arith.constant 0 : index
    %346 = vector.load %arg12[%c0_87, %c0_88] : memref<1x128xf32, #tpu.memory_space<vmem>>, vector<1x128xf32>
    %347 = arith.addf %345, %346 : vector<1x128xf32>
    %348 = arith.negf %347 : vector<1x128xf32>
    %349 = math.exp %348 : vector<1x128xf32>
    %cst_89 = arith.constant 1.000000e+00 : f32
    %350 = vector.broadcast %cst_89 : f32 to vector<1x128xf32>
    %351 = arith.addf %350, %349 : vector<1x128xf32>
    %352 = arith.divf %350, %351 : vector<1x128xf32>
    %353 = vector.broadcast %352 : vector<1x128xf32> to vector<16x128xf32>
    %354 = arith.mulf %331, %353 : vector<16x128xf32>
    %355 = arith.addf %354, %4 : vector<16x128xf32>
    %c0_90 = arith.constant 0 : index
    %c0_91 = arith.constant 0 : index
    %c0_92 = arith.constant 0 : index
    %356 = vector.load %arg13[%c0_90, %c0_91, %c0_92] : memref<1x16x128xf32, #tpu.memory_space<vmem>>, vector<1x16x128xf32>
    %357 = vector.shape_cast %356 : vector<1x16x128xf32> to vector<16x128xf32>
    %358 = vector.shape_cast %355 : vector<16x128xf32> to vector<1x16x128xf32>
    tpu.vector_store %arg13[%c0_90, %c0_91, %c0_92], %358 {strides = array<i32>} : memref<1x16x128xf32, #tpu.memory_space<vmem>>, vector<1x16x128xf32>,
    return
  }
  func.func @transform_0(%arg0: i32) -> (i32, i32, i32) {
    %c0_i32 = arith.constant 0 : i32
    %c0_i32_0 = arith.constant 0 : i32
    %c0_i32_1 = arith.constant 0 : i32
    return %arg0, %c0_i32, %c0_i32_0 : i32, i32, i32
  }
  func.func @transform_1(%arg0: i32) -> (i32, i32, i32) {
    %c0_i32 = arith.constant 0 : i32
    %c0_i32_0 = arith.constant 0 : i32
    %c0_i32_1 = arith.constant 0 : i32
    return %arg0, %c0_i32, %c0_i32_0 : i32, i32, i32
  }
  func.func @transform_2(%arg0: i32) -> (i32, i32) {
    %c0_i32 = arith.constant 0 : i32
    %c0_i32_0 = arith.constant 0 : i32
    %c0_i32_1 = arith.constant 0 : i32
    return %c0_i32, %c0_i32_0 : i32, i32
  }
  func.func @transform_3(%arg0: i32) -> (i32, i32, i32) {
    %c0_i32 = arith.constant 0 : i32
    %c0_i32_0 = arith.constant 0 : i32
    %c0_i32_1 = arith.constant 0 : i32
    %c0_i32_2 = arith.constant 0 : i32
    return %c0_i32, %c0_i32_0, %c0_i32_1 : i32, i32, i32
  }
  func.func @transform_4(%arg0: i32) -> (i32, i32, i32, i32) {
    %c0_i32 = arith.constant 0 : i32
    %c0_i32_0 = arith.constant 0 : i32
    %c0_i32_1 = arith.constant 0 : i32
    %c0_i32_2 = arith.constant 0 : i32
    %c0_i32_3 = arith.constant 0 : i32
    return %c0_i32, %c0_i32_0, %c0_i32_1, %c0_i32_2 : i32, i32, i32, i32
  }
  func.func @transform_5(%arg0: i32) -> (i32, i32, i32, i32) {
    %c0_i32 = arith.constant 0 : i32
    %c0_i32_0 = arith.constant 0 : i32
    %c0_i32_1 = arith.constant 0 : i32
    %c0_i32_2 = arith.constant 0 : i32
    %c0_i32_3 = arith.constant 0 : i32
    return %c0_i32, %c0_i32_0, %c0_i32_1, %c0_i32_2 : i32, i32, i32, i32
  }
  func.func @transform_6(%arg0: i32) -> (i32, i32, i32) {
    %c0_i32 = arith.constant 0 : i32
    %c0_i32_0 = arith.constant 0 : i32
    %c0_i32_1 = arith.constant 0 : i32
    %c0_i32_2 = arith.constant 0 : i32
    return %c0_i32, %c0_i32_0, %c0_i32_1 : i32, i32, i32
  }
  func.func @transform_7(%arg0: i32) -> (i32, i32, i32) {
    %c0_i32 = arith.constant 0 : i32
    %c0_i32_0 = arith.constant 0 : i32
    %c0_i32_1 = arith.constant 0 : i32
    %c0_i32_2 = arith.constant 0 : i32
    return %c0_i32, %c0_i32_0, %c0_i32_1 : i32, i32, i32
  }
  func.func @transform_8(%arg0: i32) -> (i32, i32) {
    %c0_i32 = arith.constant 0 : i32
    %c0_i32_0 = arith.constant 0 : i32
    %c0_i32_1 = arith.constant 0 : i32
    return %c0_i32, %c0_i32_0 : i32, i32
  }
  func.func @transform_9(%arg0: i32) -> (i32, i32) {
    %c0_i32 = arith.constant 0 : i32
    %c0_i32_0 = arith.constant 0 : i32
    %c0_i32_1 = arith.constant 0 : i32
    return %c0_i32, %c0_i32_0 : i32, i32
  }
  func.func @transform_10(%arg0: i32) -> (i32, i32) {
    %c0_i32 = arith.constant 0 : i32
    %c0_i32_0 = arith.constant 0 : i32
    %c0_i32_1 = arith.constant 0 : i32
    return %c0_i32, %c0_i32_0 : i32, i32
  }
  func.func @transform_11(%arg0: i32) -> (i32, i32) {
    %c0_i32 = arith.constant 0 : i32
    %c0_i32_0 = arith.constant 0 : i32
    %c0_i32_1 = arith.constant 0 : i32
    return %c0_i32, %c0_i32_0 : i32, i32
  }
  func.func @transform_12(%arg0: i32) -> (i32, i32, i32) {
    %c0_i32 = arith.constant 0 : i32
    %c0_i32_0 = arith.constant 0 : i32
    %c0_i32_1 = arith.constant 0 : i32
    return %arg0, %c0_i32, %c0_i32_0 : i32, i32, i32
  }
}

module attributes {stable_mosaic.version = 11 : i64} {
  func.func @_tail_kernel(%arg0: i32, %arg1: memref<1x16x128xf32, #tpu.memory_space<vmem>>, %arg2: memref<1x16x128xf32, #tpu.memory_space<vmem>>, %arg3: memref<1x16x128xf32, #tpu.memory_space<vmem>>, %arg4: memref<128x96xbf16, #tpu.memory_space<vmem>>, %arg5: memref<128x96xbf16, #tpu.memory_space<vmem>>, %arg6: memref<128x96xbf16, #tpu.memory_space<vmem>>, %arg7: memref<1x96xf32, #tpu.memory_space<vmem>>, %arg8: memref<96x128xbf16, #tpu.memory_space<vmem>>, %arg9: memref<96x128xbf16, #tpu.memory_space<vmem>>, %arg10: memref<96x128xbf16, #tpu.memory_space<vmem>>, %arg11: memref<3x1x128xf32, #tpu.memory_space<vmem>>, %arg12: memref<128x96xbf16, #tpu.memory_space<vmem>>, %arg13: memref<1x96xf32, #tpu.memory_space<vmem>>, %arg14: memref<2x1x192xf32, #tpu.memory_space<vmem>>, %arg15: memref<192x192xbf16, #tpu.memory_space<vmem>>, %arg16: memref<1x192xf32, #tpu.memory_space<vmem>>, %arg17: memref<192x40xbf16, #tpu.memory_space<vmem>>, %arg18: memref<1x40xf32, #tpu.memory_space<vmem>>, %arg19: memref<1x1x40xf32, #tpu.memory_space<vmem>>, %arg20: memref<1x1x192xf32, #tpu.memory_space<vmem>>) attributes {dimension_semantics = [#tpu.dimension_semantics<parallel>], iteration_bounds = array<i64: 2>, scalar_prefetch = 0 : i64, scratch_operands = 0 : i64, tpu.core_type = #tpu.core_type<tc>, window_params = [{transform_indices = @transform_0, window_bounds = array<i64: 1, 16, 128>}, {transform_indices = @transform_1, window_bounds = array<i64: 1, 16, 128>}, {transform_indices = @transform_2, window_bounds = array<i64: 1, 16, 128>}, {pipeline_mode = #tpu.pipeline_mode<synchronous>, transform_indices = @transform_3, window_bounds = array<i64: 128, 96>}, {pipeline_mode = #tpu.pipeline_mode<synchronous>, transform_indices = @transform_4, window_bounds = array<i64: 128, 96>}, {pipeline_mode = #tpu.pipeline_mode<synchronous>, transform_indices = @transform_5, window_bounds = array<i64: 128, 96>}, {pipeline_mode = #tpu.pipeline_mode<synchronous>, transform_indices = @transform_6, window_bounds = array<i64: 1, 96>}, {pipeline_mode = #tpu.pipeline_mode<synchronous>, transform_indices = @transform_7, window_bounds = array<i64: 96, 128>}, {pipeline_mode = #tpu.pipeline_mode<synchronous>, transform_indices = @transform_8, window_bounds = array<i64: 96, 128>}, {pipeline_mode = #tpu.pipeline_mode<synchronous>, transform_indices = @transform_9, window_bounds = array<i64: 96, 128>}, {pipeline_mode = #tpu.pipeline_mode<synchronous>, transform_indices = @transform_10, window_bounds = array<i64: 3, 1, 128>}, {pipeline_mode = #tpu.pipeline_mode<synchronous>, transform_indices = @transform_11, window_bounds = array<i64: 128, 96>}, {pipeline_mode = #tpu.pipeline_mode<synchronous>, transform_indices = @transform_12, window_bounds = array<i64: 1, 96>}, {pipeline_mode = #tpu.pipeline_mode<synchronous>, transform_indices = @transform_13, window_bounds = array<i64: 2, 1, 192>}, {pipeline_mode = #tpu.pipeline_mode<synchronous>, transform_indices = @transform_14, window_bounds = array<i64: 192, 192>}, {pipeline_mode = #tpu.pipeline_mode<synchronous>, transform_indices = @transform_15, window_bounds = array<i64: 1, 192>}, {pipeline_mode = #tpu.pipeline_mode<synchronous>, transform_indices = @transform_16, window_bounds = array<i64: 192, 40>}, {pipeline_mode = #tpu.pipeline_mode<synchronous>, transform_indices = @transform_17, window_bounds = array<i64: 1, 40>}, {transform_indices = @transform_18, window_bounds = array<i64: 1, 1, 40>}, {transform_indices = @transform_19, window_bounds = array<i64: 1, 1, 192>}]} {
    %c0 = arith.constant 0 : index
    %c0_0 = arith.constant 0 : index
    %c0_1 = arith.constant 0 : index
    %0 = vector.load %arg1[%c0, %c0_0, %c0_1] : memref<1x16x128xf32, #tpu.memory_space<vmem>>, vector<1x16x128xf32>
    %1 = vector.shape_cast %0 : vector<1x16x128xf32> to vector<16x128xf32>
    %c0_2 = arith.constant 0 : index
    %c0_3 = arith.constant 0 : index
    %2 = vector.load %arg4[%c0_2, %c0_3] : memref<128x96xbf16, #tpu.memory_space<vmem>>, vector<128x96xbf16>
    %3 = arith.truncf %1 : vector<16x128xf32> to vector<16x128xbf16>
    %cst = arith.constant dense<0.000000e+00> : vector<16x96xf32>
    %4 = tpu.matmul %3, %2, %cst {dimension_numbers = #tpu.dot_dimension_numbers<[1], [0], [0], [1], [0, 0, 1, 1], [], []>} : vector<16x128xbf16>, vector<128x96xbf16>, vector<16x96xf32> -> vector<16x96xf32>
    %c0_4 = arith.constant 0 : index
    %c0_5 = arith.constant 0 : index
    %c0_6 = arith.constant 0 : index
    %5 = vector.load %arg2[%c0_4, %c0_5, %c0_6] : memref<1x16x128xf32, #tpu.memory_space<vmem>>, vector<1x16x128xf32>
    %6 = vector.shape_cast %5 : vector<1x16x128xf32> to vector<16x128xf32>
    %c0_7 = arith.constant 0 : index
    %c0_8 = arith.constant 0 : index
    %7 = vector.load %arg5[%c0_7, %c0_8] : memref<128x96xbf16, #tpu.memory_space<vmem>>, vector<128x96xbf16>
    %8 = arith.truncf %6 : vector<16x128xf32> to vector<16x128xbf16>
    %cst_9 = arith.constant dense<0.000000e+00> : vector<16x96xf32>
    %9 = tpu.matmul %8, %7, %cst_9 {dimension_numbers = #tpu.dot_dimension_numbers<[1], [0], [0], [1], [0, 0, 1, 1], [], []>} : vector<16x128xbf16>, vector<128x96xbf16>, vector<16x96xf32> -> vector<16x96xf32>
    %10 = arith.addf %4, %9 : vector<16x96xf32>
    %c0_10 = arith.constant 0 : index
    %c0_11 = arith.constant 0 : index
    %c0_12 = arith.constant 0 : index
    %11 = vector.load %arg3[%c0_10, %c0_11, %c0_12] : memref<1x16x128xf32, #tpu.memory_space<vmem>>, vector<1x16x128xf32>
    %12 = vector.shape_cast %11 : vector<1x16x128xf32> to vector<16x128xf32>
    %c0_13 = arith.constant 0 : index
    %c0_14 = arith.constant 0 : index
    %13 = vector.load %arg6[%c0_13, %c0_14] : memref<128x96xbf16, #tpu.memory_space<vmem>>, vector<128x96xbf16>
    %14 = arith.truncf %12 : vector<16x128xf32> to vector<16x128xbf16>
    %cst_15 = arith.constant dense<0.000000e+00> : vector<16x96xf32>
    %15 = tpu.matmul %14, %13, %cst_15 {dimension_numbers = #tpu.dot_dimension_numbers<[1], [0], [0], [1], [0, 0, 1, 1], [], []>} : vector<16x128xbf16>, vector<128x96xbf16>, vector<16x96xf32> -> vector<16x96xf32>
    %16 = arith.addf %10, %15 : vector<16x96xf32>
    %c0_16 = arith.constant 0 : index
    %c0_17 = arith.constant 0 : index
    %17 = vector.load %arg7[%c0_16, %c0_17] : memref<1x96xf32, #tpu.memory_space<vmem>>, vector<1x96xf32>
    %18 = vector.broadcast %17 : vector<1x96xf32> to vector<16x96xf32>
    %19 = arith.addf %16, %18 : vector<16x96xf32>
    %cst_18 = arith.constant 0.000000e+00 : f32
    %20 = vector.broadcast %cst_18 : f32 to vector<16x96xf32>
    %21 = arith.maximumf %19, %20 : vector<16x96xf32>
    %cst_19 = arith.constant dense<0.000000e+00> : vector<96xf32>
    %22 = vector.multi_reduction <add>, %21, %cst_19 [0] : vector<16x96xf32> to vector<96xf32>
    %23 = vector.shape_cast %22 : vector<96xf32> to vector<1x96xf32>
    %cst_20 = arith.constant 1.600000e+01 : f32
    %24 = vector.broadcast %cst_20 : f32 to vector<1x96xf32>
    %25 = arith.divf %23, %24 : vector<1x96xf32>
    %26 = vector.broadcast %25 : vector<1x96xf32> to vector<16x96xf32>
    %27 = arith.subf %21, %26 : vector<16x96xf32>
    %28 = arith.mulf %27, %27 : vector<16x96xf32>
    %cst_21 = arith.constant dense<0.000000e+00> : vector<96xf32>
    %29 = vector.multi_reduction <add>, %28, %cst_21 [0] : vector<16x96xf32> to vector<96xf32>
    %30 = vector.shape_cast %29 : vector<96xf32> to vector<1x96xf32>
    %cst_22 = arith.constant 0.0666666701 : f32
    %31 = vector.broadcast %cst_22 : f32 to vector<1x96xf32>
    %32 = arith.mulf %30, %31 : vector<1x96xf32>
    %cst_23 = arith.constant 9.99999974E-5 : f32
    %33 = vector.broadcast %cst_23 : f32 to vector<1x96xf32>
    %34 = arith.maximumf %32, %33 : vector<1x96xf32>
    %35 = math.sqrt %34 : vector<1x96xf32>
    %c0_24 = arith.constant 0 : index
    %c0_25 = arith.constant 0 : index
    %c0_26 = arith.constant 0 : index
    %36 = vector.load %arg11[%c0_24, %c0_25, %c0_26] : memref<3x1x128xf32, #tpu.memory_space<vmem>>, vector<3x1x128xf32>
    %c0_27 = arith.constant 0 : index
    %c0_28 = arith.constant 0 : index
    %37 = vector.load %arg8[%c0_27, %c0_28] : memref<96x128xbf16, #tpu.memory_space<vmem>>, vector<96x128xbf16>
    %38 = arith.truncf %21 : vector<16x96xf32> to vector<16x96xbf16>
    %cst_29 = arith.constant dense<0.000000e+00> : vector<16x128xf32>
    %39 = tpu.matmul %38, %37, %cst_29 {dimension_numbers = #tpu.dot_dimension_numbers<[1], [0], [0], [1], [0, 0, 1, 1], [], []>} : vector<16x96xbf16>, vector<96x128xbf16>, vector<16x128xf32> -> vector<16x128xf32>
    %c0_30 = arith.constant 0 : index
    %c0_31 = arith.constant 0 : index
    %40 = vector.load %arg9[%c0_30, %c0_31] : memref<96x128xbf16, #tpu.memory_space<vmem>>, vector<96x128xbf16>
    %41 = arith.truncf %25 : vector<1x96xf32> to vector<1x96xbf16>
    %cst_32 = arith.constant dense<0.000000e+00> : vector<1x128xf32>
    %42 = tpu.matmul %41, %40, %cst_32 {dimension_numbers = #tpu.dot_dimension_numbers<[1], [0], [0], [1], [0, 0, 1, 1], [], []>} : vector<1x96xbf16>, vector<96x128xbf16>, vector<1x128xf32> -> vector<1x128xf32>
    %43 = vector.broadcast %42 : vector<1x128xf32> to vector<16x128xf32>
    %44 = arith.addf %39, %43 : vector<16x128xf32>
    %c0_33 = arith.constant 0 : index
    %c0_34 = arith.constant 0 : index
    %45 = vector.load %arg10[%c0_33, %c0_34] : memref<96x128xbf16, #tpu.memory_space<vmem>>, vector<96x128xbf16>
    %46 = arith.truncf %35 : vector<1x96xf32> to vector<1x96xbf16>
    %cst_35 = arith.constant dense<0.000000e+00> : vector<1x128xf32>
    %47 = tpu.matmul %46, %45, %cst_35 {dimension_numbers = #tpu.dot_dimension_numbers<[1], [0], [0], [1], [0, 0, 1, 1], [], []>} : vector<1x96xbf16>, vector<96x128xbf16>, vector<1x128xf32> -> vector<1x128xf32>
    %48 = vector.broadcast %47 : vector<1x128xf32> to vector<16x128xf32>
    %49 = arith.addf %44, %48 : vector<16x128xf32>
    %50 = vector.extract_strided_slice %36 {offsets = [0, 0, 0], sizes = [1, 1, 128], strides = [1, 1, 1]} : vector<3x1x128xf32> to vector<1x1x128xf32>
    %51 = vector.shape_cast %50 : vector<1x1x128xf32> to vector<1x128xf32>
    %52 = vector.broadcast %51 : vector<1x128xf32> to vector<16x128xf32>
    %53 = arith.addf %49, %52 : vector<16x128xf32>
    %cst_36 = arith.constant 0.000000e+00 : f32
    %54 = vector.broadcast %cst_36 : f32 to vector<16x128xf32>
    %55 = arith.maximumf %53, %54 : vector<16x128xf32>
    %56 = vector.extract_strided_slice %36 {offsets = [1, 0, 0], sizes = [1, 1, 128], strides = [1, 1, 1]} : vector<3x1x128xf32> to vector<1x1x128xf32>
    %57 = vector.shape_cast %56 : vector<1x1x128xf32> to vector<1x128xf32>
    %58 = vector.broadcast %57 : vector<1x128xf32> to vector<16x128xf32>
    %59 = arith.mulf %55, %58 : vector<16x128xf32>
    %60 = vector.extract_strided_slice %36 {offsets = [2, 0, 0], sizes = [1, 1, 128], strides = [1, 1, 1]} : vector<3x1x128xf32> to vector<1x1x128xf32>
    %61 = vector.shape_cast %60 : vector<1x1x128xf32> to vector<1x128xf32>
    %62 = vector.broadcast %61 : vector<1x128xf32> to vector<16x128xf32>
    %63 = arith.addf %59, %62 : vector<16x128xf32>
    %64 = math.tanh %63 : vector<16x128xf32>
    %c0_37 = arith.constant 0 : index
    %c0_38 = arith.constant 0 : index
    %65 = vector.load %arg12[%c0_37, %c0_38] : memref<128x96xbf16, #tpu.memory_space<vmem>>, vector<128x96xbf16>
    %66 = arith.truncf %64 : vector<16x128xf32> to vector<16x128xbf16>
    %cst_39 = arith.constant dense<0.000000e+00> : vector<16x96xf32>
    %67 = tpu.matmul %66, %65, %cst_39 {dimension_numbers = #tpu.dot_dimension_numbers<[1], [0], [0], [1], [0, 0, 1, 1], [], []>} : vector<16x128xbf16>, vector<128x96xbf16>, vector<16x96xf32> -> vector<16x96xf32>
    %c0_40 = arith.constant 0 : index
    %c0_41 = arith.constant 0 : index
    %68 = vector.load %arg13[%c0_40, %c0_41] : memref<1x96xf32, #tpu.memory_space<vmem>>, vector<1x96xf32>
    %69 = vector.broadcast %68 : vector<1x96xf32> to vector<16x96xf32>
    %70 = arith.addf %67, %69 : vector<16x96xf32>
    %cst_42 = arith.constant dense<0xFF800000> : vector<96xf32>
    %71 = vector.multi_reduction <maximumf>, %70, %cst_42 [0] : vector<16x96xf32> to vector<96xf32>
    %72 = vector.shape_cast %71 : vector<96xf32> to vector<1x96xf32>
    %73 = vector.broadcast %72 : vector<1x96xf32> to vector<16x96xf32>
    %74 = arith.subf %70, %73 : vector<16x96xf32>
    %75 = math.exp %74 : vector<16x96xf32>
    %cst_43 = arith.constant dense<0.000000e+00> : vector<96xf32>
    %76 = vector.multi_reduction <add>, %75, %cst_43 [0] : vector<16x96xf32> to vector<96xf32>
    %77 = vector.shape_cast %76 : vector<96xf32> to vector<1x96xf32>
    %78 = tpu.reciprocal %77 {approx = true} : vector<1x96xf32> -> vector<1x96xf32>
    %79 = vector.broadcast %78 : vector<1x96xf32> to vector<16x96xf32>
    %80 = arith.mulf %75, %79 : vector<16x96xf32>
    %81 = arith.mulf %21, %80 : vector<16x96xf32>
    %cst_44 = arith.constant dense<0.000000e+00> : vector<96xf32>
    %82 = vector.multi_reduction <add>, %81, %cst_44 [0] : vector<16x96xf32> to vector<96xf32>
    %83 = vector.shape_cast %82 : vector<96xf32> to vector<1x96xf32>
    %84 = arith.mulf %21, %21 : vector<16x96xf32>
    %85 = arith.mulf %84, %80 : vector<16x96xf32>
    %cst_45 = arith.constant dense<0.000000e+00> : vector<96xf32>
    %86 = vector.multi_reduction <add>, %85, %cst_45 [0] : vector<16x96xf32> to vector<96xf32>
    %87 = vector.shape_cast %86 : vector<96xf32> to vector<1x96xf32>
    %88 = arith.mulf %83, %83 : vector<1x96xf32>
    %89 = arith.subf %87, %88 : vector<1x96xf32>
    %cst_46 = arith.constant 9.99999974E-5 : f32
    %90 = vector.broadcast %cst_46 : f32 to vector<1x96xf32>
    %91 = arith.maximumf %89, %90 : vector<1x96xf32>
    %92 = math.sqrt %91 : vector<1x96xf32>
    %c0_47 = arith.constant 0 : index
    %c0_48 = arith.constant 0 : index
    %c0_49 = arith.constant 0 : index
    %93 = vector.load %arg14[%c0_47, %c0_48, %c0_49] : memref<2x1x192xf32, #tpu.memory_space<vmem>>, vector<2x1x192xf32>
    %94 = tpu.concatenate %83, %92 in 1 : vector<1x96xf32>, vector<1x96xf32> -> vector<1x192xf32>
    %95 = vector.extract_strided_slice %93 {offsets = [0, 0, 0], sizes = [1, 1, 192], strides = [1, 1, 1]} : vector<2x1x192xf32> to vector<1x1x192xf32>
    %96 = vector.shape_cast %95 : vector<1x1x192xf32> to vector<1x192xf32>
    %97 = arith.mulf %94, %96 : vector<1x192xf32>
    %98 = vector.extract_strided_slice %93 {offsets = [1, 0, 0], sizes = [1, 1, 192], strides = [1, 1, 1]} : vector<2x1x192xf32> to vector<1x1x192xf32>
    %99 = vector.shape_cast %98 : vector<1x1x192xf32> to vector<1x192xf32>
    %100 = arith.addf %97, %99 : vector<1x192xf32>
    %c0_50 = arith.constant 0 : index
    %c0_51 = arith.constant 0 : index
    %c0_52 = arith.constant 0 : index
    %101 = vector.load %arg20[%c0_50, %c0_51, %c0_52] : memref<1x1x192xf32, #tpu.memory_space<vmem>>, vector<1x1x192xf32>
    %102 = vector.shape_cast %101 : vector<1x1x192xf32> to vector<1x192xf32>
    %103 = vector.shape_cast %100 : vector<1x192xf32> to vector<1x1x192xf32>
    tpu.vector_store %arg20[%c0_50, %c0_51, %c0_52], %103 {strides = array<i32>} : memref<1x1x192xf32, #tpu.memory_space<vmem>>, vector<1x1x192xf32>,
    %c0_53 = arith.constant 0 : index
    %c0_54 = arith.constant 0 : index
    %104 = vector.load %arg15[%c0_53, %c0_54] : memref<192x192xbf16, #tpu.memory_space<vmem>>, vector<192x192xbf16>
    %105 = arith.truncf %100 : vector<1x192xf32> to vector<1x192xbf16>
    %cst_55 = arith.constant dense<0.000000e+00> : vector<1x192xf32>
    %106 = tpu.matmul %105, %104, %cst_55 {dimension_numbers = #tpu.dot_dimension_numbers<[1], [0], [0], [1], [0, 0, 1, 1], [], []>} : vector<1x192xbf16>, vector<192x192xbf16>, vector<1x192xf32> -> vector<1x192xf32>
    %c0_56 = arith.constant 0 : index
    %c0_57 = arith.constant 0 : index
    %107 = vector.load %arg16[%c0_56, %c0_57] : memref<1x192xf32, #tpu.memory_space<vmem>>, vector<1x192xf32>
    %108 = arith.addf %106, %107 : vector<1x192xf32>
    %c0_58 = arith.constant 0 : index
    %c0_59 = arith.constant 0 : index
    %109 = vector.load %arg17[%c0_58, %c0_59] : memref<192x40xbf16, #tpu.memory_space<vmem>>, vector<192x40xbf16>
    %110 = arith.truncf %108 : vector<1x192xf32> to vector<1x192xbf16>
    %cst_60 = arith.constant dense<0.000000e+00> : vector<1x40xf32>
    %111 = tpu.matmul %110, %109, %cst_60 {dimension_numbers = #tpu.dot_dimension_numbers<[1], [0], [0], [1], [0, 0, 1, 1], [], []>} : vector<1x192xbf16>, vector<192x40xbf16>, vector<1x40xf32> -> vector<1x40xf32>
    %c0_61 = arith.constant 0 : index
    %c0_62 = arith.constant 0 : index
    %112 = vector.load %arg18[%c0_61, %c0_62] : memref<1x40xf32, #tpu.memory_space<vmem>>, vector<1x40xf32>
    %113 = arith.addf %111, %112 : vector<1x40xf32>
    %c0_63 = arith.constant 0 : index
    %c0_64 = arith.constant 0 : index
    %c0_65 = arith.constant 0 : index
    %114 = vector.load %arg19[%c0_63, %c0_64, %c0_65] : memref<1x1x40xf32, #tpu.memory_space<vmem>>, vector<1x1x40xf32>
    %115 = vector.shape_cast %114 : vector<1x1x40xf32> to vector<1x40xf32>
    %116 = vector.shape_cast %113 : vector<1x40xf32> to vector<1x1x40xf32>
    tpu.vector_store %arg19[%c0_63, %c0_64, %c0_65], %116 {strides = array<i32>} : memref<1x1x40xf32, #tpu.memory_space<vmem>>, vector<1x1x40xf32>,
    return
  }
  func.func @transform_0(%arg0: i32) -> (i32, i32, i32) {
    %c0_i32 = arith.constant 0 : i32
    %c0_i32_0 = arith.constant 0 : i32
    %c0_i32_1 = arith.constant 0 : i32
    return %arg0, %c0_i32, %c0_i32_0 : i32, i32, i32
  }
  func.func @transform_1(%arg0: i32) -> (i32, i32, i32) {
    %c0_i32 = arith.constant 0 : i32
    %c0_i32_0 = arith.constant 0 : i32
    %c0_i32_1 = arith.constant 0 : i32
    return %arg0, %c0_i32, %c0_i32_0 : i32, i32, i32
  }
  func.func @transform_2(%arg0: i32) -> (i32, i32, i32) {
    %c0_i32 = arith.constant 0 : i32
    %c0_i32_0 = arith.constant 0 : i32
    %c0_i32_1 = arith.constant 0 : i32
    return %arg0, %c0_i32, %c0_i32_0 : i32, i32, i32
  }
  func.func @transform_3(%arg0: i32) -> (i32, i32) {
    %c0_i32 = arith.constant 0 : i32
    %c0_i32_0 = arith.constant 0 : i32
    %c0_i32_1 = arith.constant 0 : i32
    return %c0_i32, %c0_i32_0 : i32, i32
  }
  func.func @transform_4(%arg0: i32) -> (i32, i32) {
    %c0_i32 = arith.constant 0 : i32
    %c0_i32_0 = arith.constant 0 : i32
    %c0_i32_1 = arith.constant 0 : i32
    return %c0_i32, %c0_i32_0 : i32, i32
  }
  func.func @transform_5(%arg0: i32) -> (i32, i32) {
    %c0_i32 = arith.constant 0 : i32
    %c0_i32_0 = arith.constant 0 : i32
    %c0_i32_1 = arith.constant 0 : i32
    return %c0_i32, %c0_i32_0 : i32, i32
  }
  func.func @transform_6(%arg0: i32) -> (i32, i32) {
    %c0_i32 = arith.constant 0 : i32
    %c0_i32_0 = arith.constant 0 : i32
    %c0_i32_1 = arith.constant 0 : i32
    return %c0_i32, %c0_i32_0 : i32, i32
  }
  func.func @transform_7(%arg0: i32) -> (i32, i32) {
    %c0_i32 = arith.constant 0 : i32
    %c0_i32_0 = arith.constant 0 : i32
    %c0_i32_1 = arith.constant 0 : i32
    return %c0_i32, %c0_i32_0 : i32, i32
  }
  func.func @transform_8(%arg0: i32) -> (i32, i32) {
    %c0_i32 = arith.constant 0 : i32
    %c0_i32_0 = arith.constant 0 : i32
    %c0_i32_1 = arith.constant 0 : i32
    return %c0_i32, %c0_i32_0 : i32, i32
  }
  func.func @transform_9(%arg0: i32) -> (i32, i32) {
    %c0_i32 = arith.constant 0 : i32
    %c0_i32_0 = arith.constant 0 : i32
    %c0_i32_1 = arith.constant 0 : i32
    return %c0_i32, %c0_i32_0 : i32, i32
  }
  func.func @transform_10(%arg0: i32) -> (i32, i32, i32) {
    %c0_i32 = arith.constant 0 : i32
    %c0_i32_0 = arith.constant 0 : i32
    %c0_i32_1 = arith.constant 0 : i32
    %c0_i32_2 = arith.constant 0 : i32
    return %c0_i32, %c0_i32_0, %c0_i32_1 : i32, i32, i32
  }
  func.func @transform_11(%arg0: i32) -> (i32, i32) {
    %c0_i32 = arith.constant 0 : i32
    %c0_i32_0 = arith.constant 0 : i32
    %c0_i32_1 = arith.constant 0 : i32
    return %c0_i32, %c0_i32_0 : i32, i32
  }
  func.func @transform_12(%arg0: i32) -> (i32, i32) {
    %c0_i32 = arith.constant 0 : i32
    %c0_i32_0 = arith.constant 0 : i32
    %c0_i32_1 = arith.constant 0 : i32
    return %c0_i32, %c0_i32_0 : i32, i32
  }
  func.func @transform_13(%arg0: i32) -> (i32, i32, i32) {
    %c0_i32 = arith.constant 0 : i32
    %c0_i32_0 = arith.constant 0 : i32
    %c0_i32_1 = arith.constant 0 : i32
    %c0_i32_2 = arith.constant 0 : i32
    return %c0_i32, %c0_i32_0, %c0_i32_1 : i32, i32, i32
  }
  func.func @transform_14(%arg0: i32) -> (i32, i32) {
    %c0_i32 = arith.constant 0 : i32
    %c0_i32_0 = arith.constant 0 : i32
    %c0_i32_1 = arith.constant 0 : i32
    return %c0_i32, %c0_i32_0 : i32, i32
  }
  func.func @transform_15(%arg0: i32) -> (i32, i32) {
    %c0_i32 = arith.constant 0 : i32
    %c0_i32_0 = arith.constant 0 : i32
    %c0_i32_1 = arith.constant 0 : i32
    return %c0_i32, %c0_i32_0 : i32, i32
  }
  func.func @transform_16(%arg0: i32) -> (i32, i32) {
    %c0_i32 = arith.constant 0 : i32
    %c0_i32_0 = arith.constant 0 : i32
    %c0_i32_1 = arith.constant 0 : i32
    return %c0_i32, %c0_i32_0 : i32, i32
  }
  func.func @transform_17(%arg0: i32) -> (i32, i32) {
    %c0_i32 = arith.constant 0 : i32
    %c0_i32_0 = arith.constant 0 : i32
    %c0_i32_1 = arith.constant 0 : i32
    return %c0_i32, %c0_i32_0 : i32, i32
  }
  func.func @transform_18(%arg0: i32) -> (i32, i32, i32) {
    %c0_i32 = arith.constant 0 : i32
    %c0_i32_0 = arith.constant 0 : i32
    %c0_i32_1 = arith.constant 0 : i32
    return %arg0, %c0_i32, %c0_i32_0 : i32, i32, i32
  }
  func.func @transform_19(%arg0: i32) -> (i32, i32, i32) {
    %c0_i32 = arith.constant 0 : i32
    %c0_i32_0 = arith.constant 0 : i32
    %c0_i32_1 = arith.constant 0 : i32
    return %arg0, %c0_i32, %c0_i32_0 : i32, i32, i32
  }
}

</mosaic_0001>

<bundles_post_ra>
// kernel: forward.5
= control target key start
LH: loop header
LB: loop body
LE: loop exit
PB: predicated region body
PF: predicated region fallthrough
CT: control target
= control target key end

     0   :  { %s734_s12 = smov 0   ;;  %s827_s0 = inlined_call_operand.vmem [shape: f32[2,16,22], index: 0, kind: input, shape index: {}]   ;;  %s828_s1 = inlined_call_operand.vmem [shape: bf16[5,22,128], index: 1, kind: input, shape index: {}]   ;;  %s829_s2 = inlined_call_operand.vmem [shape: f32[3,1,128], index: 2, kind: input, shape index: {}]   ;;  %s830_s3 = inlined_call_operand.vmem [shape: f32[2,16,128], index: 3, kind: output, shape index: {}]  }
   0x1 LB: > { %s598_s13 = sadd.s32 4294967295, %s710_s12   ;;  %p602_p0 = scmp.ge.s32.totalorder %s710_s12, 1  ;;  %s710_s12 = sphi %s734_s12, %s13_s12  }
   0x2   : > { %p137_p1 = scmp.lt.s32.totalorder %s710_s12, 3 }
   0x4   : > { %p138_p2 = pnand %p602_p0, %p137_p1 }
   0x5   : > { %v694_v0 = vld [vmem:[%s828_s1 + $0xc] sm:$0xff] (!%p138_p2)   ;;  %v712_v1 = vmov (!%p138_p2), 0.0   ;;  %v695_v2 = vld [vmem:[%s828_s1] sm:$0xff] (!%p138_p2)   ;;  %vm223_vm0 = vcmask (!%p138_p2), 1042432   ;;  %p161_p3 = scmp.lt.s32.totalorder (!%p138_p2), %s598_s13, 1  ;;  %vm713_vm1 = vmmov (!%p138_p2), 0  }
   0x6   : > { %141 = sbr.rel (%p138_p2) target bundleno = 263 (0x107), region = 32  ;;  %644 = vmatprep.subr.bf16.mxu0 (!%p138_p2), %v712_v1  ;;  %652 = vmatprep.subr.bf16.mxu1 (!%p138_p2), %v712_v1  ;;  %v696_v3 = vld [vmem:[%s828_s1 + $0x14] ss:$0 sps:$4 sm:$0x77] (!%p138_p2)   ;;  %vm202_vm2 = vcmask (!%p138_p2), 1040384   ;;  %vm194_vm3 = vcmask (!%p138_p2), 1041408  }
   0x7   : > { %645 = vmatpush3.bf16.msra.mxu0 (!%p138_p2), %v694_v0  ;;  %653 = vmatpush3.bf16.msra.mxu1 (!%p138_p2), %v695_v2  ;;  %v697_v4 = vld [vmem:[%s828_s1 + $0x8] ss:$0 sps:$4 sm:$0x77] (!%p138_p2)   ;;  %v225_v5 = vsel (!%p138_p2), %vm223_vm0, %v696_v3, 0  ;;  %vm219_vm4 = vcmask (!%p138_p2), 179200   ;;  %v698_v13 = vld [vmem:[%s828_s1 + $0x18] sm:$0xff] (!%p138_p2)  }
   0x8   : > { %646 = vmatprep.subr.bf16.mxu0 (!%p138_p2), %v712_v1  ;;  %654 = vmatprep.subr.bf16.mxu1 (!%p138_p2), %v712_v1  ;;  %v281_v6 = vsel (!%p138_p2), %vm223_vm0, %v697_v4, 0  ;;  %v699_v20 = vld [vmem:[%s828_s1 + $0x24] sm:$0xff] (!%p138_p2)   ;;  %v700_v21 = vld [vmem:[%s828_s1 + $0x20] ss:$0 sps:$4 sm:$0x77] (!%p138_p2)   ;;  %vm383_vm5 = vcmask (!%p138_p2), 1046528  }
   0x9   : > { %648 = vmatprep.mubr.msk.bf16.mxu0 (!%p138_p2), %vm713_vm1, %v712_v1  ;;  %656 = vmatprep.mubr.msk.bf16.mxu1 (!%p138_p2), %vm713_vm1, %v712_v1  ;;  %v701_v24 = vld [vmem:[%s828_s1 + $0x2c] ss:$0 sps:$4 sm:$0x77] (!%p138_p2)   ;;  %v338_v27 = vsel (!%p138_p2), %vm223_vm0, %v700_v21, 0  ;;  %v702_v31 = vld [vmem:[%s828_s1 + $0x30] sm:$0xff] (!%p138_p2)   ;;  %vm449_vm6 = vcmask (!%p138_p2), 1045504  }
   0xa   : > { %v404_v28 = vsel (!%p138_p2), %vm223_vm0, %v701_v24, 0  ;;  %v703_v34 = vld [vmem:[%s828_s1 + $0x38] ss:$0 sps:$4 sm:$0x77] (!%p138_p2)   ;;  %v622_v61 = vld [vmem:[%s829_s2] ss:$0 sm:$0xff] (!%p138_p2) }
   0xb   : > { %647 = vmatpush3.bf16.msra.mxu0 (!%p138_p2), %v225_v5  ;;  %655 = vmatpush3.bf16.msra.mxu1 (!%p138_p2), %v281_v6  ;;  %v470_v37 = vsel (!%p138_p2), %vm223_vm0, %v703_v34, 0  ;;  %v623_v5 = vld [vmem:[%s829_s2 + $0x1] ss:$0 sm:$0xff] (!%p138_p2) }
   0xc   : > { %660 = vmatprep.subr.bf16.mxu0 (!%p138_p2), %v712_v1  ;;  %668 = vmatprep.subr.bf16.mxu1 (!%p138_p2), %v712_v1 }
   0xd   : > { %s832_s13 = smov (!%p161_p3, %s598_s13), 1 }
   0xe   : > { %s627_s22 = sshll.u32 %s832_s13, 4 }
   0xf   : > { %s165_s25 = scalar_lea.vmem %s827_s0, %s627_s22  ;;  %s170_s21 = scalar_lea.vmem %s830_s3, %s627_s22 }
  0x10   : > { %v172_v7 = vld [vmem:[%s165_s25] sm:$0xff]  ;;  %v173_v8 = vld [vmem:[%s165_s25 + $0x8] sm:$0xff] }
  0x11   : > { %v203_v9 = vrot.slane %v172_v7, 7  ;;  %v204_v10 = vrot.slane %v173_v8, 7  ;;  %v195_v11 = vrot.slane %v172_v7, 6  ;;  %v196_v12 = vrot.slane %v173_v8, 6 }
  0x12   : > { %v384_v14 = vrot.slane %v172_v7, 1  ;;  %v385_v15 = vrot.slane %v173_v8, 1  ;;  %v324_v29 = vpack.c.bf16 %v173_v8, %v172_v7  ;;  %v450_v32 = vrot.slane %v172_v7, 2 }
  0x13   : > { %v205_v16 = vsel %vm202_vm2, %v203_v9, %v204_v10  ;;  %v208_v17 = vsel %vm202_vm2, 0.0, %v203_v9  ;;  %v197_v18 = vsel %vm194_vm3, %v195_v11, %v196_v12  ;;  %v200_v19 = vsel %vm194_vm3, 0.0, %v195_v11 }
  0x14   : > { %v209_v22 = vpack.c.bf16 %v205_v16, %v208_v17  ;;  %v201_v23 = vpack.c.bf16 %v197_v18, %v200_v19  ;;  %v386_v25 = vsel %vm383_vm5, %v384_v14, %v385_v15  ;;  %v389_v26 = vsel %vm383_vm5, %v385_v15, 0.0 }
  0x15   : > { %v390_v30 = vpack.c.bf16 %v389_v26, %v386_v25  ;;  %v451_v33 = vrot.slane %v173_v8, 2  ;;  %v624_v8 = vld [vmem:[%s829_s2 + $0x2] ss:$0 sm:$0xff] }
  0x16   : > { %649 = vmatmul.mubr.msk.bf16.vlgmr.msra.gmra.mrb[0].mxu0 %vm219_vm4, %v209_v22  ;;  %657 = vmatmul.mubr.msk.bf16.vlgmr.msra.gmra.mrb[0].mxu1 %vm219_vm4, %v201_v23 }
  0x17   : > { %661 = vmatpush3.bf16.msra.mxu0 %v698_v13  ;;  %669 = vmatpush3.bf16.msra.mxu1 %v699_v20  ;;  %v452_v35 = vsel %vm449_vm6, %v450_v32, %v451_v33  ;;  %v455_v36 = vsel %vm449_vm6, %v451_v33, 0.0 }
  0x18   : > { %662 = vmatprep.subr.bf16.mxu0 %v712_v1  ;;  %670 = vmatprep.subr.bf16.mxu1 %v712_v1  ;;  %v456_v38 = vpack.c.bf16 %v455_v36, %v452_v35 }
  0x19   : > { %664 = vmatprep.mubr.msk.bf16.mxu0 %vm713_vm1, %v712_v1  ;;  %672 = vmatprep.mubr.msk.bf16.mxu1 %vm713_vm1, %v712_v1 }
  0x1b   : > { %663 = vmatpush3.bf16.msra.mxu0 %v338_v27  ;;  %671 = vmatpush3.bf16.msra.mxu1 %v404_v28 }
  0x1c   : > { %676 = vmatprep.subr.bf16.mxu0 %v712_v1 }
  0x1e   : > { %665 = vmatmul.mubr.msk.bf16.vlgmr.msra.gmra.mrb[4].mxu0 %vm219_vm4, %v324_v29  ;;  %673 = vmatmul.mubr.msk.bf16.vlgmr.msra.gmra.mrb[4].mxu1 %vm219_vm4, %v390_v30 }
  0x1f   : > { %677 = vmatpush3.bf16.msra.mxu0 %v702_v31  ;;  %680 = vmatprep.mubr.msk.bf16.mxu0 %vm713_vm1, %v712_v1 }
  0x20   : > { %678 = vmatprep.subr.bf16.mxu0 %v712_v1 }
  0x23   : > { %679 = vmatpush3.bf16.msra.mxu0 %v470_v37 }
  0x26   : > { %681 = vmatmul.mubr.msk.bf16.vlgmr.msra.gmra.mrb[8].mxu0 %vm219_vm4, %v456_v38 }
  0xe9   : > { %v261_v39 = vpop.f32.mrb[0].mxu0  ;;  %v317_v40 = vpop.f32.mrb[0].mxu1 }
  0xea   : > { %v318_v41 = vadd.f32 %v317_v40, %v261_v39  ;;  %v650_v42 = vpop.f32.mrb[1].mxu0  ;;  %v658_v43 = vpop.f32.mrb[1].mxu1 }
  0xeb   : > { %v264_v44 = vpop.f32.mrb[2].mxu0  ;;  %v320_v45 = vpop.f32.mrb[2].mxu1 }
  0xec   : > { %v321_v46 = vadd.f32 %v320_v45, %v264_v44  ;;  %v651_v47 = vpop.f32.mrb[3].mxu0  ;;  %v659_v48 = vpop.f32.mrb[3].mxu1 }
  0xf1   : > { %v374_v49 = vpop.f32.mrb[4].mxu0  ;;  %v440_v50 = vpop.f32.mrb[4].mxu1 }
  0xf2   : > { %v381_v51 = vadd.f32 %v374_v49, %v318_v41  ;;  %v666_v52 = vpop.f32.mrb[5].mxu0  ;;  %v674_v53 = vpop.f32.mrb[5].mxu1 }
  0xf3   : > { %v377_v54 = vpop.f32.mrb[6].mxu0  ;;  %v443_v55 = vpop.f32.mrb[6].mxu1 }
  0xf4   : > { %v382_v56 = vadd.f32 %v377_v54, %v321_v46  ;;  %v447_v57 = vadd.f32 %v440_v50, %v381_v51  ;;  %v667_v58 = vpop.f32.mrb[7].mxu0  ;;  %v675_v59 = vpop.f32.mrb[7].mxu1 }
  0xf6   : > { %v448_v60 = vadd.f32 %v443_v55, %v382_v56 }
  0xf9   : > { %v506_v62 = vpop.f32.mrb[8].mxu0 }
  0xfa   : > { %v513_v63 = vadd.f32 %v506_v62, %v447_v57  ;;  %v682_v0 = vpop.f32.mrb[9].mxu0 }
  0xfb   : > { %v509_v1 = vpop.f32.mrb[10].mxu0 }
  0xfc   : > { %v521_v2 = vadd.f32 %v622_v61, %v513_v63  ;;  %v514_v3 = vadd.f32 %v509_v1, %v448_v60  ;;  %v683_v4 = vpop.f32.mrb[11].mxu0 }
  0xfe   : > { %v523_v6 = vmax.f32 %v521_v2, 0.0  ;;  %v522_v7 = vadd.f32 %v622_v61, %v514_v3 }
 0x100   : > { %v531_v9 = vmul.f32 %v623_v5, %v523_v6  ;;  %v524_v10 = vmax.f32 %v522_v7, 0.0 }
 0x102   : > { %v539_v11 = vadd.f32 %v624_v8, %v531_v9  ;;  %v532_v12 = vmul.f32 %v623_v5, %v524_v10 }
 0x104   : > { %541 = vst [vmem:[%s170_s21] sm:$0xff] %v539_v11  ;;  %v540_v13 = vadd.f32 %v624_v8, %v532_v12 }
 0x106   : > { %542 = vst [vmem:[%s170_s21 + $0x8] sm:$0xff] %v540_v13 }
 0x107 PF: > { %s13_s12 = sadd.s32 1, %s710_s12  }
 0x108   : > { %p10_p4 = scmp.ge.s32.totalorder %s13_s12, 4  }
 0x10a   :  { %12 = sbr.rel (!%p10_p4) target bundleno = 1 (0x1), region = 62 }

// kernel: forward.6
= control target key start
LH: loop header
LB: loop body
LE: loop exit
PB: predicated region body
PF: predicated region fallthrough
CT: control target
= control target key end

     0   :  { %s3184_s17 = smov 0   ;;  %s3693_s0 = inlined_call_operand.vmem [shape: f32[2,16,128], index: 0, kind: input, shape index: {}]   ;;  %s3694_s1 = inlined_call_operand.vmem [shape: bf16[128,128], index: 1, kind: input, shape index: {}]   ;;  %s3695_s2 = inlined_call_operand.vmem [shape: f32[3,1,128], index: 2, kind: input, shape index: {}]   ;;  %s3696_s3 = inlined_call_operand.vmem [shape: bf16[7,3,8,8], index: 3, kind: input, shape index: {}]   ;;  %s3697_s4 = inlined_call_operand.vmem [shape: f32[7,3,1,8], index: 4, kind: input, shape index: {}]   ;;  %s3698_s5 = inlined_call_operand.vmem [shape: bf16[8,8,128], index: 5, kind: input, shape index: {}]   ;;  %s3699_s6 = inlined_call_operand.vmem [shape: f32[3,1,128], index: 6, kind: input, shape index: {}]   ;;  %s3700_s7 = inlined_call_operand.vmem [shape: bf16[128,128], index: 7, kind: input, shape index: {}]   ;;  %s3701_s8 = inlined_call_operand.vmem [shape: f32[1,128], index: 8, kind: input, shape index: {}]   ;;  %s3702_s9 = inlined_call_operand.vmem [shape: bf16[128,128], index: 9, kind: input, shape index: {}]   ;;  %s3703_s10 = inlined_call_operand.vmem [shape: f32[1,128], index: 10, kind: input, shape index: {}]   ;;  %s3704_s11 = inlined_call_operand.vmem [shape: f32[2,16,128], index: 11, kind: output, shape index: {}]  }
   0x1 LB: > { %s2647_s18 = sadd.s32 4294967295, %s3113_s17   ;;  %p2651_p0 = scmp.ge.s32.totalorder %s3113_s17, 1  ;;  %s3113_s17 = sphi %s3184_s17, %s21_s17  }
   0x2   : > { %p337_p1 = scmp.lt.s32.totalorder %s3113_s17, 3 }
   0x4   : > { %p338_p2 = pnand %p2651_p0, %p337_p1 }
   0x5   : > { %v3077_v0 = vld [vmem:[%s3694_s1] sm:$0xff] (!%p338_p2)   ;;  %v3115_v1 = vmov (!%p338_p2), 0.0   ;;  %v3078_v2 = vld [vmem:[%s3694_s1 + $0x8] sm:$0xff] (!%p338_p2)   ;;  %vm3116_vm0 = vmmov (!%p338_p2), 0   ;;  %p377_p3 = scmp.lt.s32.totalorder (!%p338_p2), %s2647_s18, 1  ;;  %v3079_v3 = vld [vmem:[%s3694_s1 + $0x10] sm:$0xff] (!%p338_p2)  }
   0x6   : > { %341 = sbr.rel (%p338_p2) target bundleno = 2638 (0xa4e), region = 64  ;;  %2826 = vmatprep.subr.bf16.mxu0 (!%p338_p2), %v3115_v1  ;;  %2846 = vmatprep.subr.bf16.mxu1 (!%p338_p2), %v3115_v1  ;;  %v3080_v4 = vld [vmem:[%s3694_s1 + $0x18] sm:$0xff] (!%p338_p2)   ;;  %v3081_v5 = vld [vmem:[%s3694_s1 + $0x20] sm:$0xff] (!%p338_p2)   ;;  %v3082_v6 = vld [vmem:[%s3694_s1 + $0x28] sm:$0xff] (!%p338_p2)   ;;  %vm588_vm1 = vcmask (!%p338_p2), 1043456   ;;  %s3117_s30 = smov (!%p338_p2), 112  }
   0x7   : > { %2827 = vmatpush3.bf16.msra.mxu0 (!%p338_p2), %v3077_v0  ;;  %2842 = vmatprep.mubr.msk.bf16.mxu0 (!%p338_p2), %vm3116_vm0, %v3115_v1  ;;  %v3083_v7 = vld [vmem:[%s3694_s1 + $0x30] sm:$0xff] (!%p338_p2)   ;;  %v3084_v8 = vld [vmem:[%s3694_s1 + $0x38] sm:$0xff] (!%p338_p2)   ;;  %v524_v12 = vld [vmem:[%s3696_s3 + $0x4] sm:$0xf] (!%p338_p2)  ;;  %s3118_s13 = smov (!%p338_p2), 120   ;;  %vm584_vm2 = vcmask (!%p338_p2), 64512  }
   0x8   : > { %2828 = vmatprep.subr.bf16.mxu0 (!%p338_p2), %v3115_v1  ;;  %2848 = vmatprep.mubr.msk.bf16.mxu1 (!%p338_p2), %vm3116_vm0, %v3115_v1  ;;  %v590_v13 = vsel (!%p338_p2), %vm588_vm1, %v524_v12, 0  ;;  %v2656_v14 = vld [vmem:[%s3695_s2] ss:$0 sm:$0xff] (!%p338_p2)  ;;  %v2665_v18 = vld [vmem:[%s3695_s2 + $0x1] ss:$0 sm:$0xff] (!%p338_p2)  ;;  %vm575_vm3 = vcmask (!%p338_p2), 1041408  }
   0x9   : > { %2847 = vmatpush3.bf16.msra.mxu1 (!%p338_p2), %v590_v13  ;;  %v2666_v23 = vld [vmem:[%s3695_s2 + $0x2] ss:$0 sm:$0xff] (!%p338_p2)  ;;  %vm680_vm4 = vcmask (!%p338_p2), 1045504   ;;  %s3119_s16 = smov (!%p338_p2), 104   ;;  %v525_v42 = vld [vmem:[%s3696_s3 + $0x8] sm:$0xf] (!%p338_p2) }
   0xa   : > { %2852 = vmatprep.subr.bf16.mxu1 (!%p338_p2), %v3115_v1  ;;  %v523_v29 = vld [vmem:[%s3696_s3] sm:$0xf] (!%p338_p2)  ;;  %v692_v43 = vsel (!%p338_p2), %vm588_vm1, %v525_v42, 0  ;;  %s3120_s22 = smov (!%p338_p2), 96   ;;  %s3121_s23 = smov (!%p338_p2), 88  }
   0xb   : > { %2829 = vmatpush3.bf16.msra.mxu0 (!%p338_p2), %v3078_v2  ;;  %v637_v35 = vsel (!%p338_p2), %vm588_vm1, %v523_v29, 0  ;;  %s3122_s24 = smov (!%p338_p2), 80   ;;  %s3123_s25 = smov (!%p338_p2), 72   ;;  %v527_v44 = vld [vmem:[%s3696_s3 + $0x10] sm:$0xf] (!%p338_p2) }
   0xc   : > { %2830 = vmatprep.subr.bf16.mxu0 (!%p338_p2), %v3115_v1  ;;  %v786_v45 = vsel (!%p338_p2), %vm588_vm1, %v527_v44, 0  ;;  %v528_v46 = vld [vmem:[%s3696_s3 + $0x14] sm:$0xf] (!%p338_p2)  ;;  %v2670_v58 = vld [vmem:[%s3697_s4] ss:$0 sm:$0xff] (!%p338_p2) }
   0xd   : > { %s3706_s18 = smov (!%p377_p3, %s2647_s18), 1  ;;  %v887_v47 = vsel %vm588_vm1, %v528_v46, 0 }
   0xe   : > { %s2739_s12 = sshll.u32 %s3706_s18, 4 }
   0xf   : > { %2831 = vmatpush3.bf16.msra.mxu0 %v3079_v3  ;;  %s3233_s19 = scalar_lea.vmem %s3693_s0, %s2739_s12  ;;  %v2671_v3 = vld [vmem:[%s3697_s4 + $0x1] ss:$0 sm:$0xff]  ;;  %s386_s29 = scalar_lea.vmem %s3704_s11, %s2739_s12 }
  0x10   : > { %2832 = vmatprep.subr.bf16.mxu0 %v3115_v1  ;;  %v388_v9 = vld [vmem:[%s3233_s19] sm:$0xff]  ;;  %v389_v10 = vld [vmem:[%s3233_s19 + $0x8] sm:$0xff] }
  0x11   : > { %v409_v11 = vpack.c.bf16 %v389_v10, %v388_v9 }
  0x13   : > { %2833 = vmatpush3.bf16.msra.mxu0 %v3080_v4 }
  0x14   : > { %2834 = vmatprep.subr.bf16.mxu0 %v3115_v1 }
  0x17   : > { %2835 = vmatpush3.bf16.msra.mxu0 %v3081_v5 }
  0x18   : > { %2836 = vmatprep.subr.bf16.mxu0 %v3115_v1 }
  0x1b   : > { %2837 = vmatpush3.bf16.msra.mxu0 %v3082_v6 }
  0x1c   : > { %2838 = vmatprep.subr.bf16.mxu0 %v3115_v1 }
  0x1f   : > { %2839 = vmatpush3.bf16.msra.mxu0 %v3083_v7  ;;  %v2672_v7 = vld [vmem:[%s3697_s4 + $0x2] ss:$0 sm:$0xff] }
  0x20   : > { %2840 = vmatprep.subr.bf16.mxu0 %v3115_v1 }
  0x23   : > { %2841 = vmatpush3.bf16.msra.mxu0 %v3084_v8 }
  0x24   : > { %2876 = vmatprep.subr.bf16.mxu0 %v3115_v1 }
  0x26   : > { %2843 = vmatmul.mubr.bf16.vlgmr.msra.gmra.mrb[0].mxu0 %v409_v11 }
  0x27   : > { %2878 = vmatprep.mubr.msk.bf16.mxu0 %vm3116_vm0, %v3115_v1  ;;  %2877 = vmatpush3.bf16.msra.mxu0 %v887_v47  ;;  %v2676_v47 = vld [vmem:[%s3697_s4 + $0x3] ss:$0 sm:$0xff] }
  0x28   : > { %2888 = vmatprep.subr.bf16.mxu0 %v3115_v1 }
  0xf9   : > { %v498_v15 = vpop.f32.mrb[0].mxu0 }
  0xfa   : > { %v499_v16 = vadd.f32 %v2656_v14, %v498_v15  ;;  %v2844_v17 = vpop.f32.mrb[1].mxu0 }
  0xfb   : > { %v501_v19 = vpop.f32.mrb[2].mxu0 }
  0xfc   : > { %v505_v20 = vmax.f32 %v499_v16, 0.0  ;;  %v502_v21 = vadd.f32 %v2656_v14, %v501_v19  ;;  %v2845_v22 = vpop.f32.mrb[3].mxu0  ;;  %v526_v14 = vld [vmem:[%s3696_s3 + $0xc] sm:$0xf] }
  0xfd   : > { %v833_v19 = vsel %vm588_vm1, %v526_v14, 0 }
  0xfe   : > { %v513_v24 = vmul.f32 %v2665_v18, %v505_v20  ;;  %v506_v25 = vmax.f32 %v502_v21, 0.0 }
 0x100   : > { %v521_v26 = vadd.f32 %v2666_v23, %v513_v24  ;;  %v514_v27 = vmul.f32 %v2665_v18, %v506_v25  ;;  %v565_v24 = vld [vmem:[%s3698_s5] sm:$0xf] }
 0x102   : > { %v522_v28 = vadd.f32 %v2666_v23, %v514_v27  ;;  %1053 = vrot.lane.b32.xlu1 %v521_v26, %s3117_s30  ;;  %764 = vrot.lane.b32.xlu0 %v521_v26, %s3118_s13  ;;  %v576_v30 = vrot.slane %v521_v26, 6  ;;  %v681_v33 = vrot.slane %v521_v26, 2 }
 0x104   : > { %v583_v31 = vpack.c.bf16 %v522_v28, %v521_v26  ;;  %v577_v32 = vrot.slane %v522_v28, 6  ;;  %v682_v34 = vrot.slane %v522_v28, 2  ;;  %v581_v37 = vsel %vm575_vm3, 0.0, %v576_v30 }
 0x106   : > { %1055 = vrot.lane.b32.xlu1 %v522_v28, %s3117_s30  ;;  %766 = vrot.lane.b32.xlu0 %v522_v28, %s3118_s13  ;;  %v578_v36 = vsel %vm575_vm3, %v576_v30, %v577_v32  ;;  %v683_v38 = vsel %vm680_vm4, %v681_v33, %v682_v34  ;;  %v686_v39 = vsel %vm680_vm4, %v682_v34, 0.0  ;;  %v566_v32 = vld [vmem:[%s3698_s5 + $0x4] sm:$0xf]  ;;  %v529_v34 = vld [vmem:[%s3696_s3 + $0x18] sm:$0xf] }
 0x107   : > { %2849 = vmatmul.mubr.msk.bf16.vlgmr.msra.gmra.mrb[0].mxu1 %vm584_vm2, %v583_v31  ;;  %v582_v40 = vpack.c.bf16 %v578_v36, %v581_v37  ;;  %v687_v41 = vpack.c.bf16 %v686_v39, %v683_v38  ;;  %v963_v33 = vsel %vm588_vm1, %v566_v32, 0 }
 0x108   : > { %2853 = vmatpush3.bf16.msra.mxu1 %v637_v35  ;;  %2854 = vmatprep.mubr.msk.bf16.mxu1 %vm3116_vm0, %v3115_v1  ;;  %v1122_v35 = vsel %vm588_vm1, %v529_v34, 0 }
 0x109   : > { %2858 = vmatprep.subr.bf16.mxu1 %v3115_v1 }
 0x10a   : > { %1299 = vrot.lane.b32.xlu1 %v522_v28, %s3119_s16  ;;  %1297 = vrot.lane.b32.xlu0 %v521_v26, %s3119_s16 }
 0x10e   : > { %1543 = vrot.lane.b32.xlu1 %v522_v28, %s3120_s22  ;;  %1541 = vrot.lane.b32.xlu0 %v521_v26, %s3120_s22 }
 0x10f   : > { %2855 = vmatmul.mubr.msk.bf16.vlgmr.msra.gmra.mrb[4].mxu1 %vm584_vm2, %v582_v40 }
 0x110   : > { %2859 = vmatpush3.bf16.msra.mxu1 %v692_v43  ;;  %2860 = vmatprep.mubr.msk.bf16.mxu1 %vm3116_vm0, %v3115_v1 }
 0x111   : > { %2864 = vmatprep.subr.bf16.mxu1 %v3115_v1 }
 0x112   : > { %1787 = vrot.lane.b32.xlu1 %v522_v28, %s3121_s23  ;;  %1785 = vrot.lane.b32.xlu0 %v521_v26, %s3121_s23 }
 0x116   : > { %2031 = vrot.lane.b32.xlu1 %v522_v28, %s3122_s24  ;;  %2029 = vrot.lane.b32.xlu0 %v521_v26, %s3122_s24 }
 0x117   : > { %2861 = vmatmul.mubr.msk.bf16.vlgmr.msra.gmra.mrb[8].mxu1 %vm584_vm2, %v687_v41 }
 0x118   : > { %2866 = vmatprep.mubr.msk.bf16.mxu1 %vm3116_vm0, %v3115_v1  ;;  %2865 = vmatpush3.bf16.msra.mxu1 %v786_v45 }
 0x119   : > { %2870 = vmatprep.subr.bf16.mxu1 %v3115_v1 }
 0x11a   : > { %2274 = vrot.lane.b32.xlu0 %v583_v31, %s3123_s25  ;;  %v1010_v31 = vsel %vm588_vm1, %v565_v24, 0  ;;  %v567_v24 = vld [vmem:[%s3698_s5 + $0x8] sm:$0xf] }
 0x174   : > { %v765_v6 = vpop.permute.xlu0 %764 }
 0x178   : > { %v767_v15 = vpop.permute.xlu0 %766 }
 0x1da   : > { %v626_v48 = vpop.f32.mrb[0].mxu1 }
 0x1db   : > { %v2850_v49 = vpop.f32.mrb[1].mxu1 }
 0x1dc   : > { %v629_v50 = vpop.f32.mrb[2].mxu1 }
 0x1dd   : > { %v2851_v51 = vpop.f32.mrb[3].mxu1 }
 0x1e2   : > { %v673_v52 = vpop.f32.mrb[4].mxu1 }
 0x1e3   : > { %v674_v53 = vadd.f32 %v673_v52, %v626_v48  ;;  %v2856_v54 = vpop.f32.mrb[5].mxu1 }
 0x1e4   : > { %v676_v55 = vpop.f32.mrb[6].mxu1 }
 0x1e5   : > { %v677_v56 = vadd.f32 %v676_v55, %v629_v50  ;;  %v2857_v57 = vpop.f32.mrb[7].mxu1 }
 0x1e6   : > { %v2677_v57 = vld [vmem:[%s3697_s4 + $0x4] ss:$0 sm:$0xff] }
 0x1ea   : > { %v728_v59 = vpop.f32.mrb[8].mxu1 }
 0x1eb   : > { %v735_v60 = vadd.f32 %v728_v59, %v674_v53  ;;  %v2862_v61 = vpop.f32.mrb[9].mxu1 }
 0x1ec   : > { %v731_v62 = vpop.f32.mrb[10].mxu1  ;;  %v1054_v61 = vpop.permute.xlu1 %1053 }
 0x1ed   : > { %v743_v63 = vadd.f32 %v2670_v58, %v735_v60  ;;  %v736_v0 = vadd.f32 %v731_v62, %v677_v56  ;;  %v2863_v2 = vpop.f32.mrb[11].mxu1  ;;  %v2678_v62 = vld [vmem:[%s3697_s4 + $0x5] ss:$0 sm:$0xff] }
 0x1ef   : > { %v745_v4 = vmax.f32 %v743_v63, 0.0  ;;  %v744_v5 = vadd.f32 %v2670_v58, %v736_v0 }
 0x1f1   : > { %v753_v8 = vmul.f32 %v2671_v3, %v745_v4  ;;  %v746_v9 = vmax.f32 %v744_v5, 0.0  ;;  %v530_v4 = vld [vmem:[%s3696_s3 + $0x1c] sm:$0xf] }
 0x1f3   : > { %v761_v10 = vadd.f32 %v2672_v7, %v753_v8  ;;  %v754_v11 = vmul.f32 %v2671_v3, %v746_v9 }
 0x1f5   : > { %v770_v12 = vadd.f32 %v765_v6, %v761_v10  ;;  %v762_v13 = vadd.f32 %v2672_v7, %v754_v11  ;;  %v1056_v7 = vpop.permute.xlu1 %1055 }
 0x1f7   : > { %v774_v16 = vrot.slane %v770_v12, 6  ;;  %v763_v17 = vpack.c.bf16 %v762_v13, %v761_v10  ;;  %v771_v18 = vadd.f32 %v767_v15, %v762_v13  ;;  %v876_v20 = vrot.slane %v770_v12, 2 }
 0x1f8   : > { %v1075_v10 = vsel %vm588_vm1, %v530_v4, 0 }
 0x1f9   : > { %v775_v21 = vrot.slane %v771_v18, 6  ;;  %v877_v22 = vrot.slane %v771_v18, 2  ;;  %v781_v23 = vpack.c.bf16 %v771_v18, %v770_v12  ;;  %v779_v28 = vsel %vm575_vm3, 0.0, %v774_v16 }
 0x1fb   : > { %2867 = vmatmul.mubr.msk.bf16.vlgmr.msra.gmra.mrb[12].mxu1 %vm584_vm2, %v781_v23  ;;  %v878_v25 = vsel %vm680_vm4, %v876_v20, %v877_v22  ;;  %v881_v26 = vsel %vm680_vm4, %v877_v22, 0.0  ;;  %v776_v27 = vsel %vm575_vm3, %v774_v16, %v775_v21  ;;  %v531_v21 = vld [vmem:[%s3696_s3 + $0x20] sm:$0xf] }
 0x1fc   : > { %2871 = vmatpush3.bf16.msra.mxu1 %v833_v19  ;;  %v882_v29 = vpack.c.bf16 %v881_v26, %v878_v25  ;;  %2872 = vmatprep.mubr.msk.bf16.mxu1 %vm3116_vm0, %v3115_v1  ;;  %v780_v30 = vpack.c.bf16 %v776_v27, %v779_v28  ;;  %v1176_v23 = vsel %vm588_vm1, %v531_v21, 0  ;;  %v1252_v25 = vsel %vm588_vm1, %v567_v24, 0  ;;  %v533_v26 = vld [vmem:[%s3696_s3 + $0x28] sm:$0xf] }
 0x1fd   : > { %2882 = vmatprep.subr.bf16.mxu1 %v3115_v1  ;;  %v1319_v27 = vsel %vm588_vm1, %v533_v26, 0 }
 0x1fe   : > { %2879 = vmatmul.mubr.msk.bf16.vlgmr.msra.gmra.mrb[4].mxu0 %vm584_vm2, %v882_v29 }
 0x1ff   : > { %2889 = vmatpush3.bf16.msra.mxu0 %v1010_v31  ;;  %2890 = vmatprep.mubr.msk.bf16.mxu0 %vm3116_vm0, %v3115_v1 }
 0x200   : > { %2900 = vmatprep.subr.bf16.mxu0 %v3115_v1 }
 0x203   : > { %2873 = vmatmul.mubr.msk.bf16.vlgmr.msra.gmra.mrb[16].mxu1 %vm584_vm2, %v780_v30 }
 0x204   : > { %2884 = vmatprep.mubr.msk.bf16.mxu1 %vm3116_vm0, %v3115_v1  ;;  %2883 = vmatpush3.bf16.msra.mxu1 %v963_v33 }
 0x205   : > { %2894 = vmatprep.subr.bf16.mxu1 %v3115_v1 }
 0x206   : > { %2891 = vmatmul.mubr.msk.bf16.vlgmr.msra.gmra.mrb[8].mxu0 %vm584_vm2, %v763_v17 }
 0x207   : > { %2902 = vmatprep.mubr.msk.bf16.mxu0 %vm3116_vm0, %v3115_v1  ;;  %2901 = vmatpush3.bf16.msra.mxu0 %v1122_v35 }
 0x208   : > { %2912 = vmatprep.subr.bf16.mxu0 %v3115_v1 }
 0x2ce   : > { %v822_v36 = vpop.f32.mrb[12].mxu1 }
 0x2cf   : > { %v2868_v37 = vpop.f32.mrb[13].mxu1 }
 0x2d0   : > { %v825_v38 = vpop.f32.mrb[14].mxu1 }
 0x2d1   : > { %v2869_v39 = vpop.f32.mrb[15].mxu1  ;;  %v923_v40 = vpop.f32.mrb[4].mxu0 }
 0x2d2   : > { %v2880_v41 = vpop.f32.mrb[5].mxu0 }
 0x2d3   : > { %v926_v42 = vpop.f32.mrb[6].mxu0 }
 0x2d4   : > { %v2881_v43 = vpop.f32.mrb[7].mxu0 }
 0x2d6   : > { %v869_v44 = vpop.f32.mrb[16].mxu1 }
 0x2d7   : > { %v870_v45 = vadd.f32 %v869_v44, %v822_v36  ;;  %v2874_v46 = vpop.f32.mrb[17].mxu1  ;;  %v2684_v44 = vld [vmem:[%s3697_s4 + $0x6] ss:$0 sm:$0xff] }
 0x2d8   : > { %v872_v48 = vpop.f32.mrb[18].mxu1 }
 0x2d9   : > { %v930_v49 = vadd.f32 %v923_v40, %v870_v45  ;;  %v873_v50 = vadd.f32 %v872_v48, %v825_v38  ;;  %v2875_v51 = vpop.f32.mrb[19].mxu1  ;;  %v1046_v52 = vpop.f32.mrb[8].mxu0 }
 0x2da   : > { %v2892_v53 = vpop.f32.mrb[9].mxu0 }
 0x2db   : > { %v938_v54 = vadd.f32 %v2676_v47, %v930_v49  ;;  %v931_v55 = vadd.f32 %v926_v42, %v873_v50  ;;  %v1049_v56 = vpop.f32.mrb[10].mxu0 }
 0x2dc   : > { %v2893_v58 = vpop.f32.mrb[11].mxu0 }
 0x2dd   : > { %v940_v59 = vmax.f32 %v938_v54, 0.0  ;;  %v939_v60 = vadd.f32 %v2676_v47, %v931_v55  ;;  %v2686_v55 = vld [vmem:[%s3697_s4 + $0x8] ss:$0 sm:$0xff] }
 0x2df   : > { %v948_v63 = vmul.f32 %v2677_v57, %v940_v59  ;;  %v941_v0 = vmax.f32 %v939_v60, 0.0  ;;  %v1298_v60 = vpop.permute.xlu0 %1297 }
 0x2e1   : > { %v956_v2 = vadd.f32 %v2678_v62, %v948_v63  ;;  %v949_v3 = vmul.f32 %v2677_v57, %v941_v0  ;;  %v534_v0 = vld [vmem:[%s3696_s3 + $0x2c] sm:$0xf] }
 0x2e3   : > { %v1059_v5 = vadd.f32 %v1054_v61, %v956_v2  ;;  %v957_v6 = vadd.f32 %v2678_v62, %v949_v3  ;;  %v532_v61 = vld [vmem:[%s3696_s3 + $0x24] sm:$0xf] }
 0x2e5   : > { %v958_v8 = vpack.c.bf16 %v957_v6, %v956_v2  ;;  %v1060_v9 = vadd.f32 %v1056_v7, %v957_v6  ;;  %v1063_v11 = vrot.slane %v1059_v5, 6  ;;  %v1165_v12 = vrot.slane %v1059_v5, 2  ;;  %v1300_v2 = vpop.permute.xlu1 %1299 }
 0x2e6   : > { %v1366_v6 = vsel %vm588_vm1, %v532_v61, 0  ;;  %v1420_v7 = vsel %vm588_vm1, %v534_v0, 0 }
 0x2e7   : > { %v1064_v13 = vrot.slane %v1060_v9, 6  ;;  %2885 = vmatmul.mubr.msk.bf16.vlgmr.msra.gmra.mrb[20].mxu1 %vm584_vm2, %v958_v8  ;;  %v1070_v14 = vpack.c.bf16 %v1060_v9, %v1059_v5  ;;  %v1166_v15 = vrot.slane %v1060_v9, 2  ;;  %v1068_v17 = vsel %vm575_vm3, 0.0, %v1063_v11 }
 0x2e8   : > { %2895 = vmatpush3.bf16.msra.mxu1 %v1075_v10  ;;  %2896 = vmatprep.mubr.msk.bf16.mxu1 %vm3116_vm0, %v3115_v1 }
 0x2e9   : > { %v1065_v16 = vsel %vm575_vm3, %v1063_v11, %v1064_v13  ;;  %2906 = vmatprep.subr.bf16.mxu1 %v3115_v1  ;;  %v1167_v18 = vsel %vm680_vm4, %v1165_v12, %v1166_v15  ;;  %v1170_v19 = vsel %vm680_vm4, %v1166_v15, 0.0 }
 0x2ea   : > { %v1069_v20 = vpack.c.bf16 %v1065_v16, %v1068_v17  ;;  %v1171_v22 = vpack.c.bf16 %v1170_v19, %v1167_v18  ;;  %v568_v18 = vld [vmem:[%s3698_s5 + $0xc] sm:$0xf] }
 0x2eb   : > { %v1496_v19 = vsel %vm588_vm1, %v568_v18, 0 }
 0x2ec   : > { %2903 = vmatmul.mubr.msk.bf16.vlgmr.msra.gmra.mrb[12].mxu0 %vm584_vm2, %v1069_v20  ;;  %v536_v20 = vld [vmem:[%s3696_s3 + $0x34] sm:$0xf] }
 0x2ed   : > { %2914 = vmatprep.mubr.msk.bf16.mxu0 %vm3116_vm0, %v3115_v1  ;;  %2913 = vmatpush3.bf16.msra.mxu0 %v1252_v25  ;;  %v1563_v21 = vsel %vm588_vm1, %v536_v20, 0 }
 0x2ee   : > { %2924 = vmatprep.subr.bf16.mxu0 %v3115_v1 }
 0x2ef   : > { %2897 = vmatmul.mubr.msk.bf16.vlgmr.msra.gmra.mrb[24].mxu1 %vm584_vm2, %v1070_v14 }
 0x2f0   : > { %2907 = vmatpush3.bf16.msra.mxu1 %v1176_v23  ;;  %2908 = vmatprep.mubr.msk.bf16.mxu1 %vm3116_vm0, %v3115_v1 }
 0x2f1   : > { %2918 = vmatprep.subr.bf16.mxu1 %v3115_v1 }
 0x2f7   : > { %2909 = vmatmul.mubr.msk.bf16.vlgmr.msra.gmra.mrb[28].mxu1 %vm584_vm2, %v1171_v22 }
 0x2f8   : > { %2920 = vmatprep.mubr.msk.bf16.mxu1 %vm3116_vm0, %v3115_v1  ;;  %2919 = vmatpush3.bf16.msra.mxu1 %v1319_v27 }
 0x2f9   : > { %2930 = vmatprep.subr.bf16.mxu1 %v3115_v1 }
 0x3ba   : > { %v999_v28 = vpop.f32.mrb[20].mxu1 }
 0x3bb   : > { %v3381_v29 = vadd.f32 %v1046_v52, %v999_v28  ;;  %v2886_v30 = vpop.f32.mrb[21].mxu1  ;;  %v2685_v52 = vld [vmem:[%s3697_s4 + $0x7] ss:$0 sm:$0xff] }
 0x3bc   : > { %v1002_v31 = vpop.f32.mrb[22].mxu1 }
 0x3bd   : > { %v3383_v32 = vadd.f32 %v1049_v56, %v1002_v31  ;;  %v2887_v33 = vpop.f32.mrb[23].mxu1 }
 0x3bf   : > { %v1158_v34 = vpop.f32.mrb[12].mxu0 }
 0x3c0   : > { %v2904_v35 = vpop.f32.mrb[13].mxu0 }
 0x3c1   : > { %v1161_v36 = vpop.f32.mrb[14].mxu0 }
 0x3c2   : > { %v1111_v37 = vpop.f32.mrb[24].mxu1  ;;  %v2905_v38 = vpop.f32.mrb[15].mxu0 }
 0x3c3   : > { %v1159_v39 = vadd.f32 %v1158_v34, %v1111_v37  ;;  %v2898_v40 = vpop.f32.mrb[25].mxu1  ;;  %v2691_v38 = vld [vmem:[%s3697_s4 + $0x9] ss:$0 sm:$0xff] }
 0x3c4   : > { %v1114_v41 = vpop.f32.mrb[26].mxu1 }
 0x3c5   : > { %v1162_v42 = vadd.f32 %v1161_v36, %v1114_v41  ;;  %v2899_v43 = vpop.f32.mrb[27].mxu1 }
 0x3ca   : > { %v1212_v45 = vpop.f32.mrb[28].mxu1 }
 0x3cb   : > { %v1219_v46 = vadd.f32 %v1212_v45, %v1159_v39  ;;  %v2910_v47 = vpop.f32.mrb[29].mxu1 }
 0x3cc   : > { %v1215_v48 = vpop.f32.mrb[30].mxu1 }
 0x3cd   : > { %v1227_v49 = vadd.f32 %v2684_v44, %v1219_v46  ;;  %v1220_v50 = vadd.f32 %v1215_v48, %v1162_v42  ;;  %v2911_v51 = vpop.f32.mrb[31].mxu1  ;;  %v2692_v46 = vld [vmem:[%s3697_s4 + $0xa] ss:$0 sm:$0xff] }
 0x3cf   : > { %v1229_v53 = vmax.f32 %v1227_v49, 0.0  ;;  %v1228_v54 = vadd.f32 %v2684_v44, %v1220_v50  ;;  %v2693_v49 = vld [vmem:[%s3697_s4 + $0xb] ss:$0 sm:$0xff] }
 0x3d1   : > { %v1237_v56 = vmul.f32 %v2685_v52, %v1229_v53  ;;  %v1230_v57 = vmax.f32 %v1228_v54, 0.0  ;;  %v1542_v54 = vpop.permute.xlu0 %1541 }
 0x3d3   : > { %v1245_v58 = vadd.f32 %v2686_v55, %v1237_v56  ;;  %v1238_v59 = vmul.f32 %v2685_v52, %v1230_v57 }
 0x3d5   : > { %v1303_v62 = vadd.f32 %v1298_v60, %v1245_v58  ;;  %v1246_v63 = vadd.f32 %v2686_v55, %v1238_v59  ;;  %v535_v55 = vld [vmem:[%s3696_s3 + $0x30] sm:$0xf]  ;;  %v1544_v59 = vpop.permute.xlu1 %1543 }
 0x3d7   : > { %v1307_v3 = vrot.slane %v1303_v62, 6  ;;  %v1247_v4 = vpack.c.bf16 %v1246_v63, %v1245_v58  ;;  %v1304_v5 = vadd.f32 %v1300_v2, %v1246_v63  ;;  %v1409_v8 = vrot.slane %v1303_v62, 2  ;;  %v537_v58 = vld [vmem:[%s3696_s3 + $0x38] sm:$0xf] }
 0x3d8   : > { %v1610_v63 = vsel %vm588_vm1, %v535_v55, 0  ;;  %v1664_v0 = vsel %vm588_vm1, %v537_v58, 0 }
 0x3d9   : > { %v1308_v9 = vrot.slane %v1304_v5, 6  ;;  %v1410_v10 = vrot.slane %v1304_v5, 2  ;;  %2915 = vmatmul.mubr.msk.bf16.vlgmr.msra.gmra.mrb[16].mxu0 %vm584_vm2, %v1247_v4  ;;  %v1314_v11 = vpack.c.bf16 %v1304_v5, %v1303_v62  ;;  %v1312_v13 = vsel %vm575_vm3, 0.0, %v1307_v3 }
 0x3da   : > { %2925 = vmatpush3.bf16.msra.mxu0 %v1366_v6  ;;  %2926 = vmatprep.mubr.msk.bf16.mxu0 %vm3116_vm0, %v3115_v1 }
 0x3db   : > { %2921 = vmatmul.mubr.msk.bf16.vlgmr.msra.gmra.mrb[32].mxu1 %vm584_vm2, %v1314_v11  ;;  %v1309_v12 = vsel %vm575_vm3, %v1307_v3, %v1308_v9  ;;  %v1411_v14 = vsel %vm680_vm4, %v1409_v8, %v1410_v10  ;;  %v1414_v15 = vsel %vm680_vm4, %v1410_v10, 0.0  ;;  %2936 = vmatprep.subr.bf16.mxu0 %v3115_v1 }
 0x3dc   : > { %2931 = vmatpush3.bf16.msra.mxu1 %v1420_v7  ;;  %v1313_v16 = vpack.c.bf16 %v1309_v12, %v1312_v13  ;;  %2932 = vmatprep.mubr.msk.bf16.mxu1 %vm3116_vm0, %v3115_v1  ;;  %v1415_v17 = vpack.c.bf16 %v1414_v15, %v1411_v14  ;;  %v569_v12 = vld [vmem:[%s3698_s5 + $0x10] sm:$0xf]  ;;  %v539_v14 = vld [vmem:[%s3696_s3 + $0x40] sm:$0xf] }
 0x3dd   : > { %2942 = vmatprep.subr.bf16.mxu1 %v3115_v1  ;;  %v1740_v13 = vsel %vm588_vm1, %v569_v12, 0  ;;  %v1807_v15 = vsel %vm588_vm1, %v539_v14, 0 }
 0x3e1   : > { %2927 = vmatmul.mubr.msk.bf16.vlgmr.msra.gmra.mrb[20].mxu0 %vm584_vm2, %v1313_v16 }
 0x3e2   : > { %2938 = vmatprep.mubr.msk.bf16.mxu0 %vm3116_vm0, %v3115_v1  ;;  %2937 = vmatpush3.bf16.msra.mxu0 %v1496_v19 }
 0x3e3   : > { %2933 = vmatmul.mubr.msk.bf16.vlgmr.msra.gmra.mrb[36].mxu1 %vm584_vm2, %v1415_v17  ;;  %2948 = vmatprep.subr.bf16.mxu0 %v3115_v1 }
 0x3e4   : > { %2944 = vmatprep.mubr.msk.bf16.mxu1 %vm3116_vm0, %v3115_v1  ;;  %2943 = vmatpush3.bf16.msra.mxu1 %v1563_v21 }
 0x3e5   : > { %2954 = vmatprep.subr.bf16.mxu1 %v3115_v1 }
 0x4ac   : > { %v1288_v22 = vpop.f32.mrb[16].mxu0 }
 0x4ad   : > { %v3431_v23 = vadd.f32 %v1288_v22, %v3381_v29  ;;  %v2916_v24 = vpop.f32.mrb[17].mxu0 }
 0x4ae   : > { %v1291_v25 = vpop.f32.mrb[18].mxu0  ;;  %v1355_v26 = vpop.f32.mrb[32].mxu1 }
 0x4af   : > { %v3434_v27 = vadd.f32 %v1291_v25, %v3383_v32  ;;  %v2917_v28 = vpop.f32.mrb[19].mxu0  ;;  %v2922_v30 = vpop.f32.mrb[33].mxu1 }
 0x4b0   : > { %v1358_v31 = vpop.f32.mrb[34].mxu1 }
 0x4b1   : > { %v2923_v33 = vpop.f32.mrb[35].mxu1 }
 0x4b4   : > { %v1402_v34 = vpop.f32.mrb[20].mxu0 }
 0x4b5   : > { %v1403_v35 = vadd.f32 %v1402_v34, %v1355_v26  ;;  %v2928_v36 = vpop.f32.mrb[21].mxu0  ;;  %v2698_v34 = vld [vmem:[%s3697_s4 + $0xc] ss:$0 sm:$0xff] }
 0x4b6   : > { %v1405_v37 = vpop.f32.mrb[22].mxu0  ;;  %v1456_v29 = vpop.f32.mrb[36].mxu1 }
 0x4b7   : > { %v1406_v39 = vadd.f32 %v1405_v37, %v1358_v31  ;;  %v1463_v40 = vadd.f32 %v1456_v29, %v1403_v35  ;;  %v2929_v41 = vpop.f32.mrb[23].mxu0  ;;  %v2934_v42 = vpop.f32.mrb[37].mxu1 }
 0x4b8   : > { %v1459_v43 = vpop.f32.mrb[38].mxu1  ;;  %v2699_v41 = vld [vmem:[%s3697_s4 + $0xd] ss:$0 sm:$0xff] }
 0x4b9   : > { %v1471_v32 = vadd.f32 %v2691_v38, %v1463_v40  ;;  %v1464_v44 = vadd.f32 %v1459_v43, %v1406_v39  ;;  %v2935_v45 = vpop.f32.mrb[39].mxu1 }
 0x4bb   : > { %v1473_v47 = vmax.f32 %v1471_v32, 0.0  ;;  %v1472_v48 = vadd.f32 %v2691_v38, %v1464_v44  ;;  %v2700_v32 = vld [vmem:[%s3697_s4 + $0xe] ss:$0 sm:$0xff] }
 0x4bd   : > { %v1481_v50 = vmul.f32 %v2692_v46, %v1473_v47  ;;  %v1474_v51 = vmax.f32 %v1472_v48, 0.0  ;;  %v1786_v48 = vpop.permute.xlu0 %1785 }
 0x4bf   : > { %v1489_v52 = vadd.f32 %v2693_v49, %v1481_v50  ;;  %v1482_v53 = vmul.f32 %v2692_v46, %v1474_v51 }
 0x4c1   : > { %v1547_v56 = vadd.f32 %v1542_v54, %v1489_v52  ;;  %v1490_v57 = vadd.f32 %v2693_v49, %v1482_v53  ;;  %v538_v49 = vld [vmem:[%s3696_s3 + $0x3c] sm:$0xf]  ;;  %v1788_v53 = vpop.permute.xlu1 %1787 }
 0x4c3   : > { %v1551_v60 = vrot.slane %v1547_v56, 6  ;;  %v1491_v61 = vpack.c.bf16 %v1490_v57, %v1489_v52  ;;  %v1548_v62 = vadd.f32 %v1544_v59, %v1490_v57  ;;  %v1653_v2 = vrot.slane %v1547_v56, 2  ;;  %v540_v52 = vld [vmem:[%s3696_s3 + $0x44] sm:$0xf] }
 0x4c4   : > { %v1854_v57 = vsel %vm588_vm1, %v538_v49, 0  ;;  %v1908_v58 = vsel %vm588_vm1, %v540_v52, 0 }
 0x4c5   : > { %v1552_v3 = vrot.slane %v1548_v62, 6  ;;  %v1654_v4 = vrot.slane %v1548_v62, 2  ;;  %2939 = vmatmul.mubr.msk.bf16.vlgmr.msra.gmra.mrb[24].mxu0 %vm584_vm2, %v1491_v61  ;;  %v1558_v5 = vpack.c.bf16 %v1548_v62, %v1547_v56  ;;  %v1556_v7 = vsel %vm575_vm3, 0.0, %v1551_v60 }
 0x4c6   : > { %2949 = vmatpush3.bf16.msra.mxu0 %v1610_v63  ;;  %2950 = vmatprep.mubr.msk.bf16.mxu0 %vm3116_vm0, %v3115_v1 }
 0x4c7   : > { %2945 = vmatmul.mubr.msk.bf16.vlgmr.msra.gmra.mrb[40].mxu1 %vm584_vm2, %v1558_v5  ;;  %v1553_v6 = vsel %vm575_vm3, %v1551_v60, %v1552_v3  ;;  %v1655_v8 = vsel %vm680_vm4, %v1653_v2, %v1654_v4  ;;  %v1658_v9 = vsel %vm680_vm4, %v1654_v4, 0.0  ;;  %2960 = vmatprep.subr.bf16.mxu0 %v3115_v1 }
 0x4c8   : > { %2955 = vmatpush3.bf16.msra.mxu1 %v1664_v0  ;;  %v1557_v10 = vpack.c.bf16 %v1553_v6, %v1556_v7  ;;  %2956 = vmatprep.mubr.msk.bf16.mxu1 %vm3116_vm0, %v3115_v1  ;;  %v1659_v11 = vpack.c.bf16 %v1658_v9, %v1655_v8  ;;  %v570_v6 = vld [vmem:[%s3698_s5 + $0x14] sm:$0xf]  ;;  %v542_v8 = vld [vmem:[%s3696_s3 + $0x4c] sm:$0xf] }
 0x4c9   : > { %2966 = vmatprep.subr.bf16.mxu1 %v3115_v1  ;;  %v1984_v7 = vsel %vm588_vm1, %v570_v6, 0  ;;  %v2051_v9 = vsel %vm588_vm1, %v542_v8, 0 }
 0x4cd   : > { %2951 = vmatmul.mubr.msk.bf16.vlgmr.msra.gmra.mrb[28].mxu0 %vm584_vm2, %v1557_v10 }
 0x4ce   : > { %2962 = vmatprep.mubr.msk.bf16.mxu0 %vm3116_vm0, %v3115_v1  ;;  %2961 = vmatpush3.bf16.msra.mxu0 %v1740_v13 }
 0x4cf   : > { %2957 = vmatmul.mubr.msk.bf16.vlgmr.msra.gmra.mrb[44].mxu1 %vm584_vm2, %v1659_v11  ;;  %2972 = vmatprep.subr.bf16.mxu0 %v3115_v1 }
 0x4d0   : > { %2968 = vmatprep.mubr.msk.bf16.mxu1 %vm3116_vm0, %v3115_v1  ;;  %2967 = vmatpush3.bf16.msra.mxu1 %v1807_v15 }
 0x4d1   : > { %2978 = vmatprep.subr.bf16.mxu1 %v3115_v1 }
 0x598   : > { %v1532_v16 = vpop.f32.mrb[24].mxu0 }
 0x599   : > { %v3482_v17 = vadd.f32 %v1532_v16, %v3431_v23  ;;  %v2940_v18 = vpop.f32.mrb[25].mxu0 }
 0x59a   : > { %v1535_v19 = vpop.f32.mrb[26].mxu0  ;;  %v1599_v20 = vpop.f32.mrb[40].mxu1 }
 0x59b   : > { %v3485_v21 = vadd.f32 %v1535_v19, %v3434_v27  ;;  %v2941_v22 = vpop.f32.mrb[27].mxu0  ;;  %v2946_v24 = vpop.f32.mrb[41].mxu1 }
 0x59c   : > { %v1602_v25 = vpop.f32.mrb[42].mxu1 }
 0x59d   : > { %v2947_v26 = vpop.f32.mrb[43].mxu1 }
 0x5a0   : > { %v1646_v28 = vpop.f32.mrb[28].mxu0 }
 0x5a1   : > { %v1647_v30 = vadd.f32 %v1646_v28, %v1599_v20  ;;  %v2952_v31 = vpop.f32.mrb[29].mxu0  ;;  %v2705_v28 = vld [vmem:[%s3697_s4 + $0xf] ss:$0 sm:$0xff] }
 0x5a2   : > { %v1649_v33 = vpop.f32.mrb[30].mxu0  ;;  %v1700_v23 = vpop.f32.mrb[44].mxu1 }
 0x5a3   : > { %v1650_v35 = vadd.f32 %v1649_v33, %v1602_v25  ;;  %v1707_v36 = vadd.f32 %v1700_v23, %v1647_v30  ;;  %v2953_v37 = vpop.f32.mrb[31].mxu0  ;;  %v2958_v38 = vpop.f32.mrb[45].mxu1 }
 0x5a4   : > { %v1703_v29 = vpop.f32.mrb[46].mxu1  ;;  %v2706_v37 = vld [vmem:[%s3697_s4 + $0x10] ss:$0 sm:$0xff] }
 0x5a5   : > { %v1715_v27 = vadd.f32 %v2698_v34, %v1707_v36  ;;  %v1708_v39 = vadd.f32 %v1703_v29, %v1650_v35  ;;  %v2959_v40 = vpop.f32.mrb[47].mxu1 }
 0x5a7   : > { %v1717_v42 = vmax.f32 %v1715_v27, 0.0  ;;  %v1716_v43 = vadd.f32 %v2698_v34, %v1708_v39  ;;  %v2707_v27 = vld [vmem:[%s3697_s4 + $0x11] ss:$0 sm:$0xff] }
 0x5a9   : > { %v1725_v44 = vmul.f32 %v2699_v41, %v1717_v42  ;;  %v1718_v45 = vmax.f32 %v1716_v43, 0.0  ;;  %v2030_v43 = vpop.permute.xlu0 %2029 }
 0x5ab   : > { %v1733_v46 = vadd.f32 %v2700_v32, %v1725_v44  ;;  %v1726_v47 = vmul.f32 %v2699_v41, %v1718_v45 }
 0x5ad   : > { %v1791_v50 = vadd.f32 %v1786_v48, %v1733_v46  ;;  %v1734_v51 = vadd.f32 %v2700_v32, %v1726_v47  ;;  %v541_v32 = vld [vmem:[%s3696_s3 + $0x48] sm:$0xf]  ;;  %v2032_v47 = vpop.permute.xlu1 %2031 }
 0x5af   : > { %v1795_v54 = vrot.slane %v1791_v50, 6  ;;  %v1735_v55 = vpack.c.bf16 %v1734_v51, %v1733_v46  ;;  %v1792_v56 = vadd.f32 %v1788_v53, %v1734_v51  ;;  %v1897_v59 = vrot.slane %v1791_v50, 2  ;;  %v543_v46 = vld [vmem:[%s3696_s3 + $0x50] sm:$0xf] }
 0x5b0   : > { %v2098_v51 = vsel %vm588_vm1, %v541_v32, 0  ;;  %v2152_v52 = vsel %vm588_vm1, %v543_v46, 0  ;;  %v3085_v32 = vld [vmem:[%s3700_s7] sm:$0xff]   ;;  %v3088_v46 = vld [vmem:[%s3700_s7 + $0x18] sm:$0xff]  }
 0x5b1   : > { %v1796_v60 = vrot.slane %v1792_v56, 6  ;;  %v1898_v61 = vrot.slane %v1792_v56, 2  ;;  %2963 = vmatmul.mubr.msk.bf16.vlgmr.msra.gmra.mrb[32].mxu0 %vm584_vm2, %v1735_v55  ;;  %v1802_v62 = vpack.c.bf16 %v1792_v56, %v1791_v50  ;;  %v1800_v0 = vsel %vm575_vm3, 0.0, %v1795_v54 }
 0x5b2   : > { %2973 = vmatpush3.bf16.msra.mxu0 %v1854_v57  ;;  %2974 = vmatprep.mubr.msk.bf16.mxu0 %vm3116_vm0, %v3115_v1 }
 0x5b3   : > { %2969 = vmatmul.mubr.msk.bf16.vlgmr.msra.gmra.mrb[48].mxu1 %vm584_vm2, %v1802_v62  ;;  %v1797_v63 = vsel %vm575_vm3, %v1795_v54, %v1796_v60  ;;  %v1899_v2 = vsel %vm680_vm4, %v1897_v59, %v1898_v61  ;;  %v1902_v3 = vsel %vm680_vm4, %v1898_v61, 0.0  ;;  %2984 = vmatprep.subr.bf16.mxu0 %v3115_v1 }
 0x5b4   : > { %2979 = vmatpush3.bf16.msra.mxu1 %v1908_v58  ;;  %v1801_v4 = vpack.c.bf16 %v1797_v63, %v1800_v0  ;;  %2980 = vmatprep.mubr.msk.bf16.mxu1 %vm3116_vm0, %v3115_v1  ;;  %v1903_v5 = vpack.c.bf16 %v1902_v3, %v1899_v2  ;;  %v572_v63 = vld [vmem:[%s3698_s5 + $0x1c] sm:$0xf]  ;;  %v2275_v2 = vpop.permute.xlu0 %2274  ;;  %v571_v3 = vld [vmem:[%s3698_s5 + $0x18] sm:$0xf] }
 0x5b5   : > { %2990 = vmatprep.subr.bf16.mxu1 %v3115_v1  ;;  %v2280_v0 = vsel %vm588_vm1, %v572_v63, 0 }
 0x5b9   : > { %2975 = vmatmul.mubr.msk.bf16.vlgmr.msra.gmra.mrb[36].mxu0 %vm584_vm2, %v1801_v4  ;;  %v2228_v4 = vsel %vm588_vm1, %v571_v3, 0 }
 0x5ba   : > { %2986 = vmatprep.mubr.msk.bf16.mxu0 %vm3116_vm0, %v3115_v1  ;;  %2985 = vmatpush3.bf16.msra.mxu0 %v1984_v7 }
 0x5bb   : > { %2981 = vmatmul.mubr.msk.bf16.vlgmr.msra.gmra.mrb[52].mxu1 %vm584_vm2, %v1903_v5  ;;  %2996 = vmatprep.subr.bf16.mxu0 %v3115_v1 }
 0x5bc   : > { %2992 = vmatprep.mubr.msk.bf16.mxu1 %vm3116_vm0, %v3115_v1  ;;  %2991 = vmatpush3.bf16.msra.mxu1 %v2051_v9 }
 0x5bd   : > { %3002 = vmatprep.subr.bf16.mxu1 %v3115_v1 }
 0x684   : > { %v1776_v10 = vpop.f32.mrb[32].mxu0 }
 0x685   : > { %v3533_v11 = vadd.f32 %v1776_v10, %v3482_v17  ;;  %v2964_v12 = vpop.f32.mrb[33].mxu0 }
 0x686   : > { %v1779_v13 = vpop.f32.mrb[34].mxu0  ;;  %v1843_v14 = vpop.f32.mrb[48].mxu1 }
 0x687   : > { %v3536_v15 = vadd.f32 %v1779_v13, %v3485_v21  ;;  %v2965_v16 = vpop.f32.mrb[35].mxu0  ;;  %v2970_v18 = vpop.f32.mrb[49].mxu1 }
 0x688   : > { %v1846_v19 = vpop.f32.mrb[50].mxu1 }
 0x689   : > { %v2971_v20 = vpop.f32.mrb[51].mxu1 }
 0x68c   : > { %v1890_v22 = vpop.f32.mrb[36].mxu0 }
 0x68d   : > { %v1891_v24 = vadd.f32 %v1890_v22, %v1843_v14  ;;  %v2976_v25 = vpop.f32.mrb[37].mxu0 }
 0x68e   : > { %v1893_v26 = vpop.f32.mrb[38].mxu0  ;;  %v1944_v17 = vpop.f32.mrb[52].mxu1 }
 0x68f   : > { %v1894_v30 = vadd.f32 %v1893_v26, %v1846_v19  ;;  %v1951_v31 = vadd.f32 %v1944_v17, %v1891_v24  ;;  %v2977_v33 = vpop.f32.mrb[39].mxu0  ;;  %v2982_v34 = vpop.f32.mrb[53].mxu1  ;;  %v2712_v24 = vld [vmem:[%s3697_s4 + $0x12] ss:$0 sm:$0xff] }
 0x690   : > { %v1947_v23 = vpop.f32.mrb[54].mxu1  ;;  %v2713_v34 = vld [vmem:[%s3697_s4 + $0x13] ss:$0 sm:$0xff] }
 0x691   : > { %v1959_v21 = vadd.f32 %v2705_v28, %v1951_v31  ;;  %v1952_v35 = vadd.f32 %v1947_v23, %v1894_v30  ;;  %v2983_v36 = vpop.f32.mrb[55].mxu1 }
 0x693   : > { %v1961_v38 = vmax.f32 %v1959_v21, 0.0  ;;  %v1960_v29 = vadd.f32 %v2705_v28, %v1952_v35 }
 0x695   : > { %v1969_v39 = vmul.f32 %v2706_v37, %v1961_v38  ;;  %v1962_v40 = vmax.f32 %v1960_v29, 0.0 }
 0x697   : > { %v1977_v41 = vadd.f32 %v2707_v27, %v1969_v39  ;;  %v1970_v42 = vmul.f32 %v2706_v37, %v1962_v40  ;;  %v2714_v37 = vld [vmem:[%s3697_s4 + $0x14] ss:$0 sm:$0xff] }
 0x699   : > { %v2035_v44 = vadd.f32 %v2030_v43, %v1977_v41  ;;  %v1978_v45 = vadd.f32 %v2707_v27, %v1970_v42 }
 0x69b   : > { %v2039_v48 = vrot.slane %v2035_v44, 6  ;;  %v1979_v49 = vpack.c.bf16 %v1978_v45, %v1977_v41  ;;  %v2036_v50 = vadd.f32 %v2032_v47, %v1978_v45  ;;  %v2141_v53 = vrot.slane %v2035_v44, 2  ;;  %v3087_v45 = vld [vmem:[%s3700_s7 + $0x10] sm:$0xff]   ;;  %v3089_v47 = vld [vmem:[%s3700_s7 + $0x20] sm:$0xff]  }
 0x69d   : > { %v2040_v54 = vrot.slane %v2036_v50, 6  ;;  %v2142_v55 = vrot.slane %v2036_v50, 2  ;;  %2987 = vmatmul.mubr.msk.bf16.vlgmr.msra.gmra.mrb[40].mxu0 %vm584_vm2, %v1979_v49  ;;  %v2046_v56 = vpack.c.bf16 %v2036_v50, %v2035_v44  ;;  %v2044_v58 = vsel %vm575_vm3, 0.0, %v2039_v48  ;;  %v3086_v44 = vld [vmem:[%s3700_s7 + $0x8] sm:$0xff]   ;;  %v3091_v49 = vld [vmem:[%s3700_s7 + $0x30] sm:$0xff]   ;;  %v3092_v50 = vld [vmem:[%s3700_s7 + $0x38] sm:$0xff]  }
 0x69e   : > { %2997 = vmatpush3.bf16.msra.mxu0 %v2098_v51  ;;  %2998 = vmatprep.mubr.msk.bf16.mxu0 %vm3116_vm0, %v3115_v1  ;;  %v3093_v51 = vld [vmem:[%s3702_s9] sm:$0xff]  }
 0x69f   : > { %2993 = vmatmul.mubr.msk.bf16.vlgmr.msra.gmra.mrb[56].mxu1 %vm584_vm2, %v2046_v56  ;;  %v2041_v57 = vsel %vm575_vm3, %v2039_v48, %v2040_v54  ;;  %v2143_v59 = vsel %vm680_vm4, %v2141_v53, %v2142_v55  ;;  %v2146_v60 = vsel %vm680_vm4, %v2142_v55, 0.0  ;;  %3008 = vmatprep.subr.bf16.mxu0 %v3115_v1  ;;  %v3090_v48 = vld [vmem:[%s3700_s7 + $0x28] sm:$0xff]   ;;  %v3095_v53 = vld [vmem:[%s3702_s9 + $0x10] sm:$0xff]   ;;  %v3096_v54 = vld [vmem:[%s3702_s9 + $0x18] sm:$0xff]  }
 0x6a0   : > { %3003 = vmatpush3.bf16.msra.mxu1 %v2152_v52  ;;  %v2045_v61 = vpack.c.bf16 %v2041_v57, %v2044_v58  ;;  %3004 = vmatprep.mubr.msk.bf16.mxu1 %vm3116_vm0, %v3115_v1  ;;  %v2147_v62 = vpack.c.bf16 %v2146_v60, %v2143_v59  ;;  %v3094_v52 = vld [vmem:[%s3702_s9 + $0x8] sm:$0xff]   ;;  %v3097_v55 = vld [vmem:[%s3702_s9 + $0x20] sm:$0xff]  }
 0x6a1   : > { %3014 = vmatprep.subr.bf16.mxu1 %v3115_v1  ;;  %v3098_v56 = vld [vmem:[%s3702_s9 + $0x28] sm:$0xff]   ;;  %v2717_v60 = vld [vmem:[%s3699_s6] ss:$0 sm:$0xff] }
 0x6a5   : > { %2999 = vmatmul.mubr.msk.bf16.vlgmr.msra.gmra.mrb[44].mxu0 %vm584_vm2, %v2045_v61 }
 0x6a6   : > { %3010 = vmatprep.mubr.msk.bf16.mxu0 %vm3116_vm0, %v3115_v1  ;;  %3009 = vmatpush3.bf16.msra.mxu0 %v2228_v4  ;;  %v2718_v4 = vld [vmem:[%s3699_s6 + $0x1] ss:$0 sm:$0xff] }
 0x6a7   : > { %3005 = vmatmul.mubr.msk.bf16.vlgmr.msra.gmra.mrb[60].mxu1 %vm584_vm2, %v2147_v62  ;;  %3020 = vmatprep.subr.bf16.mxu0 %v3115_v1 }
 0x6a8   : > { %3015 = vmatpush3.bf16.msra.mxu1 %v2280_v0  ;;  %3016 = vmatprep.mubr.msk.bf16.mxu1 %vm3116_vm0, %v3115_v1 }
 0x6a9   : > { %3040 = vmatprep.subr.bf16.mxu1 %v3115_v1 }
 0x6af   : > { %3017 = vmatmul.mubr.msk.bf16.vlgmr.msra.gmra.mrb[64].mxu1 %vm584_vm2, %v2275_v2 }
 0x6b0   : > { %3056 = vmatprep.mubr.msk.bf16.mxu1 %vm3116_vm0, %v3115_v1  ;;  %3041 = vmatpush3.bf16.msra.mxu1 %v3093_v51 }
 0x6b1   : > { %3042 = vmatprep.subr.bf16.mxu1 %v3115_v1 }
 0x6b4   : > { %3043 = vmatpush3.bf16.msra.mxu1 %v3094_v52 }
 0x6b5   : > { %3044 = vmatprep.subr.bf16.mxu1 %v3115_v1 }
 0x6b8   : > { %3045 = vmatpush3.bf16.msra.mxu1 %v3095_v53 }
 0x6b9   : > { %3046 = vmatprep.subr.bf16.mxu1 %v3115_v1 }
 0x6bc   : > { %3047 = vmatpush3.bf16.msra.mxu1 %v3096_v54 }
 0x6bd   : > { %3048 = vmatprep.subr.bf16.mxu1 %v3115_v1 }
 0x6c0   : > { %3049 = vmatpush3.bf16.msra.mxu1 %v3097_v55 }
 0x6c1   : > { %3050 = vmatprep.subr.bf16.mxu1 %v3115_v1 }
 0x6c4   : > { %3051 = vmatpush3.bf16.msra.mxu1 %v3098_v56 }
 0x6c5   : > { %3052 = vmatprep.subr.bf16.mxu1 %v3115_v1 }
 0x770   : > { %v2020_v5 = vpop.f32.mrb[40].mxu0 }
 0x771   : > { %v3587_v6 = vadd.f32 %v2020_v5, %v3533_v11  ;;  %v2988_v7 = vpop.f32.mrb[41].mxu0 }
 0x772   : > { %v2023_v8 = vpop.f32.mrb[42].mxu0  ;;  %v2087_v9 = vpop.f32.mrb[56].mxu1 }
 0x773   : > { %v3590_v10 = vadd.f32 %v2023_v8, %v3536_v15  ;;  %v2989_v12 = vpop.f32.mrb[43].mxu0  ;;  %v2994_v13 = vpop.f32.mrb[57].mxu1 }
 0x774   : > { %v2090_v14 = vpop.f32.mrb[58].mxu1 }
 0x775   : > { %v2995_v16 = vpop.f32.mrb[59].mxu1 }
 0x778   : > { %v2134_v18 = vpop.f32.mrb[44].mxu0 }
 0x779   : > { %v2135_v19 = vadd.f32 %v2134_v18, %v2087_v9  ;;  %v3000_v20 = vpop.f32.mrb[45].mxu0  ;;  %v2719_v9 = vld [vmem:[%s3699_s6 + $0x2] ss:$0 sm:$0xff] }
 0x77a   : > { %v2137_v22 = vpop.f32.mrb[46].mxu0  ;;  %v2188_v11 = vpop.f32.mrb[60].mxu1 }
 0x77b   : > { %v2138_v25 = vadd.f32 %v2137_v22, %v2090_v14  ;;  %v2195_v26 = vadd.f32 %v2188_v11, %v2135_v19  ;;  %v3001_v28 = vpop.f32.mrb[47].mxu0  ;;  %v3006_v17 = vpop.f32.mrb[61].mxu1 }
 0x77c   : > { %v2191_v30 = vpop.f32.mrb[62].mxu1  ;;  %v3100_v28 = vld [vmem:[%s3702_s9 + $0x38] sm:$0xff]   ;;  %v2380_v17 = vld [vmem:[%s3701_s8] sm:$0x1] }
 0x77d   : > { %v2203_v15 = vadd.f32 %v2712_v24, %v2195_v26  ;;  %v2196_v31 = vadd.f32 %v2191_v30, %v2138_v25  ;;  %v3007_v33 = vpop.f32.mrb[63].mxu1  ;;  %v3099_v26 = vld [vmem:[%s3702_s9 + $0x30] sm:$0xff]  }
 0x77e   : > { %3053 = vmatpush3.bf16.msra.mxu1 %v3099_v26 }
 0x77f   : > { %v2205_v23 = vmax.f32 %v2203_v15, 0.0  ;;  %v2204_v21 = vadd.f32 %v2712_v24, %v2196_v31  ;;  %3054 = vmatprep.subr.bf16.mxu1 %v3115_v1 }
 0x781   : > { %v2213_v35 = vmul.f32 %v2713_v34, %v2205_v23  ;;  %v2206_v36 = vmax.f32 %v2204_v21, 0.0 }
 0x782   : > { %v2316_v38 = vpop.f32.mrb[64].mxu1  ;;  %3055 = vmatpush3.bf16.msra.mxu1 %v3100_v28 }
 0x783   : > { %v2214_v29 = vmul.f32 %v2713_v34, %v2206_v36  ;;  %v3018_v27 = vpop.f32.mrb[65].mxu1  ;;  %v2221_v40 = vadd.f32 %v2714_v37, %v2213_v35 }
 0x784   : > { %v2319_v39 = vpop.f32.mrb[66].mxu1 }
 0x785   : > { %v2222_v41 = vadd.f32 %v2714_v37, %v2214_v29  ;;  %v3019_v42 = vpop.f32.mrb[67].mxu1 }
 0x787   : > { %v2223_v43 = vpack.c.bf16 %v2222_v41, %v2221_v40  ;;  %v2582_v41 = vlaneseq }
 0x789   : > { %3011 = vmatmul.mubr.msk.bf16.vlgmr.msra.gmra.mrb[48].mxu0 %vm584_vm2, %v2223_v43  ;;  %v2583_v42 = vshrl.u32 %v2582_v41, 7 }
 0x78a   : > { %3036 = vmatprep.mubr.msk.bf16.mxu0 %vm3116_vm0, %v3115_v1  ;;  %3021 = vmatpush3.bf16.msra.mxu0 %v3085_v32 }
 0x78b   : > { %3022 = vmatprep.subr.bf16.mxu0 %v3115_v1  ;;  %v2584_v43 = vsub.s32 0, %v2583_v42 }
 0x78e   : > { %3023 = vmatpush3.bf16.msra.mxu0 %v3086_v44 }
 0x78f   : > { %3024 = vmatprep.subr.bf16.mxu0 %v3115_v1 }
 0x792   : > { %3025 = vmatpush3.bf16.msra.mxu0 %v3087_v45 }
 0x793   : > { %3026 = vmatprep.subr.bf16.mxu0 %v3115_v1 }
 0x796   : > { %3027 = vmatpush3.bf16.msra.mxu0 %v3088_v46 }
 0x797   : > { %3028 = vmatprep.subr.bf16.mxu0 %v3115_v1 }
 0x79a   : > { %3029 = vmatpush3.bf16.msra.mxu0 %v3089_v47  ;;  %v3105_v47 = vld [vmem:[%s3233_s19] sm:$0xff] }
 0x79b   : > { %3030 = vmatprep.subr.bf16.mxu0 %v3115_v1 }
 0x79e   : > { %3031 = vmatpush3.bf16.msra.mxu0 %v3090_v48 }
 0x79f   : > { %3032 = vmatprep.subr.bf16.mxu0 %v3115_v1 }
 0x7a2   : > { %3033 = vmatpush3.bf16.msra.mxu0 %v3091_v49  ;;  %v3106_v49 = vld [vmem:[%s3233_s19 + $0x8] sm:$0xff] }
 0x7a3   : > { %3034 = vmatprep.subr.bf16.mxu0 %v3115_v1  ;;  %v2487_v1 = vld [vmem:[%s3703_s10] sm:$0x1] }
 0x7a6   : > { %3035 = vmatpush3.bf16.msra.mxu0 %v3092_v50 }
 0x85c   : > { %v2264_v57 = vpop.f32.mrb[48].mxu0 }
 0x85d   : > { %v2271_v58 = vadd.f32 %v2264_v57, %v3587_v6  ;;  %v3012_v59 = vpop.f32.mrb[49].mxu0 }
 0x85e   : > { %v2267_v61 = vpop.f32.mrb[50].mxu0 }
 0x85f   : > { %v2323_v62 = vadd.f32 %v2316_v38, %v2271_v58  ;;  %v2272_v63 = vadd.f32 %v2267_v61, %v3590_v10  ;;  %v3013_v0 = vpop.f32.mrb[51].mxu0 }
 0x861   : > { %v2334_v2 = vadd.f32 %v2717_v60, %v2323_v62  ;;  %v2324_v3 = vadd.f32 %v2319_v39, %v2272_v63 }
 0x863   : > { %v2336_v5 = vmax.f32 %v2334_v2, 0.0  ;;  %v2335_v7 = vadd.f32 %v2717_v60, %v2324_v3 }
 0x865   : > { %v2344_v8 = vmul.f32 %v2718_v4, %v2336_v5  ;;  %v2337_v6 = vmax.f32 %v2335_v7, 0.0 }
 0x867   : > { %v2345_v12 = vmul.f32 %v2718_v4, %v2337_v6  ;;  %v2352_v13 = vadd.f32 %v2719_v9, %v2344_v8 }
 0x869   : > { %v2353_v14 = vadd.f32 %v2719_v9, %v2345_v12 }
 0x86b   : > { %v2354_v16 = vadd.f32 %v2353_v14, %v2352_v13 }
 0x86d   : > { %v2355_v10 = vrot.slane %v2354_v16, 4 }
 0x86f   : > { %v2356_v18 = vadd.f32 %v2355_v10, %v2354_v16 }
 0x871   : > { %v2357_v19 = vrot.slane %v2356_v18, 2 }
 0x873   : > { %v2358_v20 = vadd.f32 %v2357_v19, %v2356_v18 }
 0x875   : > { %v2359_v22 = vrot.slane %v2358_v20, 1 }
 0x877   : > { %v2360_v24 = vadd.f32 %v2359_v22, %v2358_v20 }
 0x879   : > { %v2362_v11 = vmul.f32 0.0625, %v2360_v24 }
 0x87b   : > { %v2379_v25 = vpack.c.bf16 %v2362_v11, %v2362_v11 }
 0x87d   : > { %3037 = vmatmul.mubr.bf16.vlgmr.msra.gmra.mrb[52].mxu0 %v2379_v25 }
 0x950   : > { %v2463_v30 = vpop.f32.mrb[52].mxu0 }
 0x951   : > { %v2464_v15 = vadd.f32 %v2463_v30, %v2380_v17  ;;  %v3038_v31 = vpop.f32.mrb[53].mxu0 }
 0x952   : > { %v2466_v33 = vpop.f32.mrb[54].mxu0 }
 0x953   : > { %v2469_v34 = vmax.f32 %v2464_v15, 0.0  ;;  %v3039_v23 = vpop.f32.mrb[55].mxu0 }
 0x955   : > { %v2486_v21 = vpack.c.bf16 %v2469_v34, %v2469_v34 }
 0x957   : > { %3057 = vmatmul.mubr.bf16.vlgmr.msra.gmra.mrb[68].mxu1 %v2486_v21 }
 0xa2a   : > { %v2570_v35 = vpop.f32.mrb[68].mxu1 }
 0xa2b   : > { %v2571_v36 = vadd.f32 %v2570_v35, %v2487_v1  ;;  %v3058_v37 = vpop.f32.mrb[69].mxu1 }
 0xa2c   : > { %v2573_v38 = vpop.f32.mrb[70].mxu1 }
 0xa2d   : > { %v2736_v29 = vmul.f32 -1.442695, %v2571_v36  ;;  %v3059_v27 = vpop.f32.mrb[71].mxu1 }
 0xa2f   : > { %3101 = vpow2.f32 %v2736_v29 }
 0xa39   : > { %v3102_v39 = vpop.eup %3101 }
 0xa3a   : > { %v2579_v40 = vadd.f32 1.0, %v3102_v39 }
 0xa3c   : > { %3103 = vrcp.f32 %v2579_v40 }
 0xa46   : > { %v3104_v32 = vpop.eup %3103 }
 0xa47   : > { %v2585_v44 = vrot.slane %v3104_v32, %v2584_v43 }
 0xa49   : > { %v2586_v45 = vmul.f32 %v2585_v44, %v2352_v13  ;;  %v2587_v46 = vmul.f32 %v2585_v44, %v2353_v14 }
 0xa4b   : > { %v2588_v48 = vadd.f32 %v3105_v47, %v2586_v45  ;;  %v2589_v50 = vadd.f32 %v3106_v49, %v2587_v46 }
 0xa4d   : > { %2590 = vst [vmem:[%s386_s29] sm:$0xff] %v2588_v48  ;;  %2591 = vst [vmem:[%s386_s29 + $0x8] sm:$0xff] %v2589_v50 }
 0xa4e PF: > { %s21_s17 = sadd.s32 1, %s3113_s17  }
 0xa4f   : > { %p18_p4 = scmp.ge.s32.totalorder %s21_s17, 4  }
 0xa51   :  { %20 = sbr.rel (!%p18_p4) target bundleno = 1 (0x1), region = 94 }

// kernel: forward.8
= control target key start
LH: loop header
LB: loop body
LE: loop exit
PB: predicated region body
PF: predicated region fallthrough
CT: control target
= control target key end

     0   :  { %s3294_s25 = smov 0   ;;  %s3803_s0 = inlined_call_operand.vmem [shape: f32[2,16,128], index: 0, kind: input, shape index: {}]   ;;  %s3804_s1 = inlined_call_operand.vmem [shape: f32[2,16,128], index: 1, kind: input, shape index: {}]   ;;  %s3805_s2 = inlined_call_operand.vmem [shape: f32[2,16,128], index: 2, kind: input, shape index: {}]   ;;  %s3806_s3 = inlined_call_operand.vmem [shape: bf16[128,128], index: 3, kind: input, shape index: {}]   ;;  %s3807_s4 = inlined_call_operand.vmem [shape: f32[3,1,128], index: 4, kind: input, shape index: {}]   ;;  %s3808_s5 = inlined_call_operand.vmem [shape: bf16[7,3,8,8], index: 5, kind: input, shape index: {}]   ;;  %s3809_s6 = inlined_call_operand.vmem [shape: f32[7,3,1,8], index: 6, kind: input, shape index: {}]   ;;  %s3810_s7 = inlined_call_operand.vmem [shape: bf16[8,8,128], index: 7, kind: input, shape index: {}]   ;;  %s3811_s8 = inlined_call_operand.vmem [shape: f32[3,1,128], index: 8, kind: input, shape index: {}]   ;;  %s3812_s9 = inlined_call_operand.vmem [shape: bf16[128,128], index: 9, kind: input, shape index: {}]   ;;  %s3813_s10 = inlined_call_operand.vmem [shape: f32[1,128], index: 10, kind: input, shape index: {}]   ;;  %s3814_s11 = inlined_call_operand.vmem [shape: bf16[128,128], index: 11, kind: input, shape index: {}]   ;;  %s3815_s12 = inlined_call_operand.vmem [shape: f32[1,128], index: 12, kind: input, shape index: {}]   ;;  %s3816_s13 = inlined_call_operand.vmem [shape: f32[2,16,128], index: 13, kind: output, shape index: {}]  }
   0x1 LB: > { %s2743_s26 = sadd.s32 4294967295, %s3213_s25   ;;  %p2747_p0 = scmp.ge.s32.totalorder %s3213_s25, 1  ;;  %s3213_s25 = sphi %s3294_s25, %s23_s25  }
   0x2   : > { %p407_p1 = scmp.lt.s32.totalorder %s3213_s25, 3 }
   0x4   : > { %p408_p2 = pnand %p2747_p0, %p407_p1 }
   0x5   : > { %v3179_v0 = vld [vmem:[%s3806_s3] sm:$0xff] (!%p408_p2)   ;;  %v3215_v1 = vmov (!%p408_p2), 0.0   ;;  %v3180_v2 = vld [vmem:[%s3806_s3 + $0x8] sm:$0xff] (!%p408_p2)   ;;  %vm3216_vm0 = vmmov (!%p408_p2), 0   ;;  %p461_p3 = scmp.lt.s32.totalorder (!%p408_p2), %s2743_s26, 1  ;;  %v3181_v3 = vld [vmem:[%s3806_s3 + $0x10] sm:$0xff] (!%p408_p2)  }
   0x6   : > { %411 = sbr.rel (%p408_p2) target bundleno = 2638 (0xa4e), region = 72  ;;  %2928 = vmatprep.subr.bf16.mxu0 (!%p408_p2), %v3215_v1  ;;  %2948 = vmatprep.subr.bf16.mxu1 (!%p408_p2), %v3215_v1  ;;  %v3182_v4 = vld [vmem:[%s3806_s3 + $0x18] sm:$0xff] (!%p408_p2)   ;;  %v3183_v5 = vld [vmem:[%s3806_s3 + $0x20] sm:$0xff] (!%p408_p2)   ;;  %v3184_v6 = vld [vmem:[%s3806_s3 + $0x28] sm:$0xff] (!%p408_p2)   ;;  %vm677_vm1 = vcmask (!%p408_p2), 1043456   ;;  %s3217_s30 = smov (!%p408_p2), 112  }
   0x7   : > { %2929 = vmatpush3.bf16.msra.mxu0 (!%p408_p2), %v3179_v0  ;;  %2944 = vmatprep.mubr.msk.bf16.mxu0 (!%p408_p2), %vm3216_vm0, %v3215_v1  ;;  %v3185_v13 = vld [vmem:[%s3806_s3 + $0x30] sm:$0xff] (!%p408_p2)   ;;  %v3186_v18 = vld [vmem:[%s3806_s3 + $0x38] sm:$0xff] (!%p408_p2)   ;;  %v626_v20 = vld [vmem:[%s3808_s5 + $0x4] sm:$0xf] (!%p408_p2)  ;;  %s3218_s14 = smov (!%p408_p2), 120   ;;  %vm686_vm2 = vcmask (!%p408_p2), 64512  }
   0x8   : > { %2930 = vmatprep.subr.bf16.mxu0 (!%p408_p2), %v3215_v1  ;;  %2950 = vmatprep.mubr.msk.bf16.mxu1 (!%p408_p2), %vm3216_vm0, %v3215_v1  ;;  %v691_v21 = vsel (!%p408_p2), %vm677_vm1, %v626_v20, 0  ;;  %v2756_v22 = vld [vmem:[%s3807_s4] ss:$0 sm:$0xff] (!%p408_p2)  ;;  %v2765_v26 = vld [vmem:[%s3807_s4 + $0x1] ss:$0 sm:$0xff] (!%p408_p2)  ;;  %s3219_s17 = smov (!%p408_p2), 104  }
   0x9   : > { %2949 = vmatpush3.bf16.msra.mxu1 (!%p408_p2), %v691_v21  ;;  %v2766_v31 = vld [vmem:[%s3807_s4 + $0x2] ss:$0 sm:$0xff] (!%p408_p2)  ;;  %v627_v47 = vld [vmem:[%s3808_s5 + $0x8] sm:$0xf] (!%p408_p2)  ;;  %s3220_s21 = smov (!%p408_p2), 96   ;;  %s3221_s22 = smov (!%p408_p2), 88  }
   0xa   : > { %2954 = vmatprep.subr.bf16.mxu1 (!%p408_p2), %v3215_v1  ;;  %v625_v37 = vld [vmem:[%s3808_s5] sm:$0xf] (!%p408_p2)  ;;  %v788_v48 = vsel (!%p408_p2), %vm677_vm1, %v627_v47, 0  ;;  %s3223_s24 = smov (!%p408_p2), 72   ;;  %v629_v49 = vld [vmem:[%s3808_s5 + $0x10] sm:$0xf] (!%p408_p2) }
   0xb   : > { %2931 = vmatpush3.bf16.msra.mxu0 (!%p408_p2), %v3180_v2  ;;  %v738_v41 = vsel (!%p408_p2), %vm677_vm1, %v625_v37, 0  ;;  %v882_v50 = vsel (!%p408_p2), %vm677_vm1, %v629_v49, 0  ;;  %v630_v51 = vld [vmem:[%s3808_s5 + $0x14] sm:$0xf] (!%p408_p2)  ;;  %v2770_v63 = vld [vmem:[%s3809_s6] ss:$0 sm:$0xff] (!%p408_p2) }
   0xc   : > { %2932 = vmatprep.subr.bf16.mxu0 (!%p408_p2), %v3215_v1  ;;  %v979_v52 = vsel (!%p408_p2), %vm677_vm1, %v630_v51, 0  ;;  %v2776_v51 = vld [vmem:[%s3809_s6 + $0x3] ss:$0 sm:$0xff] (!%p408_p2) }
   0xd   : > { %s3818_s26 = smov (!%p461_p3, %s2743_s26), 1 }
   0xe   : > { %s3322_s18 = sshll.u32 %s3818_s26, 4 }
   0xf   : > { %2933 = vmatpush3.bf16.msra.mxu0 %v3181_v3  ;;  %s465_s23 = scalar_lea.vmem %s3803_s0, %s3322_s18  ;;  %s470_s28 = scalar_lea.vmem %s3804_s1, %s3322_s18 }
  0x10   : > { %2934 = vmatprep.subr.bf16.mxu0 %v3215_v1  ;;  %v482_v7 = vld [vmem:[%s465_s23] sm:$0xff]  ;;  %v483_v8 = vld [vmem:[%s465_s23 + $0x8] sm:$0xff]  ;;  %s475_s15 = scalar_lea.vmem %s3805_s2, %s3322_s18  ;;  %s3222_s23 = smov 80  }
  0x11   : > { %v484_v9 = vld [vmem:[%s470_s28] sm:$0xff]  ;;  %v485_v10 = vld [vmem:[%s470_s28 + $0x8] sm:$0xff]  ;;  %s480_s29 = scalar_lea.vmem %s3816_s13, %s3322_s18 }
  0x12   : > { %v486_v11 = vadd.f32 %v484_v9, %v482_v7  ;;  %v487_v12 = vadd.f32 %v485_v10, %v483_v8  ;;  %v488_v14 = vld [vmem:[%s475_s15] sm:$0xff]  ;;  %v489_v15 = vld [vmem:[%s475_s15 + $0x8] sm:$0xff] }
  0x13   : > { %2935 = vmatpush3.bf16.msra.mxu0 %v3182_v4  ;;  %v2771_v8 = vld [vmem:[%s3809_s6 + $0x1] ss:$0 sm:$0xff] }
  0x14   : > { %2936 = vmatprep.subr.bf16.mxu0 %v3215_v1  ;;  %v3349_v16 = vadd.f32 %v488_v14, %v486_v11  ;;  %v3351_v17 = vadd.f32 %v489_v15, %v487_v12  ;;  %v2772_v12 = vld [vmem:[%s3809_s6 + $0x2] ss:$0 sm:$0xff] }
  0x16   : > { %v511_v19 = vpack.c.bf16 %v3351_v17, %v3349_v16 }
  0x17   : > { %2937 = vmatpush3.bf16.msra.mxu0 %v3183_v5 }
  0x18   : > { %2938 = vmatprep.subr.bf16.mxu0 %v3215_v1 }
  0x1b   : > { %2939 = vmatpush3.bf16.msra.mxu0 %v3184_v6 }
  0x1c   : > { %2940 = vmatprep.subr.bf16.mxu0 %v3215_v1 }
  0x1f   : > { %2941 = vmatpush3.bf16.msra.mxu0 %v3185_v13 }
  0x20   : > { %2942 = vmatprep.subr.bf16.mxu0 %v3215_v1 }
  0x23   : > { %2943 = vmatpush3.bf16.msra.mxu0 %v3186_v18 }
  0x24   : > { %2978 = vmatprep.subr.bf16.mxu0 %v3215_v1 }
  0x26   : > { %2945 = vmatmul.mubr.bf16.vlgmr.msra.gmra.mrb[0].mxu0 %v511_v19 }
  0x27   : > { %2980 = vmatprep.mubr.msk.bf16.mxu0 %vm3216_vm0, %v3215_v1  ;;  %2979 = vmatpush3.bf16.msra.mxu0 %v979_v52 }
  0x28   : > { %2990 = vmatprep.subr.bf16.mxu0 %v3215_v1 }
  0xf9   : > { %v600_v23 = vpop.f32.mrb[0].mxu0 }
  0xfa   : > { %v601_v24 = vadd.f32 %v2756_v22, %v600_v23  ;;  %v2946_v25 = vpop.f32.mrb[1].mxu0 }
  0xfb   : > { %v603_v27 = vpop.f32.mrb[2].mxu0 }
  0xfc   : > { %v607_v28 = vmax.f32 %v601_v24, 0.0  ;;  %v604_v29 = vadd.f32 %v2756_v22, %v603_v27  ;;  %v2947_v30 = vpop.f32.mrb[3].mxu0  ;;  %v628_v22 = vld [vmem:[%s3808_s5 + $0xc] sm:$0xf] }
  0xfe   : > { %v615_v32 = vmul.f32 %v2765_v26, %v607_v28  ;;  %v608_v33 = vmax.f32 %v604_v29, 0.0  ;;  %v929_v28 = vsel %vm677_vm1, %v628_v22, 0  ;;  %v667_v29 = vld [vmem:[%s3810_s7] sm:$0xf] }
 0x100   : > { %v623_v34 = vadd.f32 %v2766_v31, %v615_v32  ;;  %v616_v35 = vmul.f32 %v2765_v26, %v608_v33 }
 0x102   : > { %v624_v36 = vadd.f32 %v2766_v31, %v616_v35  ;;  %1145 = vrot.lane.b32.xlu1 %v623_v34, %s3217_s30  ;;  %860 = vrot.lane.b32.xlu0 %v623_v34, %s3218_s14  ;;  %v678_v38 = vrot.slane %v623_v34, 4  ;;  %v1102_v35 = vsel %vm677_vm1, %v667_v29, 0  ;;  %v635_v29 = vld [vmem:[%s3808_s5 + $0x28] sm:$0xf] }
 0x104   : > { %v685_v39 = vpack.c.bf16 %v624_v36, %v623_v34  ;;  %v679_v40 = vrot.slane %v624_v36, 4  ;;  %v683_v43 = vsel %vm677_vm1, 0.0, %v678_v38 }
 0x106   : > { %1147 = vrot.lane.b32.xlu1 %v624_v36, %s3217_s30  ;;  %862 = vrot.lane.b32.xlu0 %v624_v36, %s3218_s14  ;;  %v680_v42 = vsel %vm677_vm1, %v678_v38, %v679_v40  ;;  %v782_v44 = vsel %vm677_vm1, %v679_v40, 0.0  ;;  %v631_v38 = vld [vmem:[%s3808_s5 + $0x18] sm:$0xf] }
 0x107   : > { %2951 = vmatmul.mubr.msk.bf16.vlgmr.msra.gmra.mrb[0].mxu1 %vm686_vm2, %v685_v39  ;;  %v684_v45 = vpack.c.bf16 %v680_v42, %v683_v43  ;;  %v783_v46 = vpack.c.bf16 %v782_v44, %v680_v42 }
 0x108   : > { %2955 = vmatpush3.bf16.msra.mxu1 %v738_v41  ;;  %2956 = vmatprep.mubr.msk.bf16.mxu1 %vm3216_vm0, %v3215_v1 }
 0x109   : > { %2960 = vmatprep.subr.bf16.mxu1 %v3215_v1 }
 0x10a   : > { %1387 = vrot.lane.b32.xlu1 %v624_v36, %s3219_s17  ;;  %1385 = vrot.lane.b32.xlu0 %v623_v34, %s3219_s17 }
 0x10e   : > { %1627 = vrot.lane.b32.xlu1 %v624_v36, %s3220_s21  ;;  %1625 = vrot.lane.b32.xlu0 %v623_v34, %s3220_s21 }
 0x10f   : > { %2957 = vmatmul.mubr.msk.bf16.vlgmr.msra.gmra.mrb[4].mxu1 %vm686_vm2, %v684_v45 }
 0x110   : > { %2961 = vmatpush3.bf16.msra.mxu1 %v788_v48  ;;  %2962 = vmatprep.mubr.msk.bf16.mxu1 %vm3216_vm0, %v3215_v1 }
 0x111   : > { %2966 = vmatprep.subr.bf16.mxu1 %v3215_v1 }
 0x112   : > { %1867 = vrot.lane.b32.xlu1 %v624_v36, %s3221_s22  ;;  %1865 = vrot.lane.b32.xlu0 %v623_v34, %s3221_s22 }
 0x116   : > { %2107 = vrot.lane.b32.xlu1 %v624_v36, %s3222_s23  ;;  %2105 = vrot.lane.b32.xlu0 %v623_v34, %s3222_s23  ;;  %v668_v36 = vld [vmem:[%s3810_s7 + $0x4] sm:$0xf] }
 0x117   : > { %2963 = vmatmul.mubr.msk.bf16.vlgmr.msra.gmra.mrb[8].mxu1 %vm686_vm2, %v783_v46  ;;  %v1055_v37 = vsel %vm677_vm1, %v668_v36, 0 }
 0x118   : > { %2968 = vmatprep.mubr.msk.bf16.mxu1 %vm3216_vm0, %v3215_v1  ;;  %2967 = vmatpush3.bf16.msra.mxu1 %v882_v50 }
 0x119   : > { %2972 = vmatprep.subr.bf16.mxu1 %v3215_v1 }
 0x11a   : > { %2346 = vrot.lane.b32.xlu0 %v685_v39, %s3223_s24  ;;  %v1214_v39 = vsel %vm677_vm1, %v631_v38, 0 }
 0x174   : > { %v861_v11 = vpop.permute.xlu0 %860 }
 0x178   : > { %v863_v21 = vpop.permute.xlu0 %862 }
 0x1da   : > { %v727_v53 = vpop.f32.mrb[0].mxu1 }
 0x1db   : > { %v2952_v54 = vpop.f32.mrb[1].mxu1 }
 0x1dc   : > { %v730_v55 = vpop.f32.mrb[2].mxu1 }
 0x1dd   : > { %v2953_v56 = vpop.f32.mrb[3].mxu1 }
 0x1e2   : > { %v774_v57 = vpop.f32.mrb[4].mxu1 }
 0x1e3   : > { %v775_v58 = vadd.f32 %v774_v57, %v727_v53  ;;  %v2958_v59 = vpop.f32.mrb[5].mxu1 }
 0x1e4   : > { %v777_v60 = vpop.f32.mrb[6].mxu1 }
 0x1e5   : > { %v778_v61 = vadd.f32 %v777_v60, %v730_v55  ;;  %v2959_v62 = vpop.f32.mrb[7].mxu1 }
 0x1ea   : > { %v824_v0 = vpop.f32.mrb[8].mxu1 }
 0x1eb   : > { %v831_v2 = vadd.f32 %v824_v0, %v775_v58  ;;  %v2964_v3 = vpop.f32.mrb[9].mxu1 }
 0x1ec   : > { %v827_v4 = vpop.f32.mrb[10].mxu1  ;;  %v2778_v3 = vld [vmem:[%s3809_s6 + $0x5] ss:$0 sm:$0xff] }
 0x1ed   : > { %v839_v5 = vadd.f32 %v2770_v63, %v831_v2  ;;  %v832_v6 = vadd.f32 %v827_v4, %v778_v61  ;;  %v2965_v7 = vpop.f32.mrb[11].mxu1  ;;  %v2777_v61 = vld [vmem:[%s3809_s6 + $0x4] ss:$0 sm:$0xff]  ;;  %v1146_v2 = vpop.permute.xlu1 %1145 }
 0x1ef   : > { %v841_v9 = vmax.f32 %v839_v5, 0.0  ;;  %v840_v10 = vadd.f32 %v2770_v63, %v832_v6 }
 0x1f1   : > { %v849_v13 = vmul.f32 %v2771_v8, %v841_v9  ;;  %v842_v14 = vmax.f32 %v840_v10, 0.0 }
 0x1f3   : > { %v857_v15 = vadd.f32 %v2772_v12, %v849_v13  ;;  %v850_v18 = vmul.f32 %v2771_v8, %v842_v14  ;;  %v632_v8 = vld [vmem:[%s3808_s5 + $0x1c] sm:$0xf] }
 0x1f5   : > { %v866_v19 = vadd.f32 %v861_v11, %v857_v15  ;;  %v858_v20 = vadd.f32 %v2772_v12, %v850_v18  ;;  %v1148_v11 = vpop.permute.xlu1 %1147 }
 0x1f7   : > { %v870_v23 = vrot.slane %v866_v19, 4  ;;  %v859_v24 = vpack.c.bf16 %v858_v20, %v857_v15  ;;  %v867_v25 = vadd.f32 %v863_v21, %v858_v20  ;;  %v1167_v15 = vsel %vm677_vm1, %v632_v8, 0 }
 0x1f9   : > { %v871_v26 = vrot.slane %v867_v25, 4  ;;  %v877_v27 = vpack.c.bf16 %v867_v25, %v866_v19  ;;  %v875_v32 = vsel %vm677_vm1, 0.0, %v870_v23 }
 0x1fb   : > { %2969 = vmatmul.mubr.msk.bf16.vlgmr.msra.gmra.mrb[12].mxu1 %vm686_vm2, %v877_v27  ;;  %v872_v30 = vsel %vm677_vm1, %v870_v23, %v871_v26  ;;  %v973_v31 = vsel %vm677_vm1, %v871_v26, 0.0  ;;  %v669_v27 = vld [vmem:[%s3810_s7 + $0x8] sm:$0xf] }
 0x1fc   : > { %2973 = vmatpush3.bf16.msra.mxu1 %v929_v28  ;;  %v974_v33 = vpack.c.bf16 %v973_v31, %v872_v30  ;;  %2974 = vmatprep.mubr.msk.bf16.mxu1 %vm3216_vm0, %v3215_v1  ;;  %v876_v34 = vpack.c.bf16 %v872_v30, %v875_v32  ;;  %v1340_v28 = vsel %vm677_vm1, %v669_v27, 0  ;;  %v1407_v30 = vsel %vm677_vm1, %v635_v29, 0 }
 0x1fd   : > { %2984 = vmatprep.subr.bf16.mxu1 %v3215_v1 }
 0x1fe   : > { %2981 = vmatmul.mubr.msk.bf16.vlgmr.msra.gmra.mrb[4].mxu0 %vm686_vm2, %v974_v33 }
 0x1ff   : > { %2991 = vmatpush3.bf16.msra.mxu0 %v1102_v35  ;;  %2992 = vmatprep.mubr.msk.bf16.mxu0 %vm3216_vm0, %v3215_v1 }
 0x200   : > { %3002 = vmatprep.subr.bf16.mxu0 %v3215_v1 }
 0x203   : > { %2975 = vmatmul.mubr.msk.bf16.vlgmr.msra.gmra.mrb[16].mxu1 %vm686_vm2, %v876_v34 }
 0x204   : > { %2986 = vmatprep.mubr.msk.bf16.mxu1 %vm3216_vm0, %v3215_v1  ;;  %2985 = vmatpush3.bf16.msra.mxu1 %v1055_v37 }
 0x205   : > { %2996 = vmatprep.subr.bf16.mxu1 %v3215_v1 }
 0x206   : > { %2993 = vmatmul.mubr.msk.bf16.vlgmr.msra.gmra.mrb[8].mxu0 %vm686_vm2, %v859_v24  ;;  %v633_v24 = vld [vmem:[%s3808_s5 + $0x20] sm:$0xf] }
 0x207   : > { %3004 = vmatprep.mubr.msk.bf16.mxu0 %vm3216_vm0, %v3215_v1  ;;  %3003 = vmatpush3.bf16.msra.mxu0 %v1214_v39  ;;  %v1264_v26 = vsel %vm677_vm1, %v633_v24, 0 }
 0x208   : > { %3014 = vmatprep.subr.bf16.mxu0 %v3215_v1 }
 0x2ce   : > { %v918_v40 = vpop.f32.mrb[12].mxu1 }
 0x2cf   : > { %v2970_v41 = vpop.f32.mrb[13].mxu1 }
 0x2d0   : > { %v921_v42 = vpop.f32.mrb[14].mxu1 }
 0x2d1   : > { %v2971_v43 = vpop.f32.mrb[15].mxu1  ;;  %v1015_v44 = vpop.f32.mrb[4].mxu0 }
 0x2d2   : > { %v2982_v45 = vpop.f32.mrb[5].mxu0 }
 0x2d3   : > { %v1018_v46 = vpop.f32.mrb[6].mxu0 }
 0x2d4   : > { %v2983_v47 = vpop.f32.mrb[7].mxu0 }
 0x2d5   : > { %v2784_v47 = vld [vmem:[%s3809_s6 + $0x6] ss:$0 sm:$0xff] }
 0x2d6   : > { %v965_v48 = vpop.f32.mrb[16].mxu1 }
 0x2d7   : > { %v966_v49 = vadd.f32 %v965_v48, %v918_v40  ;;  %v2976_v50 = vpop.f32.mrb[17].mxu1 }
 0x2d8   : > { %v968_v52 = vpop.f32.mrb[18].mxu1 }
 0x2d9   : > { %v1022_v53 = vadd.f32 %v1015_v44, %v966_v49  ;;  %v969_v54 = vadd.f32 %v968_v52, %v921_v42  ;;  %v2977_v55 = vpop.f32.mrb[19].mxu1  ;;  %v1138_v56 = vpop.f32.mrb[8].mxu0 }
 0x2da   : > { %v2994_v57 = vpop.f32.mrb[9].mxu0  ;;  %v2785_v55 = vld [vmem:[%s3809_s6 + $0x7] ss:$0 sm:$0xff] }
 0x2db   : > { %v1030_v58 = vadd.f32 %v2776_v51, %v1022_v53  ;;  %v1023_v59 = vadd.f32 %v1018_v46, %v969_v54  ;;  %v1141_v60 = vpop.f32.mrb[10].mxu0 }
 0x2dc   : > { %v2995_v62 = vpop.f32.mrb[11].mxu0 }
 0x2dd   : > { %v1032_v63 = vmax.f32 %v1030_v58, 0.0  ;;  %v1031_v0 = vadd.f32 %v2776_v51, %v1023_v59  ;;  %v2786_v58 = vld [vmem:[%s3809_s6 + $0x8] ss:$0 sm:$0xff] }
 0x2df   : > { %v1040_v4 = vmul.f32 %v2777_v61, %v1032_v63  ;;  %v1033_v5 = vmax.f32 %v1031_v0, 0.0  ;;  %v1386_v63 = vpop.permute.xlu0 %1385  ;;  %v634_v0 = vld [vmem:[%s3808_s5 + $0x24] sm:$0xf] }
 0x2e1   : > { %v1048_v6 = vadd.f32 %v2778_v3, %v1040_v4  ;;  %v1041_v7 = vmul.f32 %v2777_v61, %v1033_v5  ;;  %v1388_v4 = vpop.permute.xlu1 %1387  ;;  %v636_v5 = vld [vmem:[%s3808_s5 + $0x2c] sm:$0xf] }
 0x2e3   : > { %v1151_v9 = vadd.f32 %v1146_v2, %v1048_v6  ;;  %v1049_v10 = vadd.f32 %v2778_v3, %v1041_v7 }
 0x2e5   : > { %v1155_v12 = vrot.slane %v1151_v9, 4  ;;  %v1050_v13 = vpack.c.bf16 %v1049_v10, %v1048_v6  ;;  %v1152_v14 = vadd.f32 %v1148_v11, %v1049_v10 }
 0x2e7   : > { %v1156_v18 = vrot.slane %v1152_v14, 4  ;;  %2987 = vmatmul.mubr.msk.bf16.vlgmr.msra.gmra.mrb[20].mxu1 %vm686_vm2, %v1050_v13  ;;  %v1162_v19 = vpack.c.bf16 %v1152_v14, %v1151_v9  ;;  %v1160_v21 = vsel %vm677_vm1, 0.0, %v1155_v12  ;;  %v1454_v9 = vsel %vm677_vm1, %v634_v0, 0 }
 0x2e8   : > { %2997 = vmatpush3.bf16.msra.mxu1 %v1167_v15  ;;  %2998 = vmatprep.mubr.msk.bf16.mxu1 %vm3216_vm0, %v3215_v1 }
 0x2e9   : > { %v1157_v20 = vsel %vm677_vm1, %v1155_v12, %v1156_v18  ;;  %3008 = vmatprep.subr.bf16.mxu1 %v3215_v1  ;;  %v1258_v22 = vsel %vm677_vm1, %v1156_v18, 0.0  ;;  %v1504_v12 = vsel %vm677_vm1, %v636_v5, 0 }
 0x2ea   : > { %v1161_v23 = vpack.c.bf16 %v1157_v20, %v1160_v21  ;;  %v1259_v25 = vpack.c.bf16 %v1258_v22, %v1157_v20  ;;  %v670_v20 = vld [vmem:[%s3810_s7 + $0xc] sm:$0xf]  ;;  %v638_v22 = vld [vmem:[%s3808_s5 + $0x34] sm:$0xf] }
 0x2eb   : > { %v1580_v21 = vsel %vm677_vm1, %v670_v20, 0 }
 0x2ec   : > { %3005 = vmatmul.mubr.msk.bf16.vlgmr.msra.gmra.mrb[12].mxu0 %vm686_vm2, %v1161_v23  ;;  %v1647_v23 = vsel %vm677_vm1, %v638_v22, 0 }
 0x2ed   : > { %3016 = vmatprep.mubr.msk.bf16.mxu0 %vm3216_vm0, %v3215_v1  ;;  %3015 = vmatpush3.bf16.msra.mxu0 %v1340_v28 }
 0x2ee   : > { %3026 = vmatprep.subr.bf16.mxu0 %v3215_v1 }
 0x2ef   : > { %2999 = vmatmul.mubr.msk.bf16.vlgmr.msra.gmra.mrb[24].mxu1 %vm686_vm2, %v1162_v19 }
 0x2f0   : > { %3009 = vmatpush3.bf16.msra.mxu1 %v1264_v26  ;;  %3010 = vmatprep.mubr.msk.bf16.mxu1 %vm3216_vm0, %v3215_v1 }
 0x2f1   : > { %3020 = vmatprep.subr.bf16.mxu1 %v3215_v1 }
 0x2f7   : > { %3011 = vmatmul.mubr.msk.bf16.vlgmr.msra.gmra.mrb[28].mxu1 %vm686_vm2, %v1259_v25 }
 0x2f8   : > { %3022 = vmatprep.mubr.msk.bf16.mxu1 %vm3216_vm0, %v3215_v1  ;;  %3021 = vmatpush3.bf16.msra.mxu1 %v1407_v30 }
 0x2f9   : > { %3032 = vmatprep.subr.bf16.mxu1 %v3215_v1 }
 0x3ba   : > { %v1091_v31 = vpop.f32.mrb[20].mxu1 }
 0x3bb   : > { %v3496_v32 = vadd.f32 %v1138_v56, %v1091_v31  ;;  %v2988_v33 = vpop.f32.mrb[21].mxu1 }
 0x3bc   : > { %v1094_v34 = vpop.f32.mrb[22].mxu1 }
 0x3bd   : > { %v3498_v35 = vadd.f32 %v1141_v60, %v1094_v34  ;;  %v2989_v36 = vpop.f32.mrb[23].mxu1 }
 0x3bf   : > { %v1250_v37 = vpop.f32.mrb[12].mxu0 }
 0x3c0   : > { %v3006_v38 = vpop.f32.mrb[13].mxu0 }
 0x3c1   : > { %v1253_v39 = vpop.f32.mrb[14].mxu0 }
 0x3c2   : > { %v1203_v40 = vpop.f32.mrb[24].mxu1  ;;  %v3007_v41 = vpop.f32.mrb[15].mxu0 }
 0x3c3   : > { %v1251_v42 = vadd.f32 %v1250_v37, %v1203_v40  ;;  %v3000_v43 = vpop.f32.mrb[25].mxu1  ;;  %v2791_v40 = vld [vmem:[%s3809_s6 + $0x9] ss:$0 sm:$0xff] }
 0x3c4   : > { %v1206_v44 = vpop.f32.mrb[26].mxu1 }
 0x3c5   : > { %v1254_v45 = vadd.f32 %v1253_v39, %v1206_v44  ;;  %v3001_v46 = vpop.f32.mrb[27].mxu1 }
 0x3ca   : > { %v1300_v48 = vpop.f32.mrb[28].mxu1 }
 0x3cb   : > { %v1307_v49 = vadd.f32 %v1300_v48, %v1251_v42  ;;  %v3012_v50 = vpop.f32.mrb[29].mxu1  ;;  %v2792_v48 = vld [vmem:[%s3809_s6 + $0xa] ss:$0 sm:$0xff] }
 0x3cc   : > { %v1303_v51 = vpop.f32.mrb[30].mxu1 }
 0x3cd   : > { %v1315_v52 = vadd.f32 %v2784_v47, %v1307_v49  ;;  %v1308_v53 = vadd.f32 %v1303_v51, %v1254_v45  ;;  %v3013_v54 = vpop.f32.mrb[31].mxu1  ;;  %v2793_v51 = vld [vmem:[%s3809_s6 + $0xb] ss:$0 sm:$0xff] }
 0x3cf   : > { %v1317_v56 = vmax.f32 %v1315_v52, 0.0  ;;  %v1316_v57 = vadd.f32 %v2784_v47, %v1308_v53 }
 0x3d1   : > { %v1325_v59 = vmul.f32 %v2785_v55, %v1317_v56  ;;  %v1318_v60 = vmax.f32 %v1316_v57, 0.0  ;;  %v1626_v56 = vpop.permute.xlu0 %1625  ;;  %v637_v57 = vld [vmem:[%s3808_s5 + $0x30] sm:$0xf] }
 0x3d3   : > { %v1333_v61 = vadd.f32 %v2786_v58, %v1325_v59  ;;  %v1326_v62 = vmul.f32 %v2785_v55, %v1318_v60  ;;  %v1628_v60 = vpop.permute.xlu1 %1627 }
 0x3d5   : > { %v1391_v2 = vadd.f32 %v1386_v63, %v1333_v61  ;;  %v1334_v3 = vadd.f32 %v2786_v58, %v1326_v62 }
 0x3d7   : > { %v1395_v6 = vrot.slane %v1391_v2, 4  ;;  %v1335_v7 = vpack.c.bf16 %v1334_v3, %v1333_v61  ;;  %v1392_v8 = vadd.f32 %v1388_v4, %v1334_v3  ;;  %v639_v61 = vld [vmem:[%s3808_s5 + $0x38] sm:$0xf] }
 0x3d8   : > { %v1744_v5 = vsel %vm677_vm1, %v639_v61, 0 }
 0x3d9   : > { %v1396_v10 = vrot.slane %v1392_v8, 4  ;;  %v1402_v11 = vpack.c.bf16 %v1392_v8, %v1391_v2  ;;  %3017 = vmatmul.mubr.msk.bf16.vlgmr.msra.gmra.mrb[16].mxu0 %vm686_vm2, %v1335_v7  ;;  %v1400_v14 = vsel %vm677_vm1, 0.0, %v1395_v6  ;;  %v1694_v2 = vsel %vm677_vm1, %v637_v57, 0 }
 0x3da   : > { %3027 = vmatpush3.bf16.msra.mxu0 %v1454_v9  ;;  %3028 = vmatprep.mubr.msk.bf16.mxu0 %vm3216_vm0, %v3215_v1 }
 0x3db   : > { %3023 = vmatmul.mubr.msk.bf16.vlgmr.msra.gmra.mrb[32].mxu1 %vm686_vm2, %v1402_v11  ;;  %v1397_v13 = vsel %vm677_vm1, %v1395_v6, %v1396_v10  ;;  %v1498_v15 = vsel %vm677_vm1, %v1396_v10, 0.0  ;;  %3038 = vmatprep.subr.bf16.mxu0 %v3215_v1  ;;  %v671_v11 = vld [vmem:[%s3810_s7 + $0x10] sm:$0xf] }
 0x3dc   : > { %3033 = vmatpush3.bf16.msra.mxu1 %v1504_v12  ;;  %v1401_v18 = vpack.c.bf16 %v1397_v13, %v1400_v14  ;;  %3034 = vmatprep.mubr.msk.bf16.mxu1 %vm3216_vm0, %v3215_v1  ;;  %v1499_v19 = vpack.c.bf16 %v1498_v15, %v1397_v13  ;;  %v1820_v12 = vsel %vm677_vm1, %v671_v11, 0  ;;  %v641_v13 = vld [vmem:[%s3808_s5 + $0x40] sm:$0xf] }
 0x3dd   : > { %3044 = vmatprep.subr.bf16.mxu1 %v3215_v1  ;;  %v1887_v14 = vsel %vm677_vm1, %v641_v13, 0 }
 0x3e1   : > { %3029 = vmatmul.mubr.msk.bf16.vlgmr.msra.gmra.mrb[20].mxu0 %vm686_vm2, %v1401_v18 }
 0x3e2   : > { %3040 = vmatprep.mubr.msk.bf16.mxu0 %vm3216_vm0, %v3215_v1  ;;  %3039 = vmatpush3.bf16.msra.mxu0 %v1580_v21 }
 0x3e3   : > { %3035 = vmatmul.mubr.msk.bf16.vlgmr.msra.gmra.mrb[36].mxu1 %vm686_vm2, %v1499_v19  ;;  %3050 = vmatprep.subr.bf16.mxu0 %v3215_v1 }
 0x3e4   : > { %3046 = vmatprep.mubr.msk.bf16.mxu1 %vm3216_vm0, %v3215_v1  ;;  %3045 = vmatpush3.bf16.msra.mxu1 %v1647_v23 }
 0x3e5   : > { %3056 = vmatprep.subr.bf16.mxu1 %v3215_v1 }
 0x4ac   : > { %v1376_v24 = vpop.f32.mrb[16].mxu0 }
 0x4ad   : > { %v3545_v25 = vadd.f32 %v1376_v24, %v3496_v32  ;;  %v3018_v26 = vpop.f32.mrb[17].mxu0 }
 0x4ae   : > { %v1379_v27 = vpop.f32.mrb[18].mxu0  ;;  %v1443_v28 = vpop.f32.mrb[32].mxu1 }
 0x4af   : > { %v3548_v29 = vadd.f32 %v1379_v27, %v3498_v35  ;;  %v3019_v30 = vpop.f32.mrb[19].mxu0  ;;  %v3024_v31 = vpop.f32.mrb[33].mxu1 }
 0x4b0   : > { %v1446_v33 = vpop.f32.mrb[34].mxu1 }
 0x4b1   : > { %v3025_v34 = vpop.f32.mrb[35].mxu1 }
 0x4b2   : > { %v2798_v34 = vld [vmem:[%s3809_s6 + $0xc] ss:$0 sm:$0xff] }
 0x4b4   : > { %v1490_v36 = vpop.f32.mrb[20].mxu0 }
 0x4b5   : > { %v1491_v37 = vadd.f32 %v1490_v36, %v1443_v28  ;;  %v3030_v38 = vpop.f32.mrb[21].mxu0 }
 0x4b6   : > { %v1493_v39 = vpop.f32.mrb[22].mxu0  ;;  %v1540_v32 = vpop.f32.mrb[36].mxu1 }
 0x4b7   : > { %v1494_v41 = vadd.f32 %v1493_v39, %v1446_v33  ;;  %v1547_v42 = vadd.f32 %v1540_v32, %v1491_v37  ;;  %v3031_v43 = vpop.f32.mrb[23].mxu0  ;;  %v3036_v44 = vpop.f32.mrb[37].mxu1 }
 0x4b8   : > { %v1543_v45 = vpop.f32.mrb[38].mxu1 }
 0x4b9   : > { %v1555_v35 = vadd.f32 %v2791_v40, %v1547_v42  ;;  %v1548_v46 = vadd.f32 %v1543_v45, %v1494_v41  ;;  %v3037_v47 = vpop.f32.mrb[39].mxu1  ;;  %v2799_v42 = vld [vmem:[%s3809_s6 + $0xd] ss:$0 sm:$0xff]  ;;  %v2800_v45 = vld [vmem:[%s3809_s6 + $0xe] ss:$0 sm:$0xff] }
 0x4bb   : > { %v1557_v49 = vmax.f32 %v1555_v35, 0.0  ;;  %v1556_v50 = vadd.f32 %v2791_v40, %v1548_v46 }
 0x4bd   : > { %v1565_v52 = vmul.f32 %v2792_v48, %v1557_v49  ;;  %v1558_v53 = vmax.f32 %v1556_v50, 0.0  ;;  %v1866_v49 = vpop.permute.xlu0 %1865  ;;  %v640_v50 = vld [vmem:[%s3808_s5 + $0x3c] sm:$0xf] }
 0x4bf   : > { %v1573_v54 = vadd.f32 %v2793_v51, %v1565_v52  ;;  %v1566_v55 = vmul.f32 %v2792_v48, %v1558_v53  ;;  %v1868_v53 = vpop.permute.xlu1 %1867 }
 0x4c1   : > { %v1631_v58 = vadd.f32 %v1626_v56, %v1573_v54  ;;  %v1574_v59 = vadd.f32 %v2793_v51, %v1566_v55 }
 0x4c3   : > { %v1635_v62 = vrot.slane %v1631_v58, 4  ;;  %v1575_v63 = vpack.c.bf16 %v1574_v59, %v1573_v54  ;;  %v1632_v0 = vadd.f32 %v1628_v60, %v1574_v59  ;;  %v642_v54 = vld [vmem:[%s3808_s5 + $0x44] sm:$0xf] }
 0x4c4   : > { %v1984_v61 = vsel %vm677_vm1, %v642_v54, 0 }
 0x4c5   : > { %v1636_v3 = vrot.slane %v1632_v0, 4  ;;  %v1642_v4 = vpack.c.bf16 %v1632_v0, %v1631_v58  ;;  %3041 = vmatmul.mubr.msk.bf16.vlgmr.msra.gmra.mrb[24].mxu0 %vm686_vm2, %v1575_v63  ;;  %v1640_v7 = vsel %vm677_vm1, 0.0, %v1635_v62  ;;  %v1934_v58 = vsel %vm677_vm1, %v640_v50, 0 }
 0x4c6   : > { %3051 = vmatpush3.bf16.msra.mxu0 %v1694_v2  ;;  %3052 = vmatprep.mubr.msk.bf16.mxu0 %vm3216_vm0, %v3215_v1 }
 0x4c7   : > { %3047 = vmatmul.mubr.msk.bf16.vlgmr.msra.gmra.mrb[40].mxu1 %vm686_vm2, %v1642_v4  ;;  %v1637_v6 = vsel %vm677_vm1, %v1635_v62, %v1636_v3  ;;  %v1738_v8 = vsel %vm677_vm1, %v1636_v3, 0.0  ;;  %3062 = vmatprep.subr.bf16.mxu0 %v3215_v1  ;;  %v672_v4 = vld [vmem:[%s3810_s7 + $0x14] sm:$0xf] }
 0x4c8   : > { %3057 = vmatpush3.bf16.msra.mxu1 %v1744_v5  ;;  %v1641_v9 = vpack.c.bf16 %v1637_v6, %v1640_v7  ;;  %3058 = vmatprep.mubr.msk.bf16.mxu1 %vm3216_vm0, %v3215_v1  ;;  %v1739_v10 = vpack.c.bf16 %v1738_v8, %v1637_v6  ;;  %v2060_v5 = vsel %vm677_vm1, %v672_v4, 0  ;;  %v644_v6 = vld [vmem:[%s3808_s5 + $0x4c] sm:$0xf] }
 0x4c9   : > { %3068 = vmatprep.subr.bf16.mxu1 %v3215_v1  ;;  %v2127_v7 = vsel %vm677_vm1, %v644_v6, 0 }
 0x4cd   : > { %3053 = vmatmul.mubr.msk.bf16.vlgmr.msra.gmra.mrb[28].mxu0 %vm686_vm2, %v1641_v9 }
 0x4ce   : > { %3064 = vmatprep.mubr.msk.bf16.mxu0 %vm3216_vm0, %v3215_v1  ;;  %3063 = vmatpush3.bf16.msra.mxu0 %v1820_v12 }
 0x4cf   : > { %3059 = vmatmul.mubr.msk.bf16.vlgmr.msra.gmra.mrb[44].mxu1 %vm686_vm2, %v1739_v10  ;;  %3074 = vmatprep.subr.bf16.mxu0 %v3215_v1 }
 0x4d0   : > { %3070 = vmatprep.mubr.msk.bf16.mxu1 %vm3216_vm0, %v3215_v1  ;;  %3069 = vmatpush3.bf16.msra.mxu1 %v1887_v14 }
 0x4d1   : > { %3080 = vmatprep.subr.bf16.mxu1 %v3215_v1 }
 0x598   : > { %v1616_v15 = vpop.f32.mrb[24].mxu0 }
 0x599   : > { %v3595_v18 = vadd.f32 %v1616_v15, %v3545_v25  ;;  %v3042_v19 = vpop.f32.mrb[25].mxu0 }
 0x59a   : > { %v1619_v20 = vpop.f32.mrb[26].mxu0  ;;  %v1683_v21 = vpop.f32.mrb[40].mxu1 }
 0x59b   : > { %v3598_v22 = vadd.f32 %v1619_v20, %v3548_v29  ;;  %v3043_v23 = vpop.f32.mrb[27].mxu0  ;;  %v3048_v24 = vpop.f32.mrb[41].mxu1 }
 0x59c   : > { %v1686_v26 = vpop.f32.mrb[42].mxu1 }
 0x59d   : > { %v3049_v27 = vpop.f32.mrb[43].mxu1 }
 0x59e   : > { %v2805_v27 = vld [vmem:[%s3809_s6 + $0xf] ss:$0 sm:$0xff] }
 0x5a0   : > { %v1730_v28 = vpop.f32.mrb[28].mxu0 }
 0x5a1   : > { %v1731_v30 = vadd.f32 %v1730_v28, %v1683_v21  ;;  %v3054_v31 = vpop.f32.mrb[29].mxu0 }
 0x5a2   : > { %v1733_v33 = vpop.f32.mrb[30].mxu0  ;;  %v1780_v25 = vpop.f32.mrb[44].mxu1 }
 0x5a3   : > { %v1734_v36 = vadd.f32 %v1733_v33, %v1686_v26  ;;  %v1787_v37 = vadd.f32 %v1780_v25, %v1731_v30  ;;  %v3055_v38 = vpop.f32.mrb[31].mxu0  ;;  %v3060_v39 = vpop.f32.mrb[45].mxu1 }
 0x5a4   : > { %v1783_v40 = vpop.f32.mrb[46].mxu1 }
 0x5a5   : > { %v1795_v29 = vadd.f32 %v2798_v34, %v1787_v37  ;;  %v1788_v32 = vadd.f32 %v1783_v40, %v1734_v36  ;;  %v3061_v41 = vpop.f32.mrb[47].mxu1  ;;  %v2806_v37 = vld [vmem:[%s3809_s6 + $0x10] ss:$0 sm:$0xff]  ;;  %v2807_v40 = vld [vmem:[%s3809_s6 + $0x11] ss:$0 sm:$0xff] }
 0x5a7   : > { %v1797_v43 = vmax.f32 %v1795_v29, 0.0  ;;  %v1796_v44 = vadd.f32 %v2798_v34, %v1788_v32 }
 0x5a9   : > { %v1805_v35 = vmul.f32 %v2799_v42, %v1797_v43  ;;  %v1798_v46 = vmax.f32 %v1796_v44, 0.0  ;;  %v2106_v43 = vpop.permute.xlu0 %2105  ;;  %v643_v44 = vld [vmem:[%s3808_s5 + $0x48] sm:$0xf] }
 0x5ab   : > { %v1813_v47 = vadd.f32 %v2800_v45, %v1805_v35  ;;  %v1806_v48 = vmul.f32 %v2799_v42, %v1798_v46  ;;  %v2108_v46 = vpop.permute.xlu1 %2107 }
 0x5ad   : > { %v1871_v51 = vadd.f32 %v1866_v49, %v1813_v47  ;;  %v1814_v52 = vadd.f32 %v2800_v45, %v1806_v48 }
 0x5af   : > { %v1875_v55 = vrot.slane %v1871_v51, 4  ;;  %v1815_v56 = vpack.c.bf16 %v1814_v52, %v1813_v47  ;;  %v1872_v57 = vadd.f32 %v1868_v53, %v1814_v52  ;;  %v645_v47 = vld [vmem:[%s3808_s5 + $0x50] sm:$0xf] }
 0x5b0   : > { %v2224_v54 = vsel %vm677_vm1, %v645_v47, 0  ;;  %v3192_v47 = vld [vmem:[%s3812_s9 + $0x28] sm:$0xff]  }
 0x5b1   : > { %v1876_v59 = vrot.slane %v1872_v57, 4  ;;  %v1882_v60 = vpack.c.bf16 %v1872_v57, %v1871_v51  ;;  %3065 = vmatmul.mubr.msk.bf16.vlgmr.msra.gmra.mrb[32].mxu0 %vm686_vm2, %v1815_v56  ;;  %v1880_v63 = vsel %vm677_vm1, 0.0, %v1875_v55  ;;  %v2174_v51 = vsel %vm677_vm1, %v643_v44, 0  ;;  %v3188_v44 = vld [vmem:[%s3812_s9 + $0x8] sm:$0xff]  }
 0x5b2   : > { %3075 = vmatpush3.bf16.msra.mxu0 %v1934_v58  ;;  %3076 = vmatprep.mubr.msk.bf16.mxu0 %vm3216_vm0, %v3215_v1 }
 0x5b3   : > { %3071 = vmatmul.mubr.msk.bf16.vlgmr.msra.gmra.mrb[48].mxu1 %vm686_vm2, %v1882_v60  ;;  %v1877_v62 = vsel %vm677_vm1, %v1875_v55, %v1876_v59  ;;  %v1978_v0 = vsel %vm677_vm1, %v1876_v59, 0.0  ;;  %3086 = vmatprep.subr.bf16.mxu0 %v3215_v1  ;;  %v674_v60 = vld [vmem:[%s3810_s7 + $0x1c] sm:$0xf] }
 0x5b4   : > { %3081 = vmatpush3.bf16.msra.mxu1 %v1984_v61  ;;  %v1881_v2 = vpack.c.bf16 %v1877_v62, %v1880_v63  ;;  %3082 = vmatprep.mubr.msk.bf16.mxu1 %vm3216_vm0, %v3215_v1  ;;  %v1979_v3 = vpack.c.bf16 %v1978_v0, %v1877_v62  ;;  %v2352_v61 = vsel %vm677_vm1, %v674_v60, 0  ;;  %v2347_v62 = vpop.permute.xlu0 %2346  ;;  %v673_v63 = vld [vmem:[%s3810_s7 + $0x18] sm:$0xf] }
 0x5b5   : > { %3092 = vmatprep.subr.bf16.mxu1 %v3215_v1  ;;  %v2300_v0 = vsel %vm677_vm1, %v673_v63, 0 }
 0x5b9   : > { %3077 = vmatmul.mubr.msk.bf16.vlgmr.msra.gmra.mrb[36].mxu0 %vm686_vm2, %v1881_v2 }
 0x5ba   : > { %3088 = vmatprep.mubr.msk.bf16.mxu0 %vm3216_vm0, %v3215_v1  ;;  %3087 = vmatpush3.bf16.msra.mxu0 %v2060_v5 }
 0x5bb   : > { %3083 = vmatmul.mubr.msk.bf16.vlgmr.msra.gmra.mrb[52].mxu1 %vm686_vm2, %v1979_v3  ;;  %3098 = vmatprep.subr.bf16.mxu0 %v3215_v1 }
 0x5bc   : > { %3094 = vmatprep.mubr.msk.bf16.mxu1 %vm3216_vm0, %v3215_v1  ;;  %3093 = vmatpush3.bf16.msra.mxu1 %v2127_v7 }
 0x5bd   : > { %3104 = vmatprep.subr.bf16.mxu1 %v3215_v1 }
 0x684   : > { %v1856_v8 = vpop.f32.mrb[32].mxu0 }
 0x685   : > { %v3645_v9 = vadd.f32 %v1856_v8, %v3595_v18  ;;  %v3066_v10 = vpop.f32.mrb[33].mxu0 }
 0x686   : > { %v1859_v11 = vpop.f32.mrb[34].mxu0  ;;  %v1923_v12 = vpop.f32.mrb[48].mxu1 }
 0x687   : > { %v3648_v13 = vadd.f32 %v1859_v11, %v3598_v22  ;;  %v3067_v14 = vpop.f32.mrb[35].mxu0  ;;  %v3072_v15 = vpop.f32.mrb[49].mxu1 }
 0x688   : > { %v1926_v19 = vpop.f32.mrb[50].mxu1 }
 0x689   : > { %v3073_v20 = vpop.f32.mrb[51].mxu1 }
 0x68c   : > { %v1970_v21 = vpop.f32.mrb[36].mxu0 }
 0x68d   : > { %v1971_v23 = vadd.f32 %v1970_v21, %v1923_v12  ;;  %v3078_v24 = vpop.f32.mrb[37].mxu0  ;;  %v2812_v21 = vld [vmem:[%s3809_s6 + $0x12] ss:$0 sm:$0xff] }
 0x68e   : > { %v1973_v26 = vpop.f32.mrb[38].mxu0  ;;  %v2020_v18 = vpop.f32.mrb[52].mxu1 }
 0x68f   : > { %v1974_v28 = vadd.f32 %v1973_v26, %v1926_v19  ;;  %v2027_v30 = vadd.f32 %v2020_v18, %v1971_v23  ;;  %v3079_v31 = vpop.f32.mrb[39].mxu0  ;;  %v3084_v33 = vpop.f32.mrb[53].mxu1 }
 0x690   : > { %v2023_v34 = vpop.f32.mrb[54].mxu1  ;;  %v2813_v31 = vld [vmem:[%s3809_s6 + $0x13] ss:$0 sm:$0xff] }
 0x691   : > { %v2035_v22 = vadd.f32 %v2805_v27, %v2027_v30  ;;  %v2028_v25 = vadd.f32 %v2023_v34, %v1974_v28  ;;  %v3085_v36 = vpop.f32.mrb[55].mxu1 }
 0x692   : > { %v2814_v36 = vld [vmem:[%s3809_s6 + $0x14] ss:$0 sm:$0xff] }
 0x693   : > { %v2037_v38 = vmax.f32 %v2035_v22, 0.0  ;;  %v2036_v39 = vadd.f32 %v2805_v27, %v2028_v25 }
 0x695   : > { %v2045_v29 = vmul.f32 %v2806_v37, %v2037_v38  ;;  %v2038_v32 = vmax.f32 %v2036_v39, 0.0 }
 0x697   : > { %v2053_v41 = vadd.f32 %v2807_v40, %v2045_v29  ;;  %v2046_v42 = vmul.f32 %v2806_v37, %v2038_v32 }
 0x699   : > { %v2111_v45 = vadd.f32 %v2106_v43, %v2053_v41  ;;  %v2054_v35 = vadd.f32 %v2807_v40, %v2046_v42  ;;  %v3187_v43 = vld [vmem:[%s3812_s9] sm:$0xff]  }
 0x69b   : > { %v2115_v48 = vrot.slane %v2111_v45, 4  ;;  %v2055_v49 = vpack.c.bf16 %v2054_v35, %v2053_v41  ;;  %v2112_v50 = vadd.f32 %v2108_v46, %v2054_v35  ;;  %v3190_v35 = vld [vmem:[%s3812_s9 + $0x18] sm:$0xff]   ;;  %v3191_v46 = vld [vmem:[%s3812_s9 + $0x20] sm:$0xff]  }
 0x69d   : > { %v2116_v52 = vrot.slane %v2112_v50, 4  ;;  %v2122_v53 = vpack.c.bf16 %v2112_v50, %v2111_v45  ;;  %3089 = vmatmul.mubr.msk.bf16.vlgmr.msra.gmra.mrb[40].mxu0 %vm686_vm2, %v2055_v49  ;;  %v2120_v56 = vsel %vm677_vm1, 0.0, %v2115_v48  ;;  %v3189_v45 = vld [vmem:[%s3812_s9 + $0x10] sm:$0xff]   ;;  %v3194_v49 = vld [vmem:[%s3812_s9 + $0x38] sm:$0xff]   ;;  %v3195_v50 = vld [vmem:[%s3814_s11] sm:$0xff]  }
 0x69e   : > { %3099 = vmatpush3.bf16.msra.mxu0 %v2174_v51  ;;  %3100 = vmatprep.mubr.msk.bf16.mxu0 %vm3216_vm0, %v3215_v1  ;;  %v3196_v51 = vld [vmem:[%s3814_s11 + $0x8] sm:$0xff]  }
 0x69f   : > { %3095 = vmatmul.mubr.msk.bf16.vlgmr.msra.gmra.mrb[56].mxu1 %vm686_vm2, %v2122_v53  ;;  %v2117_v55 = vsel %vm677_vm1, %v2115_v48, %v2116_v52  ;;  %v2218_v57 = vsel %vm677_vm1, %v2116_v52, 0.0  ;;  %3110 = vmatprep.subr.bf16.mxu0 %v3215_v1  ;;  %v3193_v48 = vld [vmem:[%s3812_s9 + $0x30] sm:$0xff]   ;;  %v3198_v53 = vld [vmem:[%s3814_s11 + $0x18] sm:$0xff]  }
 0x6a0   : > { %3105 = vmatpush3.bf16.msra.mxu1 %v2224_v54  ;;  %v2121_v58 = vpack.c.bf16 %v2117_v55, %v2120_v56  ;;  %3106 = vmatprep.mubr.msk.bf16.mxu1 %vm3216_vm0, %v3215_v1  ;;  %v2219_v59 = vpack.c.bf16 %v2218_v57, %v2117_v55  ;;  %v3197_v52 = vld [vmem:[%s3814_s11 + $0x10] sm:$0xff]   ;;  %v3199_v54 = vld [vmem:[%s3814_s11 + $0x20] sm:$0xff]   ;;  %v3200_v55 = vld [vmem:[%s3814_s11 + $0x28] sm:$0xff]  }
 0x6a1   : > { %3116 = vmatprep.subr.bf16.mxu1 %v3215_v1 }
 0x6a5   : > { %3101 = vmatmul.mubr.msk.bf16.vlgmr.msra.gmra.mrb[44].mxu0 %vm686_vm2, %v2121_v58 }
 0x6a6   : > { %3112 = vmatprep.mubr.msk.bf16.mxu0 %vm3216_vm0, %v3215_v1  ;;  %3111 = vmatpush3.bf16.msra.mxu0 %v2300_v0 }
 0x6a7   : > { %3107 = vmatmul.mubr.msk.bf16.vlgmr.msra.gmra.mrb[60].mxu1 %vm686_vm2, %v2219_v59  ;;  %3122 = vmatprep.subr.bf16.mxu0 %v3215_v1  ;;  %v2817_v59 = vld [vmem:[%s3811_s8] ss:$0 sm:$0xff] }
 0x6a8   : > { %3117 = vmatpush3.bf16.msra.mxu1 %v2352_v61  ;;  %3118 = vmatprep.mubr.msk.bf16.mxu1 %vm3216_vm0, %v3215_v1 }
 0x6a9   : > { %3142 = vmatprep.subr.bf16.mxu1 %v3215_v1 }
 0x6af   : > { %3119 = vmatmul.mubr.msk.bf16.vlgmr.msra.gmra.mrb[64].mxu1 %vm686_vm2, %v2347_v62 }
 0x6b0   : > { %3158 = vmatprep.mubr.msk.bf16.mxu1 %vm3216_vm0, %v3215_v1  ;;  %3143 = vmatpush3.bf16.msra.mxu1 %v3195_v50 }
 0x6b1   : > { %3144 = vmatprep.subr.bf16.mxu1 %v3215_v1 }
 0x6b4   : > { %3145 = vmatpush3.bf16.msra.mxu1 %v3196_v51 }
 0x6b5   : > { %3146 = vmatprep.subr.bf16.mxu1 %v3215_v1 }
 0x6b8   : > { %3147 = vmatpush3.bf16.msra.mxu1 %v3197_v52 }
 0x6b9   : > { %3148 = vmatprep.subr.bf16.mxu1 %v3215_v1 }
 0x6bc   : > { %3149 = vmatpush3.bf16.msra.mxu1 %v3198_v53 }
 0x6bd   : > { %3150 = vmatprep.subr.bf16.mxu1 %v3215_v1 }
 0x6c0   : > { %3151 = vmatpush3.bf16.msra.mxu1 %v3199_v54 }
 0x6c1   : > { %3152 = vmatprep.subr.bf16.mxu1 %v3215_v1 }
 0x6c4   : > { %3153 = vmatpush3.bf16.msra.mxu1 %v3200_v55 }
 0x6c5   : > { %3154 = vmatprep.subr.bf16.mxu1 %v3215_v1 }
 0x770   : > { %v2096_v2 = vpop.f32.mrb[40].mxu0 }
 0x771   : > { %v3698_v3 = vadd.f32 %v2096_v2, %v3645_v9  ;;  %v3090_v4 = vpop.f32.mrb[41].mxu0 }
 0x772   : > { %v2099_v5 = vpop.f32.mrb[42].mxu0  ;;  %v2163_v6 = vpop.f32.mrb[56].mxu1  ;;  %v2818_v4 = vld [vmem:[%s3811_s8 + $0x1] ss:$0 sm:$0xff] }
 0x773   : > { %v3701_v7 = vadd.f32 %v2099_v5, %v3648_v13  ;;  %v3091_v8 = vpop.f32.mrb[43].mxu0  ;;  %v3096_v10 = vpop.f32.mrb[57].mxu1 }
 0x774   : > { %v2166_v11 = vpop.f32.mrb[58].mxu1  ;;  %v2819_v10 = vld [vmem:[%s3811_s8 + $0x2] ss:$0 sm:$0xff] }
 0x775   : > { %v3097_v12 = vpop.f32.mrb[59].mxu1 }
 0x778   : > { %v2210_v14 = vpop.f32.mrb[44].mxu0 }
 0x779   : > { %v2211_v15 = vadd.f32 %v2210_v14, %v2163_v6  ;;  %v3102_v19 = vpop.f32.mrb[45].mxu0 }
 0x77a   : > { %v2213_v20 = vpop.f32.mrb[46].mxu0  ;;  %v2260_v9 = vpop.f32.mrb[60].mxu1 }
 0x77b   : > { %v2214_v23 = vadd.f32 %v2213_v20, %v2166_v11  ;;  %v2267_v24 = vadd.f32 %v2260_v9, %v2211_v15  ;;  %v3103_v26 = vpop.f32.mrb[47].mxu0  ;;  %v3108_v27 = vpop.f32.mrb[61].mxu1 }
 0x77c   : > { %v2263_v18 = vpop.f32.mrb[62].mxu1  ;;  %v3201_v27 = vld [vmem:[%s3814_s11 + $0x30] sm:$0xff]  }
 0x77d   : > { %v2275_v13 = vadd.f32 %v2812_v21, %v2267_v24  ;;  %v2268_v28 = vadd.f32 %v2263_v18, %v2214_v23  ;;  %v3109_v30 = vpop.f32.mrb[63].mxu1  ;;  %3155 = vmatpush3.bf16.msra.mxu1 %v3201_v27  ;;  %v3202_v18 = vld [vmem:[%s3814_s11 + $0x38] sm:$0xff]  }
 0x77e   : > { %3156 = vmatprep.subr.bf16.mxu1 %v3215_v1 }
 0x77f   : > { %v2277_v33 = vmax.f32 %v2275_v13, 0.0  ;;  %v2276_v34 = vadd.f32 %v2812_v21, %v2268_v28  ;;  %v2452_v13 = vld [vmem:[%s3813_s10] sm:$0x1] }
 0x781   : > { %v2285_v22 = vmul.f32 %v2813_v31, %v2277_v33  ;;  %v2278_v25 = vmax.f32 %v2276_v34, 0.0  ;;  %3157 = vmatpush3.bf16.msra.mxu1 %v3202_v18 }
 0x782   : > { %v2388_v37 = vpop.f32.mrb[64].mxu1 }
 0x783   : > { %v2286_v38 = vmul.f32 %v2813_v31, %v2278_v25  ;;  %v3120_v39 = vpop.f32.mrb[65].mxu1  ;;  %v2293_v29 = vadd.f32 %v2814_v36, %v2285_v22 }
 0x784   : > { %v2391_v40 = vpop.f32.mrb[66].mxu1 }
 0x785   : > { %v2294_v32 = vadd.f32 %v2814_v36, %v2286_v38  ;;  %v3121_v41 = vpop.f32.mrb[67].mxu1 }
 0x787   : > { %v2295_v42 = vpack.c.bf16 %v2294_v32, %v2293_v29 }
 0x789   : > { %3113 = vmatmul.mubr.msk.bf16.vlgmr.msra.gmra.mrb[48].mxu0 %vm686_vm2, %v2295_v42  ;;  %v2654_v42 = vlaneseq }
 0x78a   : > { %3138 = vmatprep.mubr.msk.bf16.mxu0 %vm3216_vm0, %v3215_v1  ;;  %3123 = vmatpush3.bf16.msra.mxu0 %v3187_v43 }
 0x78b   : > { %3124 = vmatprep.subr.bf16.mxu0 %v3215_v1  ;;  %v2655_v43 = vshrl.u32 %v2654_v42, 7 }
 0x78e   : > { %3125 = vmatpush3.bf16.msra.mxu0 %v3188_v44  ;;  %v2656_v44 = vsub.s32 0, %v2655_v43 }
 0x78f   : > { %3126 = vmatprep.subr.bf16.mxu0 %v3215_v1 }
 0x792   : > { %3127 = vmatpush3.bf16.msra.mxu0 %v3189_v45 }
 0x793   : > { %3128 = vmatprep.subr.bf16.mxu0 %v3215_v1 }
 0x796   : > { %3129 = vmatpush3.bf16.msra.mxu0 %v3190_v35 }
 0x797   : > { %3130 = vmatprep.subr.bf16.mxu0 %v3215_v1 }
 0x79a   : > { %3131 = vmatpush3.bf16.msra.mxu0 %v3191_v46 }
 0x79b   : > { %3132 = vmatprep.subr.bf16.mxu0 %v3215_v1 }
 0x79e   : > { %3133 = vmatpush3.bf16.msra.mxu0 %v3192_v47 }
 0x79f   : > { %3134 = vmatprep.subr.bf16.mxu0 %v3215_v1 }
 0x7a2   : > { %3135 = vmatpush3.bf16.msra.mxu0 %v3193_v48 }
 0x7a3   : > { %3136 = vmatprep.subr.bf16.mxu0 %v3215_v1  ;;  %v2559_v1 = vld [vmem:[%s3815_s12] sm:$0x1] }
 0x7a6   : > { %3137 = vmatpush3.bf16.msra.mxu0 %v3194_v49 }
 0x85c   : > { %v2336_v56 = vpop.f32.mrb[48].mxu0 }
 0x85d   : > { %v2343_v57 = vadd.f32 %v2336_v56, %v3698_v3  ;;  %v3114_v58 = vpop.f32.mrb[49].mxu0 }
 0x85e   : > { %v2339_v60 = vpop.f32.mrb[50].mxu0 }
 0x85f   : > { %v2395_v61 = vadd.f32 %v2388_v37, %v2343_v57  ;;  %v2344_v62 = vadd.f32 %v2339_v60, %v3701_v7  ;;  %v3115_v63 = vpop.f32.mrb[51].mxu0 }
 0x861   : > { %v2406_v0 = vadd.f32 %v2817_v59, %v2395_v61  ;;  %v2396_v2 = vadd.f32 %v2391_v40, %v2344_v62 }
 0x863   : > { %v2408_v5 = vmax.f32 %v2406_v0, 0.0  ;;  %v2407_v6 = vadd.f32 %v2817_v59, %v2396_v2 }
 0x865   : > { %v2416_v8 = vmul.f32 %v2818_v4, %v2408_v5  ;;  %v2409_v3 = vmax.f32 %v2407_v6, 0.0 }
 0x867   : > { %v2417_v11 = vmul.f32 %v2818_v4, %v2409_v3  ;;  %v2424_v12 = vadd.f32 %v2819_v10, %v2416_v8 }
 0x869   : > { %v2425_v14 = vadd.f32 %v2819_v10, %v2417_v11 }
 0x86b   : > { %v2426_v15 = vadd.f32 %v2425_v14, %v2424_v12 }
 0x86d   : > { %v2427_v7 = vrot.slane %v2426_v15, 4 }
 0x86f   : > { %v2428_v19 = vadd.f32 %v2427_v7, %v2426_v15 }
 0x871   : > { %v2429_v20 = vrot.slane %v2428_v19, 2 }
 0x873   : > { %v2430_v21 = vadd.f32 %v2429_v20, %v2428_v19 }
 0x875   : > { %v2431_v9 = vrot.slane %v2430_v21, 1 }
 0x877   : > { %v2432_v23 = vadd.f32 %v2431_v9, %v2430_v21 }
 0x879   : > { %v2434_v24 = vmul.f32 0.0625, %v2432_v23 }
 0x87b   : > { %v2451_v26 = vpack.c.bf16 %v2434_v24, %v2434_v24 }
 0x87d   : > { %3139 = vmatmul.mubr.bf16.vlgmr.msra.gmra.mrb[52].mxu0 %v2451_v26 }
 0x950   : > { %v2535_v28 = vpop.f32.mrb[52].mxu0 }
 0x951   : > { %v2536_v30 = vadd.f32 %v2535_v28, %v2452_v13  ;;  %v3140_v31 = vpop.f32.mrb[53].mxu0 }
 0x952   : > { %v2538_v33 = vpop.f32.mrb[54].mxu0 }
 0x953   : > { %v2541_v34 = vmax.f32 %v2536_v30, 0.0  ;;  %v3141_v22 = vpop.f32.mrb[55].mxu0 }
 0x955   : > { %v2558_v25 = vpack.c.bf16 %v2541_v34, %v2541_v34 }
 0x957   : > { %3159 = vmatmul.mubr.bf16.vlgmr.msra.gmra.mrb[68].mxu1 %v2558_v25 }
 0xa2a   : > { %v2642_v36 = vpop.f32.mrb[68].mxu1 }
 0xa2b   : > { %v2643_v37 = vadd.f32 %v2642_v36, %v2559_v1  ;;  %v3160_v38 = vpop.f32.mrb[69].mxu1 }
 0xa2c   : > { %v2645_v39 = vpop.f32.mrb[70].mxu1 }
 0xa2d   : > { %v2836_v40 = vmul.f32 -1.442695, %v2643_v37  ;;  %v3161_v29 = vpop.f32.mrb[71].mxu1 }
 0xa2f   : > { %3203 = vpow2.f32 %v2836_v40 }
 0xa39   : > { %v3204_v32 = vpop.eup %3203 }
 0xa3a   : > { %v2651_v41 = vadd.f32 1.0, %v3204_v32 }
 0xa3c   : > { %3205 = vrcp.f32 %v2651_v41 }
 0xa46   : > { %v3206_v45 = vpop.eup %3205 }
 0xa47   : > { %v2657_v35 = vrot.slane %v3206_v45, %v2656_v44 }
 0xa49   : > { %v2658_v46 = vmul.f32 %v2657_v35, %v2424_v12  ;;  %v2659_v47 = vmul.f32 %v2657_v35, %v2425_v14 }
 0xa4b   : > { %v2660_v48 = vadd.f32 %v2658_v46, %v3349_v16  ;;  %v2661_v49 = vadd.f32 %v2659_v47, %v3351_v17 }
 0xa4d   : > { %2662 = vst [vmem:[%s480_s29] sm:$0xff] %v2660_v48  ;;  %2663 = vst [vmem:[%s480_s29 + $0x8] sm:$0xff] %v2661_v49 }
 0xa4e PF: > { %s23_s25 = sadd.s32 1, %s3213_s25  }
 0xa4f   : > { %p20_p4 = scmp.ge.s32.totalorder %s23_s25, 4  }
 0xa51   :  { %22 = sbr.rel (!%p20_p4) target bundleno = 1 (0x1), region = 108 }

// kernel: forward.7
= control target key start
LH: loop header
LB: loop body
LE: loop exit
PB: predicated region body
PF: predicated region fallthrough
CT: control target
= control target key end

     0   :  { %s3253_s21 = smov 0   ;;  %s3765_s0 = inlined_call_operand.vmem [shape: f32[2,16,128], index: 0, kind: input, shape index: {}]   ;;  %s3766_s1 = inlined_call_operand.vmem [shape: f32[2,16,128], index: 1, kind: input, shape index: {}]   ;;  %s3767_s2 = inlined_call_operand.vmem [shape: bf16[128,128], index: 2, kind: input, shape index: {}]   ;;  %s3768_s3 = inlined_call_operand.vmem [shape: f32[3,1,128], index: 3, kind: input, shape index: {}]   ;;  %s3769_s4 = inlined_call_operand.vmem [shape: bf16[7,3,8,8], index: 4, kind: input, shape index: {}]   ;;  %s3770_s5 = inlined_call_operand.vmem [shape: f32[7,3,1,8], index: 5, kind: input, shape index: {}]   ;;  %s3771_s6 = inlined_call_operand.vmem [shape: bf16[8,8,128], index: 6, kind: input, shape index: {}]   ;;  %s3772_s7 = inlined_call_operand.vmem [shape: f32[3,1,128], index: 7, kind: input, shape index: {}]   ;;  %s3773_s8 = inlined_call_operand.vmem [shape: bf16[128,128], index: 8, kind: input, shape index: {}]   ;;  %s3774_s9 = inlined_call_operand.vmem [shape: f32[1,128], index: 9, kind: input, shape index: {}]   ;;  %s3775_s10 = inlined_call_operand.vmem [shape: bf16[128,128], index: 10, kind: input, shape index: {}]   ;;  %s3776_s11 = inlined_call_operand.vmem [shape: f32[1,128], index: 11, kind: input, shape index: {}]   ;;  %s3777_s12 = inlined_call_operand.vmem [shape: f32[2,16,128], index: 12, kind: output, shape index: {}]  }
   0x1 LB: > { %s2710_s22 = sadd.s32 4294967295, %s3177_s21   ;;  %p2714_p0 = scmp.ge.s32.totalorder %s3177_s21, 1  ;;  %s3177_s21 = sphi %s3253_s21, %s22_s21  }
   0x2   : > { %p372_p1 = scmp.lt.s32.totalorder %s3177_s21, 3 }
   0x4   : > { %p373_p2 = pnand %p2714_p0, %p372_p1 }
   0x5   : > { %v3143_v0 = vld [vmem:[%s3767_s2] sm:$0xff] (!%p373_p2)   ;;  %v3179_v1 = vmov (!%p373_p2), 0.0   ;;  %v3144_v2 = vld [vmem:[%s3767_s2 + $0x8] sm:$0xff] (!%p373_p2)   ;;  %vm3180_vm0 = vmmov (!%p373_p2), 0   ;;  %p419_p3 = scmp.lt.s32.totalorder (!%p373_p2), %s2710_s22, 1  ;;  %v3145_v3 = vld [vmem:[%s3767_s2 + $0x10] sm:$0xff] (!%p373_p2)  }
   0x6   : > { %376 = sbr.rel (%p373_p2) target bundleno = 2638 (0xa4e), region = 68  ;;  %2892 = vmatprep.subr.bf16.mxu0 (!%p373_p2), %v3179_v1  ;;  %2912 = vmatprep.subr.bf16.mxu1 (!%p373_p2), %v3179_v1  ;;  %v3146_v4 = vld [vmem:[%s3767_s2 + $0x18] sm:$0xff] (!%p373_p2)   ;;  %v3147_v5 = vld [vmem:[%s3767_s2 + $0x20] sm:$0xff] (!%p373_p2)   ;;  %v3148_v6 = vld [vmem:[%s3767_s2 + $0x28] sm:$0xff] (!%p373_p2)   ;;  %vm639_vm1 = vcmask (!%p373_p2), 1043456   ;;  %vm635_vm2 = vcmask (!%p373_p2), 64512  }
   0x7   : > { %2893 = vmatpush3.bf16.msra.mxu0 (!%p373_p2), %v3143_v0  ;;  %2908 = vmatprep.mubr.msk.bf16.mxu0 (!%p373_p2), %vm3180_vm0, %v3179_v1  ;;  %v3149_v7 = vld [vmem:[%s3767_s2 + $0x30] sm:$0xff] (!%p373_p2)   ;;  %v3150_v14 = vld [vmem:[%s3767_s2 + $0x38] sm:$0xff] (!%p373_p2)   ;;  %v575_v16 = vld [vmem:[%s3769_s4 + $0x4] sm:$0xf] (!%p373_p2)  ;;  %vm626_vm3 = vcmask (!%p373_p2), 1042432   ;;  %vm731_vm4 = vcmask (!%p373_p2), 1044480  }
   0x8   : > { %2894 = vmatprep.subr.bf16.mxu0 (!%p373_p2), %v3179_v1  ;;  %2914 = vmatprep.mubr.msk.bf16.mxu1 (!%p373_p2), %vm3180_vm0, %v3179_v1  ;;  %v641_v17 = vsel (!%p373_p2), %vm639_vm1, %v575_v16, 0  ;;  %v2721_v18 = vld [vmem:[%s3768_s3] ss:$0 sm:$0xff] (!%p373_p2)  ;;  %v2730_v22 = vld [vmem:[%s3768_s3 + $0x1] ss:$0 sm:$0xff] (!%p373_p2)  ;;  %s3183_s25 = smov (!%p373_p2), 104  }
   0x9   : > { %2913 = vmatpush3.bf16.msra.mxu1 (!%p373_p2), %v641_v17  ;;  %v2731_v27 = vld [vmem:[%s3768_s3 + $0x2] ss:$0 sm:$0xff] (!%p373_p2)  ;;  %v576_v46 = vld [vmem:[%s3769_s4 + $0x8] sm:$0xf] (!%p373_p2)  ;;  %s3184_s28 = smov (!%p373_p2), 96   ;;  %s3185_s29 = smov (!%p373_p2), 88  }
   0xa   : > { %2918 = vmatprep.subr.bf16.mxu1 (!%p373_p2), %v3179_v1  ;;  %v574_v33 = vld [vmem:[%s3769_s4] sm:$0xf] (!%p373_p2)  ;;  %v743_v47 = vsel (!%p373_p2), %vm639_vm1, %v576_v46, 0  ;;  %s3186_s30 = smov (!%p373_p2), 80   ;;  %s3187_s14 = smov (!%p373_p2), 72  }
   0xb   : > { %2895 = vmatpush3.bf16.msra.mxu0 (!%p373_p2), %v3144_v2  ;;  %v688_v39 = vsel (!%p373_p2), %vm639_vm1, %v574_v33, 0  ;;  %v578_v48 = vld [vmem:[%s3769_s4 + $0x10] sm:$0xf] (!%p373_p2)  ;;  %v579_v50 = vld [vmem:[%s3769_s4 + $0x14] sm:$0xf] (!%p373_p2) }
   0xc   : > { %2896 = vmatprep.subr.bf16.mxu0 (!%p373_p2), %v3179_v1  ;;  %v837_v49 = vsel (!%p373_p2), %vm639_vm1, %v578_v48, 0  ;;  %v938_v51 = vsel (!%p373_p2), %vm639_vm1, %v579_v50, 0  ;;  %v2735_v62 = vld [vmem:[%s3770_s5] ss:$0 sm:$0xff] (!%p373_p2) }
   0xd   : > { %s3779_s22 = smov (!%p419_p3, %s2710_s22), 1 }
   0xe   : > { %s3281_s13 = sshll.u32 %s3779_s22, 4  ;;  %s3182_s22 = smov 120  }
   0xf   : > { %2897 = vmatpush3.bf16.msra.mxu0 %v3145_v3  ;;  %s423_s20 = scalar_lea.vmem %s3765_s0, %s3281_s13  ;;  %s428_s24 = scalar_lea.vmem %s3766_s1, %s3281_s13 }
  0x10   : > { %2898 = vmatprep.subr.bf16.mxu0 %v3179_v1  ;;  %v435_v8 = vld [vmem:[%s423_s20] sm:$0xff]  ;;  %v436_v9 = vld [vmem:[%s423_s20 + $0x8] sm:$0xff]  ;;  %s3181_s20 = smov 112   ;;  %s433_s26 = scalar_lea.vmem %s3777_s12, %s3281_s13 }
  0x11   : > { %v437_v10 = vld [vmem:[%s428_s24] sm:$0xff]  ;;  %v438_v11 = vld [vmem:[%s428_s24 + $0x8] sm:$0xff] }
  0x12   : > { %v3304_v12 = vadd.f32 %v437_v10, %v435_v8  ;;  %v3306_v13 = vadd.f32 %v438_v11, %v436_v9  ;;  %v2737_v11 = vld [vmem:[%s3770_s5 + $0x2] ss:$0 sm:$0xff] }
  0x13   : > { %2899 = vmatpush3.bf16.msra.mxu0 %v3146_v4 }
  0x14   : > { %2900 = vmatprep.subr.bf16.mxu0 %v3179_v1  ;;  %v460_v15 = vpack.c.bf16 %v3306_v13, %v3304_v12 }
  0x17   : > { %2901 = vmatpush3.bf16.msra.mxu0 %v3147_v5 }
  0x18   : > { %2902 = vmatprep.subr.bf16.mxu0 %v3179_v1 }
  0x1b   : > { %2903 = vmatpush3.bf16.msra.mxu0 %v3148_v6 }
  0x1c   : > { %2904 = vmatprep.subr.bf16.mxu0 %v3179_v1 }
  0x1f   : > { %2905 = vmatpush3.bf16.msra.mxu0 %v3149_v7  ;;  %v2736_v7 = vld [vmem:[%s3770_s5 + $0x1] ss:$0 sm:$0xff] }
  0x20   : > { %2906 = vmatprep.subr.bf16.mxu0 %v3179_v1 }
  0x23   : > { %2907 = vmatpush3.bf16.msra.mxu0 %v3150_v14 }
  0x24   : > { %2942 = vmatprep.subr.bf16.mxu0 %v3179_v1 }
  0x26   : > { %2909 = vmatmul.mubr.bf16.vlgmr.msra.gmra.mrb[0].mxu0 %v460_v15 }
  0x27   : > { %2944 = vmatprep.mubr.msk.bf16.mxu0 %vm3180_vm0, %v3179_v1  ;;  %2943 = vmatpush3.bf16.msra.mxu0 %v938_v51 }
  0x28   : > { %2954 = vmatprep.subr.bf16.mxu0 %v3179_v1 }
  0xf9   : > { %v549_v19 = vpop.f32.mrb[0].mxu0 }
  0xfa   : > { %v550_v20 = vadd.f32 %v2721_v18, %v549_v19  ;;  %v2910_v21 = vpop.f32.mrb[1].mxu0 }
  0xfb   : > { %v552_v23 = vpop.f32.mrb[2].mxu0 }
  0xfc   : > { %v556_v24 = vmax.f32 %v550_v20, 0.0  ;;  %v553_v25 = vadd.f32 %v2721_v18, %v552_v23  ;;  %v2911_v26 = vpop.f32.mrb[3].mxu0  ;;  %v577_v20 = vld [vmem:[%s3769_s4 + $0xc] sm:$0xf] }
  0xfe   : > { %v564_v28 = vmul.f32 %v2730_v22, %v556_v24  ;;  %v557_v29 = vmax.f32 %v553_v25, 0.0  ;;  %v884_v25 = vsel %vm639_vm1, %v577_v20, 0 }
 0x100   : > { %v572_v30 = vadd.f32 %v2731_v27, %v564_v28  ;;  %v565_v31 = vmul.f32 %v2730_v22, %v557_v29 }
 0x102   : > { %v573_v32 = vadd.f32 %v2731_v27, %v565_v31  ;;  %1104 = vrot.lane.b32.xlu1 %v572_v30, %s3181_s20  ;;  %815 = vrot.lane.b32.xlu0 %v572_v30, %s3182_s22  ;;  %v627_v34 = vrot.slane %v572_v30, 5  ;;  %v732_v37 = vrot.slane %v572_v30, 3 }
 0x104   : > { %v634_v35 = vpack.c.bf16 %v573_v32, %v572_v30  ;;  %v628_v36 = vrot.slane %v573_v32, 5  ;;  %v733_v38 = vrot.slane %v573_v32, 3  ;;  %v632_v41 = vsel %vm626_vm3, 0.0, %v627_v34 }
 0x106   : > { %1106 = vrot.lane.b32.xlu1 %v573_v32, %s3181_s20  ;;  %817 = vrot.lane.b32.xlu0 %v573_v32, %s3182_s22  ;;  %v629_v40 = vsel %vm626_vm3, %v627_v34, %v628_v36  ;;  %v734_v42 = vsel %vm731_vm4, %v732_v37, %v733_v38  ;;  %v737_v43 = vsel %vm731_vm4, %v733_v38, 0.0  ;;  %v617_v38 = vld [vmem:[%s3771_s6 + $0x4] sm:$0xf] }
 0x107   : > { %2915 = vmatmul.mubr.msk.bf16.vlgmr.msra.gmra.mrb[0].mxu1 %vm635_vm2, %v634_v35  ;;  %v633_v44 = vpack.c.bf16 %v629_v40, %v632_v41  ;;  %v738_v45 = vpack.c.bf16 %v737_v43, %v734_v42  ;;  %v580_v40 = vld [vmem:[%s3769_s4 + $0x18] sm:$0xf] }
 0x108   : > { %2919 = vmatpush3.bf16.msra.mxu1 %v688_v39  ;;  %2920 = vmatprep.mubr.msk.bf16.mxu1 %vm3180_vm0, %v3179_v1  ;;  %v1014_v39 = vsel %vm639_vm1, %v617_v38, 0  ;;  %v1173_v41 = vsel %vm639_vm1, %v580_v40, 0 }
 0x109   : > { %2924 = vmatprep.subr.bf16.mxu1 %v3179_v1 }
 0x10a   : > { %1350 = vrot.lane.b32.xlu1 %v573_v32, %s3183_s25  ;;  %1348 = vrot.lane.b32.xlu0 %v572_v30, %s3183_s25 }
 0x10e   : > { %1594 = vrot.lane.b32.xlu1 %v573_v32, %s3184_s28  ;;  %1592 = vrot.lane.b32.xlu0 %v572_v30, %s3184_s28 }
 0x10f   : > { %2921 = vmatmul.mubr.msk.bf16.vlgmr.msra.gmra.mrb[4].mxu1 %vm635_vm2, %v633_v44 }
 0x110   : > { %2925 = vmatpush3.bf16.msra.mxu1 %v743_v47  ;;  %2926 = vmatprep.mubr.msk.bf16.mxu1 %vm3180_vm0, %v3179_v1 }
 0x111   : > { %2930 = vmatprep.subr.bf16.mxu1 %v3179_v1 }
 0x112   : > { %1838 = vrot.lane.b32.xlu1 %v573_v32, %s3185_s29  ;;  %1836 = vrot.lane.b32.xlu0 %v572_v30, %s3185_s29 }
 0x116   : > { %2082 = vrot.lane.b32.xlu1 %v573_v32, %s3186_s30  ;;  %2080 = vrot.lane.b32.xlu0 %v572_v30, %s3186_s30  ;;  %v616_v30 = vld [vmem:[%s3771_s6] sm:$0xf] }
 0x117   : > { %2927 = vmatmul.mubr.msk.bf16.vlgmr.msra.gmra.mrb[8].mxu1 %vm635_vm2, %v738_v45  ;;  %v1061_v37 = vsel %vm639_vm1, %v616_v30, 0 }
 0x118   : > { %2932 = vmatprep.mubr.msk.bf16.mxu1 %vm3180_vm0, %v3179_v1  ;;  %2931 = vmatpush3.bf16.msra.mxu1 %v837_v49 }
 0x119   : > { %2936 = vmatprep.subr.bf16.mxu1 %v3179_v1 }
 0x11a   : > { %2325 = vrot.lane.b32.xlu0 %v634_v35, %s3187_s14 }
 0x174   : > { %v816_v10 = vpop.permute.xlu0 %815 }
 0x178   : > { %v818_v21 = vpop.permute.xlu0 %817 }
 0x1da   : > { %v677_v52 = vpop.f32.mrb[0].mxu1 }
 0x1db   : > { %v2916_v53 = vpop.f32.mrb[1].mxu1 }
 0x1dc   : > { %v680_v54 = vpop.f32.mrb[2].mxu1  ;;  %v2741_v53 = vld [vmem:[%s3770_s5 + $0x3] ss:$0 sm:$0xff] }
 0x1dd   : > { %v2917_v55 = vpop.f32.mrb[3].mxu1 }
 0x1e2   : > { %v724_v56 = vpop.f32.mrb[4].mxu1 }
 0x1e3   : > { %v725_v57 = vadd.f32 %v724_v56, %v677_v52  ;;  %v2922_v58 = vpop.f32.mrb[5].mxu1 }
 0x1e4   : > { %v727_v59 = vpop.f32.mrb[6].mxu1 }
 0x1e5   : > { %v728_v60 = vadd.f32 %v727_v59, %v680_v54  ;;  %v2923_v61 = vpop.f32.mrb[7].mxu1 }
 0x1ea   : > { %v779_v63 = vpop.f32.mrb[8].mxu1 }
 0x1eb   : > { %v786_v0 = vadd.f32 %v779_v63, %v725_v57  ;;  %v2928_v2 = vpop.f32.mrb[9].mxu1  ;;  %v2742_v63 = vld [vmem:[%s3770_s5 + $0x4] ss:$0 sm:$0xff] }
 0x1ec   : > { %v782_v3 = vpop.f32.mrb[10].mxu1 }
 0x1ed   : > { %v794_v4 = vadd.f32 %v2735_v62, %v786_v0  ;;  %v787_v5 = vadd.f32 %v782_v3, %v728_v60  ;;  %v2929_v6 = vpop.f32.mrb[11].mxu1 }
 0x1ef   : > { %v796_v8 = vmax.f32 %v794_v4, 0.0  ;;  %v795_v9 = vadd.f32 %v2735_v62, %v787_v5  ;;  %v1105_v4 = vpop.permute.xlu1 %1104  ;;  %v2743_v5 = vld [vmem:[%s3770_s5 + $0x5] ss:$0 sm:$0xff] }
 0x1f1   : > { %v804_v14 = vmul.f32 %v2736_v7, %v796_v8  ;;  %v797_v15 = vmax.f32 %v795_v9, 0.0 }
 0x1f3   : > { %v812_v16 = vadd.f32 %v2737_v11, %v804_v14  ;;  %v805_v17 = vmul.f32 %v2736_v7, %v797_v15  ;;  %v1107_v15 = vpop.permute.xlu1 %1106 }
 0x1f5   : > { %v821_v18 = vadd.f32 %v816_v10, %v812_v16  ;;  %v813_v19 = vadd.f32 %v2737_v11, %v805_v17  ;;  %v581_v10 = vld [vmem:[%s3769_s4 + $0x1c] sm:$0xf] }
 0x1f7   : > { %v825_v22 = vrot.slane %v821_v18, 5  ;;  %v814_v23 = vpack.c.bf16 %v813_v19, %v812_v16  ;;  %v822_v24 = vadd.f32 %v818_v21, %v813_v19  ;;  %v927_v26 = vrot.slane %v821_v18, 3 }
 0x1f9   : > { %v826_v27 = vrot.slane %v822_v24, 5  ;;  %v928_v28 = vrot.slane %v822_v24, 3  ;;  %v832_v29 = vpack.c.bf16 %v822_v24, %v821_v18  ;;  %v830_v34 = vsel %vm626_vm3, 0.0, %v825_v22 }
 0x1fa   : > { %v1126_v18 = vsel %vm639_vm1, %v581_v10, 0  ;;  %v1351_v10 = vpop.permute.xlu1 %1350 }
 0x1fb   : > { %2933 = vmatmul.mubr.msk.bf16.vlgmr.msra.gmra.mrb[12].mxu1 %vm635_vm2, %v832_v29  ;;  %v929_v31 = vsel %vm731_vm4, %v927_v26, %v928_v28  ;;  %v932_v32 = vsel %vm731_vm4, %v928_v28, 0.0  ;;  %v827_v33 = vsel %vm626_vm3, %v825_v22, %v826_v27  ;;  %v582_v29 = vld [vmem:[%s3769_s4 + $0x20] sm:$0xf] }
 0x1fc   : > { %2937 = vmatpush3.bf16.msra.mxu1 %v884_v25  ;;  %v933_v35 = vpack.c.bf16 %v932_v32, %v929_v31  ;;  %2938 = vmatprep.mubr.msk.bf16.mxu1 %vm3180_vm0, %v3179_v1  ;;  %v831_v36 = vpack.c.bf16 %v827_v33, %v830_v34  ;;  %v1227_v31 = vsel %vm639_vm1, %v582_v29, 0  ;;  %v618_v32 = vld [vmem:[%s3771_s6 + $0x8] sm:$0xf] }
 0x1fd   : > { %2948 = vmatprep.subr.bf16.mxu1 %v3179_v1  ;;  %v1303_v33 = vsel %vm639_vm1, %v618_v32, 0  ;;  %v584_v34 = vld [vmem:[%s3769_s4 + $0x28] sm:$0xf] }
 0x1fe   : > { %2945 = vmatmul.mubr.msk.bf16.vlgmr.msra.gmra.mrb[4].mxu0 %vm635_vm2, %v933_v35  ;;  %v1370_v35 = vsel %vm639_vm1, %v584_v34, 0 }
 0x1ff   : > { %2955 = vmatpush3.bf16.msra.mxu0 %v1061_v37  ;;  %2956 = vmatprep.mubr.msk.bf16.mxu0 %vm3180_vm0, %v3179_v1 }
 0x200   : > { %2966 = vmatprep.subr.bf16.mxu0 %v3179_v1 }
 0x203   : > { %2939 = vmatmul.mubr.msk.bf16.vlgmr.msra.gmra.mrb[16].mxu1 %vm635_vm2, %v831_v36 }
 0x204   : > { %2950 = vmatprep.mubr.msk.bf16.mxu1 %vm3180_vm0, %v3179_v1  ;;  %2949 = vmatpush3.bf16.msra.mxu1 %v1014_v39 }
 0x205   : > { %2960 = vmatprep.subr.bf16.mxu1 %v3179_v1 }
 0x206   : > { %2957 = vmatmul.mubr.msk.bf16.vlgmr.msra.gmra.mrb[8].mxu0 %vm635_vm2, %v814_v23 }
 0x207   : > { %2968 = vmatprep.mubr.msk.bf16.mxu0 %vm3180_vm0, %v3179_v1  ;;  %2967 = vmatpush3.bf16.msra.mxu0 %v1173_v41 }
 0x208   : > { %2978 = vmatprep.subr.bf16.mxu0 %v3179_v1 }
 0x2ce   : > { %v873_v42 = vpop.f32.mrb[12].mxu1 }
 0x2cf   : > { %v2934_v43 = vpop.f32.mrb[13].mxu1 }
 0x2d0   : > { %v876_v44 = vpop.f32.mrb[14].mxu1 }
 0x2d1   : > { %v2935_v45 = vpop.f32.mrb[15].mxu1  ;;  %v974_v46 = vpop.f32.mrb[4].mxu0 }
 0x2d2   : > { %v2946_v47 = vpop.f32.mrb[5].mxu0 }
 0x2d3   : > { %v977_v48 = vpop.f32.mrb[6].mxu0 }
 0x2d4   : > { %v2947_v49 = vpop.f32.mrb[7].mxu0 }
 0x2d6   : > { %v920_v50 = vpop.f32.mrb[16].mxu1 }
 0x2d7   : > { %v921_v51 = vadd.f32 %v920_v50, %v873_v42  ;;  %v2940_v52 = vpop.f32.mrb[17].mxu1 }
 0x2d8   : > { %v923_v54 = vpop.f32.mrb[18].mxu1  ;;  %v2749_v52 = vld [vmem:[%s3770_s5 + $0x6] ss:$0 sm:$0xff] }
 0x2d9   : > { %v981_v55 = vadd.f32 %v974_v46, %v921_v51  ;;  %v924_v56 = vadd.f32 %v923_v54, %v876_v44  ;;  %v2941_v57 = vpop.f32.mrb[19].mxu1  ;;  %v1097_v58 = vpop.f32.mrb[8].mxu0 }
 0x2da   : > { %v2958_v59 = vpop.f32.mrb[9].mxu0 }
 0x2db   : > { %v989_v60 = vadd.f32 %v2741_v53, %v981_v55  ;;  %v982_v61 = vadd.f32 %v977_v48, %v924_v56  ;;  %v1100_v62 = vpop.f32.mrb[10].mxu0 }
 0x2dc   : > { %v2959_v0 = vpop.f32.mrb[11].mxu0 }
 0x2dd   : > { %v991_v2 = vmax.f32 %v989_v60, 0.0  ;;  %v990_v3 = vadd.f32 %v2741_v53, %v982_v61  ;;  %v2750_v60 = vld [vmem:[%s3770_s5 + $0x7] ss:$0 sm:$0xff] }
 0x2df   : > { %v999_v6 = vmul.f32 %v2742_v63, %v991_v2  ;;  %v992_v7 = vmax.f32 %v990_v3, 0.0 }
 0x2e1   : > { %v1007_v8 = vadd.f32 %v2743_v5, %v999_v6  ;;  %v1000_v9 = vmul.f32 %v2742_v63, %v992_v7  ;;  %v2751_v63 = vld [vmem:[%s3770_s5 + $0x8] ss:$0 sm:$0xff]  ;;  %v583_v6 = vld [vmem:[%s3769_s4 + $0x24] sm:$0xf] }
 0x2e3   : > { %v1110_v11 = vadd.f32 %v1105_v4, %v1007_v8  ;;  %v1008_v14 = vadd.f32 %v2743_v5, %v1000_v9  ;;  %v1349_v5 = vpop.permute.xlu0 %1348  ;;  %v585_v9 = vld [vmem:[%s3769_s4 + $0x2c] sm:$0xf] }
 0x2e5   : > { %v1009_v16 = vpack.c.bf16 %v1008_v14, %v1007_v8  ;;  %v1111_v17 = vadd.f32 %v1107_v15, %v1008_v14  ;;  %v1114_v19 = vrot.slane %v1110_v11, 5  ;;  %v1216_v20 = vrot.slane %v1110_v11, 3 }
 0x2e7   : > { %v1115_v21 = vrot.slane %v1111_v17, 5  ;;  %2951 = vmatmul.mubr.msk.bf16.vlgmr.msra.gmra.mrb[20].mxu1 %vm635_vm2, %v1009_v16  ;;  %v1121_v22 = vpack.c.bf16 %v1111_v17, %v1110_v11  ;;  %v1217_v23 = vrot.slane %v1111_v17, 3  ;;  %v1119_v25 = vsel %vm626_vm3, 0.0, %v1114_v19 }
 0x2e8   : > { %2961 = vmatpush3.bf16.msra.mxu1 %v1126_v18  ;;  %2962 = vmatprep.mubr.msk.bf16.mxu1 %vm3180_vm0, %v3179_v1  ;;  %v1417_v16 = vsel %vm639_vm1, %v583_v6, 0  ;;  %v1471_v17 = vsel %vm639_vm1, %v585_v9, 0  ;;  %v1595_v6 = vpop.permute.xlu1 %1594 }
 0x2e9   : > { %v1116_v24 = vsel %vm626_vm3, %v1114_v19, %v1115_v21  ;;  %2972 = vmatprep.subr.bf16.mxu1 %v3179_v1  ;;  %v1218_v26 = vsel %vm731_vm4, %v1216_v20, %v1217_v23  ;;  %v1221_v27 = vsel %vm731_vm4, %v1217_v23, 0.0 }
 0x2ea   : > { %v1120_v28 = vpack.c.bf16 %v1116_v24, %v1119_v25  ;;  %v1222_v30 = vpack.c.bf16 %v1221_v27, %v1218_v26 }
 0x2ec   : > { %2969 = vmatmul.mubr.msk.bf16.vlgmr.msra.gmra.mrb[12].mxu0 %vm635_vm2, %v1120_v28  ;;  %v619_v28 = vld [vmem:[%s3771_s6 + $0xc] sm:$0xf] }
 0x2ed   : > { %2980 = vmatprep.mubr.msk.bf16.mxu0 %vm3180_vm0, %v3179_v1  ;;  %2979 = vmatpush3.bf16.msra.mxu0 %v1303_v33  ;;  %v1547_v29 = vsel %vm639_vm1, %v619_v28, 0 }
 0x2ee   : > { %2990 = vmatprep.subr.bf16.mxu0 %v3179_v1 }
 0x2ef   : > { %2963 = vmatmul.mubr.msk.bf16.vlgmr.msra.gmra.mrb[24].mxu1 %vm635_vm2, %v1121_v22 }
 0x2f0   : > { %2973 = vmatpush3.bf16.msra.mxu1 %v1227_v31  ;;  %2974 = vmatprep.mubr.msk.bf16.mxu1 %vm3180_vm0, %v3179_v1 }
 0x2f1   : > { %2984 = vmatprep.subr.bf16.mxu1 %v3179_v1 }
 0x2f7   : > { %2975 = vmatmul.mubr.msk.bf16.vlgmr.msra.gmra.mrb[28].mxu1 %vm635_vm2, %v1222_v30  ;;  %v587_v30 = vld [vmem:[%s3769_s4 + $0x34] sm:$0xf] }
 0x2f8   : > { %2986 = vmatprep.mubr.msk.bf16.mxu1 %vm3180_vm0, %v3179_v1  ;;  %2985 = vmatpush3.bf16.msra.mxu1 %v1370_v35  ;;  %v1614_v31 = vsel %vm639_vm1, %v587_v30, 0 }
 0x2f9   : > { %2996 = vmatprep.subr.bf16.mxu1 %v3179_v1 }
 0x3ba   : > { %v1050_v36 = vpop.f32.mrb[20].mxu1 }
 0x3bb   : > { %v3454_v37 = vadd.f32 %v1097_v58, %v1050_v36  ;;  %v2952_v38 = vpop.f32.mrb[21].mxu1 }
 0x3bc   : > { %v1053_v39 = vpop.f32.mrb[22].mxu1 }
 0x3bd   : > { %v3456_v40 = vadd.f32 %v1100_v62, %v1053_v39  ;;  %v2953_v41 = vpop.f32.mrb[23].mxu1 }
 0x3bf   : > { %v1209_v42 = vpop.f32.mrb[12].mxu0 }
 0x3c0   : > { %v2970_v43 = vpop.f32.mrb[13].mxu0 }
 0x3c1   : > { %v1212_v44 = vpop.f32.mrb[14].mxu0 }
 0x3c2   : > { %v1162_v45 = vpop.f32.mrb[24].mxu1  ;;  %v2971_v46 = vpop.f32.mrb[15].mxu0 }
 0x3c3   : > { %v1210_v47 = vadd.f32 %v1209_v42, %v1162_v45  ;;  %v2964_v48 = vpop.f32.mrb[25].mxu1 }
 0x3c4   : > { %v1165_v49 = vpop.f32.mrb[26].mxu1  ;;  %v2756_v48 = vld [vmem:[%s3770_s5 + $0x9] ss:$0 sm:$0xff] }
 0x3c5   : > { %v1213_v50 = vadd.f32 %v1212_v44, %v1165_v49  ;;  %v2965_v51 = vpop.f32.mrb[27].mxu1 }
 0x3ca   : > { %v1263_v53 = vpop.f32.mrb[28].mxu1 }
 0x3cb   : > { %v1270_v54 = vadd.f32 %v1263_v53, %v1210_v47  ;;  %v2976_v55 = vpop.f32.mrb[29].mxu1 }
 0x3cc   : > { %v1266_v56 = vpop.f32.mrb[30].mxu1 }
 0x3cd   : > { %v1278_v57 = vadd.f32 %v2749_v52, %v1270_v54  ;;  %v1271_v58 = vadd.f32 %v1266_v56, %v1213_v50  ;;  %v2977_v59 = vpop.f32.mrb[31].mxu1  ;;  %v2757_v56 = vld [vmem:[%s3770_s5 + $0xa] ss:$0 sm:$0xff] }
 0x3ce   : > { %v2758_v59 = vld [vmem:[%s3770_s5 + $0xb] ss:$0 sm:$0xff] }
 0x3cf   : > { %v1280_v61 = vmax.f32 %v1278_v57, 0.0  ;;  %v1279_v62 = vadd.f32 %v2749_v52, %v1271_v58 }
 0x3d1   : > { %v1288_v0 = vmul.f32 %v2750_v60, %v1280_v61  ;;  %v1281_v2 = vmax.f32 %v1279_v62, 0.0 }
 0x3d3   : > { %v1296_v3 = vadd.f32 %v2751_v63, %v1288_v0  ;;  %v1289_v4 = vmul.f32 %v2750_v60, %v1281_v2  ;;  %v1593_v0 = vpop.permute.xlu0 %1592  ;;  %v586_v2 = vld [vmem:[%s3769_s4 + $0x30] sm:$0xf] }
 0x3d5   : > { %v1354_v7 = vadd.f32 %v1349_v5, %v1296_v3  ;;  %v1297_v8 = vadd.f32 %v2751_v63, %v1289_v4  ;;  %v588_v5 = vld [vmem:[%s3769_s4 + $0x38] sm:$0xf] }
 0x3d7   : > { %v1358_v11 = vrot.slane %v1354_v7, 5  ;;  %v1298_v14 = vpack.c.bf16 %v1297_v8, %v1296_v3  ;;  %v1355_v15 = vadd.f32 %v1351_v10, %v1297_v8  ;;  %v1460_v18 = vrot.slane %v1354_v7, 3 }
 0x3d8   : > { %v1661_v10 = vsel %vm639_vm1, %v586_v2, 0  ;;  %v1839_v2 = vpop.permute.xlu1 %1838 }
 0x3d9   : > { %v1359_v19 = vrot.slane %v1355_v15, 5  ;;  %v1461_v20 = vrot.slane %v1355_v15, 3  ;;  %2981 = vmatmul.mubr.msk.bf16.vlgmr.msra.gmra.mrb[16].mxu0 %vm635_vm2, %v1298_v14  ;;  %v1365_v21 = vpack.c.bf16 %v1355_v15, %v1354_v7  ;;  %v1363_v23 = vsel %vm626_vm3, 0.0, %v1358_v11 }
 0x3da   : > { %2991 = vmatpush3.bf16.msra.mxu0 %v1417_v16  ;;  %2992 = vmatprep.mubr.msk.bf16.mxu0 %vm3180_vm0, %v3179_v1 }
 0x3db   : > { %2987 = vmatmul.mubr.msk.bf16.vlgmr.msra.gmra.mrb[32].mxu1 %vm635_vm2, %v1365_v21  ;;  %v1360_v22 = vsel %vm626_vm3, %v1358_v11, %v1359_v19  ;;  %v1462_v24 = vsel %vm731_vm4, %v1460_v18, %v1461_v20  ;;  %v1465_v25 = vsel %vm731_vm4, %v1461_v20, 0.0  ;;  %3002 = vmatprep.subr.bf16.mxu0 %v3179_v1  ;;  %v1715_v11 = vsel %vm639_vm1, %v588_v5, 0 }
 0x3dc   : > { %2997 = vmatpush3.bf16.msra.mxu1 %v1471_v17  ;;  %v1364_v26 = vpack.c.bf16 %v1360_v22, %v1363_v23  ;;  %2998 = vmatprep.mubr.msk.bf16.mxu1 %vm3180_vm0, %v3179_v1  ;;  %v1466_v27 = vpack.c.bf16 %v1465_v25, %v1462_v24  ;;  %v620_v24 = vld [vmem:[%s3771_s6 + $0x10] sm:$0xf] }
 0x3dd   : > { %3008 = vmatprep.subr.bf16.mxu1 %v3179_v1  ;;  %v1791_v25 = vsel %vm639_vm1, %v620_v24, 0 }
 0x3e1   : > { %2993 = vmatmul.mubr.msk.bf16.vlgmr.msra.gmra.mrb[20].mxu0 %vm635_vm2, %v1364_v26  ;;  %v590_v26 = vld [vmem:[%s3769_s4 + $0x40] sm:$0xf] }
 0x3e2   : > { %3004 = vmatprep.mubr.msk.bf16.mxu0 %vm3180_vm0, %v3179_v1  ;;  %3003 = vmatpush3.bf16.msra.mxu0 %v1547_v29 }
 0x3e3   : > { %2999 = vmatmul.mubr.msk.bf16.vlgmr.msra.gmra.mrb[36].mxu1 %vm635_vm2, %v1466_v27  ;;  %3014 = vmatprep.subr.bf16.mxu0 %v3179_v1  ;;  %v1858_v27 = vsel %vm639_vm1, %v590_v26, 0 }
 0x3e4   : > { %3010 = vmatprep.mubr.msk.bf16.mxu1 %vm3180_vm0, %v3179_v1  ;;  %3009 = vmatpush3.bf16.msra.mxu1 %v1614_v31 }
 0x3e5   : > { %3020 = vmatprep.subr.bf16.mxu1 %v3179_v1 }
 0x4ac   : > { %v1339_v32 = vpop.f32.mrb[16].mxu0 }
 0x4ad   : > { %v3504_v33 = vadd.f32 %v1339_v32, %v3454_v37  ;;  %v2982_v34 = vpop.f32.mrb[17].mxu0 }
 0x4ae   : > { %v1342_v35 = vpop.f32.mrb[18].mxu0  ;;  %v1406_v36 = vpop.f32.mrb[32].mxu1 }
 0x4af   : > { %v3507_v38 = vadd.f32 %v1342_v35, %v3456_v40  ;;  %v2983_v39 = vpop.f32.mrb[19].mxu0  ;;  %v2988_v41 = vpop.f32.mrb[33].mxu1 }
 0x4b0   : > { %v1409_v42 = vpop.f32.mrb[34].mxu1 }
 0x4b1   : > { %v2989_v43 = vpop.f32.mrb[35].mxu1 }
 0x4b4   : > { %v1453_v44 = vpop.f32.mrb[20].mxu0 }
 0x4b5   : > { %v1454_v45 = vadd.f32 %v1453_v44, %v1406_v36  ;;  %v2994_v46 = vpop.f32.mrb[21].mxu0 }
 0x4b6   : > { %v1456_v47 = vpop.f32.mrb[22].mxu0  ;;  %v1507_v37 = vpop.f32.mrb[36].mxu1  ;;  %v2763_v46 = vld [vmem:[%s3770_s5 + $0xc] ss:$0 sm:$0xff] }
 0x4b7   : > { %v1457_v49 = vadd.f32 %v1456_v47, %v1409_v42  ;;  %v1514_v50 = vadd.f32 %v1507_v37, %v1454_v45  ;;  %v2995_v51 = vpop.f32.mrb[23].mxu0  ;;  %v3000_v52 = vpop.f32.mrb[37].mxu1 }
 0x4b8   : > { %v1510_v53 = vpop.f32.mrb[38].mxu1 }
 0x4b9   : > { %v1522_v40 = vadd.f32 %v2756_v48, %v1514_v50  ;;  %v1515_v54 = vadd.f32 %v1510_v53, %v1457_v49  ;;  %v3001_v55 = vpop.f32.mrb[39].mxu1  ;;  %v2764_v53 = vld [vmem:[%s3770_s5 + $0xd] ss:$0 sm:$0xff] }
 0x4ba   : > { %v2765_v55 = vld [vmem:[%s3770_s5 + $0xe] ss:$0 sm:$0xff] }
 0x4bb   : > { %v1524_v57 = vmax.f32 %v1522_v40, 0.0  ;;  %v1523_v58 = vadd.f32 %v2756_v48, %v1515_v54 }
 0x4bd   : > { %v1532_v60 = vmul.f32 %v2757_v56, %v1524_v57  ;;  %v1525_v61 = vmax.f32 %v1523_v58, 0.0 }
 0x4bf   : > { %v1540_v62 = vadd.f32 %v2758_v59, %v1532_v60  ;;  %v1533_v63 = vmul.f32 %v2757_v56, %v1525_v61  ;;  %v1837_v60 = vpop.permute.xlu0 %1836  ;;  %v589_v61 = vld [vmem:[%s3769_s4 + $0x3c] sm:$0xf] }
 0x4c1   : > { %v1598_v3 = vadd.f32 %v1593_v0, %v1540_v62  ;;  %v1541_v4 = vadd.f32 %v2758_v59, %v1533_v63  ;;  %v591_v0 = vld [vmem:[%s3769_s4 + $0x44] sm:$0xf] }
 0x4c3   : > { %v1602_v7 = vrot.slane %v1598_v3, 5  ;;  %v1542_v8 = vpack.c.bf16 %v1541_v4, %v1540_v62  ;;  %v1599_v9 = vadd.f32 %v1595_v6, %v1541_v4  ;;  %v1704_v14 = vrot.slane %v1598_v3, 3 }
 0x4c4   : > { %v1905_v6 = vsel %vm639_vm1, %v589_v61, 0  ;;  %v2083_v61 = vpop.permute.xlu1 %2082 }
 0x4c5   : > { %v1603_v15 = vrot.slane %v1599_v9, 5  ;;  %v1705_v16 = vrot.slane %v1599_v9, 3  ;;  %3005 = vmatmul.mubr.msk.bf16.vlgmr.msra.gmra.mrb[24].mxu0 %vm635_vm2, %v1542_v8  ;;  %v1609_v17 = vpack.c.bf16 %v1599_v9, %v1598_v3  ;;  %v1607_v19 = vsel %vm626_vm3, 0.0, %v1602_v7 }
 0x4c6   : > { %3015 = vmatpush3.bf16.msra.mxu0 %v1661_v10  ;;  %3016 = vmatprep.mubr.msk.bf16.mxu0 %vm3180_vm0, %v3179_v1 }
 0x4c7   : > { %3011 = vmatmul.mubr.msk.bf16.vlgmr.msra.gmra.mrb[40].mxu1 %vm635_vm2, %v1609_v17  ;;  %v1604_v18 = vsel %vm626_vm3, %v1602_v7, %v1603_v15  ;;  %v1706_v20 = vsel %vm731_vm4, %v1704_v14, %v1705_v16  ;;  %v1709_v21 = vsel %vm731_vm4, %v1705_v16, 0.0  ;;  %3026 = vmatprep.subr.bf16.mxu0 %v3179_v1  ;;  %v1959_v7 = vsel %vm639_vm1, %v591_v0, 0 }
 0x4c8   : > { %3021 = vmatpush3.bf16.msra.mxu1 %v1715_v11  ;;  %v1608_v22 = vpack.c.bf16 %v1604_v18, %v1607_v19  ;;  %3022 = vmatprep.mubr.msk.bf16.mxu1 %vm3180_vm0, %v3179_v1  ;;  %v1710_v23 = vpack.c.bf16 %v1709_v21, %v1706_v20  ;;  %v621_v20 = vld [vmem:[%s3771_s6 + $0x14] sm:$0xf] }
 0x4c9   : > { %3032 = vmatprep.subr.bf16.mxu1 %v3179_v1  ;;  %v2035_v21 = vsel %vm639_vm1, %v621_v20, 0 }
 0x4cd   : > { %3017 = vmatmul.mubr.msk.bf16.vlgmr.msra.gmra.mrb[28].mxu0 %vm635_vm2, %v1608_v22  ;;  %v593_v22 = vld [vmem:[%s3769_s4 + $0x4c] sm:$0xf] }
 0x4ce   : > { %3028 = vmatprep.mubr.msk.bf16.mxu0 %vm3180_vm0, %v3179_v1  ;;  %3027 = vmatpush3.bf16.msra.mxu0 %v1791_v25 }
 0x4cf   : > { %3023 = vmatmul.mubr.msk.bf16.vlgmr.msra.gmra.mrb[44].mxu1 %vm635_vm2, %v1710_v23  ;;  %3038 = vmatprep.subr.bf16.mxu0 %v3179_v1  ;;  %v2102_v23 = vsel %vm639_vm1, %v593_v22, 0 }
 0x4d0   : > { %3034 = vmatprep.mubr.msk.bf16.mxu1 %vm3180_vm0, %v3179_v1  ;;  %3033 = vmatpush3.bf16.msra.mxu1 %v1858_v27 }
 0x4d1   : > { %3044 = vmatprep.subr.bf16.mxu1 %v3179_v1 }
 0x598   : > { %v1583_v28 = vpop.f32.mrb[24].mxu0 }
 0x599   : > { %v3555_v29 = vadd.f32 %v1583_v28, %v3504_v33  ;;  %v3006_v30 = vpop.f32.mrb[25].mxu0 }
 0x59a   : > { %v1586_v31 = vpop.f32.mrb[26].mxu0  ;;  %v1650_v32 = vpop.f32.mrb[40].mxu1 }
 0x59b   : > { %v3558_v34 = vadd.f32 %v1586_v31, %v3507_v38  ;;  %v3007_v35 = vpop.f32.mrb[27].mxu0  ;;  %v3012_v36 = vpop.f32.mrb[41].mxu1 }
 0x59c   : > { %v1653_v39 = vpop.f32.mrb[42].mxu1 }
 0x59d   : > { %v3013_v41 = vpop.f32.mrb[43].mxu1 }
 0x5a0   : > { %v1697_v42 = vpop.f32.mrb[28].mxu0 }
 0x5a1   : > { %v1698_v43 = vadd.f32 %v1697_v42, %v1650_v32  ;;  %v3018_v44 = vpop.f32.mrb[29].mxu0 }
 0x5a2   : > { %v1700_v45 = vpop.f32.mrb[30].mxu0  ;;  %v1751_v33 = vpop.f32.mrb[44].mxu1  ;;  %v2770_v44 = vld [vmem:[%s3770_s5 + $0xf] ss:$0 sm:$0xff] }
 0x5a3   : > { %v1701_v47 = vadd.f32 %v1700_v45, %v1653_v39  ;;  %v1758_v48 = vadd.f32 %v1751_v33, %v1698_v43  ;;  %v3019_v37 = vpop.f32.mrb[31].mxu0  ;;  %v3024_v49 = vpop.f32.mrb[45].mxu1 }
 0x5a4   : > { %v1754_v50 = vpop.f32.mrb[46].mxu1 }
 0x5a5   : > { %v1766_v38 = vadd.f32 %v2763_v46, %v1758_v48  ;;  %v1759_v51 = vadd.f32 %v1754_v50, %v1701_v47  ;;  %v3025_v52 = vpop.f32.mrb[47].mxu1  ;;  %v2771_v50 = vld [vmem:[%s3770_s5 + $0x10] ss:$0 sm:$0xff] }
 0x5a6   : > { %v2772_v52 = vld [vmem:[%s3770_s5 + $0x11] ss:$0 sm:$0xff] }
 0x5a7   : > { %v1768_v40 = vmax.f32 %v1766_v38, 0.0  ;;  %v1767_v54 = vadd.f32 %v2763_v46, %v1759_v51 }
 0x5a9   : > { %v1776_v56 = vmul.f32 %v2764_v53, %v1768_v40  ;;  %v1769_v57 = vmax.f32 %v1767_v54, 0.0 }
 0x5ab   : > { %v1784_v58 = vadd.f32 %v2765_v55, %v1776_v56  ;;  %v1777_v59 = vmul.f32 %v2764_v53, %v1769_v57  ;;  %v2081_v56 = vpop.permute.xlu0 %2080  ;;  %v592_v57 = vld [vmem:[%s3769_s4 + $0x48] sm:$0xf] }
 0x5ad   : > { %v1842_v62 = vadd.f32 %v1837_v60, %v1784_v58  ;;  %v1785_v63 = vadd.f32 %v2765_v55, %v1777_v59  ;;  %v594_v60 = vld [vmem:[%s3769_s4 + $0x50] sm:$0xf] }
 0x5af   : > { %v1846_v3 = vrot.slane %v1842_v62, 5  ;;  %v1786_v4 = vpack.c.bf16 %v1785_v63, %v1784_v58  ;;  %v1843_v5 = vadd.f32 %v1839_v2, %v1785_v63  ;;  %v1948_v8 = vrot.slane %v1842_v62, 3 }
 0x5b0   : > { %v2149_v2 = vsel %vm639_vm1, %v592_v57, 0 }
 0x5b1   : > { %v1847_v9 = vrot.slane %v1843_v5, 5  ;;  %v1949_v10 = vrot.slane %v1843_v5, 3  ;;  %3029 = vmatmul.mubr.msk.bf16.vlgmr.msra.gmra.mrb[32].mxu0 %vm635_vm2, %v1786_v4  ;;  %v1853_v11 = vpack.c.bf16 %v1843_v5, %v1842_v62  ;;  %v1851_v15 = vsel %vm626_vm3, 0.0, %v1846_v3 }
 0x5b2   : > { %3039 = vmatpush3.bf16.msra.mxu0 %v1905_v6  ;;  %3040 = vmatprep.mubr.msk.bf16.mxu0 %vm3180_vm0, %v3179_v1 }
 0x5b3   : > { %3035 = vmatmul.mubr.msk.bf16.vlgmr.msra.gmra.mrb[48].mxu1 %vm635_vm2, %v1853_v11  ;;  %v1848_v14 = vsel %vm626_vm3, %v1846_v3, %v1847_v9  ;;  %v1950_v16 = vsel %vm731_vm4, %v1948_v8, %v1949_v10  ;;  %v1953_v17 = vsel %vm731_vm4, %v1949_v10, 0.0  ;;  %3050 = vmatprep.subr.bf16.mxu0 %v3179_v1  ;;  %v2203_v3 = vsel %vm639_vm1, %v594_v60, 0  ;;  %v3152_v60 = vld [vmem:[%s3773_s8 + $0x8] sm:$0xff]  }
 0x5b4   : > { %3045 = vmatpush3.bf16.msra.mxu1 %v1959_v7  ;;  %v1852_v18 = vpack.c.bf16 %v1848_v14, %v1851_v15  ;;  %3046 = vmatprep.mubr.msk.bf16.mxu1 %vm3180_vm0, %v3179_v1  ;;  %v1954_v19 = vpack.c.bf16 %v1953_v17, %v1950_v16  ;;  %v623_v16 = vld [vmem:[%s3771_s6 + $0x1c] sm:$0xf] }
 0x5b5   : > { %3056 = vmatprep.subr.bf16.mxu1 %v3179_v1  ;;  %v2331_v17 = vsel %vm639_vm1, %v623_v16, 0 }
 0x5b9   : > { %3041 = vmatmul.mubr.msk.bf16.vlgmr.msra.gmra.mrb[36].mxu0 %vm635_vm2, %v1852_v18  ;;  %v2326_v18 = vpop.permute.xlu0 %2325 }
 0x5ba   : > { %3052 = vmatprep.mubr.msk.bf16.mxu0 %vm3180_vm0, %v3179_v1  ;;  %3051 = vmatpush3.bf16.msra.mxu0 %v2035_v21 }
 0x5bb   : > { %3047 = vmatmul.mubr.msk.bf16.vlgmr.msra.gmra.mrb[52].mxu1 %vm635_vm2, %v1954_v19  ;;  %3062 = vmatprep.subr.bf16.mxu0 %v3179_v1  ;;  %v622_v19 = vld [vmem:[%s3771_s6 + $0x18] sm:$0xf] }
 0x5bc   : > { %3058 = vmatprep.mubr.msk.bf16.mxu1 %vm3180_vm0, %v3179_v1  ;;  %3057 = vmatpush3.bf16.msra.mxu1 %v2102_v23  ;;  %v2279_v20 = vsel %vm639_vm1, %v622_v19, 0 }
 0x5bd   : > { %3068 = vmatprep.subr.bf16.mxu1 %v3179_v1 }
 0x684   : > { %v1827_v24 = vpop.f32.mrb[32].mxu0 }
 0x685   : > { %v3606_v25 = vadd.f32 %v1827_v24, %v3555_v29  ;;  %v3030_v26 = vpop.f32.mrb[33].mxu0 }
 0x686   : > { %v1830_v27 = vpop.f32.mrb[34].mxu0  ;;  %v1894_v28 = vpop.f32.mrb[48].mxu1 }
 0x687   : > { %v3609_v30 = vadd.f32 %v1830_v27, %v3558_v34  ;;  %v3031_v31 = vpop.f32.mrb[35].mxu0  ;;  %v3036_v32 = vpop.f32.mrb[49].mxu1 }
 0x688   : > { %v1897_v35 = vpop.f32.mrb[50].mxu1 }
 0x689   : > { %v3037_v36 = vpop.f32.mrb[51].mxu1 }
 0x68c   : > { %v1941_v39 = vpop.f32.mrb[36].mxu0 }
 0x68d   : > { %v1942_v41 = vadd.f32 %v1941_v39, %v1894_v28  ;;  %v3042_v42 = vpop.f32.mrb[37].mxu0 }
 0x68e   : > { %v1944_v43 = vpop.f32.mrb[38].mxu0  ;;  %v1995_v29 = vpop.f32.mrb[52].mxu1 }
 0x68f   : > { %v1945_v45 = vadd.f32 %v1944_v43, %v1897_v35  ;;  %v2002_v46 = vadd.f32 %v1995_v29, %v1942_v41  ;;  %v3043_v33 = vpop.f32.mrb[39].mxu0  ;;  %v3048_v47 = vpop.f32.mrb[53].mxu1  ;;  %v2777_v43 = vld [vmem:[%s3770_s5 + $0x12] ss:$0 sm:$0xff] }
 0x690   : > { %v1998_v48 = vpop.f32.mrb[54].mxu1 }
 0x691   : > { %v2010_v34 = vadd.f32 %v2770_v44, %v2002_v46  ;;  %v2003_v37 = vadd.f32 %v1998_v48, %v1945_v45  ;;  %v3049_v49 = vpop.f32.mrb[55].mxu1 }
 0x693   : > { %v2012_v38 = vmax.f32 %v2010_v34, 0.0  ;;  %v2011_v51 = vadd.f32 %v2770_v44, %v2003_v37  ;;  %v2778_v34 = vld [vmem:[%s3770_s5 + $0x13] ss:$0 sm:$0xff] }
 0x695   : > { %v2020_v53 = vmul.f32 %v2771_v50, %v2012_v38  ;;  %v2013_v40 = vmax.f32 %v2011_v51, 0.0  ;;  %v2779_v51 = vld [vmem:[%s3770_s5 + $0x14] ss:$0 sm:$0xff] }
 0x697   : > { %v2028_v54 = vadd.f32 %v2772_v52, %v2020_v53  ;;  %v2021_v55 = vmul.f32 %v2771_v50, %v2013_v40 }
 0x699   : > { %v2086_v58 = vadd.f32 %v2081_v56, %v2028_v54  ;;  %v2029_v59 = vadd.f32 %v2772_v52, %v2021_v55 }
 0x69b   : > { %v2090_v62 = vrot.slane %v2086_v58, 5  ;;  %v2030_v63 = vpack.c.bf16 %v2029_v59, %v2028_v54  ;;  %v2087_v0 = vadd.f32 %v2083_v61, %v2029_v59  ;;  %v2192_v4 = vrot.slane %v2086_v58, 3  ;;  %v3151_v59 = vld [vmem:[%s3773_s8] sm:$0xff]   ;;  %v3153_v61 = vld [vmem:[%s3773_s8 + $0x10] sm:$0xff]  }
 0x69d   : > { %v2091_v5 = vrot.slane %v2087_v0, 5  ;;  %v2193_v6 = vrot.slane %v2087_v0, 3  ;;  %3053 = vmatmul.mubr.msk.bf16.vlgmr.msra.gmra.mrb[40].mxu0 %vm635_vm2, %v2030_v63  ;;  %v2097_v7 = vpack.c.bf16 %v2087_v0, %v2086_v58  ;;  %v2095_v9 = vsel %vm626_vm3, 0.0, %v2090_v62  ;;  %v3155_v63 = vld [vmem:[%s3773_s8 + $0x20] sm:$0xff]   ;;  %v3156_v0 = vld [vmem:[%s3773_s8 + $0x28] sm:$0xff]  }
 0x69e   : > { %3063 = vmatpush3.bf16.msra.mxu0 %v2149_v2  ;;  %3064 = vmatprep.mubr.msk.bf16.mxu0 %vm3180_vm0, %v3179_v1  ;;  %v3157_v2 = vld [vmem:[%s3773_s8 + $0x30] sm:$0xff]  }
 0x69f   : > { %3059 = vmatmul.mubr.msk.bf16.vlgmr.msra.gmra.mrb[56].mxu1 %vm635_vm2, %v2097_v7  ;;  %v2092_v8 = vsel %vm626_vm3, %v2090_v62, %v2091_v5  ;;  %v2194_v10 = vsel %vm731_vm4, %v2192_v4, %v2193_v6  ;;  %v2197_v11 = vsel %vm731_vm4, %v2193_v6, 0.0  ;;  %3074 = vmatprep.subr.bf16.mxu0 %v3179_v1  ;;  %v3154_v62 = vld [vmem:[%s3773_s8 + $0x18] sm:$0xff]   ;;  %v3159_v4 = vld [vmem:[%s3775_s10] sm:$0xff]   ;;  %v3160_v5 = vld [vmem:[%s3775_s10 + $0x8] sm:$0xff]  }
 0x6a0   : > { %3069 = vmatpush3.bf16.msra.mxu1 %v2203_v3  ;;  %v2096_v14 = vpack.c.bf16 %v2092_v8, %v2095_v9  ;;  %3070 = vmatprep.mubr.msk.bf16.mxu1 %vm3180_vm0, %v3179_v1  ;;  %v2198_v15 = vpack.c.bf16 %v2197_v11, %v2194_v10  ;;  %v3158_v3 = vld [vmem:[%s3773_s8 + $0x38] sm:$0xff]   ;;  %v3161_v6 = vld [vmem:[%s3775_s10 + $0x10] sm:$0xff]   ;;  %v3163_v8 = vld [vmem:[%s3775_s10 + $0x20] sm:$0xff]  }
 0x6a1   : > { %3080 = vmatprep.subr.bf16.mxu1 %v3179_v1  ;;  %v3162_v7 = vld [vmem:[%s3775_s10 + $0x18] sm:$0xff]   ;;  %v3164_v9 = vld [vmem:[%s3775_s10 + $0x28] sm:$0xff]  }
 0x6a5   : > { %3065 = vmatmul.mubr.msk.bf16.vlgmr.msra.gmra.mrb[44].mxu0 %vm635_vm2, %v2096_v14 }
 0x6a6   : > { %3076 = vmatprep.mubr.msk.bf16.mxu0 %vm3180_vm0, %v3179_v1  ;;  %3075 = vmatpush3.bf16.msra.mxu0 %v2279_v20 }
 0x6a7   : > { %3071 = vmatmul.mubr.msk.bf16.vlgmr.msra.gmra.mrb[60].mxu1 %vm635_vm2, %v2198_v15  ;;  %3086 = vmatprep.subr.bf16.mxu0 %v3179_v1  ;;  %v2782_v15 = vld [vmem:[%s3772_s7] ss:$0 sm:$0xff] }
 0x6a8   : > { %3081 = vmatpush3.bf16.msra.mxu1 %v2331_v17  ;;  %3082 = vmatprep.mubr.msk.bf16.mxu1 %vm3180_vm0, %v3179_v1 }
 0x6a9   : > { %3106 = vmatprep.subr.bf16.mxu1 %v3179_v1 }
 0x6af   : > { %3083 = vmatmul.mubr.msk.bf16.vlgmr.msra.gmra.mrb[64].mxu1 %vm635_vm2, %v2326_v18 }
 0x6b0   : > { %3122 = vmatprep.mubr.msk.bf16.mxu1 %vm3180_vm0, %v3179_v1  ;;  %3107 = vmatpush3.bf16.msra.mxu1 %v3159_v4 }
 0x6b1   : > { %3108 = vmatprep.subr.bf16.mxu1 %v3179_v1 }
 0x6b4   : > { %3109 = vmatpush3.bf16.msra.mxu1 %v3160_v5 }
 0x6b5   : > { %3110 = vmatprep.subr.bf16.mxu1 %v3179_v1 }
 0x6b8   : > { %3111 = vmatpush3.bf16.msra.mxu1 %v3161_v6 }
 0x6b9   : > { %3112 = vmatprep.subr.bf16.mxu1 %v3179_v1 }
 0x6bc   : > { %3113 = vmatpush3.bf16.msra.mxu1 %v3162_v7 }
 0x6bd   : > { %3114 = vmatprep.subr.bf16.mxu1 %v3179_v1 }
 0x6c0   : > { %3115 = vmatpush3.bf16.msra.mxu1 %v3163_v8 }
 0x6c1   : > { %3116 = vmatprep.subr.bf16.mxu1 %v3179_v1 }
 0x6c4   : > { %3117 = vmatpush3.bf16.msra.mxu1 %v3164_v9 }
 0x6c5   : > { %3118 = vmatprep.subr.bf16.mxu1 %v3179_v1 }
 0x770   : > { %v2071_v21 = vpop.f32.mrb[40].mxu0 }
 0x771   : > { %v3660_v22 = vadd.f32 %v2071_v21, %v3606_v25  ;;  %v3054_v23 = vpop.f32.mrb[41].mxu0 }
 0x772   : > { %v2074_v24 = vpop.f32.mrb[42].mxu0  ;;  %v2138_v26 = vpop.f32.mrb[56].mxu1  ;;  %v2783_v23 = vld [vmem:[%s3772_s7 + $0x1] ss:$0 sm:$0xff] }
 0x773   : > { %v3663_v27 = vadd.f32 %v2074_v24, %v3609_v30  ;;  %v3055_v28 = vpop.f32.mrb[43].mxu0  ;;  %v3060_v31 = vpop.f32.mrb[57].mxu1 }
 0x774   : > { %v2141_v32 = vpop.f32.mrb[58].mxu1  ;;  %v2784_v31 = vld [vmem:[%s3772_s7 + $0x2] ss:$0 sm:$0xff] }
 0x775   : > { %v3061_v35 = vpop.f32.mrb[59].mxu1 }
 0x778   : > { %v2185_v36 = vpop.f32.mrb[44].mxu0 }
 0x779   : > { %v2186_v39 = vadd.f32 %v2185_v36, %v2138_v26  ;;  %v3066_v41 = vpop.f32.mrb[45].mxu0 }
 0x77a   : > { %v2188_v42 = vpop.f32.mrb[46].mxu0  ;;  %v2239_v25 = vpop.f32.mrb[60].mxu1 }
 0x77b   : > { %v2189_v44 = vadd.f32 %v2188_v42, %v2141_v32  ;;  %v2246_v29 = vadd.f32 %v2239_v25, %v2186_v39  ;;  %v3067_v45 = vpop.f32.mrb[47].mxu0  ;;  %v3072_v46 = vpop.f32.mrb[61].mxu1 }
 0x77c   : > { %v2242_v33 = vpop.f32.mrb[62].mxu1  ;;  %v3165_v46 = vld [vmem:[%s3775_s10 + $0x30] sm:$0xff]  }
 0x77d   : > { %v2254_v30 = vadd.f32 %v2777_v43, %v2246_v29  ;;  %v2247_v47 = vadd.f32 %v2242_v33, %v2189_v44  ;;  %v3073_v48 = vpop.f32.mrb[63].mxu1  ;;  %3119 = vmatpush3.bf16.msra.mxu1 %v3165_v46  ;;  %v3166_v33 = vld [vmem:[%s3775_s10 + $0x38] sm:$0xff]  }
 0x77e   : > { %3120 = vmatprep.subr.bf16.mxu1 %v3179_v1 }
 0x77f   : > { %v2256_v37 = vmax.f32 %v2254_v30, 0.0  ;;  %v2255_v49 = vadd.f32 %v2777_v43, %v2247_v47  ;;  %v2431_v30 = vld [vmem:[%s3774_s9] sm:$0x1] }
 0x781   : > { %v2264_v50 = vmul.f32 %v2778_v34, %v2256_v37  ;;  %v2257_v38 = vmax.f32 %v2255_v49, 0.0  ;;  %3121 = vmatpush3.bf16.msra.mxu1 %v3166_v33 }
 0x782   : > { %v2367_v52 = vpop.f32.mrb[64].mxu1 }
 0x783   : > { %v2265_v53 = vmul.f32 %v2778_v34, %v2257_v38  ;;  %v3084_v40 = vpop.f32.mrb[65].mxu1  ;;  %v2272_v55 = vadd.f32 %v2779_v51, %v2264_v50 }
 0x784   : > { %v2370_v54 = vpop.f32.mrb[66].mxu1 }
 0x785   : > { %v2273_v56 = vadd.f32 %v2779_v51, %v2265_v53  ;;  %v3085_v57 = vpop.f32.mrb[67].mxu1 }
 0x787   : > { %v2274_v58 = vpack.c.bf16 %v2273_v56, %v2272_v55 }
 0x789   : > { %3077 = vmatmul.mubr.msk.bf16.vlgmr.msra.gmra.mrb[48].mxu0 %vm635_vm2, %v2274_v58  ;;  %v2633_v58 = vlaneseq }
 0x78a   : > { %3102 = vmatprep.mubr.msk.bf16.mxu0 %vm3180_vm0, %v3179_v1  ;;  %3087 = vmatpush3.bf16.msra.mxu0 %v3151_v59 }
 0x78b   : > { %3088 = vmatprep.subr.bf16.mxu0 %v3179_v1  ;;  %v2634_v59 = vshrl.u32 %v2633_v58, 7 }
 0x78e   : > { %3089 = vmatpush3.bf16.msra.mxu0 %v3152_v60  ;;  %v2635_v60 = vsub.s32 0, %v2634_v59 }
 0x78f   : > { %3090 = vmatprep.subr.bf16.mxu0 %v3179_v1 }
 0x792   : > { %3091 = vmatpush3.bf16.msra.mxu0 %v3153_v61 }
 0x793   : > { %3092 = vmatprep.subr.bf16.mxu0 %v3179_v1 }
 0x796   : > { %3093 = vmatpush3.bf16.msra.mxu0 %v3154_v62 }
 0x797   : > { %3094 = vmatprep.subr.bf16.mxu0 %v3179_v1 }
 0x79a   : > { %3095 = vmatpush3.bf16.msra.mxu0 %v3155_v63 }
 0x79b   : > { %3096 = vmatprep.subr.bf16.mxu0 %v3179_v1 }
 0x79e   : > { %3097 = vmatpush3.bf16.msra.mxu0 %v3156_v0 }
 0x79f   : > { %3098 = vmatprep.subr.bf16.mxu0 %v3179_v1 }
 0x7a2   : > { %3099 = vmatpush3.bf16.msra.mxu0 %v3157_v2 }
 0x7a3   : > { %3100 = vmatprep.subr.bf16.mxu0 %v3179_v1  ;;  %v2538_v1 = vld [vmem:[%s3776_s11] sm:$0x1] }
 0x7a6   : > { %3101 = vmatpush3.bf16.msra.mxu0 %v3158_v3 }
 0x85c   : > { %v2315_v10 = vpop.f32.mrb[48].mxu0 }
 0x85d   : > { %v2322_v11 = vadd.f32 %v2315_v10, %v3660_v22  ;;  %v3078_v14 = vpop.f32.mrb[49].mxu0 }
 0x85e   : > { %v2318_v16 = vpop.f32.mrb[50].mxu0 }
 0x85f   : > { %v2374_v17 = vadd.f32 %v2367_v52, %v2322_v11  ;;  %v2323_v18 = vadd.f32 %v2318_v16, %v3663_v27  ;;  %v3079_v19 = vpop.f32.mrb[51].mxu0 }
 0x861   : > { %v2385_v20 = vadd.f32 %v2782_v15, %v2374_v17  ;;  %v2375_v21 = vadd.f32 %v2370_v54, %v2323_v18 }
 0x863   : > { %v2387_v24 = vmax.f32 %v2385_v20, 0.0  ;;  %v2386_v26 = vadd.f32 %v2782_v15, %v2375_v21 }
 0x865   : > { %v2395_v28 = vmul.f32 %v2783_v23, %v2387_v24  ;;  %v2388_v22 = vmax.f32 %v2386_v26, 0.0 }
 0x867   : > { %v2396_v32 = vmul.f32 %v2783_v23, %v2388_v22  ;;  %v2403_v35 = vadd.f32 %v2784_v31, %v2395_v28 }
 0x869   : > { %v2404_v36 = vadd.f32 %v2784_v31, %v2396_v32 }
 0x86b   : > { %v2405_v39 = vadd.f32 %v2404_v36, %v2403_v35 }
 0x86d   : > { %v2406_v27 = vrot.slane %v2405_v39, 4 }
 0x86f   : > { %v2407_v41 = vadd.f32 %v2406_v27, %v2405_v39 }
 0x871   : > { %v2408_v42 = vrot.slane %v2407_v41, 2 }
 0x873   : > { %v2409_v43 = vadd.f32 %v2408_v42, %v2407_v41 }
 0x875   : > { %v2410_v25 = vrot.slane %v2409_v43, 1 }
 0x877   : > { %v2411_v44 = vadd.f32 %v2410_v25, %v2409_v43 }
 0x879   : > { %v2413_v29 = vmul.f32 0.0625, %v2411_v44 }
 0x87b   : > { %v2430_v45 = vpack.c.bf16 %v2413_v29, %v2413_v29 }
 0x87d   : > { %3103 = vmatmul.mubr.bf16.vlgmr.msra.gmra.mrb[52].mxu0 %v2430_v45 }
 0x950   : > { %v2514_v47 = vpop.f32.mrb[52].mxu0 }
 0x951   : > { %v2515_v48 = vadd.f32 %v2514_v47, %v2431_v30  ;;  %v3104_v34 = vpop.f32.mrb[53].mxu0 }
 0x952   : > { %v2517_v37 = vpop.f32.mrb[54].mxu0 }
 0x953   : > { %v2520_v49 = vmax.f32 %v2515_v48, 0.0  ;;  %v3105_v50 = vpop.f32.mrb[55].mxu0 }
 0x955   : > { %v2537_v38 = vpack.c.bf16 %v2520_v49, %v2520_v49 }
 0x957   : > { %3123 = vmatmul.mubr.bf16.vlgmr.msra.gmra.mrb[68].mxu1 %v2537_v38 }
 0xa2a   : > { %v2621_v51 = vpop.f32.mrb[68].mxu1 }
 0xa2b   : > { %v2622_v52 = vadd.f32 %v2621_v51, %v2538_v1  ;;  %v3124_v53 = vpop.f32.mrb[69].mxu1 }
 0xa2c   : > { %v2624_v40 = vpop.f32.mrb[70].mxu1 }
 0xa2d   : > { %v2801_v54 = vmul.f32 -1.442695, %v2622_v52  ;;  %v3125_v55 = vpop.f32.mrb[71].mxu1 }
 0xa2f   : > { %3167 = vpow2.f32 %v2801_v54 }
 0xa39   : > { %v3168_v56 = vpop.eup %3167 }
 0xa3a   : > { %v2630_v57 = vadd.f32 1.0, %v3168_v56 }
 0xa3c   : > { %3169 = vrcp.f32 %v2630_v57 }
 0xa46   : > { %v3170_v61 = vpop.eup %3169 }
 0xa47   : > { %v2636_v62 = vrot.slane %v3170_v61, %v2635_v60 }
 0xa49   : > { %v2637_v63 = vmul.f32 %v2636_v62, %v2403_v35  ;;  %v2638_v0 = vmul.f32 %v2636_v62, %v2404_v36 }
 0xa4b   : > { %v2639_v2 = vadd.f32 %v2637_v63, %v3304_v12  ;;  %v2640_v3 = vadd.f32 %v2638_v0, %v3306_v13 }
 0xa4d   : > { %2641 = vst [vmem:[%s433_s26] sm:$0xff] %v2639_v2  ;;  %2642 = vst [vmem:[%s433_s26 + $0x8] sm:$0xff] %v2640_v3 }
 0xa4e PF: > { %s22_s21 = sadd.s32 1, %s3177_s21  }
 0xa4f   : > { %p19_p4 = scmp.ge.s32.totalorder %s22_s21, 4  }
 0xa51   :  { %21 = sbr.rel (!%p19_p4) target bundleno = 1 (0x1), region = 101 }

// kernel: forward.9
= control target key start
LH: loop header
LB: loop body
LE: loop exit
PB: predicated region body
PF: predicated region fallthrough
CT: control target
= control target key end

     0   :  { %s3197_s0 = inlined_call_operand.vmem [shape: f32[2,16,128], index: 0, kind: input, shape index: {}]   ;;  %s3198_s1 = inlined_call_operand.vmem [shape: f32[2,16,128], index: 1, kind: input, shape index: {}]   ;;  %s3199_s2 = inlined_call_operand.vmem [shape: f32[2,16,128], index: 2, kind: input, shape index: {}]   ;;  %s3200_s3 = inlined_call_operand.vmem [shape: bf16[128,96], index: 3, kind: input, shape index: {}]   ;;  %s3201_s4 = inlined_call_operand.vmem [shape: bf16[128,96], index: 4, kind: input, shape index: {}]   ;;  %s3202_s5 = inlined_call_operand.vmem [shape: bf16[128,96], index: 5, kind: input, shape index: {}]   ;;  %s3203_s6 = inlined_call_operand.vmem [shape: f32[1,96], index: 6, kind: input, shape index: {}]   ;;  %s3204_s7 = inlined_call_operand.vmem [shape: bf16[96,128], index: 7, kind: input, shape index: {}]   ;;  %s3205_s8 = inlined_call_operand.vmem [shape: bf16[96,128], index: 8, kind: input, shape index: {}]   ;;  %s3206_s9 = inlined_call_operand.vmem [shape: bf16[96,128], index: 9, kind: input, shape index: {}]   ;;  %s3207_s10 = inlined_call_operand.vmem [shape: f32[3,1,128], index: 10, kind: input, shape index: {}]   ;;  %s3208_s11 = inlined_call_operand.vmem [shape: bf16[128,96], index: 11, kind: input, shape index: {}]   ;;  %s3209_s12 = inlined_call_operand.vmem [shape: f32[1,96], index: 12, kind: input, shape index: {}]   ;;  %s3210_s13 = inlined_call_operand.vmem [shape: f32[2,1,192], index: 13, kind: input, shape index: {}]   ;;  %s3211_s14 = inlined_call_operand.vmem [shape: bf16[192,192], index: 14, kind: input, shape index: {}]   ;;  %s3212_s15 = inlined_call_operand.vmem [shape: f32[1,192], index: 15, kind: input, shape index: {}]   ;;  %s3213_s16 = inlined_call_operand.vmem [shape: bf16[192,40], index: 16, kind: input, shape index: {}]   ;;  %s3214_s17 = inlined_call_operand.vmem [shape: f32[1,40], index: 17, kind: input, shape index: {}]   ;;  %s3215_s18 = inlined_call_operand.hbm [shape: f32[2,1,40], index: 18, kind: output, shape index: {0}]   ;;  %s3216_s19 = inlined_call_operand.vmem [shape: f32[2,1,192], index: 19, kind: output, shape index: {1}]  }
   0x1   :  { %3227 = sst [smem:[#allocation12_spill]] %s3197_s0 }
   0x2   :  { %3228 = sst [smem:[#allocation13_spill]] %s3198_s1 }
   0x3   :  { %3229 = sst [smem:[#allocation14_spill]] %s3199_s2 }
   0x4   :  { %3230 = sst [smem:[#allocation15_spill]] %s3200_s3 }
   0x5   :  { %3231 = sst [smem:[#allocation16_spill]] %s3214_s17 }
   0x6   :  { %3232 = sst [smem:[#allocation17_spill]] %s3215_s18 }
   0x7   :  { %25 = vsyncpa [#allocation3], 0 }
   0x8   :  { %27 = vsyncpa [#allocation3 + $0x1], 0  ;;  %s2665_s0 = smov 0   ;;  %s2667_s30 = smov 0  }
   0x9   :  { %s2669_s20 = smov 0   ;;  %s2671_s21 = smov 0  }
   0xa LB: > { %3233 = sst [smem:[#allocation5_spill]] %s2545_s0  ;;  %s2686_s1 = sadd.s32 4294967295, %s2557_s21   ;;  %s2557_s21 = sphi %s2671_s21, %s3253_s21   ;;  %s2553_s20 = sphi %s2669_s20, %s3255_s20   ;;  %s2549_s30 = sphi %s2667_s30, %s3257_s30   ;;  %s2545_s0 = sphi %s2665_s0, %s3256_s0  }
   0xb   : > { %3234 = sst [smem:[#allocation6_spill]] %s2553_s20  ;;  %s2041_s22 = sadd.s32 4294967294, %s2557_s21  }
   0xc   : > { %3235 = sst [smem:[#allocation7_spill]] %s2557_s21  ;;  %s2690_s2 = sadd.s32 1, %s2557_s21  }
   0xd   : > { %3236 = sst [smem:[#allocation8_spill]] %s2690_s2  ;;  %s433_s23 = sadd.s32 1, %s2553_s20 }
   0xe   : > { %s430_s24 = ssub.s32 %s2557_s21, %s2690_s2  ;;  %p443_p0 = scmp.ne.s32.totalorder %s2553_s20, %s2549_s30 }
   0xf   : > { %p431_p1 = scmp.eq.s32.totalorder %s430_s24, 0  ;;  %p444_p2 = scmp.eq.s32.totalorder %s2686_s1, 1 }
  0x10   : > { %p449_p3 = scmp.ne.s32.totalorder %s2549_s30, %s2545_s0  ;;  %p450_p4 = scmp.eq.s32.totalorder %s2041_s22, 1 }
  0x11   : > { %s2701_s25 = scalar_select %p431_p1, %s2553_s20, %s433_s23  }
  0x12   : > { %p2703_p5 = por %p444_p2, %p443_p0  ;;  %p2707_p6 = por %p450_p4, %p449_p3 }
  0x13   : > { %3237 = sst [smem:[#allocation9_spill]] %s2701_s25  ;;  %p2044_p7 = scmp.ge.s32.totalorder %s2557_s21, 1 }
  0x14   : > { %s3238_s3 = scalar_select %p2703_p5, 1, 0 }
  0x15   : > { %s3240_s26 = scalar_select %p2707_p6, 1, 0 }
  0x16   : > { %3239 = sst [smem:[#allocation10_spill]] %s3238_s3  ;;  %p563_p8 = scmp.lt.s32.totalorder %s2557_s21, 3 }
  0x17   : > { %3241 = sst [smem:[#allocation11_spill]] %s3240_s26 }
  0x18   : > { %p564_p9 = pnand %p2044_p7, %p563_p8 }
  0x19   : > { %v2383_v0 = vld [vmem:[%s3201_s4] sm:$0xff] (!%p564_p9)   ;;  %v2559_v1 = vmov (!%p564_p9), 0.0   ;;  %s3242_s23 = sld [smem:[#allocation15_spill]] (!%p564_p9)  ;;  %v2385_v3 = vld [vmem:[%s3201_s4 + $0x8] sm:$0xff] (!%p564_p9)   ;;  %vm2560_vm0 = vmmov (!%p564_p9), 0   ;;  %v2387_v5 = vld [vmem:[%s3201_s4 + $0x10] sm:$0xff] (!%p564_p9)  }
  0x1a   : > { %567 = sbr.rel (%p564_p9) target bundleno = 1486 (0x5ce), region = 92  ;;  %2211 = vmatprep.subr.bf16.mxu0 (!%p564_p9), %v2559_v1  ;;  %2231 = vmatprep.subr.bf16.mxu1 (!%p564_p9), %v2559_v1  ;;  %v2389_v7 = vld [vmem:[%s3201_s4 + $0x18] sm:$0xff] (!%p564_p9)   ;;  %p632_p10 = scmp.lt.s32.totalorder (!%p564_p9), %s2686_s1, 1  ;;  %v2391_v9 = vld [vmem:[%s3201_s4 + $0x20] sm:$0xff] (!%p564_p9)   ;;  %v2393_v11 = vld [vmem:[%s3201_s4 + $0x28] sm:$0xff] (!%p564_p9)   ;;  %vm989_vm1 = vcmask (!%p564_p9), 785408  }
  0x1b   : > { %2212 = vmatpush3.bf16.msra.mxu0 (!%p564_p9), %v2383_v0  ;;  %2227 = vmatprep.mubr.msk.bf16.mxu0 (!%p564_p9), %vm2560_vm0, %v2559_v1  ;;  %s3243_s26 = sld [smem:[#allocation13_spill]] (!%p564_p9)  ;;  %v2395_v13 = vld [vmem:[%s3201_s4 + $0x30] sm:$0xff] (!%p564_p9)   ;;  %s3244_s3 = sld [smem:[#allocation12_spill]] (!%p564_p9)  ;;  %v2397_v15 = vld [vmem:[%s3201_s4 + $0x38] sm:$0xff] (!%p564_p9)   ;;  %v2399_v21 = vld [vmem:[%s3202_s5] sm:$0xff] (!%p564_p9)   ;;  %vm1729_vm6 = vcmask (!%p564_p9), 523264  }
  0x1c   : > { %2213 = vmatprep.subr.bf16.mxu0 (!%p564_p9), %v2559_v1  ;;  %2247 = vmatprep.mubr.msk.bf16.mxu1 (!%p564_p9), %vm2560_vm0, %v2559_v1  ;;  %v2400_v24 = vld [vmem:[%s3202_s5 + $0x8] sm:$0xff] (!%p564_p9)   ;;  %v2401_v25 = vld [vmem:[%s3202_s5 + $0x10] sm:$0xff] (!%p564_p9)   ;;  %v2402_v26 = vld [vmem:[%s3202_s5 + $0x18] sm:$0xff] (!%p564_p9)   ;;  %s624_s27 = sand.u32 (!%p564_p9), 1, %s2549_s30   ;;  %s3246_s25 = sld [smem:[#allocation16_spill]] (!%p564_p9)  ;;  %vm1916_vm8 = vcmask (!%p564_p9), 319488  }
  0x1d   : > { %v2403_v27 = vld [vmem:[%s3202_s5 + $0x20] sm:$0xff] (!%p564_p9)   ;;  %v2404_v28 = vld [vmem:[%s3202_s5 + $0x28] sm:$0xff] (!%p564_p9)   ;;  %v2405_v29 = vld [vmem:[%s3202_s5 + $0x30] sm:$0xff] (!%p564_p9)   ;;  %s2148_s21 = sshll.u32 (!%p564_p9), %s2686_s1, 4 }
  0x1e   : > { %v2406_v30 = vld [vmem:[%s3202_s5 + $0x38] sm:$0xff] (!%p564_p9)   ;;  %v2407_v34 = vld [vmem:[%s3205_s8] sm:$0xff] (!%p564_p9)   ;;  %v2408_v35 = vld [vmem:[%s3205_s8 + $0x8] sm:$0xff] (!%p564_p9)  }
  0x1f   : > { %v2384_v2 = vld [vmem:[%s3242_s23] sm:$0xff] (!%p564_p9)   ;;  %v2386_v4 = vld [vmem:[%s3242_s23 + $0x8] sm:$0xff] (!%p564_p9)   ;;  %2214 = vmatpush3.bf16.msra.mxu0 (!%p564_p9), %v2385_v3  ;;  %v2388_v6 = vld [vmem:[%s3242_s23 + $0x10] sm:$0xff] (!%p564_p9)  }
  0x20   : > { %2232 = vmatpush3.bf16.msra.mxu1 (!%p564_p9), %v2384_v2  ;;  %2215 = vmatprep.subr.bf16.mxu0 (!%p564_p9), %v2559_v1  ;;  %v2390_v8 = vld [vmem:[%s3242_s23 + $0x18] sm:$0xff] (!%p564_p9)   ;;  %v2392_v10 = vld [vmem:[%s3242_s23 + $0x20] sm:$0xff] (!%p564_p9)   ;;  %v2394_v12 = vld [vmem:[%s3242_s23 + $0x28] sm:$0xff] (!%p564_p9)  }
  0x21   : > { %2233 = vmatprep.subr.bf16.mxu1 %v2559_v1  ;;  %s2754_s20 = scalar_select %p632_p10, %s2686_s1, 1  ;;  %v2396_v14 = vld [vmem:[%s3242_s23 + $0x30] sm:$0xff]   ;;  %v2398_v17 = vld [vmem:[%s3242_s23 + $0x38] sm:$0xff]   ;;  %v2411_v38 = vld [vmem:[%s3205_s8 + $0x20] sm:$0xff]  }
  0x22   : > { %v2409_v36 = vld [vmem:[%s3205_s8 + $0x10] sm:$0xff]   ;;  %v2410_v37 = vld [vmem:[%s3205_s8 + $0x18] sm:$0xff]   ;;  %v2412_v39 = vld [vmem:[%s3205_s8 + $0x28] sm:$0xff]   ;;  %s1919_s1 = scalar_lea.sflag [#allocation3], %s624_s27 }
  0x23   : > { %2216 = vmatpush3.bf16.msra.mxu0 %v2387_v5  ;;  %s2765_s2 = sshll.u32 %s2754_s20, 4  ;;  %v2417_v40 = vld [vmem:[%s3206_s9] sm:$0xff]   ;;  %v2419_v41 = vld [vmem:[%s3206_s9 + $0x8] sm:$0xff]   ;;  %v2421_v42 = vld [vmem:[%s3206_s9 + $0x10] sm:$0xff]   ;;  %s2051_s18 = sshll.u32 %s2754_s20, 1 }
  0x24   : > { %2234 = vmatpush3.bf16.msra.mxu1 %v2386_v4  ;;  %2217 = vmatprep.subr.bf16.mxu0 %v2559_v1  ;;  %s641_s0 = scalar_lea.vmem %s3243_s26, %s2765_s2  ;;  %s636_s17 = scalar_lea.vmem %s3244_s3, %s2765_s2  ;;  %v2422_v43 = vld [vmem:[%s3206_s9 + $0x18] sm:$0xff]   ;;  %v2423_v44 = vld [vmem:[%s3206_s9 + $0x20] sm:$0xff]   ;;  %v2424_v45 = vld [vmem:[%s3206_s9 + $0x28] sm:$0xff]  }
  0x25   : > { %2235 = vmatprep.subr.bf16.mxu1 %v2559_v1  ;;  %v671_v16 = vld [vmem:[%s641_s0] sm:$0xff]  ;;  %v672_v18 = vld [vmem:[%s641_s0 + $0x8] sm:$0xff]  ;;  %s2562_s0 = smov 96   ;;  %s625_s3 = scalar_lea.vmem [#allocation2], %s624_s27 }
  0x26   : > { %v652_v19 = vld [vmem:[%s636_s17] sm:$0xff]  ;;  %v653_v20 = vld [vmem:[%s636_s17 + $0x8] sm:$0xff]  ;;  %v689_v22 = vpack.c.bf16 %v672_v18, %v671_v16  ;;  %s3245_s17 = sld [smem:[#allocation14_spill]]  ;;  %s3248_s20 = sld [smem:[#allocation17_spill]] }
  0x27   : > { %2218 = vmatpush3.bf16.msra.mxu0 %v2389_v7  ;;  %v670_v23 = vpack.c.bf16 %v653_v20, %v652_v19  ;;  %v2076_v57 = vld [vmem:[%s3203_s6] ss:$0 sm:$0xff]  ;;  %v2414_v20 = vld [vmem:[%s3204_s7 + $0x8] sm:$0xff]   ;;  %s2564_s26 = smov [#allocation2]  }
  0x28   : > { %2236 = vmatpush3.bf16.msra.mxu1 %v2388_v6  ;;  %2219 = vmatprep.subr.bf16.mxu0 %v2559_v1  ;;  %s2499_s28 = sshll.u32 %s2564_s26, 4  ;;  %s2500_s28 = int_to_ptr.vmem [resolvable:$false] %s2499_s28 }
  0x29   : > { %2237 = vmatprep.subr.bf16.mxu1 %v2559_v1 }
  0x2b   : > { %2220 = vmatpush3.bf16.msra.mxu0 %v2391_v9 }
  0x2c   : > { %2238 = vmatpush3.bf16.msra.mxu1 %v2390_v8  ;;  %2221 = vmatprep.subr.bf16.mxu0 %v2559_v1  ;;  %s646_s29 = scalar_lea.vmem %s3245_s17, %s2765_s2  ;;  %s3249_s22 = smov %s3248_s20 }
  0x2d   : > { %2239 = vmatprep.subr.bf16.mxu1 %v2559_v1  ;;  %v868_v31 = vld [vmem:[%s646_s29] sm:$0xff]  ;;  %v869_v32 = vld [vmem:[%s646_s29 + $0x8] sm:$0xff]  ;;  %s3155_s24 = scalar_lea.hbm %s3248_s20, %s2148_s21 }
  0x2e   : > { %v886_v33 = vpack.c.bf16 %v869_v32, %v868_v31  ;;  %v2418_v31 = vld [vmem:[%s3204_s7 + $0x20] sm:$0xff]  }
  0x2f   : > { %2222 = vmatpush3.bf16.msra.mxu0 %v2393_v11 }
  0x30   : > { %2240 = vmatpush3.bf16.msra.mxu1 %v2392_v10  ;;  %2223 = vmatprep.subr.bf16.mxu0 %v2559_v1 }
  0x31   : > { %2241 = vmatprep.subr.bf16.mxu1 %v2559_v1 }
  0x33   : > { %2224 = vmatpush3.bf16.msra.mxu0 %v2395_v13 }
  0x34   : > { %2242 = vmatpush3.bf16.msra.mxu1 %v2394_v12  ;;  %2225 = vmatprep.subr.bf16.mxu0 %v2559_v1 }
  0x35   : > { %2243 = vmatprep.subr.bf16.mxu1 %v2559_v1 }
  0x37   : > { %2226 = vmatpush3.bf16.msra.mxu0 %v2397_v15 }
  0x38   : > { %2244 = vmatpush3.bf16.msra.mxu1 %v2396_v14  ;;  %2251 = vmatprep.subr.bf16.mxu0 %v2559_v1  ;;  %v2413_v14 = vld [vmem:[%s3204_s7] sm:$0xff]  }
  0x39   : > { %2245 = vmatprep.subr.bf16.mxu1 %v2559_v1 }
  0x3a   : > { %2228 = vmatmul.mubr.bf16.vlgmr.msra.gmra.mrb[0].mxu0 %v689_v22 }
  0x3b   : > { %2252 = vmatpush3.bf16.msra.mxu0 %v2399_v21  ;;  %2267 = vmatprep.mubr.msk.bf16.mxu0 %vm2560_vm0, %v2559_v1 }
  0x3c   : > { %2246 = vmatpush3.bf16.msra.mxu1 %v2398_v17  ;;  %2253 = vmatprep.subr.bf16.mxu0 %v2559_v1 }
  0x3d   : > { %2271 = vmatprep.subr.bf16.mxu1 %v2559_v1 }
  0x3f   : > { %2248 = vmatmul.mubr.bf16.vlgmr.msra.gmra.mrb[0].mxu1 %v670_v23  ;;  %2254 = vmatpush3.bf16.msra.mxu0 %v2400_v24 }
  0x40   : > { %2283 = vmatprep.mubr.msk.bf16.mxu1 %vm2560_vm0, %v2559_v1  ;;  %2255 = vmatprep.subr.bf16.mxu0 %v2559_v1 }
  0x41   : > { %2272 = vmatpush3.bf16.msra.mxu1 %v2407_v34  ;;  %v2420_v34 = vld [vmem:[%s3204_s7 + $0x28] sm:$0xff]  }
  0x42   : > { %2273 = vmatprep.subr.bf16.mxu1 %v2559_v1 }
  0x43   : > { %2256 = vmatpush3.bf16.msra.mxu0 %v2401_v25  ;;  %v2415_v25 = vld [vmem:[%s3204_s7 + $0x10] sm:$0xff]  }
  0x44   : > { %2257 = vmatprep.subr.bf16.mxu0 %v2559_v1 }
  0x45   : > { %2274 = vmatpush3.bf16.msra.mxu1 %v2408_v35 }
  0x46   : > { %2275 = vmatprep.subr.bf16.mxu1 %v2559_v1 }
  0x47   : > { %2258 = vmatpush3.bf16.msra.mxu0 %v2402_v26 }
  0x48   : > { %2259 = vmatprep.subr.bf16.mxu0 %v2559_v1 }
  0x49   : > { %2276 = vmatpush3.bf16.msra.mxu1 %v2409_v36 }
  0x4a   : > { %2277 = vmatprep.subr.bf16.mxu1 %v2559_v1 }
  0x4b   : > { %2260 = vmatpush3.bf16.msra.mxu0 %v2403_v27 }
  0x4c   : > { %2261 = vmatprep.subr.bf16.mxu0 %v2559_v1 }
  0x4d   : > { %2278 = vmatpush3.bf16.msra.mxu1 %v2410_v37 }
  0x4e   : > { %2279 = vmatprep.subr.bf16.mxu1 %v2559_v1 }
  0x4f   : > { %2262 = vmatpush3.bf16.msra.mxu0 %v2404_v28  ;;  %v2416_v28 = vld [vmem:[%s3204_s7 + $0x18] sm:$0xff]  }
  0x50   : > { %2263 = vmatprep.subr.bf16.mxu0 %v2559_v1 }
  0x51   : > { %2280 = vmatpush3.bf16.msra.mxu1 %v2411_v38 }
  0x52   : > { %2281 = vmatprep.subr.bf16.mxu1 %v2559_v1 }
  0x53   : > { %2264 = vmatpush3.bf16.msra.mxu0 %v2405_v29 }
  0x54   : > { %2265 = vmatprep.subr.bf16.mxu0 %v2559_v1 }
  0x55   : > { %2282 = vmatpush3.bf16.msra.mxu1 %v2412_v39 }
  0x56   : > { %2287 = vmatprep.subr.bf16.mxu1 %v2559_v1 }
  0x57   : > { %2266 = vmatpush3.bf16.msra.mxu0 %v2406_v30 }
  0x58   : > { %2303 = vmatprep.subr.bf16.mxu0 %v2559_v1 }
  0x5a   : > { %2268 = vmatmul.mubr.bf16.vlgmr.msra.gmra.mrb[4].mxu0 %v886_v33 }
  0x5b   : > { %2315 = vmatprep.mubr.msk.bf16.mxu0 %vm2560_vm0, %v2559_v1  ;;  %2304 = vmatpush3.bf16.msra.mxu0 %v2417_v40 }
  0x5c   : > { %2305 = vmatprep.subr.bf16.mxu0 %v2559_v1 }
  0x5f   : > { %2306 = vmatpush3.bf16.msra.mxu0 %v2419_v41 }
  0x60   : > { %2307 = vmatprep.subr.bf16.mxu0 %v2559_v1 }
  0x63   : > { %2308 = vmatpush3.bf16.msra.mxu0 %v2421_v42 }
  0x64   : > { %2309 = vmatprep.subr.bf16.mxu0 %v2559_v1 }
  0x67   : > { %2310 = vmatpush3.bf16.msra.mxu0 %v2422_v43  ;;  %v2425_v43 = vld [vmem:[%s3208_s11] sm:$0xff]  }
  0x68   : > { %2311 = vmatprep.subr.bf16.mxu0 %v2559_v1 }
  0x6b   : > { %2312 = vmatpush3.bf16.msra.mxu0 %v2423_v44  ;;  %v2426_v44 = vld [vmem:[%s3208_s11 + $0x8] sm:$0xff]  }
  0x6c   : > { %2313 = vmatprep.subr.bf16.mxu0 %v2559_v1 }
  0x6f   : > { %2314 = vmatpush3.bf16.msra.mxu0 %v2424_v45  ;;  %v2427_v45 = vld [vmem:[%s3208_s11 + $0x10] sm:$0xff]  }
 0x10d   : > { %v772_v46 = vpop.f32.mrb[0].mxu0 }
 0x10e   : > { %v2229_v48 = vpop.f32.mrb[1].mxu0 }
 0x10f   : > { %v775_v51 = vpop.f32.mrb[2].mxu0  ;;  %v2430_v48 = vld [vmem:[%s3208_s11 + $0x28] sm:$0xff]  }
 0x110   : > { %v2230_v53 = vpop.f32.mrb[3].mxu0 }
 0x112   : > { %v861_v47 = vpop.f32.mrb[0].mxu1 }
 0x113   : > { %v862_v49 = vadd.f32 %v861_v47, %v772_v46  ;;  %v2249_v50 = vpop.f32.mrb[1].mxu1  ;;  %v2428_v46 = vld [vmem:[%s3208_s11 + $0x18] sm:$0xff]   ;;  %v2429_v47 = vld [vmem:[%s3208_s11 + $0x20] sm:$0xff]  }
 0x114   : > { %v864_v52 = vpop.f32.mrb[2].mxu1  ;;  %v2432_v50 = vld [vmem:[%s3208_s11 + $0x38] sm:$0xff]  }
 0x115   : > { %v865_v54 = vadd.f32 %v864_v52, %v775_v51  ;;  %v2250_v55 = vpop.f32.mrb[3].mxu1 }
 0x116   : > { %v1131_v55 = vlaneseq }
 0x118   : > { %vm1568_vm7 = vcmp.lt.s32.totalorder %v1131_v55, 192 }
 0x12d   : > { %v969_v56 = vpop.f32.mrb[4].mxu0 }
 0x12e   : > { %v976_v58 = vadd.f32 %v969_v56, %v862_v49  ;;  %v2269_v59 = vpop.f32.mrb[5].mxu0  ;;  %v2431_v49 = vld [vmem:[%s3208_s11 + $0x30] sm:$0xff]   ;;  %v2967_v56 = vshrl.u32 %v1131_v55, 7  ;;  %v1597_v55 = vld [vmem:[%s3212_s15] sm:$0x3] }
 0x12f   : > { %v972_v60 = vpop.f32.mrb[6].mxu0 }
 0x130   : > { %v985_v61 = vadd.f32 %v2076_v57, %v976_v58  ;;  %v977_v62 = vadd.f32 %v972_v60, %v865_v54  ;;  %v2270_v63 = vpop.f32.mrb[7].mxu0 }
 0x132   : > { %v2890_v0 = vmax.f32 %v985_v61, 0.0  ;;  %v986_v2 = vadd.f32 %v2076_v57, %v977_v62  ;;  %v2970_v57 = vsub.s32 0, %v2967_v56 }
 0x134   : > { %v2892_v3 = vmax.f32 %v986_v2, 0.0  ;;  %v990_v4 = vsel %vm989_vm1, %v2890_v0, 0.0 }
 0x136   : > { %v991_v5 = vsel %vm989_vm1, %v2892_v3, 0.0  ;;  %v1038_v36 = vpack.c.bf16 %v2892_v3, %v2890_v0 }
 0x137   : > { %v992_v6 = vadd.f32 %v991_v5, %v990_v4 }
 0x139   : > { %v993_v7 = vrot.slane %v992_v6, 4 }
 0x13b   : > { %v994_v8 = vadd.f32 %v993_v7, %v992_v6  ;;  %v2098_v6 = vld [vmem:[%s3207_s10] ss:$0 sm:$0xff] }
 0x13d   : > { %v995_v9 = vrot.slane %v994_v8, 2 }
 0x13f   : > { %v996_v10 = vadd.f32 %v995_v9, %v994_v8 }
 0x141   : > { %v997_v11 = vrot.slane %v996_v10, 1 }
 0x143   : > { %v998_v12 = vadd.f32 %v997_v11, %v996_v10 }
 0x145   : > { %v1000_v13 = vmul.f32 0.0625, %v998_v12 }
 0x147   : > { %v1001_v15 = vsub.f32 %v2890_v0, %v1000_v13  ;;  %v1002_v16 = vsub.f32 %v2892_v3, %v1000_v13  ;;  %v1051_v17 = vpack.c.bf16 %v1000_v13, %v1000_v13  ;;  %v2099_v13 = vld [vmem:[%s3207_s10 + $0x1] ss:$0 sm:$0xff] }
 0x149   : > { %v1003_v18 = vmul.f32 %v1001_v15, %v1001_v15  ;;  %v1004_v19 = vmul.f32 %v1002_v16, %v1002_v16  ;;  %2284 = vmatmul.mubr.msk.bf16.vlgmr.msra.gmra.mrb[4].mxu1 %vm989_vm1, %v1051_v17  ;;  %v2100_v16 = vld [vmem:[%s3207_s10 + $0x2] ss:$0 sm:$0xff] }
 0x14a   : > { %2288 = vmatpush3.bf16.msra.mxu1 %v2413_v14  ;;  %2299 = vmatprep.mubr.msk.bf16.mxu1 %vm2560_vm0, %v2559_v1 }
 0x14b   : > { %v1005_v21 = vsel %vm989_vm1, %v1003_v18, 0.0  ;;  %v1006_v22 = vsel %vm989_vm1, %v1004_v19, 0.0  ;;  %2289 = vmatprep.subr.bf16.mxu1 %v2559_v1 }
 0x14c   : > { %v1007_v23 = vadd.f32 %v1006_v22, %v1005_v21 }
 0x14e   : > { %v1008_v24 = vrot.slane %v1007_v23, 4  ;;  %2290 = vmatpush3.bf16.msra.mxu1 %v2414_v20 }
 0x14f   : > { %2291 = vmatprep.subr.bf16.mxu1 %v2559_v1 }
 0x150   : > { %v1009_v26 = vadd.f32 %v1008_v24, %v1007_v23  ;;  %v2433_v24 = vld [vmem:[%s3211_s14] ss:$8 sps:$4 sm:$0xff]  }
 0x152   : > { %v1010_v27 = vrot.slane %v1009_v26, 2  ;;  %2292 = vmatpush3.bf16.msra.mxu1 %v2415_v25  ;;  %v2435_v25 = vld [vmem:[%s3211_s14 + $0x4] ss:$8 sps:$4 sm:$0xff]  }
 0x153   : > { %2293 = vmatprep.subr.bf16.mxu1 %v2559_v1  ;;  %1733 = vmatprep.subr.bf16.mxu0 %v2435_v25 }
 0x154   : > { %v1011_v29 = vadd.f32 %v1010_v27, %v1009_v26  ;;  %v2438_v26 = vld [vmem:[%s3211_s14 + $0x14] ss:$8 sps:$4 sm:$0xff]   ;;  %v2436_v27 = vld [vmem:[%s3211_s14 + $0x10] ss:$8 sps:$4 sm:$0xff]  }
 0x156   : > { %v1012_v30 = vrot.slane %v1011_v29, 1  ;;  %2294 = vmatpush3.bf16.msra.mxu1 %v2416_v28  ;;  %v2441_v28 = vld [vmem:[%s3211_s14 + $0x24] ss:$8 sps:$4 sm:$0xff]  }
 0x157   : > { %2295 = vmatprep.subr.bf16.mxu1 %v2559_v1 }
 0x158   : > { %v1013_v32 = vadd.f32 %v1012_v30, %v1011_v29  ;;  %v2439_v29 = vld [vmem:[%s3211_s14 + $0x20] ss:$8 sps:$4 sm:$0xff]   ;;  %v2444_v30 = vld [vmem:[%s3211_s14 + $0x34] ss:$8 sps:$4 sm:$0xff]  }
 0x15a   : > { %v1014_v33 = vmul.f32 0.06666667, %v1013_v32  ;;  %2296 = vmatpush3.bf16.msra.mxu1 %v2418_v31  ;;  %v2442_v31 = vld [vmem:[%s3211_s14 + $0x30] ss:$8 sps:$4 sm:$0xff]   ;;  %v2447_v32 = vld [vmem:[%s3211_s14 + $0x44] ss:$8 sps:$4 sm:$0xff]  }
 0x15b   : > { %2297 = vmatprep.subr.bf16.mxu1 %v2559_v1 }
 0x15c   : > { %v1015_v35 = vmax.f32 %v1014_v33, 0.0001  ;;  %v2445_v33 = vld [vmem:[%s3211_s14 + $0x40] ss:$8 sps:$4 sm:$0xff]  }
 0x15e   : > { %2298 = vmatpush3.bf16.msra.mxu1 %v2420_v34  ;;  %2481 = vrsqrt.f32 %v1015_v35  ;;  %vm1018_vm2 = vcmp.eq.f32.partialorder %v1015_v35, inf  ;;  %v1021_v39 = vand.u32 2147483648, %v1015_v35  ;;  %vm1020_vm3 = vcmp.eq.f32.partialorder %v1015_v35, 0.0  ;;  %v2450_v34 = vld [vmem:[%s3211_s14 + $0x54] ss:$8 sps:$4 sm:$0xff]  }
 0x15f   : > { %2319 = vmatprep.subr.bf16.mxu1 %v2559_v1 }
 0x161   : > { %2300 = vmatmul.mubr.msk.bf16.vlgmr.msra.gmra.mrb[8].mxu1 %vm989_vm1, %v1038_v36  ;;  %v2453_v36 = vld [vmem:[%s3211_s14 + $0x64] ss:$8 sps:$4 sm:$0xff]  }
 0x162   : > { %2335 = vmatprep.mubr.msk.bf16.mxu1 %vm2560_vm0, %v2559_v1  ;;  %2320 = vmatpush3.bf16.msra.mxu1 %v2425_v43  ;;  %v2454_v43 = vld [vmem:[%s3211_s14 + $0x70] ss:$8 sps:$4 sm:$0xff]  }
 0x163   : > { %2321 = vmatprep.subr.bf16.mxu1 %v2559_v1 }
 0x166   : > { %2322 = vmatpush3.bf16.msra.mxu1 %v2426_v44 }
 0x167   : > { %2323 = vmatprep.subr.bf16.mxu1 %v2559_v1 }
 0x168   : > { %v2482_v37 = vpop.eup %2481 }
 0x169   : > { %v1017_v38 = vmul.f32 %v2482_v37, %v1015_v35  ;;  %v2451_v37 = vld [vmem:[%s3211_s14 + $0x60] ss:$8 sps:$4 sm:$0xff]  }
 0x16a   : > { %2324 = vmatpush3.bf16.msra.mxu1 %v2427_v45  ;;  %v2459_v45 = vld [vmem:[%s3211_s14 + $0x84] ss:$8 sps:$4 sm:$0xff]  }
 0x16b   : > { %v1019_v40 = vsel %vm1018_vm2, %v1015_v35, %v1017_v38  ;;  %2325 = vmatprep.subr.bf16.mxu1 %v2559_v1  ;;  %v2448_v35 = vld [vmem:[%s3211_s14 + $0x50] ss:$8 sps:$4 sm:$0xff]   ;;  %v2101_v38 = vld [vmem:[%s3209_s12] ss:$0 sm:$0xff] }
 0x16c   : > { %v1022_v41 = vsel %vm1020_vm3, %v1021_v39, %v1019_v40  ;;  %v2456_v39 = vld [vmem:[%s3211_s14 + $0x74] ss:$8 sps:$4 sm:$0xff]  }
 0x16d   : > { %v1227_v42 = vpack.c.bf16 %v1022_v41, %v1022_v41 }
 0x16e   : > { %2326 = vmatpush3.bf16.msra.mxu1 %v2428_v46 }
 0x16f   : > { %2316 = vmatmul.mubr.msk.bf16.vlgmr.msra.gmra.mrb[8].mxu0 %vm989_vm1, %v1227_v42  ;;  %2327 = vmatprep.subr.bf16.mxu1 %v2559_v1 }
 0x170   : > { %1734 = vmatpush1.bf16.msra.mxu0 %v2433_v24 }
 0x171   : > { %1735 = vmatprep.subr.bf16.mxu0 %v2438_v26 }
 0x172   : > { %2328 = vmatpush3.bf16.msra.mxu1 %v2429_v47 }
 0x173   : > { %2329 = vmatprep.subr.bf16.mxu1 %v2559_v1 }
 0x174   : > { %1736 = vmatpush1.bf16.msra.mxu0 %v2436_v27 }
 0x175   : > { %1737 = vmatprep.subr.bf16.mxu0 %v2441_v28 }
 0x176   : > { %2330 = vmatpush3.bf16.msra.mxu1 %v2430_v48 }
 0x177   : > { %2331 = vmatprep.subr.bf16.mxu1 %v2559_v1 }
 0x178   : > { %1738 = vmatpush1.bf16.msra.mxu0 %v2439_v29 }
 0x179   : > { %1739 = vmatprep.subr.bf16.mxu0 %v2444_v30 }
 0x17a   : > { %2332 = vmatpush3.bf16.msra.mxu1 %v2431_v49 }
 0x17b   : > { %2333 = vmatprep.subr.bf16.mxu1 %v2559_v1 }
 0x17c   : > { %1740 = vmatpush1.bf16.msra.mxu0 %v2442_v31 }
 0x17d   : > { %1741 = vmatprep.subr.bf16.mxu0 %v2447_v32 }
 0x17e   : > { %2334 = vmatpush3.bf16.msra.mxu1 %v2432_v50  ;;  %v2457_v50 = vld [vmem:[%s3211_s14 + $0x80] ss:$8 sps:$4 sm:$0xff]  }
 0x180   : > { %1742 = vmatpush1.bf16.msra.mxu0 %v2445_v33 }
 0x181   : > { %1743 = vmatprep.subr.bf16.mxu0 %v2450_v34 }
 0x184   : > { %1744 = vmatpush1.bf16.msra.mxu0 %v2448_v35 }
 0x185   : > { %1745 = vmatprep.subr.bf16.mxu0 %v2453_v36 }
 0x188   : > { %1746 = vmatpush1.bf16.msra.mxu0 %v2451_v37 }
 0x189   : > { %1747 = vmatprep.subr.bf16.mxu0 %v2456_v39 }
 0x18c   : > { %1748 = vmatpush1.bf16.msra.mxu0 %v2454_v43 }
 0x18d   : > { %1749 = vmatprep.subr.bf16.mxu0 %v2459_v45  ;;  %v2463_v45 = vld [vmem:[%s3211_s14 + $0xa0] ss:$8 sps:$4 sm:$0xff]  }
 0x190   : > { %1750 = vmatpush1.bf16.msra.mxu0 %v2457_v50 }
 0x21c   : > { %v1125_v51 = vpop.f32.mrb[4].mxu1 }
 0x21d   : > { %v2285_v52 = vpop.f32.mrb[5].mxu1  ;;  %v1134_v58 = vrot.slane %v1125_v51, %v2970_v57 }
 0x21e   : > { %v1128_v53 = vpop.f32.mrb[6].mxu1  ;;  %v2462_v52 = vld [vmem:[%s3211_s14 + $0x94] ss:$8 sps:$4 sm:$0xff]  }
 0x21f   : > { %v2286_v54 = vpop.f32.mrb[7].mxu1  ;;  %1751 = vmatprep.subr.bf16.mxu0 %v2462_v52  ;;  %v2469_v52 = vld [vmem:[%s3213_s16] sm:$0xff]  }
 0x220   : > { %v2460_v54 = vld [vmem:[%s3211_s14 + $0x90] ss:$8 sps:$4 sm:$0xff]  }
 0x221   : > { %1752 = vmatpush1.bf16.msra.mxu0 %v2460_v54  ;;  %v2561_v54 = vmov 0  }
 0x222   : > { %1876 = vmatprep.subr.bf16.mxu1 %v2561_v54 }
 0x234   : > { %v1208_v59 = vpop.f32.mrb[8].mxu1 }
 0x235   : > { %v1209_v60 = vadd.f32 %v1208_v59, %v1134_v58  ;;  %v2301_v61 = vpop.f32.mrb[9].mxu1 }
 0x236   : > { %v1211_v62 = vpop.f32.mrb[10].mxu1 }
 0x237   : > { %v1212_v63 = vadd.f32 %v1211_v62, %v1134_v58  ;;  %v2302_v1 = vpop.f32.mrb[11].mxu1 }
 0x242   : > { %v1301_v2 = vpop.f32.mrb[8].mxu0 }
 0x243   : > { %v1310_v4 = vrot.slane %v1301_v2, %v2970_v57  ;;  %v2317_v5 = vpop.f32.mrb[9].mxu0 }
 0x244   : > { %v1304_v7 = vpop.f32.mrb[10].mxu0 }
 0x245   : > { %v1311_v8 = vadd.f32 %v1310_v4, %v1209_v60  ;;  %v1312_v9 = vadd.f32 %v1310_v4, %v1212_v63  ;;  %v2318_v10 = vpop.f32.mrb[11].mxu0 }
 0x247   : > { %v1319_v11 = vadd.f32 %v2098_v6, %v1311_v8  ;;  %v1320_v12 = vadd.f32 %v2098_v6, %v1312_v9 }
 0x249   : > { %v1321_v14 = vmax.f32 %v1319_v11, 0.0  ;;  %v1322_v15 = vmax.f32 %v1320_v12, 0.0 }
 0x24b   : > { %v1329_v17 = vmul.f32 %v2099_v13, %v1321_v14  ;;  %v1330_v18 = vmul.f32 %v2099_v13, %v1322_v15 }
 0x24d   : > { %v1337_v19 = vadd.f32 %v2100_v16, %v1329_v17  ;;  %v1338_v20 = vadd.f32 %v2100_v16, %v1330_v18  ;;  %v1492_v17 = vmul.f32 %v2890_v0, %v2890_v0  ;;  %v1493_v18 = vmul.f32 %v2892_v3, %v2892_v3 }
 0x24f   : > { %2483 = vtanh.f32 %v1337_v19 }
 0x250   : > { %2485 = vtanh.f32 %v1338_v20 }
 0x259   : > { %v2484_v21 = vpop.eup %2483 }
 0x25a   : > { %v2486_v22 = vpop.eup %2485 }
 0x25b   : > { %v1357_v23 = vpack.c.bf16 %v2486_v22, %v2484_v21 }
 0x25d   : > { %2336 = vmatmul.mubr.bf16.vlgmr.msra.gmra.mrb[12].mxu1 %v1357_v23 }
 0x25e   : > { %1877 = vmatpush1.bf16.msra.mxu1 %v2469_v52 }
 0x25f   : > { %1878 = vmatprep.subr.bf16.mxu1 %v2561_v54 }
 0x330   : > { %v1447_v40 = vpop.f32.mrb[12].mxu1 }
 0x331   : > { %v1448_v41 = vadd.f32 %v2101_v38, %v1447_v40  ;;  %v2337_v42 = vpop.f32.mrb[13].mxu1 }
 0x332   : > { %v1450_v44 = vpop.f32.mrb[14].mxu1 }
 0x333   : > { %v1451_v46 = vadd.f32 %v2101_v38, %v1450_v44  ;;  %v2338_v47 = vpop.f32.mrb[15].mxu1  ;;  %v1454_v48 = vsel %vm989_vm1, %v1448_v41, -inf  ;;  %v2465_v44 = vld [vmem:[%s3211_s14 + $0xa4] ss:$8 sps:$4 sm:$0xff]  }
 0x334   : > { %1753 = vmatprep.subr.bf16.mxu0 %v2465_v44  ;;  %v2466_v47 = vld [vmem:[%s3211_s14 + $0xb0] ss:$8 sps:$4 sm:$0xff]  }
 0x335   : > { %v1455_v49 = vsel %vm989_vm1, %v1451_v46, -inf  ;;  %1754 = vmatpush1.bf16.msra.mxu0 %v2463_v45 }
 0x336   : > { %v1456_v51 = vmax.f32 %v1454_v48, %v1455_v49 }
 0x338   : > { %v1457_v53 = vrot.slane %v1456_v51, 4 }
 0x33a   : > { %v1458_v58 = vmax.f32 %v1456_v51, %v1457_v53 }
 0x33c   : > { %v1459_v59 = vrot.slane %v1458_v58, 2 }
 0x33e   : > { %v1460_v60 = vmax.f32 %v1458_v58, %v1459_v59  ;;  %v2470_v58 = vld [vmem:[%s3213_s16 + $0x8] sm:$0xff]   ;;  %v2471_v59 = vld [vmem:[%s3213_s16 + $0x10] sm:$0xff]  }
 0x33f   : > { %1879 = vmatpush1.bf16.msra.mxu1 %v2470_v58 }
 0x340   : > { %v1461_v61 = vrot.slane %v1460_v60, 1  ;;  %1880 = vmatprep.subr.bf16.mxu1 %v2561_v54 }
 0x342   : > { %v1462_v62 = vmax.f32 %v1460_v60, %v1461_v61  ;;  %v2472_v60 = vld [vmem:[%s3213_s16 + $0x18] sm:$0xff]   ;;  %v2473_v61 = vld [vmem:[%s3213_s16 + $0x20] sm:$0xff]  }
 0x343   : > { %1881 = vmatpush1.bf16.msra.mxu1 %v2471_v59 }
 0x344   : > { %v1463_v63 = vsub.f32 %v1448_v41, %v1462_v62  ;;  %v1464_v1 = vsub.f32 %v1451_v46, %v1462_v62  ;;  %v2468_v46 = vld [vmem:[%s3211_s14 + $0xb4] ss:$8 sps:$4 sm:$0xff]   ;;  %1882 = vmatprep.subr.bf16.mxu1 %v2561_v54  ;;  %v2474_v62 = vld [vmem:[%s3213_s16 + $0x28] sm:$0xff]  }
 0x345   : > { %1755 = vmatprep.subr.bf16.mxu0 %v2468_v46 }
 0x346   : > { %v1465_v2 = vmul.f32 1.442695, %v1463_v63  ;;  %v1467_v4 = vmul.f32 1.442695, %v1464_v1  ;;  %1756 = vmatpush1.bf16.msra.mxu0 %v2466_v47  ;;  %v2475_v63 = vld [vmem:[%s3213_s16 + $0x30] sm:$0xff]   ;;  %v2476_v1 = vld [vmem:[%s3213_s16 + $0x38] sm:$0xff]  }
 0x347   : > { %1883 = vmatpush1.bf16.msra.mxu1 %v2472_v60 }
 0x348   : > { %2487 = vpow2.f32 %v1465_v2  ;;  %1884 = vmatprep.subr.bf16.mxu1 %v2561_v54  ;;  %v2477_v2 = vld [vmem:[%s3213_s16 + $0x40] sm:$0xff]  }
 0x349   : > { %2489 = vpow2.f32 %v1467_v4  ;;  %v2478_v4 = vld [vmem:[%s3213_s16 + $0x48] sm:$0xff]  }
 0x34b   : > { %1885 = vmatpush1.bf16.msra.mxu1 %v2473_v61 }
 0x34c   : > { %1886 = vmatprep.subr.bf16.mxu1 %v2561_v54 }
 0x34f   : > { %1887 = vmatpush1.bf16.msra.mxu1 %v2474_v62 }
 0x350   : > { %1888 = vmatprep.subr.bf16.mxu1 %v2561_v54 }
 0x352   : > { %v2488_v5 = vpop.eup %2487 }
 0x353   : > { %v2490_v6 = vpop.eup %2489  ;;  %v1469_v7 = vsel %vm989_vm1, %v2488_v5, 0.0  ;;  %1889 = vmatpush1.bf16.msra.mxu1 %v2475_v63 }
 0x354   : > { %v1470_v8 = vsel %vm989_vm1, %v2490_v6, 0.0  ;;  %1890 = vmatprep.subr.bf16.mxu1 %v2561_v54 }
 0x355   : > { %v1471_v9 = vadd.f32 %v1470_v8, %v1469_v7  ;;  %v1516_v7 = vld [vmem:[%s3210_s13 + $0x2] sm:$0x3]  ;;  %v2563_v8 = vmov 1966171168  }
 0x357   : > { %v1472_v10 = vrot.slane %v1471_v9, 4  ;;  %1891 = vmatpush1.bf16.msra.mxu1 %v2476_v1 }
 0x358   : > { %1892 = vmatprep.subr.bf16.mxu1 %v2561_v54 }
 0x359   : > { %v1473_v11 = vadd.f32 %v1472_v10, %v1471_v9  ;;  %v1552_v9 = vunpack.c.l.s4 %v2563_v8 }
 0x35b   : > { %v1474_v12 = vrot.slane %v1473_v11, 2  ;;  %1893 = vmatpush1.bf16.msra.mxu1 %v2477_v2 }
 0x35c   : > { %1894 = vmatprep.subr.bf16.mxu1 %v2561_v54 }
 0x35d   : > { %v1475_v13 = vadd.f32 %v1474_v12, %v1473_v11 }
 0x35f   : > { %v1476_v14 = vrot.slane %v1475_v13, 1  ;;  %1895 = vmatpush1.bf16.msra.mxu1 %v2478_v4 }
 0x360   : > { %1896 = vmatprep.subr.bf16.mxu1 %v2561_v54 }
 0x361   : > { %v1477_v15 = vadd.f32 %v1476_v14, %v1475_v13  ;;  %v1539_v14 = vrot.slane %v1516_v7, %v2970_v57 }
 0x363   : > { %2491 = vrcp.f32 %v1477_v15  ;;  %v1553_v15 = vunpack.c.0.s8 %v1552_v9 }
 0x36d   : > { %v2492_v16 = vpop.eup %2491 }
 0x36e   : > { %v1479_v19 = vmul.f32 %v2492_v16, %v2488_v5  ;;  %v1480_v20 = vmul.f32 %v2492_v16, %v2490_v6  ;;  %v1529_v5 = vsub.s32 1, %v2967_v56  ;;  %v1515_v6 = vld [vmem:[%s3210_s13] sm:$0x3] }
 0x36f   : > { %v1526_v11 = vrot.slane %v1515_v6, %v2970_v57 }
 0x370   : > { %v1481_v21 = vmul.f32 %v1479_v19, %v2890_v0  ;;  %v1482_v22 = vmul.f32 %v1480_v20, %v2892_v3  ;;  %v1494_v23 = vmul.f32 %v1492_v17, %v1479_v19  ;;  %v1495_v24 = vmul.f32 %v1493_v18, %v1480_v20 }
 0x371   : > { %v1530_v10 = vrot.slane %v1515_v6, %v1529_v5  ;;  %v1543_v12 = vrot.slane %v1516_v7, %v1529_v5 }
 0x372   : > { %v1483_v25 = vsel %vm989_vm1, %v1481_v21, 0.0  ;;  %v1484_v26 = vsel %vm989_vm1, %v1482_v22, 0.0  ;;  %v1496_v27 = vsel %vm989_vm1, %v1494_v23, 0.0  ;;  %v1497_v28 = vsel %vm989_vm1, %v1495_v24, 0.0 }
 0x373   : > { %v1485_v29 = vadd.f32 %v1484_v26, %v1483_v25  ;;  %v1498_v30 = vadd.f32 %v1497_v28, %v1496_v27  ;;  %v1556_v21 = vsub.s32 %v1553_v15, %v2967_v56  ;;  %v2479_v56 = vld [vmem:[%s3213_s16 + $0x50] sm:$0xff]   ;;  %v2480_v27 = vld [vmem:[%s3213_s16 + $0x58] sm:$0xff]   ;;  %v1722_v28 = vrot.slane %v1597_v55, %v2970_v57 }
 0x374   : > { %1897 = vmatpush1.bf16.msra.mxu1 %v2479_v56 }
 0x375   : > { %v1486_v31 = vrot.slane %v1485_v29, 4  ;;  %v1499_v32 = vrot.slane %v1498_v30, 4  ;;  %1898 = vmatprep.subr.bf16.mxu1 %v2561_v54 }
 0x377   : > { %v1487_v33 = vadd.f32 %v1486_v31, %v1485_v29  ;;  %v1500_v34 = vadd.f32 %v1499_v32, %v1498_v30  ;;  %v1726_v29 = vrot.slane %v1597_v55, %v1529_v5 }
 0x378   : > { %1899 = vmatpush1.bf16.msra.mxu1 %v2480_v27 }
 0x379   : > { %v1488_v35 = vrot.slane %v1487_v33, 2  ;;  %v1501_v0 = vrot.slane %v1500_v34, 2 }
 0x37b   : > { %v1489_v36 = vadd.f32 %v1488_v35, %v1487_v33  ;;  %v1502_v3 = vadd.f32 %v1501_v0, %v1500_v34 }
 0x37d   : > { %v1490_v37 = vrot.slane %v1489_v36, 1  ;;  %v1503_v38 = vrot.slane %v1502_v3, 1 }
 0x37f   : > { %v3060_v39 = vadd.f32 %v1490_v37, %v1489_v36  ;;  %v1504_v40 = vadd.f32 %v1503_v38, %v1502_v3  ;;  %v1800_v3 = vld [vmem:[%s3246_s25] sm:$0x1]  ;;  %s2501_s25 = scalar_lea.vmem %s2500_s28, 32 }
 0x381   : > { %v1505_v41 = vmul.f32 %v3060_v39, %v3060_v39 }
 0x383   : > { %v1506_v42 = vsub.f32 %v1504_v40, %v1505_v41 }
 0x385   : > { %v1507_v43 = vmax.f32 %v1506_v42, 0.0001 }
 0x387   : > { %2493 = vrsqrt.f32 %v1507_v43  ;;  %vm1510_vm4 = vcmp.eq.f32.partialorder %v1507_v43, inf  ;;  %v1513_v50 = vand.u32 2147483648, %v1507_v43  ;;  %vm1512_vm5 = vcmp.eq.f32.partialorder %v1507_v43, 0.0 }
 0x391   : > { %v2494_v48 = vpop.eup %2493 }
 0x392   : > { %v1509_v49 = vmul.f32 %v2494_v48, %v1507_v43 }
 0x394   : > { %v1511_v51 = vsel %vm1510_vm4, %v1507_v43, %v1509_v49 }
 0x395   : > { %v1514_v53 = vsel %vm1512_vm5, %v1513_v50, %v1511_v51 }
 0x396   : > { %1518 = vrot.lane.b32.xlu0 %v1514_v53, %s2562_s0  ;;  %s650_s0 = scalar_lea.vmem %s3216_s19, %s2051_s18 }
 0x408   : > { %v1519_v13 = vpop.permute.xlu0 %1518 }
 0x409   : > { %v1521_v16 = vsel %vm989_vm1, %v3060_v39, %v1519_v13  ;;  %v1534_v17 = vmul.f32 %v1530_v10, %v1519_v13 }
 0x40a   : > { %v1533_v18 = vmul.f32 %v1526_v11, %v1521_v16 }
 0x40b   : > { %v1547_v19 = vadd.f32 %v1543_v12, %v1534_v17 }
 0x40c   : > { %v1546_v20 = vadd.f32 %v1539_v14, %v1533_v18 }
 0x40d   : > { %v1596_v22 = vpack.c.bf16 %v1547_v19, %v1547_v19 }
 0x40e   : > { %v1550_v23 = vcombine.low %v1546_v20, %v1547_v19  ;;  %v1595_v24 = vpack.c.bf16 %v1546_v20, %v1546_v20 }
 0x40f   : > { %2134 = vmatprep.mubr.msk.bf16.mxu0 %vm1729_vm6, %v1596_v22 }
 0x410   : > { %v1557_v25 = vrot.slane %v1550_v23, %v1556_v21  ;;  %1766 = vmatmul.mubr.bf16.vlgmr.msra.gmra.mrb[12].mxu0 %v1595_v24 }
 0x412   : > { %v1564_v26 = vrot.slane %v1557_v25, %v1556_v21 }
 0x414   : > { %1570 = vst.msk [vmem:[%s650_s0] sm:$0x3] %vm1568_vm7, %v1564_v26  ;;  %s1935_s0 = sshll.u32 %s625_s3, 4  ;;  %s3157_s0 = int_to_ptr.vmem [resolvable:$true] %s1935_s0 }
 0x415   : > { %s2495_s2 = scalar_lea.vmem %s3157_s0, 16  ;;  %p2502_p0 = scmp.lt.s32.totalorder %s3157_s0, %s2500_s28 }
 0x416   : > { %p2496_p11 = scmp.ne.s32.totalorder %s3157_s0, %s2495_s2  ;;  %p2503_p1 = scmp.lt.s32.totalorder %s2501_s25, %s2495_s2 }
 0x418   : > { %p2497_p12 = pnand %p2496_p11, %p2703_p5  ;;  %p2504_p2 = por %p2503_p1, %p2502_p0 }
 0x41a   : > { %p2498_p13 = pneg %p2497_p12 }
 0x41c   : > { %p2505_p3 = pnand %p2504_p2, %p2498_p13 }
 0x4e3   : > { %v1767_v30 = vpop.f32.mrb[12].mxu0 }
 0x4e4   : > { %v1768_v31 = vadd.f32 %v1767_v30, %v1722_v28  ;;  %v1769_v32 = vpop.f32.mrb[13].mxu0 }
 0x4e5   : > { %v1770_v33 = vadd.f32 %v1769_v32, %v1726_v29  ;;  %v1771_v34 = vpop.f32.mrb[14].mxu0 }
 0x4e6   : > { %v1772_v35 = vpop.f32.mrb[15].mxu0  ;;  %v1798_v36 = vpack.c.bf16 %v1768_v31, %v1768_v31 }
 0x4e7   : > { %v1799_v0 = vpack.c.bf16 %v1770_v33, %v1770_v33 }
 0x4e9   : > { %2147 = vmatprep.mubr.msk.bf16.mxu1 %vm1729_vm6, %v1799_v0 }
 0x4ea   : > { %1909 = vmatmul.mubr.bf16.vlgmr.msra.gmra.mrb[16].mxu1 %v1798_v36 }
 0x5bd   : > { %v1910_v57 = vpop.f32.mrb[16].mxu1 }
 0x5be   : > { %v1911_v37 = vadd.f32 %v1910_v57, %v1800_v3  ;;  %v1912_v38 = vpop.f32.mrb[17].mxu1 }
 0x5bf   : > { %v1913_v39 = vpop.f32.mrb[18].mxu1 }
 0x5c0   : > { %v1914_v40 = vpop.f32.mrb[19].mxu1  ;;  %1917 = vst.msk [vmem:[%s625_s3] sm:$0x1] %vm1916_vm8, %v1911_v37 }
 0x5c1   : > { %2508 = shalt.err (!%p2505_p3)
}
 0x5c2   : > { %s2509_s27 = scalar_lea.hbm %s3155_s24, 16  ;;  %s2513_s17 = scalar_lea.hbm %s3249_s22, 32 }
 0x5c3   : > { %p2510_p4 = scmp.ne.s32.totalorder %s3155_s24, %s2509_s27  ;;  %p2514_p9 = scmp.lt.u32.totalorder %s3155_s24, %s3249_s22 }
 0x5c4   : > { %p2515_p10 = scmp.lt.u32.totalorder %s2513_s17, %s2509_s27  ;;  %p2517_p12 = scmp.lt.u32.totalorder %s2509_s27, %s3155_s24 }
 0x5c5   : > { %p2511_p7 = pnand %p2510_p4, %p2703_p5 }
 0x5c6   : > { %p2516_p11 = por %p2515_p10, %p2514_p9 }
 0x5c7   : > { %p2512_p8 = pneg %p2511_p7 }
 0x5c8   : > { %p2518_p13 = por %p2517_p12, %p2516_p11 }
 0x5ca   : > { %p2519_p0 = pnand %p2518_p13, %p2512_p8 }
 0x5cc   : > { %2522 = shalt.err (!%p2519_p0)
}
 0x5cd   : > { %2339 = dma.vmem_to_hbm [thread:$0]  (%p2703_p5), %s3157_s0, 16, %s3155_s24, %s1919_s1  }
 0x5ce PF: > { %s3250_s2 = sld [smem:[#allocation7_spill]]  ;;  %s3251_s26 = sld [smem:[#allocation5_spill]] }
 0x5d4   : > { %p2345_p1 = scmp.ge.s32.totalorder %s3250_s2, 2  ;;  %s1950_s25 = sand.u32 1, %s3251_s26  }
 0x5d5   : > { %s1951_s21 = scalar_lea.sflag [#allocation3], %s1950_s25 }
 0x5d6   : > { %p2342_p2 = pnand %p2345_p1, %p2707_p6 }
 0x5d8   : > { %2540 = dma.done.wait (!%p2342_p2), %s1951_s21, 16  }
 0x5d9   : > { %2542 = vsyncadd (!%p2342_p2), %s1951_s21, 4294967280  ;;  %s3253_s21 = sld [smem:[#allocation8_spill]]  ;;  %s3254_s27 = sld [smem:[#allocation6_spill]] }
 0x5da   : > { %s3255_s20 = sld [smem:[#allocation9_spill]]  ;;  %s3256_s0 = smov %s2549_s30 }
 0x5df   : > { %p30_p3 = scmp.ge.s32.totalorder %s3253_s21, 4   ;;  %s3257_s30 = smov %s3254_s27 }
 0x5e1   :  { %32 = sbr.rel (!%p30_p3) target bundleno = 10 (0xa), region = 145 }
 0x5e8   :  { %1962 = vsyncpa [#allocation3], 1 }
 0x5e9   :  { %1964 = vsyncpa [#allocation3 + $0x1], 1 }

</bundles_post_ra>
